<compile_context>
chip_gen: v5e
topology: v5e:2x2
jax: 0.10.0
libtpu: 0.0.40
codegen_flags: <defaults>
</compile_context>

<pallas_src>
import math
from functools import partial

import jax
import jax.numpy as jnp
from jax.experimental import pallas as pl
from jax.experimental.pallas import tpu as pltpu

EPS = 1e-5
LANE = 128
CDT = jnp.bfloat16                     # MXU operand dtype (f32 accumulation)
VMEM_LIMIT = 32 * 1024 * 1024          # explicit scoped-VMEM budget


# ---------------------------------------------------------------------------
# host-side helpers
# ---------------------------------------------------------------------------
def _round_up(x, m):
    return (x + m - 1) // m * m


def _pad_last(x, target):
    d = target - x.shape[-1]
    if d == 0:
        return x
    return jnp.pad(x, [(0, 0)] * (x.ndim - 1) + [(0, d)])


def _const_spec(shape, grid_rank):
    zeros = (0,) * len(shape)
    if grid_rank == 1:
        return pl.BlockSpec(shape, lambda i: zeros)
    return pl.BlockSpec(shape, lambda i, j: zeros)


def _batch_spec(shape, grid_rank):
    tail = (0,) * (len(shape) - 1)
    if grid_rank == 1:
        return pl.BlockSpec(shape, lambda i: (i,) + tail)
    return pl.BlockSpec(shape, lambda i, j: (i,) + tail)


def _pick_tile(total, cap=256):
    """Largest divisor of `total` that is <= cap and a multiple of 8."""
    if total <= cap:
        return total
    for t in range(cap, 7, -8):
        if total % t == 0:
            return t
    return total


# ---------------------------------------------------------------------------
# in-kernel building blocks (activations zero-padded in the lane dim to Cp)
# ---------------------------------------------------------------------------
def _ln_normalize(x, true_c):
    # Padded lanes of `x` are zero, so full-lane sums equal sums over the true
    # C channels; divide by true_c.  The affine (gamma, beta) is applied by the
    # caller (padded gamma/beta are zero so padded output lanes stay zero).
    inv = 1.0 / true_c
    mu = jnp.sum(x, axis=-1, keepdims=True) * inv
    var = jnp.sum(x * x, axis=-1, keepdims=True) * inv - mu * mu
    return (x - mu) * jax.lax.rsqrt(var + EPS)


def _mha(q, k, v, wo_ref, bo_ref, *, num_heads, dh, scale):
    # q: (Lq, Cp), k, v: (Lk, Cp); heads packed at their true dh within the
    # first C lanes (no per-head 128-lane padding).  Per-head work slices the
    # packed projections; the output projection is accumulated per head.
    out = None
    for h in range(num_heads):
        lo = h * dh
        qh = q[:, lo:lo + dh].astype(CDT)
        kh = k[:, lo:lo + dh].astype(CDT)
        vh = v[:, lo:lo + dh].astype(CDT)
        s = jax.lax.dot_general(qh, kh, (((1,), (1,)), ((), ())),
                                preferred_element_type=jnp.float32) * scale
        s = s - jnp.max(s, axis=-1, keepdims=True)
        p = jnp.exp(s)
        p = p * pl.reciprocal(jnp.sum(p, axis=-1, keepdims=True), approx=False)
        oh = jnp.dot(p.astype(CDT), vh, preferred_element_type=jnp.float32)
        contrib = jnp.dot(oh.astype(CDT), wo_ref[pl.ds(lo, dh), :],
                          preferred_element_type=jnp.float32)
        out = contrib if out is None else out + contrib
    return out + bo_ref[...]


def _attn_from_norm(nrm, x_pe, mem, mem_pe,
                    g_ref, b_ref, qkvw_ref, qkvb_ref, wo_ref, bo_ref,
                    *, num_heads, dh, scale, self_attn=False):
    # CrossAttention / SelfAttention with add_pe_to_qkv = (True, True, False):
    #   xn = LN(x); q = xn + x_pe; k = mem + mem_pe; v = mem; out = xn + MHA
    # `nrm` is the pre-affine normalized query (LN statistics may be shared).
    # TODO(synk): residual is taken from the *normed* query (xn + MHA); verify
    # against the reference CrossAttention/SelfAttention residual choice.
    xn = nrm * g_ref[...] + b_ref[...]
    if self_attn:
        mem, mem_pe = xn, x_pe                 # keys/values from the normed x
    q = jnp.dot((xn + x_pe).astype(CDT), qkvw_ref[0],
                preferred_element_type=jnp.float32) + qkvb_ref[0]
    k = jnp.dot((mem + mem_pe).astype(CDT), qkvw_ref[1],
                preferred_element_type=jnp.float32) + qkvb_ref[1]
    v = jnp.dot(mem.astype(CDT), qkvw_ref[2],
                preferred_element_type=jnp.float32) + qkvb_ref[2]
    return xn + _mha(q, k, v, wo_ref, bo_ref,
                     num_heads=num_heads, dh=dh, scale=scale)


def _ffn_block(x, g_ref, b_ref, w1_ref, b1_ref, w2_ref, b2_ref, *, true_c):
    xn = _ln_normalize(x, true_c) * g_ref[...] + b_ref[...]
    hid = jnp.maximum(
        jnp.dot(xn.astype(CDT), w1_ref[...],
                preferred_element_type=jnp.float32) + b1_ref[...], 0.0)
    return x + jnp.dot(hid.astype(CDT), w2_ref[...],
                       preferred_element_type=jnp.float32) + b2_ref[...]


# ---------------------------------------------------------------------------
# kernel A: read_from_pixel + self_attn + FFN  (query tokens, grid over B)
# ---------------------------------------------------------------------------
def _make_query_chain_kernel(num_heads, dh, true_c):
    scale = 1.0 / math.sqrt(dh)

    def kernel(obj_ref, objpe_ref, mem_ref, mempe_ref,
               g_a, b_a, qkvw_a, qkvb_a, wo_a, bo_a,
               g_s, b_s, qkvw_s, qkvb_s, wo_s, bo_s,
               g_f, b_f, w1_f, b1_f, w2_f, b2_f,
               out_ref):
        kw = dict(num_heads=num_heads, dh=dh, scale=scale)
        x = obj_ref[0].astype(jnp.float32)
        xpe = objpe_ref[0].astype(jnp.float32)
        mem = mem_ref[0].astype(jnp.float32)
        mpe = mempe_ref[0].astype(jnp.float32)
        # read_from_pixel (cross-attention of the query tokens into msk_value)
        x = _attn_from_norm(_ln_normalize(x, true_c), xpe, mem, mpe,
                            g_a, b_a, qkvw_a, qkvb_a, wo_a, bo_a, **kw)
        # query self-attention (keys/values from the normed x itself)
        x = _attn_from_norm(_ln_normalize(x, true_c), xpe, None, None,
                            g_s, b_s, qkvw_s, qkvb_s, wo_s, bo_s,
                            self_attn=True, **kw)
        # FFN (residual from the un-normed input)
        x = _ffn_block(x, g_f, b_f, w1_f, b1_f, w2_f, b2_f, true_c=true_c)
        out_ref[0] = x.astype(out_ref.dtype)

    return kernel


def _query_chain(obj, obj_pe, mem, mem_pe, pa, ps, pf, *, num_heads, true_c, dh):
    B, nq, Cp = obj.shape
    Lk = mem.shape[1]
    Fp = pf["w1"].shape[1]
    attn_specs = [_const_spec((1, Cp), 1), _const_spec((1, Cp), 1),
                  _const_spec((3, Cp, Cp), 1), _const_spec((3, 1, Cp), 1),
                  _const_spec((Cp, Cp), 1), _const_spec((1, Cp), 1)]
    ffn_specs = [_const_spec((1, Cp), 1), _const_spec((1, Cp), 1),
                 _const_spec((Cp, Fp), 1), _const_spec((1, Fp), 1),
                 _const_spec((Fp, Cp), 1), _const_spec((1, Cp), 1)]
    return pl.pallas_call(
        _make_query_chain_kernel(num_heads, dh, true_c),
        out_shape=jax.ShapeDtypeStruct((B, nq, Cp), obj.dtype),
        grid=(B,),
        in_specs=[_batch_spec((1, nq, Cp), 1), _batch_spec((1, nq, Cp), 1),
                  _batch_spec((1, Lk, Cp), 1), _batch_spec((1, Lk, Cp), 1)]
                 + attn_specs + attn_specs + ffn_specs,
        out_specs=_batch_spec((1, nq, Cp), 1),
        compiler_params=pltpu.CompilerParams(
            dimension_semantics=("parallel",), vmem_limit_bytes=VMEM_LIMIT),
    )(obj, obj_pe, mem, mem_pe,
      pa["ln_g"], pa["ln_b"], pa["wqkv"], pa["bqkv"], pa["wo"], pa["bo"],
      ps["ln_g"], ps["ln_b"], ps["wqkv"], ps["bqkv"], ps["wo"], ps["bo"],
      pf["ln_g"], pf["ln_b"], pf["w1"], pf["b1"], pf["w2"], pf["b2"])


# ---------------------------------------------------------------------------
# kernel B: out_from_object + out_from_mask fused (shared query LayerNorm),
#           grid over (B, HW tiles), writes their SUM directly
# ---------------------------------------------------------------------------
def _make_pixel_readout_kernel(num_heads, dh, true_c):
    scale = 1.0 / math.sqrt(dh)

    def kernel(pix_ref, pixpe_ref, xq_ref, xqpe_ref, msk_ref, mskpe_ref,
               g_o, b_o, qkvw_o, qkvb_o, wo_o, bo_o,
               g_m, b_m, qkvw_m, qkvb_m, wo_m, bo_m,
               out_ref):
        kw = dict(num_heads=num_heads, dh=dh, scale=scale)
        pf = pix_ref[0].astype(jnp.float32)
        ppe = pixpe_ref[0].astype(jnp.float32)
        nrm = _ln_normalize(pf, true_c)        # LN statistics computed ONCE
        pixel_object = _attn_from_norm(
            nrm, ppe, xq_ref[0].astype(jnp.float32),
            xqpe_ref[0].astype(jnp.float32),
            g_o, b_o, qkvw_o, qkvb_o, wo_o, bo_o, **kw)
        pixel_semantic = _attn_from_norm(
            nrm, ppe, msk_ref[0].astype(jnp.float32),
            mskpe_ref[0].astype(jnp.float32),
            g_m, b_m, qkvw_m, qkvb_m, wo_m, bo_m, **kw)
        out_ref[0] = (pixel_object + pixel_semantic).astype(out_ref.dtype)

    return kernel


def _pixel_readout(pixel_flat, pixel_pe, xq, obj_emb, msk_flat, mask_pe, po, pm,
                   *, num_heads, true_c, dh):
    B, HW, Cp = pixel_flat.shape
    nq = xq.shape[1]
    hwt = _pick_tile(HW)
    attn_specs = [_const_spec((1, Cp), 2), _const_spec((1, Cp), 2),
                  _const_spec((3, Cp, Cp), 2), _const_spec((3, 1, Cp), 2),
                  _const_spec((Cp, Cp), 2), _const_spec((1, Cp), 2)]
    tile_spec = pl.BlockSpec((1, hwt, Cp), lambda i, j: (i, j, 0))
    return pl.pallas_call(
        _make_pixel_readout_kernel(num_heads, dh, true_c),
        out_shape=jax.ShapeDtypeStruct((B, HW, Cp), pixel_flat.dtype),
        grid=(B, HW // hwt),
        in_specs=[tile_spec, tile_spec,
                  _batch_spec((1, nq, Cp), 2), _batch_spec((1, nq, Cp), 2),
                  _batch_spec((1, HW, Cp), 2), _batch_spec((1, HW, Cp), 2)]
                 + attn_specs + attn_specs,
        out_specs=pl.BlockSpec((1, hwt, Cp), lambda i, j: (i, j, 0)),
        compiler_params=pltpu.CompilerParams(
            dimension_semantics=("parallel", "parallel"),
            vmem_limit_bytes=VMEM_LIMIT),
    )(pixel_flat, pixel_pe, xq, obj_emb, msk_flat, mask_pe,
      po["ln_g"], po["ln_b"], po["wqkv"], po["bqkv"], po["wo"], po["bo"],
      pm["ln_g"], pm["ln_b"], pm["wqkv"], pm["bqkv"], pm["wo"], pm["bo"])


# ---------------------------------------------------------------------------
# kernel C: PixelFFN = CAResBlock; 3x3 convs as 9 shifted matmuls on a
#           flattened halo scratch (contiguous sublane-offset taps + col masks)
# ---------------------------------------------------------------------------
def _make_pixel_ffn_kernel(H, W, Cp):
    HW = H * W
    OFF = W + 1                       # halo offset inside the flattened scratch

    def kernel(pix_ref, pf_ref, w1_ref, b1_ref, w2_ref, b2_ref, t_ref,
               out_ref, pad_ref):
        # zero only the 1-pixel halo border (tiny); the interior is always
        # fully overwritten before it is read.
        pad_ref[pl.ds(0, OFF), :] = jnp.zeros((OFF, Cp), pad_ref.dtype)
        pad_ref[pl.ds(OFF + HW, W + 1), :] = jnp.zeros((W + 1, Cp),
                                                       pad_ref.dtype)

        col = jax.lax.broadcasted_iota(jnp.int32, (HW, 1), 0) % W
        not_left = (col >= 1).astype(jnp.float32)         # valid for dx = -1
        not_right = (col <= W - 2).astype(jnp.float32)    # valid for dx = +1

        def conv3x3_relu(xin, w_ref, bias_ref):
            # conv(relu(xin)), padding=1, as 9 shifted matmuls on the flattened
            # (HW, Cp) tile; each tap is a contiguous sublane-offset load from
            # the halo scratch (no (H,W,C) strided-slice / reshape copies).
            pad_ref[pl.ds(OFF, HW), :] = jnp.maximum(xin, 0.0)
            acc = jnp.zeros((HW, Cp), jnp.float32) + bias_ref[...]
            widx = 0
            for dy in (-1, 0, 1):
                for dx in (-1, 0, 1):
                    tap = pad_ref[pl.ds(OFF + dy * W + dx, HW), :]
                    if dx == -1:
                        tap = tap * not_left
                    elif dx == 1:
                        tap = tap * not_right
                    acc = acc + jnp.dot(tap.astype(CDT), w_ref[widx],
                                        preferred_element_type=jnp.float32)
                    widx += 1
            return acc

        # TODO(synk): the exact CAResBlock fusion of (pixel, pixel_flat) is not
        # shown in the provided source; we fuse by summation before the block.
        f0 = pix_ref[0].astype(jnp.float32) + pf_ref[0].astype(jnp.float32)
        f1 = conv3x3_relu(f0, w1_ref, b1_ref)              # conv1(relu(f0))
        f2 = conv3x3_relu(f1, w2_ref, b2_ref)              # conv2(relu(f1))
        # ECA channel attention: global avg pool + banded 1-D conv + sigmoid
        m = jnp.sum(f2, axis=0, keepdims=True) * (1.0 / HW)          # (1, Cp)
        ca = jax.nn.sigmoid(jnp.dot(m, t_ref[...],
                                    preferred_element_type=jnp.float32))
        out_ref[0] = (f2 * ca + f0).astype(out_ref.dtype)

    return kernel


def _pixel_ffn(pixel_flat, pix_sum, p, H, W):
    # TODO(synk): for production H,W additionally tile the spatial dim with a
    # 1-row halo; at these sizes a whole image per grid step fits comfortably.
    B, HW, Cp = pixel_flat.shape
    img = _batch_spec((1, HW, Cp), 1)
    return pl.pallas_call(
        _make_pixel_ffn_kernel(H, W, Cp),
        out_shape=jax.ShapeDtypeStruct((B, HW, Cp), pixel_flat.dtype),
        grid=(B,),
        in_specs=[img, img,
                  _const_spec((9, Cp, Cp), 1), _const_spec((1, Cp), 1),
                  _const_spec((9, Cp, Cp), 1), _const_spec((1, Cp), 1),
                  _const_spec((Cp, Cp), 1)],
        out_specs=_batch_spec((1, HW, Cp), 1),
        scratch_shapes=[pltpu.VMEM((HW + 2 * W + 2, Cp), jnp.float32)],
        compiler_params=pltpu.CompilerParams(
            dimension_semantics=("parallel",), vmem_limit_bytes=VMEM_LIMIT),
    )(pixel_flat, pix_sum, p["w1"], p["b1"], p["w2"], p["b2"], p["eca_T"])


# ---------------------------------------------------------------------------
# lane-dense parameter padding (done once in the wrapper; weights -> bf16)
# ---------------------------------------------------------------------------
def _pad_attn_params(p, C, Cp):
    pad_w = lambda wm: jnp.pad(wm, ((0, Cp - C), (0, Cp - C))).astype(CDT)
    return dict(
        ln_g=_pad_last(p["ln_g"], Cp), ln_b=_pad_last(p["ln_b"], Cp),
        wqkv=jnp.stack([pad_w(p["wq"]), pad_w(p["wk"]), pad_w(p["wv"])]),
        bqkv=jnp.stack([_pad_last(p["bq"], Cp), _pad_last(p["bk"], Cp),
                        _pad_last(p["bv"], Cp)]),
        wo=pad_w(p["wo"]), bo=_pad_last(p["bo"], Cp))


def _pad_ffn_params(p, Cp, Fp):
    C, F = p["w1"].shape
    return dict(
        ln_g=_pad_last(p["ln_g"], Cp), ln_b=_pad_last(p["ln_b"], Cp),
        w1=jnp.pad(p["w1"], ((0, Cp - C), (0, Fp - F))).astype(CDT),
        b1=_pad_last(p["b1"], Fp),
        w2=jnp.pad(p["w2"], ((0, Fp - F), (0, Cp - C))).astype(CDT),
        b2=_pad_last(p["b2"], Cp))


def _pad_pixel_ffn_params(p, C, Cp):
    pad_conv = lambda wm: jnp.pad(
        wm, ((0, 0), (0, 0), (0, Cp - C), (0, Cp - C))
    ).reshape(9, Cp, Cp).astype(CDT)
    return dict(w1=pad_conv(p["w1"]), b1=_pad_last(p["b1"], Cp),
                w2=pad_conv(p["w2"]), b2=_pad_last(p["b2"], Cp),
                eca_T=jnp.pad(p["eca_T"], ((0, Cp - C), (0, Cp - C))))


# ---------------------------------------------------------------------------
# top level: QueryTransformerBlock.forward
# ---------------------------------------------------------------------------
def query_transformer_block(params, pixel, pixel_pe, msk_value, mask_pe,
                            cur_obj_init, cur_obj_emb, num_heads):
    b, n, c, h, w = pixel.shape
    B, HW = b * n, h * w
    Cp = _round_up(c, LANE)
    dh = c // num_heads
    Fp = _round_up(params["ffn"]["w1"].shape[1], LANE)

    # pad parameters to lane-dense shapes (zero padding keeps the math exact)
    pa = _pad_attn_params(params["read_from_pixel"], c, Cp)
    psa = _pad_attn_params(params["self_attn"], c, Cp)
    pff = _pad_ffn_params(params["ffn"], Cp, Fp)
    pob = _pad_attn_params(params["out_from_object"], c, Cp)
    pmk = _pad_attn_params(params["out_from_mask"], c, Cp)
    ppx = _pad_pixel_ffn_params(params["pixel_ffn"], c, Cp)

    # flatten(3,4).flatten(0,1).transpose(1,2)  ==  reshape + transpose
    pixel_flat = _pad_last(jnp.transpose(pixel.reshape(B, c, HW), (0, 2, 1)), Cp)
    msk_flat = _pad_last(jnp.transpose(msk_value.reshape(B, c, HW), (0, 2, 1)), Cp)
    pixel_pe_p = _pad_last(pixel_pe, Cp)
    mask_pe_p = _pad_last(mask_pe, Cp)
    obj_init_p = _pad_last(cur_obj_init, Cp)
    obj_emb_p = _pad_last(cur_obj_emb, Cp)

    # kernel A: read_from_pixel + self_attn + FFN (query tokens)
    x_p = _query_chain(obj_init_p, obj_emb_p, msk_flat, mask_pe_p, pa, psa, pff,
                       num_heads=num_heads, true_c=c, dh=dh)
    # kernel B: out_from_object + out_from_mask, summed in-kernel
    pix_sum = _pixel_readout(pixel_flat, pixel_pe_p, x_p, obj_emb_p,
                             msk_flat, mask_pe_p, pob, pmk,
                             num_heads=num_heads, true_c=c, dh=dh)
    # kernel C: PixelFFN (CAResBlock) with in-kernel 3x3 convs
    out_flat = _pixel_ffn(pixel_flat, pix_sum, ppx, h, w)

    x_out = x_p[:, :, :c]
    pixel_out = jnp.transpose(out_flat[:, :, :c], (0, 2, 1)).reshape(b, n, c, h, w)
    # need_weights=False in the reference call path -> attention weights None
    return pixel_out, x_out, None, None


# ---------------------------------------------------------------------------
# deterministic parameter construction (logical, un-padded sizes)
# ---------------------------------------------------------------------------
def _attn_params(key, C):
    ks = jax.random.split(key, 5)
    wm = lambda k: jax.random.normal(k, (C, C), jnp.float32) / math.sqrt(C)
    return dict(ln_g=jnp.ones((1, C), jnp.float32), ln_b=jnp.zeros((1, C), jnp.float32),
                wq=wm(ks[0]), wk=wm(ks[1]), wv=wm(ks[2]), wo=wm(ks[3]),
                bq=jnp.zeros((1, C), jnp.float32), bk=jnp.zeros((1, C), jnp.float32),
                bv=jnp.zeros((1, C), jnp.float32),
                bo=jax.random.normal(ks[4], (1, C), jnp.float32) * 0.01)


def _ffn_params(key, C, F):
    ks = jax.random.split(key, 2)
    return dict(ln_g=jnp.ones((1, C), jnp.float32), ln_b=jnp.zeros((1, C), jnp.float32),
                w1=jax.random.normal(ks[0], (C, F), jnp.float32) / math.sqrt(C),
                b1=jnp.zeros((1, F), jnp.float32),
                w2=jax.random.normal(ks[1], (F, C), jnp.float32) / math.sqrt(F),
                b2=jnp.zeros((1, C), jnp.float32))


def _eca_matrix(key, C):
    t = int((abs(math.log2(C)) + 1) // 2)
    ksz = t if t % 2 else t + 1
    pad = (ksz - 1) // 2
    kvec = jax.random.normal(key, (ksz,), jnp.float32) * 0.3
    i = jnp.arange(C)[:, None]
    j = jnp.arange(C)[None, :]
    d = i - j + pad
    valid = (d >= 0) & (d < ksz)
    return jnp.where(valid, kvec[jnp.clip(d, 0, ksz - 1)], 0.0).astype(jnp.float32)


def _pixel_ffn_params(key, C):
    ks = jax.random.split(key, 3)
    wconv = lambda k: jax.random.normal(k, (3, 3, C, C), jnp.float32) / math.sqrt(9 * C)
    return dict(w1=wconv(ks[0]), b1=jnp.zeros((1, C), jnp.float32),
                w2=wconv(ks[1]), b2=jnp.zeros((1, C), jnp.float32),
                eca_T=_eca_matrix(ks[2], C))


if __name__ == "__main__":
    key = jax.random.PRNGKey(0)
    b, n = 1, 2                     # batch, num_objects
    C, heads, nq, F = 32, 2, 8, 64  # embed_dim, num_heads, num_queries, ff_dim
    h = w = 8
    B = b * n

    ks = jax.random.split(key, 12)
    params = dict(
        read_from_pixel=_attn_params(ks[0], C),
        self_attn=_attn_params(ks[1], C),
        ffn=_ffn_params(ks[2], C, F),
        out_from_object=_attn_params(ks[3], C),
        out_from_mask=_attn_params(ks[4], C),
        pixel_ffn=_pixel_ffn_params(ks[5], C),
    )

    pixel = jax.random.normal(ks[6], (b, n, C, h, w), jnp.float32)
    pixel_pe = jax.random.normal(ks[7], (B, h * w, C), jnp.float32) * 0.5
    msk_value = jax.random.normal(ks[8], (b, n, C, h, w), jnp.float32)
    mask_pe = jax.random.normal(ks[9], (B, h * w, C), jnp.float32) * 0.5
    cur_obj_init = jax.random.normal(ks[10], (B, nq, C), jnp.float32)
    cur_obj_emb = jax.random.normal(ks[11], (B, nq, C), jnp.float32) * 0.5

    fwd = jax.jit(partial(query_transformer_block, num_heads=heads))
    pixel_out, x_out, p_w, _ = fwd(params, pixel, pixel_pe, msk_value, mask_pe,
                                   cur_obj_init, cur_obj_emb)
    jax.block_until_ready(pixel_out)
    jax.block_until_ready(x_out)

    assert pixel_out.shape == (b, n, C, h, w), pixel_out.shape
    assert x_out.shape == (B, nq, C), x_out.shape
    assert bool(jnp.all(jnp.isfinite(pixel_out))) and bool(jnp.all(jnp.isfinite(x_out)))
    print("KERNEL_OK")
</pallas_src>

<mosaic_0001>
module attributes {stable_mosaic.version = 11 : i64} {
  func.func @kernel(%arg0: i32, %arg1: i32, %arg2: memref<1x64x128xf32, #tpu.memory_space<vmem>>, %arg3: memref<1x64x128xf32, #tpu.memory_space<vmem>>, %arg4: memref<1x8x128xf32, #tpu.memory_space<vmem>>, %arg5: memref<1x8x128xf32, #tpu.memory_space<vmem>>, %arg6: memref<1x64x128xf32, #tpu.memory_space<vmem>>, %arg7: memref<1x64x128xf32, #tpu.memory_space<vmem>>, %arg8: memref<1x128xf32, #tpu.memory_space<vmem>>, %arg9: memref<1x128xf32, #tpu.memory_space<vmem>>, %arg10: memref<3x128x128xbf16, #tpu.memory_space<vmem>>, %arg11: memref<3x1x128xf32, #tpu.memory_space<vmem>>, %arg12: memref<128x128xbf16, #tpu.memory_space<vmem>>, %arg13: memref<1x128xf32, #tpu.memory_space<vmem>>, %arg14: memref<1x128xf32, #tpu.memory_space<vmem>>, %arg15: memref<1x128xf32, #tpu.memory_space<vmem>>, %arg16: memref<3x128x128xbf16, #tpu.memory_space<vmem>>, %arg17: memref<3x1x128xf32, #tpu.memory_space<vmem>>, %arg18: memref<128x128xbf16, #tpu.memory_space<vmem>>, %arg19: memref<1x128xf32, #tpu.memory_space<vmem>>, %arg20: memref<1x64x128xf32, #tpu.memory_space<vmem>>) attributes {dimension_semantics = [#tpu.dimension_semantics<parallel>, #tpu.dimension_semantics<parallel>], iteration_bounds = array<i64: 2, 1>, scalar_prefetch = 0 : i64, scratch_operands = 0 : i64, tpu.core_type = #tpu.core_type<tc>, window_params = [{transform_indices = @transform_0, window_bounds = array<i64: 1, 64, 128>}, {transform_indices = @transform_1, window_bounds = array<i64: 1, 64, 128>}, {transform_indices = @transform_2, window_bounds = array<i64: 1, 8, 128>}, {transform_indices = @transform_3, window_bounds = array<i64: 1, 8, 128>}, {transform_indices = @transform_4, window_bounds = array<i64: 1, 64, 128>}, {transform_indices = @transform_5, window_bounds = array<i64: 1, 64, 128>}, {pipeline_mode = #tpu.pipeline_mode<synchronous>, transform_indices = @transform_6, window_bounds = array<i64: 1, 128>}, {pipeline_mode = #tpu.pipeline_mode<synchronous>, transform_indices = @transform_7, window_bounds = array<i64: 1, 128>}, {pipeline_mode = #tpu.pipeline_mode<synchronous>, transform_indices = @transform_8, window_bounds = array<i64: 3, 128, 128>}, {pipeline_mode = #tpu.pipeline_mode<synchronous>, transform_indices = @transform_9, window_bounds = array<i64: 3, 1, 128>}, {pipeline_mode = #tpu.pipeline_mode<synchronous>, transform_indices = @transform_10, window_bounds = array<i64: 128, 128>}, {pipeline_mode = #tpu.pipeline_mode<synchronous>, transform_indices = @transform_11, window_bounds = array<i64: 1, 128>}, {pipeline_mode = #tpu.pipeline_mode<synchronous>, transform_indices = @transform_12, window_bounds = array<i64: 1, 128>}, {pipeline_mode = #tpu.pipeline_mode<synchronous>, transform_indices = @transform_13, window_bounds = array<i64: 1, 128>}, {pipeline_mode = #tpu.pipeline_mode<synchronous>, transform_indices = @transform_14, window_bounds = array<i64: 3, 128, 128>}, {pipeline_mode = #tpu.pipeline_mode<synchronous>, transform_indices = @transform_15, window_bounds = array<i64: 3, 1, 128>}, {pipeline_mode = #tpu.pipeline_mode<synchronous>, transform_indices = @transform_16, window_bounds = array<i64: 128, 128>}, {pipeline_mode = #tpu.pipeline_mode<synchronous>, transform_indices = @transform_17, window_bounds = array<i64: 1, 128>}, {transform_indices = @transform_18, window_bounds = array<i64: 1, 64, 128>}]} {
    %c0 = arith.constant 0 : index
    %c0_0 = arith.constant 0 : index
    %c0_1 = arith.constant 0 : index
    %0 = vector.load %arg2[%c0, %c0_0, %c0_1] : memref<1x64x128xf32, #tpu.memory_space<vmem>>, vector<1x64x128xf32>
    %1 = vector.shape_cast %0 : vector<1x64x128xf32> to vector<64x128xf32>
    %c0_2 = arith.constant 0 : index
    %c0_3 = arith.constant 0 : index
    %c0_4 = arith.constant 0 : index
    %2 = vector.load %arg3[%c0_2, %c0_3, %c0_4] : memref<1x64x128xf32, #tpu.memory_space<vmem>>, vector<1x64x128xf32>
    %3 = vector.shape_cast %2 : vector<1x64x128xf32> to vector<64x128xf32>
    %cst = arith.constant dense<0.000000e+00> : vector<64xf32>
    %4 = vector.multi_reduction <add>, %1, %cst [1] : vector<64x128xf32> to vector<64xf32>
    %5 = vector.shape_cast %4 : vector<64xf32> to vector<64x1xf32>
    %cst_5 = arith.constant 3.125000e-02 : f32
    %6 = vector.broadcast %cst_5 : f32 to vector<64x1xf32>
    %7 = arith.mulf %5, %6 : vector<64x1xf32>
    %8 = arith.mulf %1, %1 : vector<64x128xf32>
    %cst_6 = arith.constant dense<0.000000e+00> : vector<64xf32>
    %9 = vector.multi_reduction <add>, %8, %cst_6 [1] : vector<64x128xf32> to vector<64xf32>
    %10 = vector.shape_cast %9 : vector<64xf32> to vector<64x1xf32>
    %cst_7 = arith.constant 3.125000e-02 : f32
    %11 = vector.broadcast %cst_7 : f32 to vector<64x1xf32>
    %12 = arith.mulf %10, %11 : vector<64x1xf32>
    %13 = arith.mulf %7, %7 : vector<64x1xf32>
    %14 = arith.subf %12, %13 : vector<64x1xf32>
    %15 = vector.broadcast %7 : vector<64x1xf32> to vector<64x128xf32>
    %16 = arith.subf %1, %15 : vector<64x128xf32>
    %cst_8 = arith.constant 9.99999974E-6 : f32
    %17 = vector.broadcast %cst_8 : f32 to vector<64x1xf32>
    %18 = arith.addf %14, %17 : vector<64x1xf32>
    %19 = math.rsqrt %18 : vector<64x1xf32>
    %20 = vector.broadcast %19 : vector<64x1xf32> to vector<64x128xf32>
    %21 = arith.mulf %16, %20 : vector<64x128xf32>
    %c0_9 = arith.constant 0 : index
    %c0_10 = arith.constant 0 : index
    %c0_11 = arith.constant 0 : index
    %22 = vector.load %arg4[%c0_9, %c0_10, %c0_11] : memref<1x8x128xf32, #tpu.memory_space<vmem>>, vector<1x8x128xf32>
    %23 = vector.shape_cast %22 : vector<1x8x128xf32> to vector<8x128xf32>
    %c0_12 = arith.constant 0 : index
    %c0_13 = arith.constant 0 : index
    %c0_14 = arith.constant 0 : index
    %24 = vector.load %arg5[%c0_12, %c0_13, %c0_14] : memref<1x8x128xf32, #tpu.memory_space<vmem>>, vector<1x8x128xf32>
    %25 = vector.shape_cast %24 : vector<1x8x128xf32> to vector<8x128xf32>
    %c0_15 = arith.constant 0 : index
    %c0_16 = arith.constant 0 : index
    %26 = vector.load %arg8[%c0_15, %c0_16] : memref<1x128xf32, #tpu.memory_space<vmem>>, vector<1x128xf32>
    %27 = vector.broadcast %26 : vector<1x128xf32> to vector<64x128xf32>
    %28 = arith.mulf %21, %27 : vector<64x128xf32>
    %c0_17 = arith.constant 0 : index
    %c0_18 = arith.constant 0 : index
    %29 = vector.load %arg9[%c0_17, %c0_18] : memref<1x128xf32, #tpu.memory_space<vmem>>, vector<1x128xf32>
    %30 = vector.broadcast %29 : vector<1x128xf32> to vector<64x128xf32>
    %31 = arith.addf %28, %30 : vector<64x128xf32>
    %32 = arith.addf %31, %3 : vector<64x128xf32>
    %33 = arith.truncf %32 : vector<64x128xf32> to vector<64x128xbf16>
    %c0_19 = arith.constant 0 : index
    %c0_20 = arith.constant 0 : index
    %c0_21 = arith.constant 0 : index
    %34 = vector.load %arg10[%c0_19, %c0_20, %c0_21] : memref<3x128x128xbf16, #tpu.memory_space<vmem>>, vector<1x128x128xbf16>
    %35 = vector.shape_cast %34 : vector<1x128x128xbf16> to vector<128x128xbf16>
    %cst_22 = arith.constant dense<0.000000e+00> : vector<64x128xf32>
    %36 = tpu.matmul %33, %35, %cst_22 {dimension_numbers = #tpu.dot_dimension_numbers<[1], [0], [0], [1], [0, 0, 1, 1], [], []>} : vector<64x128xbf16>, vector<128x128xbf16>, vector<64x128xf32> -> vector<64x128xf32>
    %c0_23 = arith.constant 0 : index
    %c0_24 = arith.constant 0 : index
    %c0_25 = arith.constant 0 : index
    %37 = vector.load %arg11[%c0_23, %c0_24, %c0_25] : memref<3x1x128xf32, #tpu.memory_space<vmem>>, vector<1x1x128xf32>
    %38 = vector.shape_cast %37 : vector<1x1x128xf32> to vector<1x128xf32>
    %39 = vector.broadcast %38 : vector<1x128xf32> to vector<64x128xf32>
    %40 = arith.addf %36, %39 : vector<64x128xf32>
    %41 = arith.addf %23, %25 : vector<8x128xf32>
    %42 = arith.truncf %41 : vector<8x128xf32> to vector<8x128xbf16>
    %c1 = arith.constant 1 : index
    %c0_26 = arith.constant 0 : index
    %c0_27 = arith.constant 0 : index
    %43 = vector.load %arg10[%c1, %c0_26, %c0_27] : memref<3x128x128xbf16, #tpu.memory_space<vmem>>, vector<1x128x128xbf16>
    %44 = vector.shape_cast %43 : vector<1x128x128xbf16> to vector<128x128xbf16>
    %cst_28 = arith.constant dense<0.000000e+00> : vector<8x128xf32>
    %45 = tpu.matmul %42, %44, %cst_28 {dimension_numbers = #tpu.dot_dimension_numbers<[1], [0], [0], [1], [0, 0, 1, 1], [], []>} : vector<8x128xbf16>, vector<128x128xbf16>, vector<8x128xf32> -> vector<8x128xf32>
    %c1_29 = arith.constant 1 : index
    %c0_30 = arith.constant 0 : index
    %c0_31 = arith.constant 0 : index
    %46 = vector.load %arg11[%c1_29, %c0_30, %c0_31] : memref<3x1x128xf32, #tpu.memory_space<vmem>>, vector<1x1x128xf32>
    %47 = vector.shape_cast %46 : vector<1x1x128xf32> to vector<1x128xf32>
    %48 = vector.broadcast %47 : vector<1x128xf32> to vector<8x128xf32>
    %49 = arith.addf %45, %48 : vector<8x128xf32>
    %50 = arith.truncf %23 : vector<8x128xf32> to vector<8x128xbf16>
    %c2 = arith.constant 2 : index
    %c0_32 = arith.constant 0 : index
    %c0_33 = arith.constant 0 : index
    %51 = vector.load %arg10[%c2, %c0_32, %c0_33] : memref<3x128x128xbf16, #tpu.memory_space<vmem>>, vector<1x128x128xbf16>
    %52 = vector.shape_cast %51 : vector<1x128x128xbf16> to vector<128x128xbf16>
    %cst_34 = arith.constant dense<0.000000e+00> : vector<8x128xf32>
    %53 = tpu.matmul %50, %52, %cst_34 {dimension_numbers = #tpu.dot_dimension_numbers<[1], [0], [0], [1], [0, 0, 1, 1], [], []>} : vector<8x128xbf16>, vector<128x128xbf16>, vector<8x128xf32> -> vector<8x128xf32>
    %c2_35 = arith.constant 2 : index
    %c0_36 = arith.constant 0 : index
    %c0_37 = arith.constant 0 : index
    %54 = vector.load %arg11[%c2_35, %c0_36, %c0_37] : memref<3x1x128xf32, #tpu.memory_space<vmem>>, vector<1x1x128xf32>
    %55 = vector.shape_cast %54 : vector<1x1x128xf32> to vector<1x128xf32>
    %56 = vector.broadcast %55 : vector<1x128xf32> to vector<8x128xf32>
    %57 = arith.addf %53, %56 : vector<8x128xf32>
    %58 = vector.extract_strided_slice %40 {offsets = [0, 0], sizes = [64, 16], strides = [1, 1]} : vector<64x128xf32> to vector<64x16xf32>
    %59 = arith.truncf %58 : vector<64x16xf32> to vector<64x16xbf16>
    %60 = vector.extract_strided_slice %49 {offsets = [0, 0], sizes = [8, 16], strides = [1, 1]} : vector<8x128xf32> to vector<8x16xf32>
    %61 = arith.truncf %60 : vector<8x16xf32> to vector<8x16xbf16>
    %62 = vector.extract_strided_slice %57 {offsets = [0, 0], sizes = [8, 16], strides = [1, 1]} : vector<8x128xf32> to vector<8x16xf32>
    %63 = arith.truncf %62 : vector<8x16xf32> to vector<8x16xbf16>
    %cst_38 = arith.constant dense<0.000000e+00> : vector<64x8xf32>
    %64 = tpu.matmul %59, %61, %cst_38 {dimension_numbers = #tpu.dot_dimension_numbers<[1], [1], [0], [0], [0, 0, 1, 0], [], []>} : vector<64x16xbf16>, vector<8x16xbf16>, vector<64x8xf32> -> vector<64x8xf32>
    %cst_39 = arith.constant 2.500000e-01 : f32
    %65 = vector.broadcast %cst_39 : f32 to vector<64x8xf32>
    %66 = arith.mulf %64, %65 : vector<64x8xf32>
    %cst_40 = arith.constant dense<0xFF800000> : vector<64xf32>
    %67 = vector.multi_reduction <maximumf>, %66, %cst_40 [1] : vector<64x8xf32> to vector<64xf32>
    %68 = vector.shape_cast %67 : vector<64xf32> to vector<64x1xf32>
    %69 = vector.broadcast %68 : vector<64x1xf32> to vector<64x8xf32>
    %70 = arith.subf %66, %69 : vector<64x8xf32>
    %71 = math.exp %70 : vector<64x8xf32>
    %cst_41 = arith.constant dense<0.000000e+00> : vector<64xf32>
    %72 = vector.multi_reduction <add>, %71, %cst_41 [1] : vector<64x8xf32> to vector<64xf32>
    %73 = vector.shape_cast %72 : vector<64xf32> to vector<64x1xf32>
    %74 = tpu.reciprocal %73 : vector<64x1xf32> -> vector<64x1xf32>
    %75 = vector.broadcast %74 : vector<64x1xf32> to vector<64x8xf32>
    %76 = arith.mulf %71, %75 : vector<64x8xf32>
    %77 = arith.truncf %76 : vector<64x8xf32> to vector<64x8xbf16>
    %cst_42 = arith.constant dense<0.000000e+00> : vector<64x16xf32>
    %78 = tpu.matmul %77, %63, %cst_42 {dimension_numbers = #tpu.dot_dimension_numbers<[1], [0], [0], [1], [0, 0, 1, 1], [], []>} : vector<64x8xbf16>, vector<8x16xbf16>, vector<64x16xf32> -> vector<64x16xf32>
    %79 = arith.truncf %78 : vector<64x16xf32> to vector<64x16xbf16>
    %c0_43 = arith.constant 0 : index
    %c0_44 = arith.constant 0 : index
    %80 = vector.load %arg12[%c0_43, %c0_44] : memref<128x128xbf16, #tpu.memory_space<vmem>>, vector<16x128xbf16>
    %cst_45 = arith.constant dense<0.000000e+00> : vector<64x128xf32>
    %81 = tpu.matmul %79, %80, %cst_45 {dimension_numbers = #tpu.dot_dimension_numbers<[1], [0], [0], [1], [0, 0, 1, 1], [], []>} : vector<64x16xbf16>, vector<16x128xbf16>, vector<64x128xf32> -> vector<64x128xf32>
    %82 = vector.extract_strided_slice %40 {offsets = [0, 16], sizes = [64, 16], strides = [1, 1]} : vector<64x128xf32> to vector<64x16xf32>
    %83 = arith.truncf %82 : vector<64x16xf32> to vector<64x16xbf16>
    %84 = vector.extract_strided_slice %49 {offsets = [0, 16], sizes = [8, 16], strides = [1, 1]} : vector<8x128xf32> to vector<8x16xf32>
    %85 = arith.truncf %84 : vector<8x16xf32> to vector<8x16xbf16>
    %86 = vector.extract_strided_slice %57 {offsets = [0, 16], sizes = [8, 16], strides = [1, 1]} : vector<8x128xf32> to vector<8x16xf32>
    %87 = arith.truncf %86 : vector<8x16xf32> to vector<8x16xbf16>
    %cst_46 = arith.constant dense<0.000000e+00> : vector<64x8xf32>
    %88 = tpu.matmul %83, %85, %cst_46 {dimension_numbers = #tpu.dot_dimension_numbers<[1], [1], [0], [0], [0, 0, 1, 0], [], []>} : vector<64x16xbf16>, vector<8x16xbf16>, vector<64x8xf32> -> vector<64x8xf32>
    %cst_47 = arith.constant 2.500000e-01 : f32
    %89 = vector.broadcast %cst_47 : f32 to vector<64x8xf32>
    %90 = arith.mulf %88, %89 : vector<64x8xf32>
    %cst_48 = arith.constant dense<0xFF800000> : vector<64xf32>
    %91 = vector.multi_reduction <maximumf>, %90, %cst_48 [1] : vector<64x8xf32> to vector<64xf32>
    %92 = vector.shape_cast %91 : vector<64xf32> to vector<64x1xf32>
    %93 = vector.broadcast %92 : vector<64x1xf32> to vector<64x8xf32>
    %94 = arith.subf %90, %93 : vector<64x8xf32>
    %95 = math.exp %94 : vector<64x8xf32>
    %cst_49 = arith.constant dense<0.000000e+00> : vector<64xf32>
    %96 = vector.multi_reduction <add>, %95, %cst_49 [1] : vector<64x8xf32> to vector<64xf32>
    %97 = vector.shape_cast %96 : vector<64xf32> to vector<64x1xf32>
    %98 = tpu.reciprocal %97 : vector<64x1xf32> -> vector<64x1xf32>
    %99 = vector.broadcast %98 : vector<64x1xf32> to vector<64x8xf32>
    %100 = arith.mulf %95, %99 : vector<64x8xf32>
    %101 = arith.truncf %100 : vector<64x8xf32> to vector<64x8xbf16>
    %cst_50 = arith.constant dense<0.000000e+00> : vector<64x16xf32>
    %102 = tpu.matmul %101, %87, %cst_50 {dimension_numbers = #tpu.dot_dimension_numbers<[1], [0], [0], [1], [0, 0, 1, 1], [], []>} : vector<64x8xbf16>, vector<8x16xbf16>, vector<64x16xf32> -> vector<64x16xf32>
    %103 = arith.truncf %102 : vector<64x16xf32> to vector<64x16xbf16>
    %c16 = arith.constant 16 : index
    %c0_51 = arith.constant 0 : index
    %104 = vector.load %arg12[%c16, %c0_51] : memref<128x128xbf16, #tpu.memory_space<vmem>>, vector<16x128xbf16>
    %cst_52 = arith.constant dense<0.000000e+00> : vector<64x128xf32>
    %105 = tpu.matmul %103, %104, %cst_52 {dimension_numbers = #tpu.dot_dimension_numbers<[1], [0], [0], [1], [0, 0, 1, 1], [], []>} : vector<64x16xbf16>, vector<16x128xbf16>, vector<64x128xf32> -> vector<64x128xf32>
    %106 = arith.addf %81, %105 : vector<64x128xf32>
    %c0_53 = arith.constant 0 : index
    %c0_54 = arith.constant 0 : index
    %107 = vector.load %arg13[%c0_53, %c0_54] : memref<1x128xf32, #tpu.memory_space<vmem>>, vector<1x128xf32>
    %108 = vector.broadcast %107 : vector<1x128xf32> to vector<64x128xf32>
    %109 = arith.addf %106, %108 : vector<64x128xf32>
    %110 = arith.addf %31, %109 : vector<64x128xf32>
    %c0_55 = arith.constant 0 : index
    %c0_56 = arith.constant 0 : index
    %c0_57 = arith.constant 0 : index
    %111 = vector.load %arg6[%c0_55, %c0_56, %c0_57] : memref<1x64x128xf32, #tpu.memory_space<vmem>>, vector<1x64x128xf32>
    %112 = vector.shape_cast %111 : vector<1x64x128xf32> to vector<64x128xf32>
    %c0_58 = arith.constant 0 : index
    %c0_59 = arith.constant 0 : index
    %c0_60 = arith.constant 0 : index
    %113 = vector.load %arg7[%c0_58, %c0_59, %c0_60] : memref<1x64x128xf32, #tpu.memory_space<vmem>>, vector<1x64x128xf32>
    %114 = vector.shape_cast %113 : vector<1x64x128xf32> to vector<64x128xf32>
    %c0_61 = arith.constant 0 : index
    %c0_62 = arith.constant 0 : index
    %115 = vector.load %arg14[%c0_61, %c0_62] : memref<1x128xf32, #tpu.memory_space<vmem>>, vector<1x128xf32>
    %116 = vector.broadcast %115 : vector<1x128xf32> to vector<64x128xf32>
    %117 = arith.mulf %21, %116 : vector<64x128xf32>
    %c0_63 = arith.constant 0 : index
    %c0_64 = arith.constant 0 : index
    %118 = vector.load %arg15[%c0_63, %c0_64] : memref<1x128xf32, #tpu.memory_space<vmem>>, vector<1x128xf32>
    %119 = vector.broadcast %118 : vector<1x128xf32> to vector<64x128xf32>
    %120 = arith.addf %117, %119 : vector<64x128xf32>
    %121 = arith.addf %120, %3 : vector<64x128xf32>
    %122 = arith.truncf %121 : vector<64x128xf32> to vector<64x128xbf16>
    %c0_65 = arith.constant 0 : index
    %c0_66 = arith.constant 0 : index
    %c0_67 = arith.constant 0 : index
    %123 = vector.load %arg16[%c0_65, %c0_66, %c0_67] : memref<3x128x128xbf16, #tpu.memory_space<vmem>>, vector<1x128x128xbf16>
    %124 = vector.shape_cast %123 : vector<1x128x128xbf16> to vector<128x128xbf16>
    %cst_68 = arith.constant dense<0.000000e+00> : vector<64x128xf32>
    %125 = tpu.matmul %122, %124, %cst_68 {dimension_numbers = #tpu.dot_dimension_numbers<[1], [0], [0], [1], [0, 0, 1, 1], [], []>} : vector<64x128xbf16>, vector<128x128xbf16>, vector<64x128xf32> -> vector<64x128xf32>
    %c0_69 = arith.constant 0 : index
    %c0_70 = arith.constant 0 : index
    %c0_71 = arith.constant 0 : index
    %126 = vector.load %arg17[%c0_69, %c0_70, %c0_71] : memref<3x1x128xf32, #tpu.memory_space<vmem>>, vector<1x1x128xf32>
    %127 = vector.shape_cast %126 : vector<1x1x128xf32> to vector<1x128xf32>
    %128 = vector.broadcast %127 : vector<1x128xf32> to vector<64x128xf32>
    %129 = arith.addf %125, %128 : vector<64x128xf32>
    %130 = arith.addf %112, %114 : vector<64x128xf32>
    %131 = arith.truncf %130 : vector<64x128xf32> to vector<64x128xbf16>
    %c1_72 = arith.constant 1 : index
    %c0_73 = arith.constant 0 : index
    %c0_74 = arith.constant 0 : index
    %132 = vector.load %arg16[%c1_72, %c0_73, %c0_74] : memref<3x128x128xbf16, #tpu.memory_space<vmem>>, vector<1x128x128xbf16>
    %133 = vector.shape_cast %132 : vector<1x128x128xbf16> to vector<128x128xbf16>
    %cst_75 = arith.constant dense<0.000000e+00> : vector<64x128xf32>
    %134 = tpu.matmul %131, %133, %cst_75 {dimension_numbers = #tpu.dot_dimension_numbers<[1], [0], [0], [1], [0, 0, 1, 1], [], []>} : vector<64x128xbf16>, vector<128x128xbf16>, vector<64x128xf32> -> vector<64x128xf32>
    %c1_76 = arith.constant 1 : index
    %c0_77 = arith.constant 0 : index
    %c0_78 = arith.constant 0 : index
    %135 = vector.load %arg17[%c1_76, %c0_77, %c0_78] : memref<3x1x128xf32, #tpu.memory_space<vmem>>, vector<1x1x128xf32>
    %136 = vector.shape_cast %135 : vector<1x1x128xf32> to vector<1x128xf32>
    %137 = vector.broadcast %136 : vector<1x128xf32> to vector<64x128xf32>
    %138 = arith.addf %134, %137 : vector<64x128xf32>
    %139 = arith.truncf %112 : vector<64x128xf32> to vector<64x128xbf16>
    %c2_79 = arith.constant 2 : index
    %c0_80 = arith.constant 0 : index
    %c0_81 = arith.constant 0 : index
    %140 = vector.load %arg16[%c2_79, %c0_80, %c0_81] : memref<3x128x128xbf16, #tpu.memory_space<vmem>>, vector<1x128x128xbf16>
    %141 = vector.shape_cast %140 : vector<1x128x128xbf16> to vector<128x128xbf16>
    %cst_82 = arith.constant dense<0.000000e+00> : vector<64x128xf32>
    %142 = tpu.matmul %139, %141, %cst_82 {dimension_numbers = #tpu.dot_dimension_numbers<[1], [0], [0], [1], [0, 0, 1, 1], [], []>} : vector<64x128xbf16>, vector<128x128xbf16>, vector<64x128xf32> -> vector<64x128xf32>
    %c2_83 = arith.constant 2 : index
    %c0_84 = arith.constant 0 : index
    %c0_85 = arith.constant 0 : index
    %143 = vector.load %arg17[%c2_83, %c0_84, %c0_85] : memref<3x1x128xf32, #tpu.memory_space<vmem>>, vector<1x1x128xf32>
    %144 = vector.shape_cast %143 : vector<1x1x128xf32> to vector<1x128xf32>
    %145 = vector.broadcast %144 : vector<1x128xf32> to vector<64x128xf32>
    %146 = arith.addf %142, %145 : vector<64x128xf32>
    %147 = vector.extract_strided_slice %129 {offsets = [0, 0], sizes = [64, 16], strides = [1, 1]} : vector<64x128xf32> to vector<64x16xf32>
    %148 = arith.truncf %147 : vector<64x16xf32> to vector<64x16xbf16>
    %149 = vector.extract_strided_slice %138 {offsets = [0, 0], sizes = [64, 16], strides = [1, 1]} : vector<64x128xf32> to vector<64x16xf32>
    %150 = arith.truncf %149 : vector<64x16xf32> to vector<64x16xbf16>
    %151 = vector.extract_strided_slice %146 {offsets = [0, 0], sizes = [64, 16], strides = [1, 1]} : vector<64x128xf32> to vector<64x16xf32>
    %152 = arith.truncf %151 : vector<64x16xf32> to vector<64x16xbf16>
    %cst_86 = arith.constant dense<0.000000e+00> : vector<64x64xf32>
    %153 = tpu.matmul %148, %150, %cst_86 {dimension_numbers = #tpu.dot_dimension_numbers<[1], [1], [0], [0], [0, 0, 1, 0], [], []>} : vector<64x16xbf16>, vector<64x16xbf16>, vector<64x64xf32> -> vector<64x64xf32>
    %cst_87 = arith.constant 2.500000e-01 : f32
    %154 = vector.broadcast %cst_87 : f32 to vector<64x64xf32>
    %155 = arith.mulf %153, %154 : vector<64x64xf32>
    %cst_88 = arith.constant dense<0xFF800000> : vector<64xf32>
    %156 = vector.multi_reduction <maximumf>, %155, %cst_88 [1] : vector<64x64xf32> to vector<64xf32>
    %157 = vector.shape_cast %156 : vector<64xf32> to vector<64x1xf32>
    %158 = vector.broadcast %157 : vector<64x1xf32> to vector<64x64xf32>
    %159 = arith.subf %155, %158 : vector<64x64xf32>
    %160 = math.exp %159 : vector<64x64xf32>
    %cst_89 = arith.constant dense<0.000000e+00> : vector<64xf32>
    %161 = vector.multi_reduction <add>, %160, %cst_89 [1] : vector<64x64xf32> to vector<64xf32>
    %162 = vector.shape_cast %161 : vector<64xf32> to vector<64x1xf32>
    %163 = tpu.reciprocal %162 : vector<64x1xf32> -> vector<64x1xf32>
    %164 = vector.broadcast %163 : vector<64x1xf32> to vector<64x64xf32>
    %165 = arith.mulf %160, %164 : vector<64x64xf32>
    %166 = arith.truncf %165 : vector<64x64xf32> to vector<64x64xbf16>
    %cst_90 = arith.constant dense<0.000000e+00> : vector<64x16xf32>
    %167 = tpu.matmul %166, %152, %cst_90 {dimension_numbers = #tpu.dot_dimension_numbers<[1], [0], [0], [1], [0, 0, 1, 1], [], []>} : vector<64x64xbf16>, vector<64x16xbf16>, vector<64x16xf32> -> vector<64x16xf32>
    %168 = arith.truncf %167 : vector<64x16xf32> to vector<64x16xbf16>
    %c0_91 = arith.constant 0 : index
    %c0_92 = arith.constant 0 : index
    %169 = vector.load %arg18[%c0_91, %c0_92] : memref<128x128xbf16, #tpu.memory_space<vmem>>, vector<16x128xbf16>
    %cst_93 = arith.constant dense<0.000000e+00> : vector<64x128xf32>
    %170 = tpu.matmul %168, %169, %cst_93 {dimension_numbers = #tpu.dot_dimension_numbers<[1], [0], [0], [1], [0, 0, 1, 1], [], []>} : vector<64x16xbf16>, vector<16x128xbf16>, vector<64x128xf32> -> vector<64x128xf32>
    %171 = vector.extract_strided_slice %129 {offsets = [0, 16], sizes = [64, 16], strides = [1, 1]} : vector<64x128xf32> to vector<64x16xf32>
    %172 = arith.truncf %171 : vector<64x16xf32> to vector<64x16xbf16>
    %173 = vector.extract_strided_slice %138 {offsets = [0, 16], sizes = [64, 16], strides = [1, 1]} : vector<64x128xf32> to vector<64x16xf32>
    %174 = arith.truncf %173 : vector<64x16xf32> to vector<64x16xbf16>
    %175 = vector.extract_strided_slice %146 {offsets = [0, 16], sizes = [64, 16], strides = [1, 1]} : vector<64x128xf32> to vector<64x16xf32>
    %176 = arith.truncf %175 : vector<64x16xf32> to vector<64x16xbf16>
    %cst_94 = arith.constant dense<0.000000e+00> : vector<64x64xf32>
    %177 = tpu.matmul %172, %174, %cst_94 {dimension_numbers = #tpu.dot_dimension_numbers<[1], [1], [0], [0], [0, 0, 1, 0], [], []>} : vector<64x16xbf16>, vector<64x16xbf16>, vector<64x64xf32> -> vector<64x64xf32>
    %cst_95 = arith.constant 2.500000e-01 : f32
    %178 = vector.broadcast %cst_95 : f32 to vector<64x64xf32>
    %179 = arith.mulf %177, %178 : vector<64x64xf32>
    %cst_96 = arith.constant dense<0xFF800000> : vector<64xf32>
    %180 = vector.multi_reduction <maximumf>, %179, %cst_96 [1] : vector<64x64xf32> to vector<64xf32>
    %181 = vector.shape_cast %180 : vector<64xf32> to vector<64x1xf32>
    %182 = vector.broadcast %181 : vector<64x1xf32> to vector<64x64xf32>
    %183 = arith.subf %179, %182 : vector<64x64xf32>
    %184 = math.exp %183 : vector<64x64xf32>
    %cst_97 = arith.constant dense<0.000000e+00> : vector<64xf32>
    %185 = vector.multi_reduction <add>, %184, %cst_97 [1] : vector<64x64xf32> to vector<64xf32>
    %186 = vector.shape_cast %185 : vector<64xf32> to vector<64x1xf32>
    %187 = tpu.reciprocal %186 : vector<64x1xf32> -> vector<64x1xf32>
    %188 = vector.broadcast %187 : vector<64x1xf32> to vector<64x64xf32>
    %189 = arith.mulf %184, %188 : vector<64x64xf32>
    %190 = arith.truncf %189 : vector<64x64xf32> to vector<64x64xbf16>
    %cst_98 = arith.constant dense<0.000000e+00> : vector<64x16xf32>
    %191 = tpu.matmul %190, %176, %cst_98 {dimension_numbers = #tpu.dot_dimension_numbers<[1], [0], [0], [1], [0, 0, 1, 1], [], []>} : vector<64x64xbf16>, vector<64x16xbf16>, vector<64x16xf32> -> vector<64x16xf32>
    %192 = arith.truncf %191 : vector<64x16xf32> to vector<64x16xbf16>
    %c16_99 = arith.constant 16 : index
    %c0_100 = arith.constant 0 : index
    %193 = vector.load %arg18[%c16_99, %c0_100] : memref<128x128xbf16, #tpu.memory_space<vmem>>, vector<16x128xbf16>
    %cst_101 = arith.constant dense<0.000000e+00> : vector<64x128xf32>
    %194 = tpu.matmul %192, %193, %cst_101 {dimension_numbers = #tpu.dot_dimension_numbers<[1], [0], [0], [1], [0, 0, 1, 1], [], []>} : vector<64x16xbf16>, vector<16x128xbf16>, vector<64x128xf32> -> vector<64x128xf32>
    %195 = arith.addf %170, %194 : vector<64x128xf32>
    %c0_102 = arith.constant 0 : index
    %c0_103 = arith.constant 0 : index
    %196 = vector.load %arg19[%c0_102, %c0_103] : memref<1x128xf32, #tpu.memory_space<vmem>>, vector<1x128xf32>
    %197 = vector.broadcast %196 : vector<1x128xf32> to vector<64x128xf32>
    %198 = arith.addf %195, %197 : vector<64x128xf32>
    %199 = arith.addf %120, %198 : vector<64x128xf32>
    %200 = arith.addf %110, %199 : vector<64x128xf32>
    %c0_104 = arith.constant 0 : index
    %c0_105 = arith.constant 0 : index
    %c0_106 = arith.constant 0 : index
    %201 = vector.load %arg20[%c0_104, %c0_105, %c0_106] : memref<1x64x128xf32, #tpu.memory_space<vmem>>, vector<1x64x128xf32>
    %202 = vector.shape_cast %201 : vector<1x64x128xf32> to vector<64x128xf32>
    %203 = vector.shape_cast %200 : vector<64x128xf32> to vector<1x64x128xf32>
    tpu.vector_store %arg20[%c0_104, %c0_105, %c0_106], %203 {strides = array<i32>} : memref<1x64x128xf32, #tpu.memory_space<vmem>>, vector<1x64x128xf32>,
    return
  }
  func.func @transform_0(%arg0: i32, %arg1: i32) -> (i32, i32, i32) {
    %c0_i32 = arith.constant 0 : i32
    %c0_i32_0 = arith.constant 0 : i32
    return %arg0, %arg1, %c0_i32 : i32, i32, i32
  }
  func.func @transform_1(%arg0: i32, %arg1: i32) -> (i32, i32, i32) {
    %c0_i32 = arith.constant 0 : i32
    %c0_i32_0 = arith.constant 0 : i32
    return %arg0, %arg1, %c0_i32 : i32, i32, i32
  }
  func.func @transform_2(%arg0: i32, %arg1: i32) -> (i32, i32, i32) {
    %c0_i32 = arith.constant 0 : i32
    %c0_i32_0 = arith.constant 0 : i32
    %c0_i32_1 = arith.constant 0 : i32
    return %arg0, %c0_i32, %c0_i32_0 : i32, i32, i32
  }
  func.func @transform_3(%arg0: i32, %arg1: i32) -> (i32, i32, i32) {
    %c0_i32 = arith.constant 0 : i32
    %c0_i32_0 = arith.constant 0 : i32
    %c0_i32_1 = arith.constant 0 : i32
    return %arg0, %c0_i32, %c0_i32_0 : i32, i32, i32
  }
  func.func @transform_4(%arg0: i32, %arg1: i32) -> (i32, i32, i32) {
    %c0_i32 = arith.constant 0 : i32
    %c0_i32_0 = arith.constant 0 : i32
    %c0_i32_1 = arith.constant 0 : i32
    return %arg0, %c0_i32, %c0_i32_0 : i32, i32, i32
  }
  func.func @transform_5(%arg0: i32, %arg1: i32) -> (i32, i32, i32) {
    %c0_i32 = arith.constant 0 : i32
    %c0_i32_0 = arith.constant 0 : i32
    %c0_i32_1 = arith.constant 0 : i32
    return %arg0, %c0_i32, %c0_i32_0 : i32, i32, i32
  }
  func.func @transform_6(%arg0: i32, %arg1: i32) -> (i32, i32) {
    %c0_i32 = arith.constant 0 : i32
    %c0_i32_0 = arith.constant 0 : i32
    %c0_i32_1 = arith.constant 0 : i32
    return %c0_i32, %c0_i32_0 : i32, i32
  }
  func.func @transform_7(%arg0: i32, %arg1: i32) -> (i32, i32) {
    %c0_i32 = arith.constant 0 : i32
    %c0_i32_0 = arith.constant 0 : i32
    %c0_i32_1 = arith.constant 0 : i32
    return %c0_i32, %c0_i32_0 : i32, i32
  }
  func.func @transform_8(%arg0: i32, %arg1: i32) -> (i32, i32, i32) {
    %c0_i32 = arith.constant 0 : i32
    %c0_i32_0 = arith.constant 0 : i32
    %c0_i32_1 = arith.constant 0 : i32
    %c0_i32_2 = arith.constant 0 : i32
    return %c0_i32, %c0_i32_0, %c0_i32_1 : i32, i32, i32
  }
  func.func @transform_9(%arg0: i32, %arg1: i32) -> (i32, i32, i32) {
    %c0_i32 = arith.constant 0 : i32
    %c0_i32_0 = arith.constant 0 : i32
    %c0_i32_1 = arith.constant 0 : i32
    %c0_i32_2 = arith.constant 0 : i32
    return %c0_i32, %c0_i32_0, %c0_i32_1 : i32, i32, i32
  }
  func.func @transform_10(%arg0: i32, %arg1: i32) -> (i32, i32) {
    %c0_i32 = arith.constant 0 : i32
    %c0_i32_0 = arith.constant 0 : i32
    %c0_i32_1 = arith.constant 0 : i32
    return %c0_i32, %c0_i32_0 : i32, i32
  }
  func.func @transform_11(%arg0: i32, %arg1: i32) -> (i32, i32) {
    %c0_i32 = arith.constant 0 : i32
    %c0_i32_0 = arith.constant 0 : i32
    %c0_i32_1 = arith.constant 0 : i32
    return %c0_i32, %c0_i32_0 : i32, i32
  }
  func.func @transform_12(%arg0: i32, %arg1: i32) -> (i32, i32) {
    %c0_i32 = arith.constant 0 : i32
    %c0_i32_0 = arith.constant 0 : i32
    %c0_i32_1 = arith.constant 0 : i32
    return %c0_i32, %c0_i32_0 : i32, i32
  }
  func.func @transform_13(%arg0: i32, %arg1: i32) -> (i32, i32) {
    %c0_i32 = arith.constant 0 : i32
    %c0_i32_0 = arith.constant 0 : i32
    %c0_i32_1 = arith.constant 0 : i32
    return %c0_i32, %c0_i32_0 : i32, i32
  }
  func.func @transform_14(%arg0: i32, %arg1: i32) -> (i32, i32, i32) {
    %c0_i32 = arith.constant 0 : i32
    %c0_i32_0 = arith.constant 0 : i32
    %c0_i32_1 = arith.constant 0 : i32
    %c0_i32_2 = arith.constant 0 : i32
    return %c0_i32, %c0_i32_0, %c0_i32_1 : i32, i32, i32
  }
  func.func @transform_15(%arg0: i32, %arg1: i32) -> (i32, i32, i32) {
    %c0_i32 = arith.constant 0 : i32
    %c0_i32_0 = arith.constant 0 : i32
    %c0_i32_1 = arith.constant 0 : i32
    %c0_i32_2 = arith.constant 0 : i32
    return %c0_i32, %c0_i32_0, %c0_i32_1 : i32, i32, i32
  }
  func.func @transform_16(%arg0: i32, %arg1: i32) -> (i32, i32) {
    %c0_i32 = arith.constant 0 : i32
    %c0_i32_0 = arith.constant 0 : i32
    %c0_i32_1 = arith.constant 0 : i32
    return %c0_i32, %c0_i32_0 : i32, i32
  }
  func.func @transform_17(%arg0: i32, %arg1: i32) -> (i32, i32) {
    %c0_i32 = arith.constant 0 : i32
    %c0_i32_0 = arith.constant 0 : i32
    %c0_i32_1 = arith.constant 0 : i32
    return %c0_i32, %c0_i32_0 : i32, i32
  }
  func.func @transform_18(%arg0: i32, %arg1: i32) -> (i32, i32, i32) {
    %c0_i32 = arith.constant 0 : i32
    %c0_i32_0 = arith.constant 0 : i32
    return %arg0, %arg1, %c0_i32 : i32, i32, i32
  }
}

module attributes {stable_mosaic.version = 11 : i64} {
  func.func @kernel(%arg0: i32, %arg1: memref<1x8x128xf32, #tpu.memory_space<vmem>>, %arg2: memref<1x8x128xf32, #tpu.memory_space<vmem>>, %arg3: memref<1x64x128xf32, #tpu.memory_space<vmem>>, %arg4: memref<1x64x128xf32, #tpu.memory_space<vmem>>, %arg5: memref<1x128xf32, #tpu.memory_space<vmem>>, %arg6: memref<1x128xf32, #tpu.memory_space<vmem>>, %arg7: memref<3x128x128xbf16, #tpu.memory_space<vmem>>, %arg8: memref<3x1x128xf32, #tpu.memory_space<vmem>>, %arg9: memref<128x128xbf16, #tpu.memory_space<vmem>>, %arg10: memref<1x128xf32, #tpu.memory_space<vmem>>, %arg11: memref<1x128xf32, #tpu.memory_space<vmem>>, %arg12: memref<1x128xf32, #tpu.memory_space<vmem>>, %arg13: memref<3x128x128xbf16, #tpu.memory_space<vmem>>, %arg14: memref<3x1x128xf32, #tpu.memory_space<vmem>>, %arg15: memref<128x128xbf16, #tpu.memory_space<vmem>>, %arg16: memref<1x128xf32, #tpu.memory_space<vmem>>, %arg17: memref<1x128xf32, #tpu.memory_space<vmem>>, %arg18: memref<1x128xf32, #tpu.memory_space<vmem>>, %arg19: memref<128x128xbf16, #tpu.memory_space<vmem>>, %arg20: memref<1x128xf32, #tpu.memory_space<vmem>>, %arg21: memref<128x128xbf16, #tpu.memory_space<vmem>>, %arg22: memref<1x128xf32, #tpu.memory_space<vmem>>, %arg23: memref<1x8x128xf32, #tpu.memory_space<vmem>>) attributes {dimension_semantics = [#tpu.dimension_semantics<parallel>], iteration_bounds = array<i64: 2>, scalar_prefetch = 0 : i64, scratch_operands = 0 : i64, tpu.core_type = #tpu.core_type<tc>, window_params = [{transform_indices = @transform_0, window_bounds = array<i64: 1, 8, 128>}, {transform_indices = @transform_1, window_bounds = array<i64: 1, 8, 128>}, {transform_indices = @transform_2, window_bounds = array<i64: 1, 64, 128>}, {transform_indices = @transform_3, window_bounds = array<i64: 1, 64, 128>}, {pipeline_mode = #tpu.pipeline_mode<synchronous>, transform_indices = @transform_4, window_bounds = array<i64: 1, 128>}, {pipeline_mode = #tpu.pipeline_mode<synchronous>, transform_indices = @transform_5, window_bounds = array<i64: 1, 128>}, {pipeline_mode = #tpu.pipeline_mode<synchronous>, transform_indices = @transform_6, window_bounds = array<i64: 3, 128, 128>}, {pipeline_mode = #tpu.pipeline_mode<synchronous>, transform_indices = @transform_7, window_bounds = array<i64: 3, 1, 128>}, {pipeline_mode = #tpu.pipeline_mode<synchronous>, transform_indices = @transform_8, window_bounds = array<i64: 128, 128>}, {pipeline_mode = #tpu.pipeline_mode<synchronous>, transform_indices = @transform_9, window_bounds = array<i64: 1, 128>}, {pipeline_mode = #tpu.pipeline_mode<synchronous>, transform_indices = @transform_10, window_bounds = array<i64: 1, 128>}, {pipeline_mode = #tpu.pipeline_mode<synchronous>, transform_indices = @transform_11, window_bounds = array<i64: 1, 128>}, {pipeline_mode = #tpu.pipeline_mode<synchronous>, transform_indices = @transform_12, window_bounds = array<i64: 3, 128, 128>}, {pipeline_mode = #tpu.pipeline_mode<synchronous>, transform_indices = @transform_13, window_bounds = array<i64: 3, 1, 128>}, {pipeline_mode = #tpu.pipeline_mode<synchronous>, transform_indices = @transform_14, window_bounds = array<i64: 128, 128>}, {pipeline_mode = #tpu.pipeline_mode<synchronous>, transform_indices = @transform_15, window_bounds = array<i64: 1, 128>}, {pipeline_mode = #tpu.pipeline_mode<synchronous>, transform_indices = @transform_16, window_bounds = array<i64: 1, 128>}, {pipeline_mode = #tpu.pipeline_mode<synchronous>, transform_indices = @transform_17, window_bounds = array<i64: 1, 128>}, {pipeline_mode = #tpu.pipeline_mode<synchronous>, transform_indices = @transform_18, window_bounds = array<i64: 128, 128>}, {pipeline_mode = #tpu.pipeline_mode<synchronous>, transform_indices = @transform_19, window_bounds = array<i64: 1, 128>}, {pipeline_mode = #tpu.pipeline_mode<synchronous>, transform_indices = @transform_20, window_bounds = array<i64: 128, 128>}, {pipeline_mode = #tpu.pipeline_mode<synchronous>, transform_indices = @transform_21, window_bounds = array<i64: 1, 128>}, {transform_indices = @transform_22, window_bounds = array<i64: 1, 8, 128>}]} {
    %c0 = arith.constant 0 : index
    %c0_0 = arith.constant 0 : index
    %c0_1 = arith.constant 0 : index
    %0 = vector.load %arg1[%c0, %c0_0, %c0_1] : memref<1x8x128xf32, #tpu.memory_space<vmem>>, vector<1x8x128xf32>
    %1 = vector.shape_cast %0 : vector<1x8x128xf32> to vector<8x128xf32>
    %c0_2 = arith.constant 0 : index
    %c0_3 = arith.constant 0 : index
    %c0_4 = arith.constant 0 : index
    %2 = vector.load %arg2[%c0_2, %c0_3, %c0_4] : memref<1x8x128xf32, #tpu.memory_space<vmem>>, vector<1x8x128xf32>
    %3 = vector.shape_cast %2 : vector<1x8x128xf32> to vector<8x128xf32>
    %c0_5 = arith.constant 0 : index
    %c0_6 = arith.constant 0 : index
    %c0_7 = arith.constant 0 : index
    %4 = vector.load %arg3[%c0_5, %c0_6, %c0_7] : memref<1x64x128xf32, #tpu.memory_space<vmem>>, vector<1x64x128xf32>
    %5 = vector.shape_cast %4 : vector<1x64x128xf32> to vector<64x128xf32>
    %c0_8 = arith.constant 0 : index
    %c0_9 = arith.constant 0 : index
    %c0_10 = arith.constant 0 : index
    %6 = vector.load %arg4[%c0_8, %c0_9, %c0_10] : memref<1x64x128xf32, #tpu.memory_space<vmem>>, vector<1x64x128xf32>
    %7 = vector.shape_cast %6 : vector<1x64x128xf32> to vector<64x128xf32>
    %cst = arith.constant dense<0.000000e+00> : vector<8xf32>
    %8 = vector.multi_reduction <add>, %1, %cst [1] : vector<8x128xf32> to vector<8xf32>
    %9 = vector.shape_cast %8 : vector<8xf32> to vector<8x1xf32>
    %cst_11 = arith.constant 3.125000e-02 : f32
    %10 = vector.broadcast %cst_11 : f32 to vector<8x1xf32>
    %11 = arith.mulf %9, %10 : vector<8x1xf32>
    %12 = arith.mulf %1, %1 : vector<8x128xf32>
    %cst_12 = arith.constant dense<0.000000e+00> : vector<8xf32>
    %13 = vector.multi_reduction <add>, %12, %cst_12 [1] : vector<8x128xf32> to vector<8xf32>
    %14 = vector.shape_cast %13 : vector<8xf32> to vector<8x1xf32>
    %cst_13 = arith.constant 3.125000e-02 : f32
    %15 = vector.broadcast %cst_13 : f32 to vector<8x1xf32>
    %16 = arith.mulf %14, %15 : vector<8x1xf32>
    %17 = arith.mulf %11, %11 : vector<8x1xf32>
    %18 = arith.subf %16, %17 : vector<8x1xf32>
    %19 = vector.broadcast %11 : vector<8x1xf32> to vector<8x128xf32>
    %20 = arith.subf %1, %19 : vector<8x128xf32>
    %cst_14 = arith.constant 9.99999974E-6 : f32
    %21 = vector.broadcast %cst_14 : f32 to vector<8x1xf32>
    %22 = arith.addf %18, %21 : vector<8x1xf32>
    %23 = math.rsqrt %22 : vector<8x1xf32>
    %24 = vector.broadcast %23 : vector<8x1xf32> to vector<8x128xf32>
    %25 = arith.mulf %20, %24 : vector<8x128xf32>
    %c0_15 = arith.constant 0 : index
    %c0_16 = arith.constant 0 : index
    %26 = vector.load %arg5[%c0_15, %c0_16] : memref<1x128xf32, #tpu.memory_space<vmem>>, vector<1x128xf32>
    %27 = vector.broadcast %26 : vector<1x128xf32> to vector<8x128xf32>
    %28 = arith.mulf %25, %27 : vector<8x128xf32>
    %c0_17 = arith.constant 0 : index
    %c0_18 = arith.constant 0 : index
    %29 = vector.load %arg6[%c0_17, %c0_18] : memref<1x128xf32, #tpu.memory_space<vmem>>, vector<1x128xf32>
    %30 = vector.broadcast %29 : vector<1x128xf32> to vector<8x128xf32>
    %31 = arith.addf %28, %30 : vector<8x128xf32>
    %32 = arith.addf %31, %3 : vector<8x128xf32>
    %33 = arith.truncf %32 : vector<8x128xf32> to vector<8x128xbf16>
    %c0_19 = arith.constant 0 : index
    %c0_20 = arith.constant 0 : index
    %c0_21 = arith.constant 0 : index
    %34 = vector.load %arg7[%c0_19, %c0_20, %c0_21] : memref<3x128x128xbf16, #tpu.memory_space<vmem>>, vector<1x128x128xbf16>
    %35 = vector.shape_cast %34 : vector<1x128x128xbf16> to vector<128x128xbf16>
    %cst_22 = arith.constant dense<0.000000e+00> : vector<8x128xf32>
    %36 = tpu.matmul %33, %35, %cst_22 {dimension_numbers = #tpu.dot_dimension_numbers<[1], [0], [0], [1], [0, 0, 1, 1], [], []>} : vector<8x128xbf16>, vector<128x128xbf16>, vector<8x128xf32> -> vector<8x128xf32>
    %c0_23 = arith.constant 0 : index
    %c0_24 = arith.constant 0 : index
    %c0_25 = arith.constant 0 : index
    %37 = vector.load %arg8[%c0_23, %c0_24, %c0_25] : memref<3x1x128xf32, #tpu.memory_space<vmem>>, vector<1x1x128xf32>
    %38 = vector.shape_cast %37 : vector<1x1x128xf32> to vector<1x128xf32>
    %39 = vector.broadcast %38 : vector<1x128xf32> to vector<8x128xf32>
    %40 = arith.addf %36, %39 : vector<8x128xf32>
    %41 = arith.addf %5, %7 : vector<64x128xf32>
    %42 = arith.truncf %41 : vector<64x128xf32> to vector<64x128xbf16>
    %c1 = arith.constant 1 : index
    %c0_26 = arith.constant 0 : index
    %c0_27 = arith.constant 0 : index
    %43 = vector.load %arg7[%c1, %c0_26, %c0_27] : memref<3x128x128xbf16, #tpu.memory_space<vmem>>, vector<1x128x128xbf16>
    %44 = vector.shape_cast %43 : vector<1x128x128xbf16> to vector<128x128xbf16>
    %cst_28 = arith.constant dense<0.000000e+00> : vector<64x128xf32>
    %45 = tpu.matmul %42, %44, %cst_28 {dimension_numbers = #tpu.dot_dimension_numbers<[1], [0], [0], [1], [0, 0, 1, 1], [], []>} : vector<64x128xbf16>, vector<128x128xbf16>, vector<64x128xf32> -> vector<64x128xf32>
    %c1_29 = arith.constant 1 : index
    %c0_30 = arith.constant 0 : index
    %c0_31 = arith.constant 0 : index
    %46 = vector.load %arg8[%c1_29, %c0_30, %c0_31] : memref<3x1x128xf32, #tpu.memory_space<vmem>>, vector<1x1x128xf32>
    %47 = vector.shape_cast %46 : vector<1x1x128xf32> to vector<1x128xf32>
    %48 = vector.broadcast %47 : vector<1x128xf32> to vector<64x128xf32>
    %49 = arith.addf %45, %48 : vector<64x128xf32>
    %50 = arith.truncf %5 : vector<64x128xf32> to vector<64x128xbf16>
    %c2 = arith.constant 2 : index
    %c0_32 = arith.constant 0 : index
    %c0_33 = arith.constant 0 : index
    %51 = vector.load %arg7[%c2, %c0_32, %c0_33] : memref<3x128x128xbf16, #tpu.memory_space<vmem>>, vector<1x128x128xbf16>
    %52 = vector.shape_cast %51 : vector<1x128x128xbf16> to vector<128x128xbf16>
    %cst_34 = arith.constant dense<0.000000e+00> : vector<64x128xf32>
    %53 = tpu.matmul %50, %52, %cst_34 {dimension_numbers = #tpu.dot_dimension_numbers<[1], [0], [0], [1], [0, 0, 1, 1], [], []>} : vector<64x128xbf16>, vector<128x128xbf16>, vector<64x128xf32> -> vector<64x128xf32>
    %c2_35 = arith.constant 2 : index
    %c0_36 = arith.constant 0 : index
    %c0_37 = arith.constant 0 : index
    %54 = vector.load %arg8[%c2_35, %c0_36, %c0_37] : memref<3x1x128xf32, #tpu.memory_space<vmem>>, vector<1x1x128xf32>
    %55 = vector.shape_cast %54 : vector<1x1x128xf32> to vector<1x128xf32>
    %56 = vector.broadcast %55 : vector<1x128xf32> to vector<64x128xf32>
    %57 = arith.addf %53, %56 : vector<64x128xf32>
    %58 = vector.extract_strided_slice %40 {offsets = [0, 0], sizes = [8, 16], strides = [1, 1]} : vector<8x128xf32> to vector<8x16xf32>
    %59 = arith.truncf %58 : vector<8x16xf32> to vector<8x16xbf16>
    %60 = vector.extract_strided_slice %49 {offsets = [0, 0], sizes = [64, 16], strides = [1, 1]} : vector<64x128xf32> to vector<64x16xf32>
    %61 = arith.truncf %60 : vector<64x16xf32> to vector<64x16xbf16>
    %62 = vector.extract_strided_slice %57 {offsets = [0, 0], sizes = [64, 16], strides = [1, 1]} : vector<64x128xf32> to vector<64x16xf32>
    %63 = arith.truncf %62 : vector<64x16xf32> to vector<64x16xbf16>
    %cst_38 = arith.constant dense<0.000000e+00> : vector<8x64xf32>
    %64 = tpu.matmul %59, %61, %cst_38 {dimension_numbers = #tpu.dot_dimension_numbers<[1], [1], [0], [0], [0, 0, 1, 0], [], []>} : vector<8x16xbf16>, vector<64x16xbf16>, vector<8x64xf32> -> vector<8x64xf32>
    %cst_39 = arith.constant 2.500000e-01 : f32
    %65 = vector.broadcast %cst_39 : f32 to vector<8x64xf32>
    %66 = arith.mulf %64, %65 : vector<8x64xf32>
    %cst_40 = arith.constant dense<0xFF800000> : vector<8xf32>
    %67 = vector.multi_reduction <maximumf>, %66, %cst_40 [1] : vector<8x64xf32> to vector<8xf32>
    %68 = vector.shape_cast %67 : vector<8xf32> to vector<8x1xf32>
    %69 = vector.broadcast %68 : vector<8x1xf32> to vector<8x64xf32>
    %70 = arith.subf %66, %69 : vector<8x64xf32>
    %71 = math.exp %70 : vector<8x64xf32>
    %cst_41 = arith.constant dense<0.000000e+00> : vector<8xf32>
    %72 = vector.multi_reduction <add>, %71, %cst_41 [1] : vector<8x64xf32> to vector<8xf32>
    %73 = vector.shape_cast %72 : vector<8xf32> to vector<8x1xf32>
    %74 = tpu.reciprocal %73 : vector<8x1xf32> -> vector<8x1xf32>
    %75 = vector.broadcast %74 : vector<8x1xf32> to vector<8x64xf32>
    %76 = arith.mulf %71, %75 : vector<8x64xf32>
    %77 = arith.truncf %76 : vector<8x64xf32> to vector<8x64xbf16>
    %cst_42 = arith.constant dense<0.000000e+00> : vector<8x16xf32>
    %78 = tpu.matmul %77, %63, %cst_42 {dimension_numbers = #tpu.dot_dimension_numbers<[1], [0], [0], [1], [0, 0, 1, 1], [], []>} : vector<8x64xbf16>, vector<64x16xbf16>, vector<8x16xf32> -> vector<8x16xf32>
    %79 = arith.truncf %78 : vector<8x16xf32> to vector<8x16xbf16>
    %c0_43 = arith.constant 0 : index
    %c0_44 = arith.constant 0 : index
    %80 = vector.load %arg9[%c0_43, %c0_44] : memref<128x128xbf16, #tpu.memory_space<vmem>>, vector<16x128xbf16>
    %cst_45 = arith.constant dense<0.000000e+00> : vector<8x128xf32>
    %81 = tpu.matmul %79, %80, %cst_45 {dimension_numbers = #tpu.dot_dimension_numbers<[1], [0], [0], [1], [0, 0, 1, 1], [], []>} : vector<8x16xbf16>, vector<16x128xbf16>, vector<8x128xf32> -> vector<8x128xf32>
    %82 = vector.extract_strided_slice %40 {offsets = [0, 16], sizes = [8, 16], strides = [1, 1]} : vector<8x128xf32> to vector<8x16xf32>
    %83 = arith.truncf %82 : vector<8x16xf32> to vector<8x16xbf16>
    %84 = vector.extract_strided_slice %49 {offsets = [0, 16], sizes = [64, 16], strides = [1, 1]} : vector<64x128xf32> to vector<64x16xf32>
    %85 = arith.truncf %84 : vector<64x16xf32> to vector<64x16xbf16>
    %86 = vector.extract_strided_slice %57 {offsets = [0, 16], sizes = [64, 16], strides = [1, 1]} : vector<64x128xf32> to vector<64x16xf32>
    %87 = arith.truncf %86 : vector<64x16xf32> to vector<64x16xbf16>
    %cst_46 = arith.constant dense<0.000000e+00> : vector<8x64xf32>
    %88 = tpu.matmul %83, %85, %cst_46 {dimension_numbers = #tpu.dot_dimension_numbers<[1], [1], [0], [0], [0, 0, 1, 0], [], []>} : vector<8x16xbf16>, vector<64x16xbf16>, vector<8x64xf32> -> vector<8x64xf32>
    %cst_47 = arith.constant 2.500000e-01 : f32
    %89 = vector.broadcast %cst_47 : f32 to vector<8x64xf32>
    %90 = arith.mulf %88, %89 : vector<8x64xf32>
    %cst_48 = arith.constant dense<0xFF800000> : vector<8xf32>
    %91 = vector.multi_reduction <maximumf>, %90, %cst_48 [1] : vector<8x64xf32> to vector<8xf32>
    %92 = vector.shape_cast %91 : vector<8xf32> to vector<8x1xf32>
    %93 = vector.broadcast %92 : vector<8x1xf32> to vector<8x64xf32>
    %94 = arith.subf %90, %93 : vector<8x64xf32>
    %95 = math.exp %94 : vector<8x64xf32>
    %cst_49 = arith.constant dense<0.000000e+00> : vector<8xf32>
    %96 = vector.multi_reduction <add>, %95, %cst_49 [1] : vector<8x64xf32> to vector<8xf32>
    %97 = vector.shape_cast %96 : vector<8xf32> to vector<8x1xf32>
    %98 = tpu.reciprocal %97 : vector<8x1xf32> -> vector<8x1xf32>
    %99 = vector.broadcast %98 : vector<8x1xf32> to vector<8x64xf32>
    %100 = arith.mulf %95, %99 : vector<8x64xf32>
    %101 = arith.truncf %100 : vector<8x64xf32> to vector<8x64xbf16>
    %cst_50 = arith.constant dense<0.000000e+00> : vector<8x16xf32>
    %102 = tpu.matmul %101, %87, %cst_50 {dimension_numbers = #tpu.dot_dimension_numbers<[1], [0], [0], [1], [0, 0, 1, 1], [], []>} : vector<8x64xbf16>, vector<64x16xbf16>, vector<8x16xf32> -> vector<8x16xf32>
    %103 = arith.truncf %102 : vector<8x16xf32> to vector<8x16xbf16>
    %c16 = arith.constant 16 : index
    %c0_51 = arith.constant 0 : index
    %104 = vector.load %arg9[%c16, %c0_51] : memref<128x128xbf16, #tpu.memory_space<vmem>>, vector<16x128xbf16>
    %cst_52 = arith.constant dense<0.000000e+00> : vector<8x128xf32>
    %105 = tpu.matmul %103, %104, %cst_52 {dimension_numbers = #tpu.dot_dimension_numbers<[1], [0], [0], [1], [0, 0, 1, 1], [], []>} : vector<8x16xbf16>, vector<16x128xbf16>, vector<8x128xf32> -> vector<8x128xf32>
    %106 = arith.addf %81, %105 : vector<8x128xf32>
    %c0_53 = arith.constant 0 : index
    %c0_54 = arith.constant 0 : index
    %107 = vector.load %arg10[%c0_53, %c0_54] : memref<1x128xf32, #tpu.memory_space<vmem>>, vector<1x128xf32>
    %108 = vector.broadcast %107 : vector<1x128xf32> to vector<8x128xf32>
    %109 = arith.addf %106, %108 : vector<8x128xf32>
    %110 = arith.addf %31, %109 : vector<8x128xf32>
    %cst_55 = arith.constant dense<0.000000e+00> : vector<8xf32>
    %111 = vector.multi_reduction <add>, %110, %cst_55 [1] : vector<8x128xf32> to vector<8xf32>
    %112 = vector.shape_cast %111 : vector<8xf32> to vector<8x1xf32>
    %cst_56 = arith.constant 3.125000e-02 : f32
    %113 = vector.broadcast %cst_56 : f32 to vector<8x1xf32>
    %114 = arith.mulf %112, %113 : vector<8x1xf32>
    %115 = arith.mulf %110, %110 : vector<8x128xf32>
    %cst_57 = arith.constant dense<0.000000e+00> : vector<8xf32>
    %116 = vector.multi_reduction <add>, %115, %cst_57 [1] : vector<8x128xf32> to vector<8xf32>
    %117 = vector.shape_cast %116 : vector<8xf32> to vector<8x1xf32>
    %cst_58 = arith.constant 3.125000e-02 : f32
    %118 = vector.broadcast %cst_58 : f32 to vector<8x1xf32>
    %119 = arith.mulf %117, %118 : vector<8x1xf32>
    %120 = arith.mulf %114, %114 : vector<8x1xf32>
    %121 = arith.subf %119, %120 : vector<8x1xf32>
    %122 = vector.broadcast %114 : vector<8x1xf32> to vector<8x128xf32>
    %123 = arith.subf %110, %122 : vector<8x128xf32>
    %cst_59 = arith.constant 9.99999974E-6 : f32
    %124 = vector.broadcast %cst_59 : f32 to vector<8x1xf32>
    %125 = arith.addf %121, %124 : vector<8x1xf32>
    %126 = math.rsqrt %125 : vector<8x1xf32>
    %127 = vector.broadcast %126 : vector<8x1xf32> to vector<8x128xf32>
    %128 = arith.mulf %123, %127 : vector<8x128xf32>
    %c0_60 = arith.constant 0 : index
    %c0_61 = arith.constant 0 : index
    %129 = vector.load %arg11[%c0_60, %c0_61] : memref<1x128xf32, #tpu.memory_space<vmem>>, vector<1x128xf32>
    %130 = vector.broadcast %129 : vector<1x128xf32> to vector<8x128xf32>
    %131 = arith.mulf %128, %130 : vector<8x128xf32>
    %c0_62 = arith.constant 0 : index
    %c0_63 = arith.constant 0 : index
    %132 = vector.load %arg12[%c0_62, %c0_63] : memref<1x128xf32, #tpu.memory_space<vmem>>, vector<1x128xf32>
    %133 = vector.broadcast %132 : vector<1x128xf32> to vector<8x128xf32>
    %134 = arith.addf %131, %133 : vector<8x128xf32>
    %135 = arith.addf %134, %3 : vector<8x128xf32>
    %136 = arith.truncf %135 : vector<8x128xf32> to vector<8x128xbf16>
    %c0_64 = arith.constant 0 : index
    %c0_65 = arith.constant 0 : index
    %c0_66 = arith.constant 0 : index
    %137 = vector.load %arg13[%c0_64, %c0_65, %c0_66] : memref<3x128x128xbf16, #tpu.memory_space<vmem>>, vector<1x128x128xbf16>
    %138 = vector.shape_cast %137 : vector<1x128x128xbf16> to vector<128x128xbf16>
    %cst_67 = arith.constant dense<0.000000e+00> : vector<8x128xf32>
    %139 = tpu.matmul %136, %138, %cst_67 {dimension_numbers = #tpu.dot_dimension_numbers<[1], [0], [0], [1], [0, 0, 1, 1], [], []>} : vector<8x128xbf16>, vector<128x128xbf16>, vector<8x128xf32> -> vector<8x128xf32>
    %c0_68 = arith.constant 0 : index
    %c0_69 = arith.constant 0 : index
    %c0_70 = arith.constant 0 : index
    %140 = vector.load %arg14[%c0_68, %c0_69, %c0_70] : memref<3x1x128xf32, #tpu.memory_space<vmem>>, vector<1x1x128xf32>
    %141 = vector.shape_cast %140 : vector<1x1x128xf32> to vector<1x128xf32>
    %142 = vector.broadcast %141 : vector<1x128xf32> to vector<8x128xf32>
    %143 = arith.addf %139, %142 : vector<8x128xf32>
    %144 = arith.addf %134, %3 : vector<8x128xf32>
    %145 = arith.truncf %144 : vector<8x128xf32> to vector<8x128xbf16>
    %c1_71 = arith.constant 1 : index
    %c0_72 = arith.constant 0 : index
    %c0_73 = arith.constant 0 : index
    %146 = vector.load %arg13[%c1_71, %c0_72, %c0_73] : memref<3x128x128xbf16, #tpu.memory_space<vmem>>, vector<1x128x128xbf16>
    %147 = vector.shape_cast %146 : vector<1x128x128xbf16> to vector<128x128xbf16>
    %cst_74 = arith.constant dense<0.000000e+00> : vector<8x128xf32>
    %148 = tpu.matmul %145, %147, %cst_74 {dimension_numbers = #tpu.dot_dimension_numbers<[1], [0], [0], [1], [0, 0, 1, 1], [], []>} : vector<8x128xbf16>, vector<128x128xbf16>, vector<8x128xf32> -> vector<8x128xf32>
    %c1_75 = arith.constant 1 : index
    %c0_76 = arith.constant 0 : index
    %c0_77 = arith.constant 0 : index
    %149 = vector.load %arg14[%c1_75, %c0_76, %c0_77] : memref<3x1x128xf32, #tpu.memory_space<vmem>>, vector<1x1x128xf32>
    %150 = vector.shape_cast %149 : vector<1x1x128xf32> to vector<1x128xf32>
    %151 = vector.broadcast %150 : vector<1x128xf32> to vector<8x128xf32>
    %152 = arith.addf %148, %151 : vector<8x128xf32>
    %153 = arith.truncf %134 : vector<8x128xf32> to vector<8x128xbf16>
    %c2_78 = arith.constant 2 : index
    %c0_79 = arith.constant 0 : index
    %c0_80 = arith.constant 0 : index
    %154 = vector.load %arg13[%c2_78, %c0_79, %c0_80] : memref<3x128x128xbf16, #tpu.memory_space<vmem>>, vector<1x128x128xbf16>
    %155 = vector.shape_cast %154 : vector<1x128x128xbf16> to vector<128x128xbf16>
    %cst_81 = arith.constant dense<0.000000e+00> : vector<8x128xf32>
    %156 = tpu.matmul %153, %155, %cst_81 {dimension_numbers = #tpu.dot_dimension_numbers<[1], [0], [0], [1], [0, 0, 1, 1], [], []>} : vector<8x128xbf16>, vector<128x128xbf16>, vector<8x128xf32> -> vector<8x128xf32>
    %c2_82 = arith.constant 2 : index
    %c0_83 = arith.constant 0 : index
    %c0_84 = arith.constant 0 : index
    %157 = vector.load %arg14[%c2_82, %c0_83, %c0_84] : memref<3x1x128xf32, #tpu.memory_space<vmem>>, vector<1x1x128xf32>
    %158 = vector.shape_cast %157 : vector<1x1x128xf32> to vector<1x128xf32>
    %159 = vector.broadcast %158 : vector<1x128xf32> to vector<8x128xf32>
    %160 = arith.addf %156, %159 : vector<8x128xf32>
    %161 = vector.extract_strided_slice %143 {offsets = [0, 0], sizes = [8, 16], strides = [1, 1]} : vector<8x128xf32> to vector<8x16xf32>
    %162 = arith.truncf %161 : vector<8x16xf32> to vector<8x16xbf16>
    %163 = vector.extract_strided_slice %152 {offsets = [0, 0], sizes = [8, 16], strides = [1, 1]} : vector<8x128xf32> to vector<8x16xf32>
    %164 = arith.truncf %163 : vector<8x16xf32> to vector<8x16xbf16>
    %165 = vector.extract_strided_slice %160 {offsets = [0, 0], sizes = [8, 16], strides = [1, 1]} : vector<8x128xf32> to vector<8x16xf32>
    %166 = arith.truncf %165 : vector<8x16xf32> to vector<8x16xbf16>
    %cst_85 = arith.constant dense<0.000000e+00> : vector<8x8xf32>
    %167 = tpu.matmul %162, %164, %cst_85 {dimension_numbers = #tpu.dot_dimension_numbers<[1], [1], [0], [0], [0, 0, 1, 0], [], []>} : vector<8x16xbf16>, vector<8x16xbf16>, vector<8x8xf32> -> vector<8x8xf32>
    %cst_86 = arith.constant 2.500000e-01 : f32
    %168 = vector.broadcast %cst_86 : f32 to vector<8x8xf32>
    %169 = arith.mulf %167, %168 : vector<8x8xf32>
    %cst_87 = arith.constant dense<0xFF800000> : vector<8xf32>
    %170 = vector.multi_reduction <maximumf>, %169, %cst_87 [1] : vector<8x8xf32> to vector<8xf32>
    %171 = vector.shape_cast %170 : vector<8xf32> to vector<8x1xf32>
    %172 = vector.broadcast %171 : vector<8x1xf32> to vector<8x8xf32>
    %173 = arith.subf %169, %172 : vector<8x8xf32>
    %174 = math.exp %173 : vector<8x8xf32>
    %cst_88 = arith.constant dense<0.000000e+00> : vector<8xf32>
    %175 = vector.multi_reduction <add>, %174, %cst_88 [1] : vector<8x8xf32> to vector<8xf32>
    %176 = vector.shape_cast %175 : vector<8xf32> to vector<8x1xf32>
    %177 = tpu.reciprocal %176 : vector<8x1xf32> -> vector<8x1xf32>
    %178 = vector.broadcast %177 : vector<8x1xf32> to vector<8x8xf32>
    %179 = arith.mulf %174, %178 : vector<8x8xf32>
    %180 = arith.truncf %179 : vector<8x8xf32> to vector<8x8xbf16>
    %cst_89 = arith.constant dense<0.000000e+00> : vector<8x16xf32>
    %181 = tpu.matmul %180, %166, %cst_89 {dimension_numbers = #tpu.dot_dimension_numbers<[1], [0], [0], [1], [0, 0, 1, 1], [], []>} : vector<8x8xbf16>, vector<8x16xbf16>, vector<8x16xf32> -> vector<8x16xf32>
    %182 = arith.truncf %181 : vector<8x16xf32> to vector<8x16xbf16>
    %c0_90 = arith.constant 0 : index
    %c0_91 = arith.constant 0 : index
    %183 = vector.load %arg15[%c0_90, %c0_91] : memref<128x128xbf16, #tpu.memory_space<vmem>>, vector<16x128xbf16>
    %cst_92 = arith.constant dense<0.000000e+00> : vector<8x128xf32>
    %184 = tpu.matmul %182, %183, %cst_92 {dimension_numbers = #tpu.dot_dimension_numbers<[1], [0], [0], [1], [0, 0, 1, 1], [], []>} : vector<8x16xbf16>, vector<16x128xbf16>, vector<8x128xf32> -> vector<8x128xf32>
    %185 = vector.extract_strided_slice %143 {offsets = [0, 16], sizes = [8, 16], strides = [1, 1]} : vector<8x128xf32> to vector<8x16xf32>
    %186 = arith.truncf %185 : vector<8x16xf32> to vector<8x16xbf16>
    %187 = vector.extract_strided_slice %152 {offsets = [0, 16], sizes = [8, 16], strides = [1, 1]} : vector<8x128xf32> to vector<8x16xf32>
    %188 = arith.truncf %187 : vector<8x16xf32> to vector<8x16xbf16>
    %189 = vector.extract_strided_slice %160 {offsets = [0, 16], sizes = [8, 16], strides = [1, 1]} : vector<8x128xf32> to vector<8x16xf32>
    %190 = arith.truncf %189 : vector<8x16xf32> to vector<8x16xbf16>
    %cst_93 = arith.constant dense<0.000000e+00> : vector<8x8xf32>
    %191 = tpu.matmul %186, %188, %cst_93 {dimension_numbers = #tpu.dot_dimension_numbers<[1], [1], [0], [0], [0, 0, 1, 0], [], []>} : vector<8x16xbf16>, vector<8x16xbf16>, vector<8x8xf32> -> vector<8x8xf32>
    %cst_94 = arith.constant 2.500000e-01 : f32
    %192 = vector.broadcast %cst_94 : f32 to vector<8x8xf32>
    %193 = arith.mulf %191, %192 : vector<8x8xf32>
    %cst_95 = arith.constant dense<0xFF800000> : vector<8xf32>
    %194 = vector.multi_reduction <maximumf>, %193, %cst_95 [1] : vector<8x8xf32> to vector<8xf32>
    %195 = vector.shape_cast %194 : vector<8xf32> to vector<8x1xf32>
    %196 = vector.broadcast %195 : vector<8x1xf32> to vector<8x8xf32>
    %197 = arith.subf %193, %196 : vector<8x8xf32>
    %198 = math.exp %197 : vector<8x8xf32>
    %cst_96 = arith.constant dense<0.000000e+00> : vector<8xf32>
    %199 = vector.multi_reduction <add>, %198, %cst_96 [1] : vector<8x8xf32> to vector<8xf32>
    %200 = vector.shape_cast %199 : vector<8xf32> to vector<8x1xf32>
    %201 = tpu.reciprocal %200 : vector<8x1xf32> -> vector<8x1xf32>
    %202 = vector.broadcast %201 : vector<8x1xf32> to vector<8x8xf32>
    %203 = arith.mulf %198, %202 : vector<8x8xf32>
    %204 = arith.truncf %203 : vector<8x8xf32> to vector<8x8xbf16>
    %cst_97 = arith.constant dense<0.000000e+00> : vector<8x16xf32>
    %205 = tpu.matmul %204, %190, %cst_97 {dimension_numbers = #tpu.dot_dimension_numbers<[1], [0], [0], [1], [0, 0, 1, 1], [], []>} : vector<8x8xbf16>, vector<8x16xbf16>, vector<8x16xf32> -> vector<8x16xf32>
    %206 = arith.truncf %205 : vector<8x16xf32> to vector<8x16xbf16>
    %c16_98 = arith.constant 16 : index
    %c0_99 = arith.constant 0 : index
    %207 = vector.load %arg15[%c16_98, %c0_99] : memref<128x128xbf16, #tpu.memory_space<vmem>>, vector<16x128xbf16>
    %cst_100 = arith.constant dense<0.000000e+00> : vector<8x128xf32>
    %208 = tpu.matmul %206, %207, %cst_100 {dimension_numbers = #tpu.dot_dimension_numbers<[1], [0], [0], [1], [0, 0, 1, 1], [], []>} : vector<8x16xbf16>, vector<16x128xbf16>, vector<8x128xf32> -> vector<8x128xf32>
    %209 = arith.addf %184, %208 : vector<8x128xf32>
    %c0_101 = arith.constant 0 : index
    %c0_102 = arith.constant 0 : index
    %210 = vector.load %arg16[%c0_101, %c0_102] : memref<1x128xf32, #tpu.memory_space<vmem>>, vector<1x128xf32>
    %211 = vector.broadcast %210 : vector<1x128xf32> to vector<8x128xf32>
    %212 = arith.addf %209, %211 : vector<8x128xf32>
    %213 = arith.addf %134, %212 : vector<8x128xf32>
    %cst_103 = arith.constant dense<0.000000e+00> : vector<8xf32>
    %214 = vector.multi_reduction <add>, %213, %cst_103 [1] : vector<8x128xf32> to vector<8xf32>
    %215 = vector.shape_cast %214 : vector<8xf32> to vector<8x1xf32>
    %cst_104 = arith.constant 3.125000e-02 : f32
    %216 = vector.broadcast %cst_104 : f32 to vector<8x1xf32>
    %217 = arith.mulf %215, %216 : vector<8x1xf32>
    %218 = arith.mulf %213, %213 : vector<8x128xf32>
    %cst_105 = arith.constant dense<0.000000e+00> : vector<8xf32>
    %219 = vector.multi_reduction <add>, %218, %cst_105 [1] : vector<8x128xf32> to vector<8xf32>
    %220 = vector.shape_cast %219 : vector<8xf32> to vector<8x1xf32>
    %cst_106 = arith.constant 3.125000e-02 : f32
    %221 = vector.broadcast %cst_106 : f32 to vector<8x1xf32>
    %222 = arith.mulf %220, %221 : vector<8x1xf32>
    %223 = arith.mulf %217, %217 : vector<8x1xf32>
    %224 = arith.subf %222, %223 : vector<8x1xf32>
    %225 = vector.broadcast %217 : vector<8x1xf32> to vector<8x128xf32>
    %226 = arith.subf %213, %225 : vector<8x128xf32>
    %cst_107 = arith.constant 9.99999974E-6 : f32
    %227 = vector.broadcast %cst_107 : f32 to vector<8x1xf32>
    %228 = arith.addf %224, %227 : vector<8x1xf32>
    %229 = math.rsqrt %228 : vector<8x1xf32>
    %230 = vector.broadcast %229 : vector<8x1xf32> to vector<8x128xf32>
    %231 = arith.mulf %226, %230 : vector<8x128xf32>
    %c0_108 = arith.constant 0 : index
    %c0_109 = arith.constant 0 : index
    %232 = vector.load %arg17[%c0_108, %c0_109] : memref<1x128xf32, #tpu.memory_space<vmem>>, vector<1x128xf32>
    %233 = vector.broadcast %232 : vector<1x128xf32> to vector<8x128xf32>
    %234 = arith.mulf %231, %233 : vector<8x128xf32>
    %c0_110 = arith.constant 0 : index
    %c0_111 = arith.constant 0 : index
    %235 = vector.load %arg18[%c0_110, %c0_111] : memref<1x128xf32, #tpu.memory_space<vmem>>, vector<1x128xf32>
    %236 = vector.broadcast %235 : vector<1x128xf32> to vector<8x128xf32>
    %237 = arith.addf %234, %236 : vector<8x128xf32>
    %238 = arith.truncf %237 : vector<8x128xf32> to vector<8x128xbf16>
    %c0_112 = arith.constant 0 : index
    %c0_113 = arith.constant 0 : index
    %239 = vector.load %arg19[%c0_112, %c0_113] : memref<128x128xbf16, #tpu.memory_space<vmem>>, vector<128x128xbf16>
    %cst_114 = arith.constant dense<0.000000e+00> : vector<8x128xf32>
    %240 = tpu.matmul %238, %239, %cst_114 {dimension_numbers = #tpu.dot_dimension_numbers<[1], [0], [0], [1], [0, 0, 1, 1], [], []>} : vector<8x128xbf16>, vector<128x128xbf16>, vector<8x128xf32> -> vector<8x128xf32>
    %c0_115 = arith.constant 0 : index
    %c0_116 = arith.constant 0 : index
    %241 = vector.load %arg20[%c0_115, %c0_116] : memref<1x128xf32, #tpu.memory_space<vmem>>, vector<1x128xf32>
    %242 = vector.broadcast %241 : vector<1x128xf32> to vector<8x128xf32>
    %243 = arith.addf %240, %242 : vector<8x128xf32>
    %cst_117 = arith.constant 0.000000e+00 : f32
    %244 = vector.broadcast %cst_117 : f32 to vector<8x128xf32>
    %245 = arith.maximumf %243, %244 : vector<8x128xf32>
    %246 = arith.truncf %245 : vector<8x128xf32> to vector<8x128xbf16>
    %c0_118 = arith.constant 0 : index
    %c0_119 = arith.constant 0 : index
    %247 = vector.load %arg21[%c0_118, %c0_119] : memref<128x128xbf16, #tpu.memory_space<vmem>>, vector<128x128xbf16>
    %cst_120 = arith.constant dense<0.000000e+00> : vector<8x128xf32>
    %248 = tpu.matmul %246, %247, %cst_120 {dimension_numbers = #tpu.dot_dimension_numbers<[1], [0], [0], [1], [0, 0, 1, 1], [], []>} : vector<8x128xbf16>, vector<128x128xbf16>, vector<8x128xf32> -> vector<8x128xf32>
    %249 = arith.addf %213, %248 : vector<8x128xf32>
    %c0_121 = arith.constant 0 : index
    %c0_122 = arith.constant 0 : index
    %250 = vector.load %arg22[%c0_121, %c0_122] : memref<1x128xf32, #tpu.memory_space<vmem>>, vector<1x128xf32>
    %251 = vector.broadcast %250 : vector<1x128xf32> to vector<8x128xf32>
    %252 = arith.addf %249, %251 : vector<8x128xf32>
    %c0_123 = arith.constant 0 : index
    %c0_124 = arith.constant 0 : index
    %c0_125 = arith.constant 0 : index
    %253 = vector.load %arg23[%c0_123, %c0_124, %c0_125] : memref<1x8x128xf32, #tpu.memory_space<vmem>>, vector<1x8x128xf32>
    %254 = vector.shape_cast %253 : vector<1x8x128xf32> to vector<8x128xf32>
    %255 = vector.shape_cast %252 : vector<8x128xf32> to vector<1x8x128xf32>
    tpu.vector_store %arg23[%c0_123, %c0_124, %c0_125], %255 {strides = array<i32>} : memref<1x8x128xf32, #tpu.memory_space<vmem>>, vector<1x8x128xf32>,
    return
  }
  func.func @transform_0(%arg0: i32) -> (i32, i32, i32) {
    %c0_i32 = arith.constant 0 : i32
    %c0_i32_0 = arith.constant 0 : i32
    %c0_i32_1 = arith.constant 0 : i32
    return %arg0, %c0_i32, %c0_i32_0 : i32, i32, i32
  }
  func.func @transform_1(%arg0: i32) -> (i32, i32, i32) {
    %c0_i32 = arith.constant 0 : i32
    %c0_i32_0 = arith.constant 0 : i32
    %c0_i32_1 = arith.constant 0 : i32
    return %arg0, %c0_i32, %c0_i32_0 : i32, i32, i32
  }
  func.func @transform_2(%arg0: i32) -> (i32, i32, i32) {
    %c0_i32 = arith.constant 0 : i32
    %c0_i32_0 = arith.constant 0 : i32
    %c0_i32_1 = arith.constant 0 : i32
    return %arg0, %c0_i32, %c0_i32_0 : i32, i32, i32
  }
  func.func @transform_3(%arg0: i32) -> (i32, i32, i32) {
    %c0_i32 = arith.constant 0 : i32
    %c0_i32_0 = arith.constant 0 : i32
    %c0_i32_1 = arith.constant 0 : i32
    return %arg0, %c0_i32, %c0_i32_0 : i32, i32, i32
  }
  func.func @transform_4(%arg0: i32) -> (i32, i32) {
    %c0_i32 = arith.constant 0 : i32
    %c0_i32_0 = arith.constant 0 : i32
    %c0_i32_1 = arith.constant 0 : i32
    return %c0_i32, %c0_i32_0 : i32, i32
  }
  func.func @transform_5(%arg0: i32) -> (i32, i32) {
    %c0_i32 = arith.constant 0 : i32
    %c0_i32_0 = arith.constant 0 : i32
    %c0_i32_1 = arith.constant 0 : i32
    return %c0_i32, %c0_i32_0 : i32, i32
  }
  func.func @transform_6(%arg0: i32) -> (i32, i32, i32) {
    %c0_i32 = arith.constant 0 : i32
    %c0_i32_0 = arith.constant 0 : i32
    %c0_i32_1 = arith.constant 0 : i32
    %c0_i32_2 = arith.constant 0 : i32
    return %c0_i32, %c0_i32_0, %c0_i32_1 : i32, i32, i32
  }
  func.func @transform_7(%arg0: i32) -> (i32, i32, i32) {
    %c0_i32 = arith.constant 0 : i32
    %c0_i32_0 = arith.constant 0 : i32
    %c0_i32_1 = arith.constant 0 : i32
    %c0_i32_2 = arith.constant 0 : i32
    return %c0_i32, %c0_i32_0, %c0_i32_1 : i32, i32, i32
  }
  func.func @transform_8(%arg0: i32) -> (i32, i32) {
    %c0_i32 = arith.constant 0 : i32
    %c0_i32_0 = arith.constant 0 : i32
    %c0_i32_1 = arith.constant 0 : i32
    return %c0_i32, %c0_i32_0 : i32, i32
  }
  func.func @transform_9(%arg0: i32) -> (i32, i32) {
    %c0_i32 = arith.constant 0 : i32
    %c0_i32_0 = arith.constant 0 : i32
    %c0_i32_1 = arith.constant 0 : i32
    return %c0_i32, %c0_i32_0 : i32, i32
  }
  func.func @transform_10(%arg0: i32) -> (i32, i32) {
    %c0_i32 = arith.constant 0 : i32
    %c0_i32_0 = arith.constant 0 : i32
    %c0_i32_1 = arith.constant 0 : i32
    return %c0_i32, %c0_i32_0 : i32, i32
  }
  func.func @transform_11(%arg0: i32) -> (i32, i32) {
    %c0_i32 = arith.constant 0 : i32
    %c0_i32_0 = arith.constant 0 : i32
    %c0_i32_1 = arith.constant 0 : i32
    return %c0_i32, %c0_i32_0 : i32, i32
  }
  func.func @transform_12(%arg0: i32) -> (i32, i32, i32) {
    %c0_i32 = arith.constant 0 : i32
    %c0_i32_0 = arith.constant 0 : i32
    %c0_i32_1 = arith.constant 0 : i32
    %c0_i32_2 = arith.constant 0 : i32
    return %c0_i32, %c0_i32_0, %c0_i32_1 : i32, i32, i32
  }
  func.func @transform_13(%arg0: i32) -> (i32, i32, i32) {
    %c0_i32 = arith.constant 0 : i32
    %c0_i32_0 = arith.constant 0 : i32
    %c0_i32_1 = arith.constant 0 : i32
    %c0_i32_2 = arith.constant 0 : i32
    return %c0_i32, %c0_i32_0, %c0_i32_1 : i32, i32, i32
  }
  func.func @transform_14(%arg0: i32) -> (i32, i32) {
    %c0_i32 = arith.constant 0 : i32
    %c0_i32_0 = arith.constant 0 : i32
    %c0_i32_1 = arith.constant 0 : i32
    return %c0_i32, %c0_i32_0 : i32, i32
  }
  func.func @transform_15(%arg0: i32) -> (i32, i32) {
    %c0_i32 = arith.constant 0 : i32
    %c0_i32_0 = arith.constant 0 : i32
    %c0_i32_1 = arith.constant 0 : i32
    return %c0_i32, %c0_i32_0 : i32, i32
  }
  func.func @transform_16(%arg0: i32) -> (i32, i32) {
    %c0_i32 = arith.constant 0 : i32
    %c0_i32_0 = arith.constant 0 : i32
    %c0_i32_1 = arith.constant 0 : i32
    return %c0_i32, %c0_i32_0 : i32, i32
  }
  func.func @transform_17(%arg0: i32) -> (i32, i32) {
    %c0_i32 = arith.constant 0 : i32
    %c0_i32_0 = arith.constant 0 : i32
    %c0_i32_1 = arith.constant 0 : i32
    return %c0_i32, %c0_i32_0 : i32, i32
  }
  func.func @transform_18(%arg0: i32) -> (i32, i32) {
    %c0_i32 = arith.constant 0 : i32
    %c0_i32_0 = arith.constant 0 : i32
    %c0_i32_1 = arith.constant 0 : i32
    return %c0_i32, %c0_i32_0 : i32, i32
  }
  func.func @transform_19(%arg0: i32) -> (i32, i32) {
    %c0_i32 = arith.constant 0 : i32
    %c0_i32_0 = arith.constant 0 : i32
    %c0_i32_1 = arith.constant 0 : i32
    return %c0_i32, %c0_i32_0 : i32, i32
  }
  func.func @transform_20(%arg0: i32) -> (i32, i32) {
    %c0_i32 = arith.constant 0 : i32
    %c0_i32_0 = arith.constant 0 : i32
    %c0_i32_1 = arith.constant 0 : i32
    return %c0_i32, %c0_i32_0 : i32, i32
  }
  func.func @transform_21(%arg0: i32) -> (i32, i32) {
    %c0_i32 = arith.constant 0 : i32
    %c0_i32_0 = arith.constant 0 : i32
    %c0_i32_1 = arith.constant 0 : i32
    return %c0_i32, %c0_i32_0 : i32, i32
  }
  func.func @transform_22(%arg0: i32) -> (i32, i32, i32) {
    %c0_i32 = arith.constant 0 : i32
    %c0_i32_0 = arith.constant 0 : i32
    %c0_i32_1 = arith.constant 0 : i32
    return %arg0, %c0_i32, %c0_i32_0 : i32, i32, i32
  }
}

module attributes {stable_mosaic.version = 11 : i64} {
  func.func @kernel(%arg0: i32, %arg1: memref<1x64x128xf32, #tpu.memory_space<vmem>>, %arg2: memref<1x64x128xf32, #tpu.memory_space<vmem>>, %arg3: memref<9x128x128xbf16, #tpu.memory_space<vmem>>, %arg4: memref<1x128xf32, #tpu.memory_space<vmem>>, %arg5: memref<9x128x128xbf16, #tpu.memory_space<vmem>>, %arg6: memref<1x128xf32, #tpu.memory_space<vmem>>, %arg7: memref<128x128xf32, #tpu.memory_space<vmem>>, %arg8: memref<1x64x128xf32, #tpu.memory_space<vmem>>, %arg9: memref<82x128xf32, #tpu.memory_space<vmem>>) attributes {dimension_semantics = [#tpu.dimension_semantics<parallel>], iteration_bounds = array<i64: 2>, scalar_prefetch = 0 : i64, scratch_operands = 1 : i64, tpu.core_type = #tpu.core_type<tc>, window_params = [{transform_indices = @transform_0, window_bounds = array<i64: 1, 64, 128>}, {transform_indices = @transform_1, window_bounds = array<i64: 1, 64, 128>}, {pipeline_mode = #tpu.pipeline_mode<synchronous>, transform_indices = @transform_2, window_bounds = array<i64: 9, 128, 128>}, {pipeline_mode = #tpu.pipeline_mode<synchronous>, transform_indices = @transform_3, window_bounds = array<i64: 1, 128>}, {pipeline_mode = #tpu.pipeline_mode<synchronous>, transform_indices = @transform_4, window_bounds = array<i64: 9, 128, 128>}, {pipeline_mode = #tpu.pipeline_mode<synchronous>, transform_indices = @transform_5, window_bounds = array<i64: 1, 128>}, {pipeline_mode = #tpu.pipeline_mode<synchronous>, transform_indices = @transform_6, window_bounds = array<i64: 128, 128>}, {transform_indices = @transform_7, window_bounds = array<i64: 1, 64, 128>}]} {
    %cst = arith.constant 0.000000e+00 : f32
    %0 = vector.broadcast %cst : f32 to vector<9x128xf32>
    %c0 = arith.constant 0 : index
    %c0_0 = arith.constant 0 : index
    %1 = vector.load %arg9[%c0, %c0_0] : memref<82x128xf32, #tpu.memory_space<vmem>>, vector<9x128xf32>
    tpu.vector_store %arg9[%c0, %c0_0], %0 {strides = array<i32>} : memref<82x128xf32, #tpu.memory_space<vmem>>, vector<9x128xf32>,
    %cst_1 = arith.constant 0.000000e+00 : f32
    %2 = vector.broadcast %cst_1 : f32 to vector<9x128xf32>
    %c73 = arith.constant 73 : index
    %c0_2 = arith.constant 0 : index
    %3 = vector.load %arg9[%c73, %c0_2] : memref<82x128xf32, #tpu.memory_space<vmem>>, vector<9x128xf32>
    tpu.vector_store %arg9[%c73, %c0_2], %2 {strides = array<i32>} : memref<82x128xf32, #tpu.memory_space<vmem>>, vector<9x128xf32>,
    %4 = tpu.iota {dimensions = array<i32: 0>} : vector<64x1xi32>
    %c8_i32 = arith.constant 8 : i32
    %c0_i32 = arith.constant 0 : i32
    %5 = arith.cmpi eq, %c8_i32, %c0_i32 : i32
    %c1_i32 = arith.constant 1 : i32
    %6 = arith.select %5, %c1_i32, %c8_i32 : i32
    %7 = vector.broadcast %6 : i32 to vector<64x1xi32>
    %8 = arith.remsi %4, %7 : vector<64x1xi32>
    %c0_i32_3 = arith.constant 0 : i32
    %9 = vector.broadcast %c0_i32_3 : i32 to vector<64x1xi32>
    %10 = arith.cmpi ne, %8, %9 : vector<64x1xi32>
    %c0_i32_4 = arith.constant 0 : i32
    %11 = vector.broadcast %c0_i32_4 : i32 to vector<64x1xi32>
    %12 = arith.cmpi slt, %8, %11 : vector<64x1xi32>
    %c0_i32_5 = arith.constant 0 : i32
    %13 = arith.cmpi slt, %6, %c0_i32_5 : i32
    %14 = vector.broadcast %13 : i1 to vector<64x1xi1>
    %15 = vector.broadcast %14 : vector<64x1xi1> to vector<64x1xi1>
    %16 = arith.xori %12, %15 : vector<64x1xi1>
    %17 = arith.andi %16, %10 : vector<64x1xi1>
    %18 = vector.broadcast %6 : i32 to vector<64x1xi32>
    %19 = arith.addi %8, %18 : vector<64x1xi32>
    %20 = arith.select %17, %19, %8 : vector<64x1xi1>, vector<64x1xi32>
    %c1_i32_6 = arith.constant 1 : i32
    %21 = vector.broadcast %c1_i32_6 : i32 to vector<64x1xi32>
    %22 = arith.cmpi sge, %20, %21 : vector<64x1xi32>
    %23 = arith.extui %22 : vector<64x1xi1> to vector<64x1xi32>
    %24 = arith.sitofp %23 : vector<64x1xi32> to vector<64x1xf32>
    %c6_i32 = arith.constant 6 : i32
    %25 = vector.broadcast %c6_i32 : i32 to vector<64x1xi32>
    %26 = arith.cmpi sle, %20, %25 : vector<64x1xi32>
    %27 = arith.extui %26 : vector<64x1xi1> to vector<64x1xi32>
    %28 = arith.sitofp %27 : vector<64x1xi32> to vector<64x1xf32>
    %c0_7 = arith.constant 0 : index
    %c0_8 = arith.constant 0 : index
    %c0_9 = arith.constant 0 : index
    %29 = vector.load %arg1[%c0_7, %c0_8, %c0_9] : memref<1x64x128xf32, #tpu.memory_space<vmem>>, vector<1x64x128xf32>
    %30 = vector.shape_cast %29 : vector<1x64x128xf32> to vector<64x128xf32>
    %c0_10 = arith.constant 0 : index
    %c0_11 = arith.constant 0 : index
    %c0_12 = arith.constant 0 : index
    %31 = vector.load %arg2[%c0_10, %c0_11, %c0_12] : memref<1x64x128xf32, #tpu.memory_space<vmem>>, vector<1x64x128xf32>
    %32 = vector.shape_cast %31 : vector<1x64x128xf32> to vector<64x128xf32>
    %33 = arith.addf %30, %32 : vector<64x128xf32>
    %cst_13 = arith.constant 0.000000e+00 : f32
    %34 = vector.broadcast %cst_13 : f32 to vector<64x128xf32>
    %35 = arith.maximumf %33, %34 : vector<64x128xf32>
    %c9 = arith.constant 9 : index
    %c0_14 = arith.constant 0 : index
    %36 = vector.load %arg9[%c9, %c0_14] : memref<82x128xf32, #tpu.memory_space<vmem>>, vector<64x128xf32>
    tpu.vector_store %arg9[%c9, %c0_14], %35 {strides = array<i32>} : memref<82x128xf32, #tpu.memory_space<vmem>>, vector<64x128xf32>,
    %cst_15 = arith.constant 0.000000e+00 : f32
    %37 = vector.broadcast %cst_15 : f32 to vector<64x128xf32>
    %c0_16 = arith.constant 0 : index
    %c0_17 = arith.constant 0 : index
    %38 = vector.load %arg4[%c0_16, %c0_17] : memref<1x128xf32, #tpu.memory_space<vmem>>, vector<1x128xf32>
    %39 = vector.broadcast %38 : vector<1x128xf32> to vector<64x128xf32>
    %40 = arith.addf %37, %39 : vector<64x128xf32>
    %c0_18 = arith.constant 0 : index
    %c0_19 = arith.constant 0 : index
    %41 = vector.load %arg9[%c0_18, %c0_19] : memref<82x128xf32, #tpu.memory_space<vmem>>, vector<64x128xf32>
    %42 = vector.broadcast %24 : vector<64x1xf32> to vector<64x128xf32>
    %43 = arith.mulf %41, %42 : vector<64x128xf32>
    %44 = arith.truncf %43 : vector<64x128xf32> to vector<64x128xbf16>
    %c0_20 = arith.constant 0 : index
    %c0_21 = arith.constant 0 : index
    %c0_22 = arith.constant 0 : index
    %45 = vector.load %arg3[%c0_20, %c0_21, %c0_22] : memref<9x128x128xbf16, #tpu.memory_space<vmem>>, vector<1x128x128xbf16>
    %46 = vector.shape_cast %45 : vector<1x128x128xbf16> to vector<128x128xbf16>
    %cst_23 = arith.constant dense<0.000000e+00> : vector<64x128xf32>
    %47 = tpu.matmul %44, %46, %cst_23 {dimension_numbers = #tpu.dot_dimension_numbers<[1], [0], [0], [1], [0, 0, 1, 1], [], []>} : vector<64x128xbf16>, vector<128x128xbf16>, vector<64x128xf32> -> vector<64x128xf32>
    %48 = arith.addf %40, %47 : vector<64x128xf32>
    %c1 = arith.constant 1 : index
    %c0_24 = arith.constant 0 : index
    %49 = vector.load %arg9[%c1, %c0_24] : memref<82x128xf32, #tpu.memory_space<vmem>>, vector<64x128xf32>
    %50 = arith.truncf %49 : vector<64x128xf32> to vector<64x128xbf16>
    %c1_25 = arith.constant 1 : index
    %c0_26 = arith.constant 0 : index
    %c0_27 = arith.constant 0 : index
    %51 = vector.load %arg3[%c1_25, %c0_26, %c0_27] : memref<9x128x128xbf16, #tpu.memory_space<vmem>>, vector<1x128x128xbf16>
    %52 = vector.shape_cast %51 : vector<1x128x128xbf16> to vector<128x128xbf16>
    %cst_28 = arith.constant dense<0.000000e+00> : vector<64x128xf32>
    %53 = tpu.matmul %50, %52, %cst_28 {dimension_numbers = #tpu.dot_dimension_numbers<[1], [0], [0], [1], [0, 0, 1, 1], [], []>} : vector<64x128xbf16>, vector<128x128xbf16>, vector<64x128xf32> -> vector<64x128xf32>
    %54 = arith.addf %48, %53 : vector<64x128xf32>
    %c2 = arith.constant 2 : index
    %c0_29 = arith.constant 0 : index
    %55 = vector.load %arg9[%c2, %c0_29] : memref<82x128xf32, #tpu.memory_space<vmem>>, vector<64x128xf32>
    %56 = vector.broadcast %28 : vector<64x1xf32> to vector<64x128xf32>
    %57 = arith.mulf %55, %56 : vector<64x128xf32>
    %58 = arith.truncf %57 : vector<64x128xf32> to vector<64x128xbf16>
    %c2_30 = arith.constant 2 : index
    %c0_31 = arith.constant 0 : index
    %c0_32 = arith.constant 0 : index
    %59 = vector.load %arg3[%c2_30, %c0_31, %c0_32] : memref<9x128x128xbf16, #tpu.memory_space<vmem>>, vector<1x128x128xbf16>
    %60 = vector.shape_cast %59 : vector<1x128x128xbf16> to vector<128x128xbf16>
    %cst_33 = arith.constant dense<0.000000e+00> : vector<64x128xf32>
    %61 = tpu.matmul %58, %60, %cst_33 {dimension_numbers = #tpu.dot_dimension_numbers<[1], [0], [0], [1], [0, 0, 1, 1], [], []>} : vector<64x128xbf16>, vector<128x128xbf16>, vector<64x128xf32> -> vector<64x128xf32>
    %62 = arith.addf %54, %61 : vector<64x128xf32>
    %c8 = arith.constant 8 : index
    %c0_34 = arith.constant 0 : index
    %63 = vector.load %arg9[%c8, %c0_34] : memref<82x128xf32, #tpu.memory_space<vmem>>, vector<64x128xf32>
    %64 = vector.broadcast %24 : vector<64x1xf32> to vector<64x128xf32>
    %65 = arith.mulf %63, %64 : vector<64x128xf32>
    %66 = arith.truncf %65 : vector<64x128xf32> to vector<64x128xbf16>
    %c3 = arith.constant 3 : index
    %c0_35 = arith.constant 0 : index
    %c0_36 = arith.constant 0 : index
    %67 = vector.load %arg3[%c3, %c0_35, %c0_36] : memref<9x128x128xbf16, #tpu.memory_space<vmem>>, vector<1x128x128xbf16>
    %68 = vector.shape_cast %67 : vector<1x128x128xbf16> to vector<128x128xbf16>
    %cst_37 = arith.constant dense<0.000000e+00> : vector<64x128xf32>
    %69 = tpu.matmul %66, %68, %cst_37 {dimension_numbers = #tpu.dot_dimension_numbers<[1], [0], [0], [1], [0, 0, 1, 1], [], []>} : vector<64x128xbf16>, vector<128x128xbf16>, vector<64x128xf32> -> vector<64x128xf32>
    %70 = arith.addf %62, %69 : vector<64x128xf32>
    %c9_38 = arith.constant 9 : index
    %c0_39 = arith.constant 0 : index
    %71 = vector.load %arg9[%c9_38, %c0_39] : memref<82x128xf32, #tpu.memory_space<vmem>>, vector<64x128xf32>
    %72 = arith.truncf %71 : vector<64x128xf32> to vector<64x128xbf16>
    %c4 = arith.constant 4 : index
    %c0_40 = arith.constant 0 : index
    %c0_41 = arith.constant 0 : index
    %73 = vector.load %arg3[%c4, %c0_40, %c0_41] : memref<9x128x128xbf16, #tpu.memory_space<vmem>>, vector<1x128x128xbf16>
    %74 = vector.shape_cast %73 : vector<1x128x128xbf16> to vector<128x128xbf16>
    %cst_42 = arith.constant dense<0.000000e+00> : vector<64x128xf32>
    %75 = tpu.matmul %72, %74, %cst_42 {dimension_numbers = #tpu.dot_dimension_numbers<[1], [0], [0], [1], [0, 0, 1, 1], [], []>} : vector<64x128xbf16>, vector<128x128xbf16>, vector<64x128xf32> -> vector<64x128xf32>
    %76 = arith.addf %70, %75 : vector<64x128xf32>
    %c10 = arith.constant 10 : index
    %c0_43 = arith.constant 0 : index
    %77 = vector.load %arg9[%c10, %c0_43] : memref<82x128xf32, #tpu.memory_space<vmem>>, vector<64x128xf32>
    %78 = vector.broadcast %28 : vector<64x1xf32> to vector<64x128xf32>
    %79 = arith.mulf %77, %78 : vector<64x128xf32>
    %80 = arith.truncf %79 : vector<64x128xf32> to vector<64x128xbf16>
    %c5 = arith.constant 5 : index
    %c0_44 = arith.constant 0 : index
    %c0_45 = arith.constant 0 : index
    %81 = vector.load %arg3[%c5, %c0_44, %c0_45] : memref<9x128x128xbf16, #tpu.memory_space<vmem>>, vector<1x128x128xbf16>
    %82 = vector.shape_cast %81 : vector<1x128x128xbf16> to vector<128x128xbf16>
    %cst_46 = arith.constant dense<0.000000e+00> : vector<64x128xf32>
    %83 = tpu.matmul %80, %82, %cst_46 {dimension_numbers = #tpu.dot_dimension_numbers<[1], [0], [0], [1], [0, 0, 1, 1], [], []>} : vector<64x128xbf16>, vector<128x128xbf16>, vector<64x128xf32> -> vector<64x128xf32>
    %84 = arith.addf %76, %83 : vector<64x128xf32>
    %c16 = arith.constant 16 : index
    %c0_47 = arith.constant 0 : index
    %85 = vector.load %arg9[%c16, %c0_47] : memref<82x128xf32, #tpu.memory_space<vmem>>, vector<64x128xf32>
    %86 = vector.broadcast %24 : vector<64x1xf32> to vector<64x128xf32>
    %87 = arith.mulf %85, %86 : vector<64x128xf32>
    %88 = arith.truncf %87 : vector<64x128xf32> to vector<64x128xbf16>
    %c6 = arith.constant 6 : index
    %c0_48 = arith.constant 0 : index
    %c0_49 = arith.constant 0 : index
    %89 = vector.load %arg3[%c6, %c0_48, %c0_49] : memref<9x128x128xbf16, #tpu.memory_space<vmem>>, vector<1x128x128xbf16>
    %90 = vector.shape_cast %89 : vector<1x128x128xbf16> to vector<128x128xbf16>
    %cst_50 = arith.constant dense<0.000000e+00> : vector<64x128xf32>
    %91 = tpu.matmul %88, %90, %cst_50 {dimension_numbers = #tpu.dot_dimension_numbers<[1], [0], [0], [1], [0, 0, 1, 1], [], []>} : vector<64x128xbf16>, vector<128x128xbf16>, vector<64x128xf32> -> vector<64x128xf32>
    %92 = arith.addf %84, %91 : vector<64x128xf32>
    %c17 = arith.constant 17 : index
    %c0_51 = arith.constant 0 : index
    %93 = vector.load %arg9[%c17, %c0_51] : memref<82x128xf32, #tpu.memory_space<vmem>>, vector<64x128xf32>
    %94 = arith.truncf %93 : vector<64x128xf32> to vector<64x128xbf16>
    %c7 = arith.constant 7 : index
    %c0_52 = arith.constant 0 : index
    %c0_53 = arith.constant 0 : index
    %95 = vector.load %arg3[%c7, %c0_52, %c0_53] : memref<9x128x128xbf16, #tpu.memory_space<vmem>>, vector<1x128x128xbf16>
    %96 = vector.shape_cast %95 : vector<1x128x128xbf16> to vector<128x128xbf16>
    %cst_54 = arith.constant dense<0.000000e+00> : vector<64x128xf32>
    %97 = tpu.matmul %94, %96, %cst_54 {dimension_numbers = #tpu.dot_dimension_numbers<[1], [0], [0], [1], [0, 0, 1, 1], [], []>} : vector<64x128xbf16>, vector<128x128xbf16>, vector<64x128xf32> -> vector<64x128xf32>
    %98 = arith.addf %92, %97 : vector<64x128xf32>
    %c18 = arith.constant 18 : index
    %c0_55 = arith.constant 0 : index
    %99 = vector.load %arg9[%c18, %c0_55] : memref<82x128xf32, #tpu.memory_space<vmem>>, vector<64x128xf32>
    %100 = vector.broadcast %28 : vector<64x1xf32> to vector<64x128xf32>
    %101 = arith.mulf %99, %100 : vector<64x128xf32>
    %102 = arith.truncf %101 : vector<64x128xf32> to vector<64x128xbf16>
    %c8_56 = arith.constant 8 : index
    %c0_57 = arith.constant 0 : index
    %c0_58 = arith.constant 0 : index
    %103 = vector.load %arg3[%c8_56, %c0_57, %c0_58] : memref<9x128x128xbf16, #tpu.memory_space<vmem>>, vector<1x128x128xbf16>
    %104 = vector.shape_cast %103 : vector<1x128x128xbf16> to vector<128x128xbf16>
    %cst_59 = arith.constant dense<0.000000e+00> : vector<64x128xf32>
    %105 = tpu.matmul %102, %104, %cst_59 {dimension_numbers = #tpu.dot_dimension_numbers<[1], [0], [0], [1], [0, 0, 1, 1], [], []>} : vector<64x128xbf16>, vector<128x128xbf16>, vector<64x128xf32> -> vector<64x128xf32>
    %106 = arith.addf %98, %105 : vector<64x128xf32>
    %cst_60 = arith.constant 0.000000e+00 : f32
    %107 = vector.broadcast %cst_60 : f32 to vector<64x128xf32>
    %108 = arith.maximumf %106, %107 : vector<64x128xf32>
    %c9_61 = arith.constant 9 : index
    %c0_62 = arith.constant 0 : index
    %109 = vector.load %arg9[%c9_61, %c0_62] : memref<82x128xf32, #tpu.memory_space<vmem>>, vector<64x128xf32>
    tpu.vector_store %arg9[%c9_61, %c0_62], %108 {strides = array<i32>} : memref<82x128xf32, #tpu.memory_space<vmem>>, vector<64x128xf32>,
    %cst_63 = arith.constant 0.000000e+00 : f32
    %110 = vector.broadcast %cst_63 : f32 to vector<64x128xf32>
    %c0_64 = arith.constant 0 : index
    %c0_65 = arith.constant 0 : index
    %111 = vector.load %arg6[%c0_64, %c0_65] : memref<1x128xf32, #tpu.memory_space<vmem>>, vector<1x128xf32>
    %112 = vector.broadcast %111 : vector<1x128xf32> to vector<64x128xf32>
    %113 = arith.addf %110, %112 : vector<64x128xf32>
    %c0_66 = arith.constant 0 : index
    %c0_67 = arith.constant 0 : index
    %114 = vector.load %arg9[%c0_66, %c0_67] : memref<82x128xf32, #tpu.memory_space<vmem>>, vector<64x128xf32>
    %115 = vector.broadcast %24 : vector<64x1xf32> to vector<64x128xf32>
    %116 = arith.mulf %114, %115 : vector<64x128xf32>
    %117 = arith.truncf %116 : vector<64x128xf32> to vector<64x128xbf16>
    %c0_68 = arith.constant 0 : index
    %c0_69 = arith.constant 0 : index
    %c0_70 = arith.constant 0 : index
    %118 = vector.load %arg5[%c0_68, %c0_69, %c0_70] : memref<9x128x128xbf16, #tpu.memory_space<vmem>>, vector<1x128x128xbf16>
    %119 = vector.shape_cast %118 : vector<1x128x128xbf16> to vector<128x128xbf16>
    %cst_71 = arith.constant dense<0.000000e+00> : vector<64x128xf32>
    %120 = tpu.matmul %117, %119, %cst_71 {dimension_numbers = #tpu.dot_dimension_numbers<[1], [0], [0], [1], [0, 0, 1, 1], [], []>} : vector<64x128xbf16>, vector<128x128xbf16>, vector<64x128xf32> -> vector<64x128xf32>
    %121 = arith.addf %113, %120 : vector<64x128xf32>
    %c1_72 = arith.constant 1 : index
    %c0_73 = arith.constant 0 : index
    %122 = vector.load %arg9[%c1_72, %c0_73] : memref<82x128xf32, #tpu.memory_space<vmem>>, vector<64x128xf32>
    %123 = arith.truncf %122 : vector<64x128xf32> to vector<64x128xbf16>
    %c1_74 = arith.constant 1 : index
    %c0_75 = arith.constant 0 : index
    %c0_76 = arith.constant 0 : index
    %124 = vector.load %arg5[%c1_74, %c0_75, %c0_76] : memref<9x128x128xbf16, #tpu.memory_space<vmem>>, vector<1x128x128xbf16>
    %125 = vector.shape_cast %124 : vector<1x128x128xbf16> to vector<128x128xbf16>
    %cst_77 = arith.constant dense<0.000000e+00> : vector<64x128xf32>
    %126 = tpu.matmul %123, %125, %cst_77 {dimension_numbers = #tpu.dot_dimension_numbers<[1], [0], [0], [1], [0, 0, 1, 1], [], []>} : vector<64x128xbf16>, vector<128x128xbf16>, vector<64x128xf32> -> vector<64x128xf32>
    %127 = arith.addf %121, %126 : vector<64x128xf32>
    %c2_78 = arith.constant 2 : index
    %c0_79 = arith.constant 0 : index
    %128 = vector.load %arg9[%c2_78, %c0_79] : memref<82x128xf32, #tpu.memory_space<vmem>>, vector<64x128xf32>
    %129 = vector.broadcast %28 : vector<64x1xf32> to vector<64x128xf32>
    %130 = arith.mulf %128, %129 : vector<64x128xf32>
    %131 = arith.truncf %130 : vector<64x128xf32> to vector<64x128xbf16>
    %c2_80 = arith.constant 2 : index
    %c0_81 = arith.constant 0 : index
    %c0_82 = arith.constant 0 : index
    %132 = vector.load %arg5[%c2_80, %c0_81, %c0_82] : memref<9x128x128xbf16, #tpu.memory_space<vmem>>, vector<1x128x128xbf16>
    %133 = vector.shape_cast %132 : vector<1x128x128xbf16> to vector<128x128xbf16>
    %cst_83 = arith.constant dense<0.000000e+00> : vector<64x128xf32>
    %134 = tpu.matmul %131, %133, %cst_83 {dimension_numbers = #tpu.dot_dimension_numbers<[1], [0], [0], [1], [0, 0, 1, 1], [], []>} : vector<64x128xbf16>, vector<128x128xbf16>, vector<64x128xf32> -> vector<64x128xf32>
    %135 = arith.addf %127, %134 : vector<64x128xf32>
    %c8_84 = arith.constant 8 : index
    %c0_85 = arith.constant 0 : index
    %136 = vector.load %arg9[%c8_84, %c0_85] : memref<82x128xf32, #tpu.memory_space<vmem>>, vector<64x128xf32>
    %137 = vector.broadcast %24 : vector<64x1xf32> to vector<64x128xf32>
    %138 = arith.mulf %136, %137 : vector<64x128xf32>
    %139 = arith.truncf %138 : vector<64x128xf32> to vector<64x128xbf16>
    %c3_86 = arith.constant 3 : index
    %c0_87 = arith.constant 0 : index
    %c0_88 = arith.constant 0 : index
    %140 = vector.load %arg5[%c3_86, %c0_87, %c0_88] : memref<9x128x128xbf16, #tpu.memory_space<vmem>>, vector<1x128x128xbf16>
    %141 = vector.shape_cast %140 : vector<1x128x128xbf16> to vector<128x128xbf16>
    %cst_89 = arith.constant dense<0.000000e+00> : vector<64x128xf32>
    %142 = tpu.matmul %139, %141, %cst_89 {dimension_numbers = #tpu.dot_dimension_numbers<[1], [0], [0], [1], [0, 0, 1, 1], [], []>} : vector<64x128xbf16>, vector<128x128xbf16>, vector<64x128xf32> -> vector<64x128xf32>
    %143 = arith.addf %135, %142 : vector<64x128xf32>
    %c9_90 = arith.constant 9 : index
    %c0_91 = arith.constant 0 : index
    %144 = vector.load %arg9[%c9_90, %c0_91] : memref<82x128xf32, #tpu.memory_space<vmem>>, vector<64x128xf32>
    %145 = arith.truncf %144 : vector<64x128xf32> to vector<64x128xbf16>
    %c4_92 = arith.constant 4 : index
    %c0_93 = arith.constant 0 : index
    %c0_94 = arith.constant 0 : index
    %146 = vector.load %arg5[%c4_92, %c0_93, %c0_94] : memref<9x128x128xbf16, #tpu.memory_space<vmem>>, vector<1x128x128xbf16>
    %147 = vector.shape_cast %146 : vector<1x128x128xbf16> to vector<128x128xbf16>
    %cst_95 = arith.constant dense<0.000000e+00> : vector<64x128xf32>
    %148 = tpu.matmul %145, %147, %cst_95 {dimension_numbers = #tpu.dot_dimension_numbers<[1], [0], [0], [1], [0, 0, 1, 1], [], []>} : vector<64x128xbf16>, vector<128x128xbf16>, vector<64x128xf32> -> vector<64x128xf32>
    %149 = arith.addf %143, %148 : vector<64x128xf32>
    %c10_96 = arith.constant 10 : index
    %c0_97 = arith.constant 0 : index
    %150 = vector.load %arg9[%c10_96, %c0_97] : memref<82x128xf32, #tpu.memory_space<vmem>>, vector<64x128xf32>
    %151 = vector.broadcast %28 : vector<64x1xf32> to vector<64x128xf32>
    %152 = arith.mulf %150, %151 : vector<64x128xf32>
    %153 = arith.truncf %152 : vector<64x128xf32> to vector<64x128xbf16>
    %c5_98 = arith.constant 5 : index
    %c0_99 = arith.constant 0 : index
    %c0_100 = arith.constant 0 : index
    %154 = vector.load %arg5[%c5_98, %c0_99, %c0_100] : memref<9x128x128xbf16, #tpu.memory_space<vmem>>, vector<1x128x128xbf16>
    %155 = vector.shape_cast %154 : vector<1x128x128xbf16> to vector<128x128xbf16>
    %cst_101 = arith.constant dense<0.000000e+00> : vector<64x128xf32>
    %156 = tpu.matmul %153, %155, %cst_101 {dimension_numbers = #tpu.dot_dimension_numbers<[1], [0], [0], [1], [0, 0, 1, 1], [], []>} : vector<64x128xbf16>, vector<128x128xbf16>, vector<64x128xf32> -> vector<64x128xf32>
    %157 = arith.addf %149, %156 : vector<64x128xf32>
    %c16_102 = arith.constant 16 : index
    %c0_103 = arith.constant 0 : index
    %158 = vector.load %arg9[%c16_102, %c0_103] : memref<82x128xf32, #tpu.memory_space<vmem>>, vector<64x128xf32>
    %159 = vector.broadcast %24 : vector<64x1xf32> to vector<64x128xf32>
    %160 = arith.mulf %158, %159 : vector<64x128xf32>
    %161 = arith.truncf %160 : vector<64x128xf32> to vector<64x128xbf16>
    %c6_104 = arith.constant 6 : index
    %c0_105 = arith.constant 0 : index
    %c0_106 = arith.constant 0 : index
    %162 = vector.load %arg5[%c6_104, %c0_105, %c0_106] : memref<9x128x128xbf16, #tpu.memory_space<vmem>>, vector<1x128x128xbf16>
    %163 = vector.shape_cast %162 : vector<1x128x128xbf16> to vector<128x128xbf16>
    %cst_107 = arith.constant dense<0.000000e+00> : vector<64x128xf32>
    %164 = tpu.matmul %161, %163, %cst_107 {dimension_numbers = #tpu.dot_dimension_numbers<[1], [0], [0], [1], [0, 0, 1, 1], [], []>} : vector<64x128xbf16>, vector<128x128xbf16>, vector<64x128xf32> -> vector<64x128xf32>
    %165 = arith.addf %157, %164 : vector<64x128xf32>
    %c17_108 = arith.constant 17 : index
    %c0_109 = arith.constant 0 : index
    %166 = vector.load %arg9[%c17_108, %c0_109] : memref<82x128xf32, #tpu.memory_space<vmem>>, vector<64x128xf32>
    %167 = arith.truncf %166 : vector<64x128xf32> to vector<64x128xbf16>
    %c7_110 = arith.constant 7 : index
    %c0_111 = arith.constant 0 : index
    %c0_112 = arith.constant 0 : index
    %168 = vector.load %arg5[%c7_110, %c0_111, %c0_112] : memref<9x128x128xbf16, #tpu.memory_space<vmem>>, vector<1x128x128xbf16>
    %169 = vector.shape_cast %168 : vector<1x128x128xbf16> to vector<128x128xbf16>
    %cst_113 = arith.constant dense<0.000000e+00> : vector<64x128xf32>
    %170 = tpu.matmul %167, %169, %cst_113 {dimension_numbers = #tpu.dot_dimension_numbers<[1], [0], [0], [1], [0, 0, 1, 1], [], []>} : vector<64x128xbf16>, vector<128x128xbf16>, vector<64x128xf32> -> vector<64x128xf32>
    %171 = arith.addf %165, %170 : vector<64x128xf32>
    %c18_114 = arith.constant 18 : index
    %c0_115 = arith.constant 0 : index
    %172 = vector.load %arg9[%c18_114, %c0_115] : memref<82x128xf32, #tpu.memory_space<vmem>>, vector<64x128xf32>
    %173 = vector.broadcast %28 : vector<64x1xf32> to vector<64x128xf32>
    %174 = arith.mulf %172, %173 : vector<64x128xf32>
    %175 = arith.truncf %174 : vector<64x128xf32> to vector<64x128xbf16>
    %c8_116 = arith.constant 8 : index
    %c0_117 = arith.constant 0 : index
    %c0_118 = arith.constant 0 : index
    %176 = vector.load %arg5[%c8_116, %c0_117, %c0_118] : memref<9x128x128xbf16, #tpu.memory_space<vmem>>, vector<1x128x128xbf16>
    %177 = vector.shape_cast %176 : vector<1x128x128xbf16> to vector<128x128xbf16>
    %cst_119 = arith.constant dense<0.000000e+00> : vector<64x128xf32>
    %178 = tpu.matmul %175, %177, %cst_119 {dimension_numbers = #tpu.dot_dimension_numbers<[1], [0], [0], [1], [0, 0, 1, 1], [], []>} : vector<64x128xbf16>, vector<128x128xbf16>, vector<64x128xf32> -> vector<64x128xf32>
    %179 = arith.addf %171, %178 : vector<64x128xf32>
    %cst_120 = arith.constant dense<0.000000e+00> : vector<128xf32>
    %180 = vector.multi_reduction <add>, %179, %cst_120 [0] : vector<64x128xf32> to vector<128xf32>
    %181 = vector.shape_cast %180 : vector<128xf32> to vector<1x128xf32>
    %cst_121 = arith.constant 1.562500e-02 : f32
    %182 = vector.broadcast %cst_121 : f32 to vector<1x128xf32>
    %183 = arith.mulf %181, %182 : vector<1x128xf32>
    %c0_122 = arith.constant 0 : index
    %c0_123 = arith.constant 0 : index
    %184 = vector.load %arg7[%c0_122, %c0_123] : memref<128x128xf32, #tpu.memory_space<vmem>>, vector<128x128xf32>
    %cst_124 = arith.constant dense<0.000000e+00> : vector<1x128xf32>
    %185 = tpu.matmul %183, %184, %cst_124 {dimension_numbers = #tpu.dot_dimension_numbers<[1], [0], [0], [1], [0, 0, 1, 1], [], []>} : vector<1x128xf32>, vector<128x128xf32>, vector<1x128xf32> -> vector<1x128xf32>
    %186 = arith.negf %185 : vector<1x128xf32>
    %187 = math.exp %186 : vector<1x128xf32>
    %cst_125 = arith.constant 1.000000e+00 : f32
    %188 = vector.broadcast %cst_125 : f32 to vector<1x128xf32>
    %189 = arith.addf %188, %187 : vector<1x128xf32>
    %190 = arith.divf %188, %189 : vector<1x128xf32>
    %191 = vector.broadcast %190 : vector<1x128xf32> to vector<64x128xf32>
    %192 = arith.mulf %179, %191 : vector<64x128xf32>
    %193 = arith.addf %192, %33 : vector<64x128xf32>
    %c0_126 = arith.constant 0 : index
    %c0_127 = arith.constant 0 : index
    %c0_128 = arith.constant 0 : index
    %194 = vector.load %arg8[%c0_126, %c0_127, %c0_128] : memref<1x64x128xf32, #tpu.memory_space<vmem>>, vector<1x64x128xf32>
    %195 = vector.shape_cast %194 : vector<1x64x128xf32> to vector<64x128xf32>
    %196 = vector.shape_cast %193 : vector<64x128xf32> to vector<1x64x128xf32>
    tpu.vector_store %arg8[%c0_126, %c0_127, %c0_128], %196 {strides = array<i32>} : memref<1x64x128xf32, #tpu.memory_space<vmem>>, vector<1x64x128xf32>,
    return
  }
  func.func @transform_0(%arg0: i32) -> (i32, i32, i32) {
    %c0_i32 = arith.constant 0 : i32
    %c0_i32_0 = arith.constant 0 : i32
    %c0_i32_1 = arith.constant 0 : i32
    return %arg0, %c0_i32, %c0_i32_0 : i32, i32, i32
  }
  func.func @transform_1(%arg0: i32) -> (i32, i32, i32) {
    %c0_i32 = arith.constant 0 : i32
    %c0_i32_0 = arith.constant 0 : i32
    %c0_i32_1 = arith.constant 0 : i32
    return %arg0, %c0_i32, %c0_i32_0 : i32, i32, i32
  }
  func.func @transform_2(%arg0: i32) -> (i32, i32, i32) {
    %c0_i32 = arith.constant 0 : i32
    %c0_i32_0 = arith.constant 0 : i32
    %c0_i32_1 = arith.constant 0 : i32
    %c0_i32_2 = arith.constant 0 : i32
    return %c0_i32, %c0_i32_0, %c0_i32_1 : i32, i32, i32
  }
  func.func @transform_3(%arg0: i32) -> (i32, i32) {
    %c0_i32 = arith.constant 0 : i32
    %c0_i32_0 = arith.constant 0 : i32
    %c0_i32_1 = arith.constant 0 : i32
    return %c0_i32, %c0_i32_0 : i32, i32
  }
  func.func @transform_4(%arg0: i32) -> (i32, i32, i32) {
    %c0_i32 = arith.constant 0 : i32
    %c0_i32_0 = arith.constant 0 : i32
    %c0_i32_1 = arith.constant 0 : i32
    %c0_i32_2 = arith.constant 0 : i32
    return %c0_i32, %c0_i32_0, %c0_i32_1 : i32, i32, i32
  }
  func.func @transform_5(%arg0: i32) -> (i32, i32) {
    %c0_i32 = arith.constant 0 : i32
    %c0_i32_0 = arith.constant 0 : i32
    %c0_i32_1 = arith.constant 0 : i32
    return %c0_i32, %c0_i32_0 : i32, i32
  }
  func.func @transform_6(%arg0: i32) -> (i32, i32) {
    %c0_i32 = arith.constant 0 : i32
    %c0_i32_0 = arith.constant 0 : i32
    %c0_i32_1 = arith.constant 0 : i32
    return %c0_i32, %c0_i32_0 : i32, i32
  }
  func.func @transform_7(%arg0: i32) -> (i32, i32, i32) {
    %c0_i32 = arith.constant 0 : i32
    %c0_i32_0 = arith.constant 0 : i32
    %c0_i32_1 = arith.constant 0 : i32
    return %arg0, %c0_i32, %c0_i32_0 : i32, i32, i32
  }
}

</mosaic_0001>

<bundles_post_ra>
// kernel: query_transformer_block.3
= control target key start
LH: loop header
LB: loop body
LE: loop exit
PB: predicated region body
PF: predicated region fallthrough
CT: control target
= control target key end

     0   :  { %s3114_s0 = inlined_call_operand.vmem [shape: f32[2,8,128], index: 0, kind: input, shape index: {}]   ;;  %s3115_s1 = inlined_call_operand.vmem [shape: f32[2,8,128], index: 1, kind: input, shape index: {}]   ;;  %s3116_s2 = inlined_call_operand.vmem [shape: f32[2,64,128], index: 2, kind: input, shape index: {}]   ;;  %s3117_s3 = inlined_call_operand.vmem [shape: f32[2,64,128], index: 3, kind: input, shape index: {}]   ;;  %s3118_s4 = inlined_call_operand.vmem [shape: f32[1,128], index: 4, kind: input, shape index: {}]   ;;  %s3119_s5 = inlined_call_operand.vmem [shape: f32[1,128], index: 5, kind: input, shape index: {}]   ;;  %s3120_s6 = inlined_call_operand.vmem [shape: bf16[3,128,128], index: 6, kind: input, shape index: {}]   ;;  %s3121_s7 = inlined_call_operand.vmem [shape: f32[3,1,128], index: 7, kind: input, shape index: {}]   ;;  %s3122_s8 = inlined_call_operand.vmem [shape: bf16[128,128], index: 8, kind: input, shape index: {}]   ;;  %s3123_s9 = inlined_call_operand.vmem [shape: f32[1,128], index: 9, kind: input, shape index: {}]   ;;  %s3124_s10 = inlined_call_operand.vmem [shape: f32[1,128], index: 10, kind: input, shape index: {}]   ;;  %s3125_s11 = inlined_call_operand.vmem [shape: f32[1,128], index: 11, kind: input, shape index: {}]   ;;  %s3126_s12 = inlined_call_operand.vmem [shape: bf16[3,128,128], index: 12, kind: input, shape index: {}]   ;;  %s3127_s13 = inlined_call_operand.vmem [shape: f32[3,1,128], index: 13, kind: input, shape index: {}]   ;;  %s3128_s14 = inlined_call_operand.vmem [shape: bf16[128,128], index: 14, kind: input, shape index: {}]   ;;  %s3129_s15 = inlined_call_operand.vmem [shape: f32[1,128], index: 15, kind: input, shape index: {}]   ;;  %s3130_s16 = inlined_call_operand.vmem [shape: f32[1,128], index: 16, kind: input, shape index: {}]   ;;  %s3131_s17 = inlined_call_operand.vmem [shape: f32[1,128], index: 17, kind: input, shape index: {}]   ;;  %s3132_s18 = inlined_call_operand.vmem [shape: bf16[128,128], index: 18, kind: input, shape index: {}]   ;;  %s3133_s19 = inlined_call_operand.vmem [shape: f32[1,128], index: 19, kind: input, shape index: {}]   ;;  %s3134_s20 = inlined_call_operand.vmem [shape: bf16[128,128], index: 20, kind: input, shape index: {}]   ;;  %s3135_s21 = inlined_call_operand.vmem [shape: f32[1,128], index: 21, kind: input, shape index: {}]   ;;  %s3136_s22 = inlined_call_operand.vmem [shape: f32[2,8,128], index: 22, kind: output, shape index: {}]  }
   0x1   :  { %3139 = sst [smem:[#allocation3_spill]] %s3114_s0 }
   0x2   :  { %3140 = sst [smem:[#allocation4_spill]] %s3115_s1 }
   0x3   :  { %3141 = sst [smem:[#allocation5_spill]] %s3116_s2 }
   0x4   :  { %3142 = sst [smem:[#allocation6_spill]] %s3117_s3  ;;  %s2698_s3 = smov 0  }
   0x5   :  { %3143 = sst [smem:[#allocation7_spill]] %s3118_s4 }
   0x6   :  { %3144 = sst [smem:[#allocation8_spill]] %s3119_s5 }
   0x7   :  { %3145 = sst [smem:[#allocation9_spill]] %s3120_s6 }
   0x8 LB: > { %3146 = sst [smem:[#allocation2_spill]] %s2580_s3  ;;  %s2091_s28 = sadd.s32 4294967295, %s2580_s3   ;;  %s2580_s3 = sphi %s2698_s3, %s32_s3  }
   0x9   : > { %p2095_p0 = scmp.ge.s32.totalorder %s2580_s3, 1  ;;  %p640_p1 = scmp.lt.s32.totalorder %s2580_s3, 3 }
   0xb   : > { %p641_p2 = pnand %p2095_p0, %p640_p1 }
   0xc   : > { %s3147_s4 = sld [smem:[#allocation9_spill]] (!%p641_p2)  ;;  %p714_p3 = scmp.lt.s32.totalorder (!%p641_p2), %s2091_s28, 1 }
   0xd   : > { %644 = sbr.rel (%p641_p2) target bundleno = 2603 (0xa2b), region = 108  ;;  %s3148_s6 = sld [smem:[#allocation3_spill]] (!%p641_p2) }
   0xe   : > { %s3150_s3 = sld [smem:[#allocation6_spill]] (!%p641_p2) }
   0xf   : > { %s3151_s2 = sld [smem:[#allocation7_spill]] (!%p641_p2) }
  0x12   : > { %v2474_v0 = vld [vmem:[%s3147_s4 + $0x78] sm:$0xff]  ;;  %v2473_v1 = vld [vmem:[%s3147_s4 + $0x70] sm:$0xff]  ;;  %s3156_s28 = smov (!%p714_p3, %s2091_s28), 1  ;;  %v2472_v3 = vld [vmem:[%s3147_s4 + $0x68] sm:$0xff]  ;;  %vm1093_vm3 = vcmask 130048   ;;  %vm1123_vm4 = vcmask 523264  }
  0x13   : > { %952 = vmatpush.bf16.msra.mxu1 %v2474_v0  ;;  %s2712_s1 = sshll.u32 %s3156_s28, 3  ;;  %v2471_v4 = vld [vmem:[%s3147_s4 + $0x60] sm:$0xff]  ;;  %v2470_v6 = vld [vmem:[%s3147_s4 + $0x58] sm:$0xff]  ;;  %s2457_s23 = sshll.u32 %s3156_s28, 6  ;;  %v2469_v7 = vld [vmem:[%s3147_s4 + $0x50] sm:$0xff] }
  0x14   : > { %s717_s25 = scalar_lea.vmem %s3148_s6, %s2712_s1  ;;  %s3149_s6 = sld [smem:[#allocation5_spill]]  ;;  %v2468_v8 = vld [vmem:[%s3147_s4 + $0x48] sm:$0xff]  ;;  %v2467_v15 = vld [vmem:[%s3147_s4 + $0x40] sm:$0xff]  ;;  %v2466_v38 = vld [vmem:[%s3147_s4 + $0x38] sm:$0xff] }
  0x15   : > { %v2718_v2 = vld [vmem:[%s717_s25] sm:$0xff]  ;;  %s2743_s30 = scalar_lea.vmem %s3150_s3, %s2457_s23  ;;  %857 = vmatpush.bf16.msra.mxu0 %v2466_v38  ;;  %v2465_v39 = vld [vmem:[%s3147_s4 + $0x30] sm:$0xff]  ;;  %v2464_v40 = vld [vmem:[%s3147_s4 + $0x28] sm:$0xff]  ;;  %s735_s3 = scalar_lea.vmem %s3136_s22, %s2712_s1 }
  0x16   : > { %755 = vadd.xlane.f32.xlu0 %v2718_v2  ;;  %v758_v5 = vmul.f32 %v2718_v2, %v2718_v2  ;;  %v747_v11 = vld [vmem:[%s2743_s30] sm:$0xff]  ;;  %v748_v12 = vld [vmem:[%s2743_s30 + $0x8] sm:$0xff]  ;;  %v749_v19 = vld [vmem:[%s2743_s30 + $0x10] sm:$0xff] }
  0x17   : > { %953 = vmatpush.bf16.msra.mxu1 %v2473_v1  ;;  %v750_v20 = vld [vmem:[%s2743_s30 + $0x18] sm:$0xff]  ;;  %v751_v26 = vld [vmem:[%s2743_s30 + $0x20] sm:$0xff]  ;;  %v752_v27 = vld [vmem:[%s2743_s30 + $0x28] sm:$0xff] }
  0x18   : > { %v753_v33 = vld [vmem:[%s2743_s30 + $0x30] sm:$0xff]  ;;  %v754_v34 = vld [vmem:[%s2743_s30 + $0x38] sm:$0xff]  ;;  %v2463_v41 = vld [vmem:[%s3147_s4 + $0x20] sm:$0xff]  ;;  %s3152_s30 = sld [smem:[#allocation4_spill]] }
  0x19   : > { %858 = vmatpush.bf16.msra.mxu0 %v2465_v39  ;;  %v2462_v42 = vld [vmem:[%s3147_s4 + $0x18] sm:$0xff]  ;;  %v2461_v43 = vld [vmem:[%s3147_s4 + $0x10] sm:$0xff]  ;;  %v2460_v45 = vld [vmem:[%s3147_s4 + $0x8] sm:$0xff] }
  0x1a   : > { %s2735_s25 = scalar_lea.vmem %s3149_s6, %s2457_s23  ;;  %v2459_v47 = vld [vmem:[%s3147_s4] sm:$0xff]  ;;  %s3153_s23 = sld [smem:[#allocation8_spill]] }
  0x1b   : > { %954 = vmatpush.bf16.msra.mxu1 %v2472_v3  ;;  %v2749_v9 = vld [vmem:[%s2735_s25] sm:$0xff]  ;;  %v2752_v10 = vld [vmem:[%s2735_s25 + $0x8] sm:$0xff]  ;;  %v2762_v17 = vld [vmem:[%s2735_s25 + $0x10] sm:$0xff]  ;;  %s2582_s6 = smov 112  }
  0x1c   : > { %v870_v13 = vadd.f32 %v747_v11, %v2749_v9  ;;  %v871_v14 = vadd.f32 %v748_v12, %v2752_v10  ;;  %v2765_v18 = vld [vmem:[%s2735_s25 + $0x18] sm:$0xff]  ;;  %v872_v21 = vadd.f32 %v749_v19, %v2762_v17  ;;  %v2772_v24 = vld [vmem:[%s2735_s25 + $0x20] sm:$0xff]  ;;  %v2775_v25 = vld [vmem:[%s2735_s25 + $0x28] sm:$0xff] }
  0x1d   : > { %v873_v22 = vadd.f32 %v750_v20, %v2765_v18  ;;  %v874_v28 = vadd.f32 %v751_v26, %v2772_v24  ;;  %v875_v29 = vadd.f32 %v752_v27, %v2775_v25  ;;  %v2782_v31 = vld [vmem:[%s2735_s25 + $0x30] sm:$0xff]  ;;  %v2785_v32 = vld [vmem:[%s2735_s25 + $0x38] sm:$0xff]  ;;  %859 = vmatpush.bf16.msra.mxu0 %v2464_v40  ;;  %v2537_v60 = vld [vmem:[%s3151_s2] ss:$0 sm:$0xff] }
  0x1e   : > { %759 = vadd.xlane.f32.xlu0 %v758_v5  ;;  %v878_v16 = vpack.c.bf16 %v871_v14, %v870_v13  ;;  %v876_v35 = vadd.f32 %v753_v33, %v2782_v31  ;;  %v877_v36 = vadd.f32 %v754_v34, %v2785_v32  ;;  %s721_s28 = scalar_lea.vmem %s3152_s30, %s2712_s1  ;;  %v2539_v38 = vld [vmem:[%s3121_s7] ss:$0 sm:$0xff] }
  0x1f   : > { %955 = vmatpush.bf16.msra.mxu1 %v2471_v4  ;;  %v879_v23 = vpack.c.bf16 %v873_v22, %v872_v21  ;;  %v880_v30 = vpack.c.bf16 %v875_v29, %v874_v28  ;;  %v2826_v3 = vld [vmem:[%s721_s28] sm:$0xff] }
  0x20   : > { %v881_v37 = vpack.c.bf16 %v877_v36, %v876_v35  ;;  %v2538_v63 = vld [vmem:[%s3153_s23] ss:$0 sm:$0xff] }
  0x21   : > { %860 = vmatpush.bf16.msra.mxu0 %v2463_v41 }
  0x23   : > { %956 = vmatpush.bf16.msra.mxu1 %v2470_v6 }
  0x25   : > { %861 = vmatpush.bf16.msra.mxu0 %v2462_v42 }
  0x27   : > { %957 = vmatpush.bf16.msra.mxu1 %v2469_v7 }
  0x29   : > { %862 = vmatpush.bf16.msra.mxu0 %v2461_v43  ;;  %v2482_v43 = vld [vmem:[%s3147_s4 + $0xb8] sm:$0xff] }
  0x2a   : > { %1055 = vmatpush.bf16.msra.mxu2 %v2482_v43 }
  0x2b   : > { %958 = vmatpush.bf16.msra.mxu1 %v2468_v8  ;;  %v2536_v8 = vld [vmem:[%s3121_s7 + $0x1] ss:$0 sm:$0xff] }
  0x2d   : > { %863 = vmatpush.bf16.msra.mxu0 %v2460_v45 }
  0x2f   : > { %959 = vmatpush.bf16.msra.mxu1 %v2467_v15 }
  0x31   : > { %864 = vmatpush.bf16.msra.mxu0 %v2459_v47 }
  0x32   : > { %960 = vmatmul.bf16.vlgmr.msra.gmra.mxu1 %v878_v16 }
  0x42   : > { %965 = vmatmul.bf16.gmra.mxu1 %v879_v23 }
  0x52   : > { %970 = vmatmul.bf16.gmra.mxu1 %v880_v30 }
  0x62   : > { %975 = vmatmul.bf16.gmra.mxu1 %v881_v37 }
  0x89   : > { %v756_v44 = vpop.xlane.xlu0 %755 }
  0x8a   : > { %v757_v46 = vmul.f32 0.03125, %v756_v44  ;;  %v2481_v44 = vld [vmem:[%s3147_s4 + $0xb0] sm:$0xff] }
  0x8b   : > { %1056 = vmatpush.bf16.msra.mxu2 %v2481_v44 }
  0x8c   : > { %v762_v49 = vmul.f32 %v757_v46, %v757_v46  ;;  %v764_v59 = vsub.f32 %v2718_v2, %v757_v46  ;;  %v2480_v46 = vld [vmem:[%s3147_s4 + $0xa8] sm:$0xff] }
  0x8f   : > { %1057 = vmatpush.bf16.msra.mxu2 %v2480_v46 }
  0x91   : > { %v760_v48 = vpop.xlane.xlu0 %759 }
  0x92   : > { %v761_v50 = vmul.f32 0.03125, %v760_v48  ;;  %v2479_v48 = vld [vmem:[%s3147_s4 + $0xa0] sm:$0xff] }
  0x93   : > { %1058 = vmatpush.bf16.msra.mxu2 %v2479_v48 }
  0x94   : > { %v763_v51 = vsub.f32 %v761_v50, %v762_v49  ;;  %v2478_v50 = vld [vmem:[%s3147_s4 + $0x98] sm:$0xff] }
  0x96   : > { %v765_v52 = vadd.f32 1e-05, %v763_v51 }
  0x97   : > { %1059 = vmatpush.bf16.msra.mxu2 %v2478_v50 }
  0x98   : > { %2552 = vrsqrt.f32 %v765_v52  ;;  %vm772_vm1 = vweird.f32 %v765_v52 }
  0x9e   : > { %v2553_v53 = vpop.eup %2552 }
  0x9f   : > { %v767_v54 = vmul.f32 %v2553_v53, %v765_v52  ;;  %vm773_vm0 = vweird.f32 %v2553_v53 }
  0xa0   : > { %vm774_vm2 = vmor %vm772_vm1, %vm773_vm0  ;;  %vm1656_vm0 = vcmask 1043456   ;;  %vm1627_vm1 = vcmask 64512  }
  0xa1   : > { %v768_v55 = vmul.f32 %v2553_v53, %v767_v54 }
  0xa3   : > { %v769_v56 = vmul.f32 0.5, %v768_v55 }
  0xa5   : > { %v770_v57 = vsub.f32 1.5, %v769_v56 }
  0xa7   : > { %v771_v58 = vmul.f32 %v2553_v53, %v770_v57  ;;  %v2476_v57 = vld [vmem:[%s3147_s4 + $0x88] sm:$0xff] }
  0xa9   : > { %v775_v61 = vsel %vm774_vm2, %v2553_v53, %v771_v58  ;;  %v2477_v53 = vld [vmem:[%s3147_s4 + $0x90] sm:$0xff]  ;;  %v2475_v58 = vld [vmem:[%s3147_s4 + $0x80] sm:$0xff] }
  0xaa   : > { %v776_v62 = vmul.f32 %v775_v61, %v764_v59  ;;  %1060 = vmatpush.bf16.msra.mxu2 %v2477_v53  ;;  %v981_v59 = vpack.c.bf16 %v2752_v10, %v2749_v9  ;;  %v984_v9 = vpack.c.bf16 %v2785_v32, %v2782_v31 }
  0xac   : > { %v781_v0 = vmul.f32 %v2537_v60, %v776_v62  ;;  %v982_v60 = vpack.c.bf16 %v2765_v18, %v2762_v17  ;;  %v983_v62 = vpack.c.bf16 %v2775_v25, %v2772_v24 }
  0xae   : > { %v2828_v2 = vadd.f32 %v2538_v63, %v781_v0  ;;  %1061 = vmatpush.bf16.msra.mxu2 %v2476_v57 }
  0xaf   : > { %v961_v1 = vpop.f32.mrf.mxu1 }
  0xb0   : > { %v787_v4 = vadd.f32 %v2828_v2, %v2826_v3  ;;  %v962_v15 = vadd.f32 %v2536_v8, %v961_v1 }
  0xb2   : > { %v788_v5 = vpack.c.bf16 %v787_v4, %v787_v4  ;;  %1062 = vmatpush.bf16.msra.mxu2 %v2475_v58 }
  0xb4   : > { %865 = vmatmul.bf16.vlgmr.msra.gmra.mxu0 %v788_v5 }
  0xb5   : > { %1063 = vmatmul.bf16.vlgmr.msra.gmra.mxu2 %v981_v59 }
  0xb7   : > { %v963_v6 = vpop.f32.mrf.mxu1 }
  0xb8   : > { %v964_v16 = vadd.f32 %v2536_v8, %v963_v6 }
  0xba   : > { %v1085_v20 = vpack.c.bf16 %v964_v16, %v962_v15  ;;  %v2540_v16 = vld [vmem:[%s3121_s7 + $0x2] ss:$0 sm:$0xff] }
  0xbc   : > { %v1098_v37 = vsel %vm1093_vm3, %v1085_v20, 0 }
  0xbf   : > { %v966_v7 = vpop.f32.mrf.mxu1 }
  0xc0   : > { %v967_v11 = vadd.f32 %v2536_v8, %v966_v7 }
  0xc5   : > { %1068 = vmatmul.bf16.gmra.mxu2 %v982_v60 }
  0xc7   : > { %v968_v12 = vpop.f32.mrf.mxu1 }
  0xc8   : > { %v969_v13 = vadd.f32 %v2536_v8, %v968_v12 }
  0xca   : > { %v1086_v14 = vpack.c.bf16 %v969_v13, %v967_v11 }
  0xcc   : > { %1177 = vrot.lane.b32.xlu2 %v1086_v14, %s2582_s6  ;;  %v1101_v36 = vsel %vm1093_vm3, %v1086_v14, 0 }
  0xcf   : > { %v971_v19 = vpop.f32.mrf.mxu1 }
  0xd0   : > { %v972_v28 = vadd.f32 %v2536_v8, %v971_v19 }
  0xd4   : > { %1175 = vrot.lane.b32.xlu2 %v1085_v20, %s2582_s6 }
  0xd5   : > { %1073 = vmatmul.bf16.gmra.mxu2 %v983_v62 }
  0xd7   : > { %v973_v21 = vpop.f32.mrf.mxu1 }
  0xd8   : > { %v974_v29 = vadd.f32 %v2536_v8, %v973_v21 }
  0xda   : > { %v1087_v34 = vpack.c.bf16 %v974_v29, %v972_v28 }
  0xdc   : > { %v1104_v35 = vsel %vm1093_vm3, %v1087_v34, 0 }
  0xdf   : > { %v976_v22 = vpop.f32.mrf.mxu1 }
  0xe0   : > { %v977_v23 = vadd.f32 %v2536_v8, %v976_v22 }
  0xe5   : > { %1078 = vmatmul.bf16.gmra.mxu2 %v984_v9 }
  0xe7   : > { %v978_v26 = vpop.f32.mrf.mxu1 }
  0xe8   : > { %v979_v27 = vadd.f32 %v2536_v8, %v978_v26 }
  0xea   : > { %v1088_v30 = vpack.c.bf16 %v979_v27, %v977_v23 }
  0xec   : > { %1181 = vrot.lane.b32.xlu1 %v1088_v30, %s2582_s6  ;;  %v1107_v33 = vsel %vm1093_vm3, %v1088_v30, 0 }
  0xed   : > { %1113 = vmatpush.bf16.xpose.msra.mxu3 %v1107_v33 }
  0xf4   : > { %1179 = vrot.lane.b32.xlu1 %v1087_v34, %s2582_s6 }
  0xf5   : > { %1114 = vmatpush.bf16.xpose.msra.mxu3 %v1104_v35 }
  0xfd   : > { %1115 = vmatpush.bf16.xpose.msra.mxu3 %v1101_v36 }
 0x105   : > { %1116 = vmatpush.bf16.xpose.msra.mxu3 %v1098_v37 }
 0x126   : > { %v1178_v52 = vpop.permute.xlu2 %1177 }
 0x127   : > { %v1190_v54 = vsel %vm1093_vm3, %v1178_v52, 0 }
 0x12e   : > { %v1176_v55 = vpop.permute.xlu2 %1175 }
 0x12f   : > { %v1187_v56 = vsel %vm1093_vm3, %v1176_v55, 0  ;;  %v2483_v55 = vld [vmem:[%s3122_s8] sm:$0xff] }
 0x131   : > { %v866_v39 = vpop.f32.mrf.mxu0 }
 0x132   : > { %v867_v40 = vadd.f32 %v2539_v38, %v866_v39 }
 0x134   : > { %v1084_v41 = vpack.c.bf16 %v867_v40, %v867_v40 }
 0x136   : > { %1169 = vrot.lane.b32.xlu0 %v1084_v41, %s2582_s6  ;;  %2233 = vmatmul.msk.bf16.vlgmr.msra.gmra.mxu3 %vm1093_vm3, %v1084_v41 }
 0x138   : > { %v1064_v17 = vpop.f32.mrf.mxu2 }
 0x139   : > { %v868_v42 = vpop.f32.mrf.mxu0  ;;  %v1065_v30 = vadd.f32 %v2540_v16, %v1064_v17 }
 0x140   : > { %v1066_v18 = vpop.f32.mrf.mxu2 }
 0x141   : > { %v1067_v33 = vadd.f32 %v2540_v16, %v1066_v18 }
 0x143   : > { %v1089_v35 = vpack.c.bf16 %v1067_v33, %v1065_v30  ;;  %v2506_v30 = vld [vmem:[%s3126_s12 + $0xa8] sm:$0xff] }
 0x144   : > { %v2490_v33 = vld [vmem:[%s3126_s12 + $0x28] sm:$0xff] }
 0x148   : > { %v1069_v4 = vpop.f32.mrf.mxu2 }
 0x149   : > { %v1070_v19 = vadd.f32 %v2540_v16, %v1069_v4 }
 0x150   : > { %v1071_v7 = vpop.f32.mrf.mxu2 }
 0x151   : > { %v1072_v20 = vadd.f32 %v2540_v16, %v1071_v7 }
 0x153   : > { %v1090_v28 = vpack.c.bf16 %v1072_v20, %v1070_v19 }
 0x158   : > { %v1074_v13 = vpop.f32.mrf.mxu2 }
 0x159   : > { %v1075_v23 = vadd.f32 %v2540_v16, %v1074_v13 }
 0x15e   : > { %v1182_v45 = vpop.permute.xlu1 %1181 }
 0x15f   : > { %v1196_v47 = vsel %vm1093_vm3, %v1182_v45, 0 }
 0x160   : > { %1202 = vmatpush.bf16.xpose.msrb.mxu3 %v1196_v47  ;;  %v1076_v32 = vpop.f32.mrf.mxu2 }
 0x161   : > { %v1077_v26 = vadd.f32 %v2540_v16, %v1076_v32  ;;  %v2492_v32 = vld [vmem:[%s3126_s12 + $0x38] sm:$0xff] }
 0x162   : > { %1424 = vmatpush.bf16.msrb.mxu1 %v2492_v32  ;;  %v2545_v32 = vld [vmem:[%s3127_s13] ss:$0 sm:$0xff] }
 0x163   : > { %v1091_v34 = vpack.c.bf16 %v1077_v26, %v1075_v23 }
 0x166   : > { %v1180_v49 = vpop.permute.xlu1 %1179 }
 0x167   : > { %v1193_v51 = vsel %vm1093_vm3, %v1180_v49, 0 }
 0x168   : > { %1203 = vmatpush.bf16.xpose.msrb.mxu3 %v1193_v51  ;;  %v1079_v15 = vpop.f32.mrf.mxu2 }
 0x169   : > { %v1080_v21 = vadd.f32 %v2540_v16, %v1079_v15  ;;  %v2499_v15 = vld [vmem:[%s3126_s12 + $0x70] sm:$0xff] }
 0x170   : > { %1204 = vmatpush.bf16.xpose.msrb.mxu3 %v1190_v54  ;;  %v1081_v22 = vpop.f32.mrf.mxu2 }
 0x171   : > { %v1082_v27 = vadd.f32 %v2540_v16, %v1081_v22  ;;  %v2541_v16 = vld [vmem:[%s3123_s9] ss:$0 sm:$0xff] }
 0x173   : > { %v1092_v29 = vpack.c.bf16 %v1082_v27, %v1080_v21  ;;  %v2508_v27 = vld [vmem:[%s3126_s12 + $0xb8] sm:$0xff] }
 0x175   : > { %1156 = vmatpush.bf16.msrb.mxu0 %v1092_v29 }
 0x178   : > { %1205 = vmatpush.bf16.xpose.msrb.mxu3 %v1187_v56 }
 0x179   : > { %1157 = vmatpush.bf16.msrb.mxu0 %v1091_v34 }
 0x17d   : > { %1158 = vmatpush.bf16.msrb.mxu0 %v1090_v28 }
 0x180   : > { %1310 = vmatpush.bf16.msra.mxu3 %v2483_v55 }
 0x181   : > { %1159 = vmatpush.bf16.msrb.mxu0 %v1089_v35 }
 0x1a8   : > { %v1170_v61 = vpop.permute.xlu0 %1169 }
 0x1a9   : > { %2235 = vmatmul.msk.bf16.vlgmr.msrb.gmra.mxu3 %vm1093_vm3, %v1170_v61 }
 0x1b9   : > { %v1118_v63 = vpop.f32.mrf.mxu3 }
 0x1ba   : > { %v1122_v0 = vmul.f32 0.25, %v1118_v63 }
 0x1bc   : > { %v1124_v1 = vsel %vm1123_vm4, %v1122_v0, -inf }
 0x1bd   : > { %1125 = vmax.xlane.f32.xlu1 %v1124_v1 }
 0x1c1   : > { %v1120_v10 = vpop.f32.mrf.mxu3 }
 0x1d6   : > { %1247 = vrot.lane.b32.xlu1 %v1092_v29, %s2582_s6  ;;  %v2491_v29 = vld [vmem:[%s3126_s12 + $0x30] sm:$0xff] }
 0x1d7   : > { %1425 = vmatpush.bf16.msrb.mxu1 %v2491_v29 }
 0x1db   : > { %1426 = vmatpush.bf16.msrb.mxu1 %v2490_v33 }
 0x1de   : > { %1241 = vrot.lane.b32.xlu1 %v1089_v35, %s2582_s6  ;;  %v2497_v35 = vld [vmem:[%s3126_s12 + $0x60] sm:$0xff] }
 0x22c   : > { %v1207_v5 = vpop.f32.mrf.mxu3 }
 0x22d   : > { %v1211_v6 = vmul.f32 0.25, %v1207_v5 }
 0x22f   : > { %v1212_v24 = vsel %vm1123_vm4, %v1211_v6, -inf }
 0x230   : > { %v1126_v25 = vpop.xlane.xlu1 %1125  ;;  %1213 = vmax.xlane.f32.xlu2 %v1212_v24 }
 0x231   : > { %v1127_v8 = vsub.f32 %v1122_v0, %v1126_v25  ;;  %v2484_v25 = vld [vmem:[%s3122_s8 + $0x8] sm:$0xff] }
 0x233   : > { %v1128_v11 = vmul.f32 1.442695, %v1127_v8 }
 0x234   : > { %v1209_v12 = vpop.f32.mrf.mxu3 }
 0x235   : > { %2554 = vpow2.f32 %v1128_v11 }
 0x23b   : > { %v2555_v14 = vpop.eup %2554 }
 0x23c   : > { %v1130_v31 = vsel %vm1123_vm4, %v2555_v14, 0.0 }
 0x23d   : > { %1131 = vadd.xlane.f32.xlu0 %v1130_v31  ;;  %v2500_v31 = vld [vmem:[%s3126_s12 + $0x78] sm:$0xff] }
 0x23e   : > { %1507 = vmatpush.bf16.msrb.mxu2 %v2500_v31 }
 0x242   : > { %1508 = vmatpush.bf16.msrb.mxu2 %v2499_v15 }
 0x248   : > { %v1248_v54 = vpop.permute.xlu1 %1247 }
 0x249   : > { %1260 = vmatpush.bf16.msra.mxu0 %v1248_v54 }
 0x250   : > { %v1242_v10 = vpop.permute.xlu1 %1241 }
 0x251   : > { %1243 = vrot.lane.b32.xlu0 %v1090_v28, %s2582_s6  ;;  %v2498_v28 = vld [vmem:[%s3126_s12 + $0x68] sm:$0xff] }
 0x252   : > { %1509 = vmatpush.bf16.msrb.mxu2 %v2498_v28 }
 0x256   : > { %1510 = vmatpush.bf16.msrb.mxu2 %v2497_v35 }
 0x2a3   : > { %v1214_v36 = vpop.xlane.xlu2 %1213 }
 0x2a4   : > { %v1215_v37 = vsub.f32 %v1211_v6, %v1214_v36  ;;  %v2489_v36 = vld [vmem:[%s3126_s12 + $0x20] sm:$0xff] }
 0x2a5   : > { %1427 = vmatpush.bf16.msrb.mxu1 %v2489_v36 }
 0x2a6   : > { %v1216_v38 = vmul.f32 1.442695, %v1215_v37  ;;  %v2504_v37 = vld [vmem:[%s3126_s12 + $0x98] sm:$0xff] }
 0x2a8   : > { %2556 = vpow2.f32 %v1216_v38  ;;  %v2496_v38 = vld [vmem:[%s3126_s12 + $0x58] sm:$0xff] }
 0x2a9   : > { %1511 = vmatpush.bf16.msrb.mxu2 %v2496_v38 }
 0x2ae   : > { %v2557_v39 = vpop.eup %2556 }
 0x2af   : > { %v1218_v40 = vsel %vm1123_vm4, %v2557_v39, 0.0 }
 0x2b0   : > { %v1132_v41 = vpop.xlane.xlu0 %1131  ;;  %1219 = vadd.xlane.f32.xlu2 %v1218_v40  ;;  %v2503_v40 = vld [vmem:[%s3126_s12 + $0x90] sm:$0xff] }
 0x2b1   : > { %2558 = vrcp.f32 %v1132_v41  ;;  %v1144_v45 = vand.u32 2147483648, %v1132_v41  ;;  %v1142_v47 = vand.u32 2147483647, %v1132_v41  ;;  %vm1138_vm6 = vweird.f32 %v1132_v41 }
 0x2b3   : > { %v1145_v49 = vor.u32 1.1754944e-38, %v1144_v45  ;;  %vm1143_vm8 = vcmp.eq.f32.partialorder %v1142_v47, 8.507059e+37  ;;  %v2494_v45 = vld [vmem:[%s3126_s12 + $0x48] sm:$0xff]  ;;  %v2485_v47 = vld [vmem:[%s3126_s12] sm:$0xff] }
 0x2b7   : > { %v2559_v42 = vpop.eup %2558 }
 0x2b8   : > { %v1134_v43 = vmul.f32 %v2559_v42, %v1132_v41  ;;  %vm1139_vm5 = vweird.f32 %v2559_v42  ;;  %v2487_v41 = vld [vmem:[%s3126_s12 + $0x10] sm:$0xff] }
 0x2b9   : > { %vm1140_vm7 = vmor %vm1138_vm6, %vm1139_vm5 }
 0x2ba   : > { %v1135_v44 = vsub.f32 1.0, %v1134_v43  ;;  %v2502_v43 = vld [vmem:[%s3126_s12 + $0x88] sm:$0xff] }
 0x2bc   : > { %v1136_v46 = vmul.f32 %v2559_v42, %v1135_v44  ;;  %v2486_v44 = vld [vmem:[%s3126_s12 + $0x8] sm:$0xff] }
 0x2be   : > { %v1137_v48 = vadd.f32 %v2559_v42, %v1136_v46  ;;  %v2501_v46 = vld [vmem:[%s3126_s12 + $0x80] sm:$0xff] }
 0x2c0   : > { %v1141_v50 = vsel %vm1140_vm7, %v2559_v42, %v1137_v48  ;;  %v2495_v42 = vld [vmem:[%s3126_s12 + $0x50] sm:$0xff]  ;;  %v2493_v48 = vld [vmem:[%s3126_s12 + $0x40] sm:$0xff] }
 0x2c1   : > { %v1146_v51 = vsel %vm1143_vm8, %v1145_v49, %v1141_v50  ;;  %1512 = vmatpush.bf16.msrb.mxu2 %v2495_v42 }
 0x2c2   : > { %v1147_v52 = vmul.f32 %v2555_v14, %v1146_v51 }
 0x2c3   : > { %v1244_v62 = vpop.permute.xlu0 %1243 }
 0x2c4   : > { %v1148_v53 = vpack.c.bf16 %v1147_v52, %v1147_v52 }
 0x2c5   : > { %1513 = vmatpush.bf16.msrb.mxu2 %v2494_v45 }
 0x2c6   : > { %2234 = vmatmul.msk.bf16.vlgmr.msrb.gmra.mxu0 %vm1123_vm4, %v1148_v53 }
 0x2c8   : > { %1245 = vrot.lane.b32.xlu2 %v1091_v34, %s2582_s6  ;;  %v2505_v34 = vld [vmem:[%s3126_s12 + $0xa0] sm:$0xff] }
 0x2c9   : > { %1514 = vmatpush.bf16.msrb.mxu2 %v2493_v48 }
 0x323   : > { %v1220_v56 = vpop.xlane.xlu2 %1219 }
 0x324   : > { %2560 = vrcp.f32 %v1220_v56  ;;  %v1232_v61 = vand.u32 2147483648, %v1220_v56  ;;  %v1230_v0 = vand.u32 2147483647, %v1220_v56  ;;  %vm1226_vm10 = vweird.f32 %v1220_v56 }
 0x326   : > { %v1233_v9 = vor.u32 1.1754944e-38, %v1232_v61  ;;  %vm1231_vm12 = vcmp.eq.f32.partialorder %v1230_v0, 8.507059e+37 }
 0x32a   : > { %v2561_v57 = vpop.eup %2560 }
 0x32b   : > { %v1222_v58 = vmul.f32 %v2561_v57, %v1220_v56  ;;  %v1246_v59 = vpop.permute.xlu2 %1245  ;;  %vm1227_vm9 = vweird.f32 %v2561_v57 }
 0x32c   : > { %1261 = vmatpush.bf16.msra.mxu0 %v1246_v59  ;;  %vm1228_vm11 = vmor %vm1226_vm10, %vm1227_vm9 }
 0x32d   : > { %v1223_v60 = vsub.f32 1.0, %v1222_v58 }
 0x32f   : > { %v1224_v63 = vmul.f32 %v2561_v57, %v1223_v60 }
 0x330   : > { %1262 = vmatpush.bf16.msra.mxu0 %v1244_v62 }
 0x331   : > { %v1225_v1 = vadd.f32 %v2561_v57, %v1224_v63  ;;  %v2542_v63 = vld [vmem:[%s3124_s10] ss:$0 sm:$0xff] }
 0x333   : > { %v1229_v17 = vsel %vm1228_vm11, %v2561_v57, %v1225_v1 }
 0x334   : > { %v1234_v18 = vsel %vm1231_vm12, %v1233_v9, %v1229_v17  ;;  %1263 = vmatpush.bf16.msra.mxu0 %v1242_v10  ;;  %v2543_v9 = vld [vmem:[%s3125_s11] ss:$0 sm:$0xff] }
 0x335   : > { %v1235_v4 = vmul.f32 %v2557_v39, %v1234_v18  ;;  %v2488_v39 = vld [vmem:[%s3126_s12 + $0x18] sm:$0xff] }
 0x336   : > { %1428 = vmatpush.bf16.msrb.mxu1 %v2488_v39 }
 0x337   : > { %v1236_v5 = vpack.c.bf16 %v1235_v4, %v1235_v4 }
 0x338   : > { %1288 = vmatpush.bf16.msrb.mxu0 %v2484_v25 }
 0x339   : > { %2236 = vmatmul.msk.bf16.vlgmr.msra.gmra.mxu0 %vm1123_vm4, %v1236_v5 }
 0x33a   : > { %1429 = vmatpush.bf16.msrb.mxu1 %v2487_v41 }
 0x33c   : > { %1591 = vmatpush.bf16.msra.mxu0 %v2508_v27 }
 0x33e   : > { %1430 = vmatpush.bf16.msrb.mxu1 %v2486_v44 }
 0x342   : > { %1431 = vmatpush.bf16.msrb.mxu1 %v2485_v47 }
 0x343   : > { %v1161_v6 = vpop.f32.mrf.mxu0 }
 0x344   : > { %v1165_v7 = vpack.c.bf16 %v1161_v6, %v1161_v6  ;;  %v2544_v6 = vld [vmem:[%s3127_s13 + $0x2] ss:$0 sm:$0xff] }
 0x346   : > { %2246 = vmatmul.msk.bf16.vlgmr.msra.gmra.mxu3 %vm1093_vm3, %v1165_v7 }
 0x34b   : > { %v1163_v24 = vpop.f32.mrf.mxu0 }
 0x3b6   : > { %v1265_v8 = vpop.f32.mrf.mxu0 }
 0x3b7   : > { %v1269_v11 = vpack.c.bf16 %v1265_v8, %v1265_v8 }
 0x3b9   : > { %2241 = vmatmul.msk.bf16.vlgmr.msrb.gmra.mxu0 %vm1093_vm3, %v1269_v11 }
 0x3be   : > { %v1267_v12 = vpop.f32.mrf.mxu0 }
 0x3c9   : > { %v1312_v13 = vpop.f32.mrf.mxu3 }
 0x3d1   : > { %v1314_v14 = vpop.f32.mrf.mxu3 }
 0x436   : > { %v1290_v19 = vpop.f32.mrf.mxu0 }
 0x437   : > { %v1313_v20 = vadd.f32 %v1312_v13, %v1290_v19 }
 0x439   : > { %v1320_v21 = vadd.f32 %v2541_v16, %v1313_v20 }
 0x43b   : > { %v2919_v22 = vadd.f32 %v1320_v21, %v2828_v2  ;;  %v2507_v2 = vld [vmem:[%s3126_s12 + $0xb0] sm:$0xff] }
 0x43c   : > { %1592 = vmatpush.bf16.msra.mxu0 %v2507_v2 }
 0x43d   : > { %1322 = vadd.xlane.f32.xlu2 %v2919_v22  ;;  %v1325_v23 = vmul.f32 %v2919_v22, %v2919_v22 }
 0x43e   : > { %v1292_v26 = vpop.f32.mrf.mxu0 }
 0x43f   : > { %1326 = vadd.xlane.f32.xlu1 %v1325_v23 }
 0x440   : > { %1593 = vmatpush.bf16.msra.mxu0 %v2506_v30 }
 0x444   : > { %1594 = vmatpush.bf16.msra.mxu0 %v2505_v34 }
 0x448   : > { %1595 = vmatpush.bf16.msra.mxu0 %v2504_v37 }
 0x44c   : > { %1596 = vmatpush.bf16.msra.mxu0 %v2503_v40 }
 0x450   : > { %1597 = vmatpush.bf16.msra.mxu0 %v2502_v43 }
 0x454   : > { %1598 = vmatpush.bf16.msra.mxu0 %v2501_v46 }
 0x4b0   : > { %v1323_v49 = vpop.xlane.xlu2 %1322 }
 0x4b1   : > { %v1324_v50 = vmul.f32 0.03125, %v1323_v49 }
 0x4b2   : > { %v1327_v51 = vpop.xlane.xlu1 %1326 }
 0x4b3   : > { %v1329_v52 = vmul.f32 %v1324_v50, %v1324_v50  ;;  %v1328_v53 = vmul.f32 0.03125, %v1327_v51  ;;  %v1331_v62 = vsub.f32 %v2919_v22, %v1324_v50 }
 0x4b5   : > { %v1330_v54 = vsub.f32 %v1328_v53, %v1329_v52 }
 0x4b7   : > { %v1332_v55 = vadd.f32 1e-05, %v1330_v54 }
 0x4b9   : > { %2562 = vrsqrt.f32 %v1332_v55  ;;  %vm1339_vm14 = vweird.f32 %v1332_v55 }
 0x4bf   : > { %v2563_v56 = vpop.eup %2562 }
 0x4c0   : > { %v1334_v57 = vmul.f32 %v2563_v56, %v1332_v55  ;;  %vm1340_vm13 = vweird.f32 %v2563_v56 }
 0x4c1   : > { %vm1341_vm15 = vmor %vm1339_vm14, %vm1340_vm13 }
 0x4c2   : > { %v1335_v58 = vmul.f32 %v2563_v56, %v1334_v57 }
 0x4c4   : > { %v1336_v59 = vmul.f32 0.5, %v1335_v58 }
 0x4c6   : > { %v1337_v60 = vsub.f32 1.5, %v1336_v59  ;;  %v2509_v59 = vld [vmem:[%s3128_s14] sm:$0xff] }
 0x4c8   : > { %v1338_v61 = vmul.f32 %v2563_v56, %v1337_v60 }
 0x4ca   : > { %v1342_v0 = vsel %vm1341_vm15, %v2563_v56, %v1338_v61 }
 0x4cb   : > { %v1343_v1 = vmul.f32 %v1342_v0, %v1331_v62 }
 0x4cd   : > { %v1348_v10 = vmul.f32 %v2542_v63, %v1343_v1 }
 0x4cf   : > { %v2994_v17 = vadd.f32 %v2543_v9, %v1348_v10 }
 0x4d1   : > { %v1520_v18 = vpack.c.bf16 %v2994_v17, %v2994_v17  ;;  %v1354_v4 = vadd.f32 %v2994_v17, %v2826_v3  ;;  %v2546_v3 = vld [vmem:[%s3127_s13 + $0x1] ss:$0 sm:$0xff] }
 0x4d3   : > { %1599 = vmatmul.bf16.vlgmr.msra.gmra.mxu0 %v1520_v18  ;;  %v1355_v5 = vpack.c.bf16 %v1354_v4, %v1354_v4 }
 0x4d5   : > { %1432 = vmatmul.bf16.vlgmr.msrb.gmra.mxu1 %v1355_v5  ;;  %1515 = vmatmul.bf16.vlgmr.msrb.gmra.mxu2 %v1355_v5 }
 0x550   : > { %v1600_v7 = vpop.f32.mrf.mxu0 }
 0x551   : > { %v1601_v24 = vadd.f32 %v2544_v6, %v1600_v7 }
 0x552   : > { %v1433_v25 = vpop.f32.mrf.mxu1 }
 0x553   : > { %v3003_v8 = vpack.c.bf16 %v1601_v24, %v1601_v24  ;;  %v1434_v19 = vadd.f32 %v2545_v32, %v1433_v25 }
 0x555   : > { %v1658_v11 = vsel %vm1656_vm0, %v3003_v8, 0  ;;  %v1604_v21 = vpack.c.bf16 %v1434_v19, %v1434_v19 }
 0x556   : > { %1667 = vmatpush.bf16.msra.mxu1 %v1658_v11 }
 0x558   : > { %v1516_v12 = vpop.f32.mrf.mxu2  ;;  %v1602_v13 = vpop.f32.mrf.mxu0 }
 0x559   : > { %v1517_v14 = vadd.f32 %v2546_v3, %v1516_v12  ;;  %v2510_v12 = vld [vmem:[%s3128_s14 + $0x8] sm:$0xff] }
 0x55a   : > { %v1435_v31 = vpop.f32.mrf.mxu1  ;;  %1790 = vmatpush.bf16.msrb.mxu1 %v2509_v59  ;;  %1768 = vmatpush.bf16.msrb.mxu0 %v2510_v12 }
 0x55b   : > { %v1605_v15 = vpack.c.bf16 %v1517_v14, %v1517_v14 }
 0x55d   : > { %v1611_v16 = vsel %vm1093_vm3, %v1605_v15, 0  ;;  %1680 = vrot.lane.b32.xlu0 %v1605_v15, %s2582_s6 }
 0x55e   : > { %1620 = vmatpush.bf16.xpose.msrb.mxu3 %v1611_v16  ;;  %v2547_v16 = vld [vmem:[%s3129_s15] ss:$0 sm:$0xff] }
 0x560   : > { %v1518_v20 = vpop.f32.mrf.mxu2 }
 0x565   : > { %1677 = vrot.lane.b32.xlu0 %v1604_v21, %s2582_s6  ;;  %2377 = vmatmul.msk.bf16.vlgmr.msrb.gmra.mxu3 %vm1093_vm3, %v1604_v21 }
 0x5cf   : > { %v1681_v22 = vpop.permute.xlu0 %1680 }
 0x5d0   : > { %v1686_v23 = vsel %vm1093_vm3, %v1681_v22, 0 }
 0x5d1   : > { %1695 = vmatpush.bf16.xpose.msra.mxu2 %v1686_v23 }
 0x5d7   : > { %v1678_v26 = vpop.permute.xlu0 %1677 }
 0x5d8   : > { %2379 = vmatmul.msk.bf16.vlgmr.msra.gmra.mxu2 %vm1093_vm3, %v1678_v26 }
 0x5e8   : > { %v1622_v27 = vpop.f32.mrf.mxu3 }
 0x5e9   : > { %v1626_v28 = vmul.f32 0.25, %v1622_v27  ;;  %v2518_v27 = vld [vmem:[%s3132_s18 + $0x38] sm:$0xff] }
 0x5ea   : > { %1903 = vmatpush.bf16.msrb.mxu2 %v2518_v27 }
 0x5eb   : > { %v1628_v2 = vsel %vm1627_vm1, %v1626_v28, -inf }
 0x5ec   : > { %1629 = vmax.xlane.f32.xlu2 %v1628_v2  ;;  %v2515_v2 = vld [vmem:[%s3132_s18 + $0x20] sm:$0xff] }
 0x5f0   : > { %v1624_v29 = vpop.f32.mrf.mxu3 }
 0x5f1   : > { %v2514_v29 = vld [vmem:[%s3132_s18 + $0x18] sm:$0xff] }
 0x65b   : > { %v1697_v30 = vpop.f32.mrf.mxu2 }
 0x65c   : > { %v1701_v33 = vmul.f32 0.25, %v1697_v30  ;;  %v2513_v30 = vld [vmem:[%s3132_s18 + $0x10] sm:$0xff] }
 0x65e   : > { %v1702_v34 = vsel %vm1627_vm1, %v1701_v33, -inf }
 0x65f   : > { %1703 = vmax.xlane.f32.xlu0 %v1702_v34  ;;  %v1630_v35 = vpop.xlane.xlu2 %1629  ;;  %v2512_v34 = vld [vmem:[%s3132_s18 + $0x8] sm:$0xff] }
 0x660   : > { %v1631_v36 = vsub.f32 %v1626_v28, %v1630_v35  ;;  %v2517_v28 = vld [vmem:[%s3132_s18 + $0x30] sm:$0xff]  ;;  %v2511_v35 = vld [vmem:[%s3132_s18] sm:$0xff] }
 0x661   : > { %1904 = vmatpush.bf16.msrb.mxu2 %v2517_v28 }
 0x662   : > { %v1632_v37 = vmul.f32 1.442695, %v1631_v36 }
 0x663   : > { %v1699_v38 = vpop.f32.mrf.mxu2 }
 0x664   : > { %2564 = vpow2.f32 %v1632_v37 }
 0x66a   : > { %v2565_v39 = vpop.eup %2564 }
 0x66b   : > { %v1634_v40 = vsel %vm1627_vm1, %v2565_v39, 0.0 }
 0x66c   : > { %1635 = vadd.xlane.f32.xlu2 %v1634_v40  ;;  %v2526_v40 = vld [vmem:[%s3134_s20 + $0x38] sm:$0xff] }
 0x6d2   : > { %v1704_v41 = vpop.xlane.xlu0 %1703 }
 0x6d3   : > { %v1705_v42 = vsub.f32 %v1701_v33, %v1704_v41 }
 0x6d5   : > { %v1706_v43 = vmul.f32 1.442695, %v1705_v42  ;;  %v2525_v42 = vld [vmem:[%s3134_s20 + $0x30] sm:$0xff] }
 0x6d7   : > { %2566 = vpow2.f32 %v1706_v43 }
 0x6dd   : > { %v2567_v44 = vpop.eup %2566 }
 0x6de   : > { %v1708_v45 = vsel %vm1627_vm1, %v2567_v44, 0.0 }
 0x6df   : > { %1709 = vadd.xlane.f32.xlu1 %v1708_v45  ;;  %v1636_v46 = vpop.xlane.xlu2 %1635  ;;  %v2523_v45 = vld [vmem:[%s3134_s20 + $0x20] sm:$0xff] }
 0x6e0   : > { %2568 = vrcp.f32 %v1636_v46  ;;  %v1648_v50 = vand.u32 2147483648, %v1636_v46  ;;  %v1646_v52 = vand.u32 2147483647, %v1636_v46  ;;  %vm1642_vm4 = vweird.f32 %v1636_v46 }
 0x6e2   : > { %v1649_v54 = vor.u32 1.1754944e-38, %v1648_v50  ;;  %vm1647_vm6 = vcmp.eq.f32.partialorder %v1646_v52, 8.507059e+37 }
 0x6e6   : > { %v2569_v47 = vpop.eup %2568 }
 0x6e7   : > { %v1638_v48 = vmul.f32 %v2569_v47, %v1636_v46  ;;  %vm1643_vm2 = vweird.f32 %v2569_v47 }
 0x6e8   : > { %vm1644_vm5 = vmor %vm1642_vm4, %vm1643_vm2 }
 0x6e9   : > { %v1639_v49 = vsub.f32 1.0, %v1638_v48  ;;  %v2522_v48 = vld [vmem:[%s3134_s20 + $0x18] sm:$0xff] }
 0x6eb   : > { %v1640_v51 = vmul.f32 %v2569_v47, %v1639_v49 }
 0x6ed   : > { %v1641_v53 = vadd.f32 %v2569_v47, %v1640_v51  ;;  %v2521_v51 = vld [vmem:[%s3134_s20 + $0x10] sm:$0xff] }
 0x6ef   : > { %v1645_v55 = vsel %vm1644_vm5, %v2569_v47, %v1641_v53 }
 0x6f0   : > { %v1650_v56 = vsel %vm1647_vm6, %v1649_v54, %v1645_v55  ;;  %v2548_v55 = vld [vmem:[%s3130_s16] ss:$0 sm:$0xff] }
 0x6f1   : > { %v1651_v57 = vmul.f32 %v2565_v39, %v1650_v56 }
 0x6f3   : > { %v1652_v58 = vpack.c.bf16 %v1651_v57, %v1651_v57 }
 0x6f5   : > { %2378 = vmatmul.msk.bf16.vlgmr.msra.gmra.mxu1 %vm1627_vm1, %v1652_v58  ;;  %v2549_v58 = vld [vmem:[%s3131_s17] ss:$0 sm:$0xff] }
 0x6f8   : > { %1728 = vrot.lane.b32.xlu1 %v3003_v8, %s2582_s6 }
 0x752   : > { %v1710_v60 = vpop.xlane.xlu1 %1709 }
 0x753   : > { %2570 = vrcp.f32 %v1710_v60  ;;  %v1722_v9 = vand.u32 2147483648, %v1710_v60  ;;  %vm1716_vm8 = vweird.f32 %v1710_v60  ;;  %v1720_v10 = vand.u32 2147483647, %v1710_v60 }
 0x755   : > { %v1723_v4 = vor.u32 1.1754944e-38, %v1722_v9  ;;  %vm1721_vm10 = vcmp.eq.f32.partialorder %v1720_v10, 8.507059e+37 }
 0x759   : > { %v2571_v61 = vpop.eup %2570 }
 0x75a   : > { %v1712_v62 = vmul.f32 %v2571_v61, %v1710_v60  ;;  %vm1717_vm7 = vweird.f32 %v2571_v61 }
 0x75b   : > { %vm1718_vm9 = vmor %vm1716_vm8, %vm1717_vm7 }
 0x75c   : > { %v1713_v63 = vsub.f32 1.0, %v1712_v62  ;;  %v2520_v62 = vld [vmem:[%s3134_s20 + $0x8] sm:$0xff] }
 0x75e   : > { %v1714_v0 = vmul.f32 %v2571_v61, %v1713_v63  ;;  %v2519_v63 = vld [vmem:[%s3134_s20] sm:$0xff] }
 0x760   : > { %v1715_v1 = vadd.f32 %v2571_v61, %v1714_v0  ;;  %v2550_v0 = vld [vmem:[%s3133_s19] ss:$0 sm:$0xff] }
 0x762   : > { %v1719_v18 = vsel %vm1718_vm9, %v2571_v61, %v1715_v1 }
 0x763   : > { %v1724_v5 = vsel %vm1721_vm10, %v1723_v4, %v1719_v18 }
 0x764   : > { %v1725_v6 = vmul.f32 %v2567_v44, %v1724_v5  ;;  %v2524_v44 = vld [vmem:[%s3134_s20 + $0x28] sm:$0xff]  ;;  %v2551_v5 = vld [vmem:[%s3135_s21] ss:$0 sm:$0xff] }
 0x766   : > { %v1726_v25 = vpack.c.bf16 %v1725_v6, %v1725_v6 }
 0x76a   : > { %v1729_v7 = vpop.permute.xlu1 %1728 }
 0x76b   : > { %v1734_v24 = vsel %vm1656_vm0, %v1729_v7, 0 }
 0x76c   : > { %1743 = vmatpush.bf16.msra.mxu3 %v1734_v24 }
 0x76f   : > { %2380 = vmatmul.msk.bf16.vlgmr.msra.gmra.mxu3 %vm1627_vm1, %v1726_v25 }
 0x770   : > { %1982 = vmatpush.bf16.msrb.mxu3 %v2526_v40 }
 0x772   : > { %v1669_v8 = vpop.f32.mrf.mxu1 }
 0x773   : > { %v1673_v11 = vpack.c.bf16 %v1669_v8, %v1669_v8 }
 0x774   : > { %1983 = vmatpush.bf16.msrb.mxu3 %v2525_v42 }
 0x775   : > { %2390 = vmatmul.msk.bf16.vlgmr.msrb.gmra.mxu1 %vm1093_vm3, %v1673_v11 }
 0x778   : > { %1984 = vmatpush.bf16.msrb.mxu3 %v2524_v44 }
 0x77a   : > { %v1671_v3 = vpop.f32.mrf.mxu1 }
 0x77c   : > { %1985 = vmatpush.bf16.msrb.mxu3 %v2523_v45 }
 0x780   : > { %1986 = vmatpush.bf16.msrb.mxu3 %v2522_v48 }
 0x784   : > { %1987 = vmatpush.bf16.msrb.mxu3 %v2521_v51 }
 0x788   : > { %1988 = vmatpush.bf16.msrb.mxu3 %v2520_v62 }
 0x78c   : > { %1989 = vmatpush.bf16.msrb.mxu3 %v2519_v63 }
 0x7f2   : > { %v1745_v13 = vpop.f32.mrf.mxu3  ;;  %v1792_v14 = vpop.f32.mrf.mxu1 }
 0x7f3   : > { %v1749_v31 = vpack.c.bf16 %v1745_v13, %v1745_v13 }
 0x7f5   : > { %2385 = vmatmul.msk.bf16.vlgmr.msrb.gmra.mxu0 %vm1093_vm3, %v1749_v31 }
 0x7fa   : > { %v1747_v32 = vpop.f32.mrf.mxu3  ;;  %v1794_v15 = vpop.f32.mrf.mxu1 }
 0x872   : > { %v1770_v19 = vpop.f32.mrf.mxu0 }
 0x873   : > { %v1793_v20 = vadd.f32 %v1792_v14, %v1770_v19 }
 0x875   : > { %v1800_v21 = vadd.f32 %v2547_v16, %v1793_v20 }
 0x877   : > { %v3040_v22 = vadd.f32 %v1800_v21, %v2994_v17  ;;  %v2516_v17 = vld [vmem:[%s3132_s18 + $0x28] sm:$0xff] }
 0x878   : > { %1905 = vmatpush.bf16.msrb.mxu2 %v2516_v17 }
 0x879   : > { %1802 = vadd.xlane.f32.xlu2 %v3040_v22  ;;  %v1805_v26 = vmul.f32 %v3040_v22, %v3040_v22 }
 0x87a   : > { %v1772_v23 = vpop.f32.mrf.mxu0 }
 0x87c   : > { %1906 = vmatpush.bf16.msrb.mxu2 %v2515_v2 }
 0x880   : > { %1907 = vmatpush.bf16.msrb.mxu2 %v2514_v29 }
 0x881   : > { %1806 = vadd.xlane.f32.xlu2 %v1805_v26 }
 0x884   : > { %1908 = vmatpush.bf16.msrb.mxu2 %v2513_v30 }
 0x888   : > { %1909 = vmatpush.bf16.msrb.mxu2 %v2512_v34 }
 0x88c   : > { %1910 = vmatpush.bf16.msrb.mxu2 %v2511_v35 }
 0x8ec   : > { %v1803_v33 = vpop.xlane.xlu2 %1802 }
 0x8ed   : > { %v1804_v36 = vmul.f32 0.03125, %v1803_v33 }
 0x8ef   : > { %v1809_v38 = vmul.f32 %v1804_v36, %v1804_v36  ;;  %v1811_v54 = vsub.f32 %v3040_v22, %v1804_v36 }
 0x8f4   : > { %v1807_v37 = vpop.xlane.xlu2 %1806 }
 0x8f5   : > { %v1808_v39 = vmul.f32 0.03125, %v1807_v37 }
 0x8f7   : > { %v1810_v41 = vsub.f32 %v1808_v39, %v1809_v38 }
 0x8f9   : > { %v1812_v43 = vadd.f32 1e-05, %v1810_v41 }
 0x8fb   : > { %2572 = vrsqrt.f32 %v1812_v43  ;;  %vm1819_vm11 = vweird.f32 %v1812_v43 }
 0x901   : > { %v2573_v46 = vpop.eup %2572 }
 0x902   : > { %v1814_v47 = vmul.f32 %v2573_v46, %v1812_v43  ;;  %vm1820_vm3 = vweird.f32 %v2573_v46 }
 0x903   : > { %vm1821_vm12 = vmor %vm1819_vm11, %vm1820_vm3 }
 0x904   : > { %v1815_v49 = vmul.f32 %v2573_v46, %v1814_v47 }
 0x906   : > { %v1816_v50 = vmul.f32 0.5, %v1815_v49 }
 0x908   : > { %v1817_v52 = vsub.f32 1.5, %v1816_v50 }
 0x90a   : > { %v1818_v53 = vmul.f32 %v2573_v46, %v1817_v52 }
 0x90c   : > { %v1822_v56 = vsel %vm1821_vm12, %v2573_v46, %v1818_v53 }
 0x90d   : > { %v1823_v57 = vmul.f32 %v1822_v56, %v1811_v54 }
 0x90f   : > { %v1828_v59 = vmul.f32 %v2548_v55, %v1823_v57 }
 0x911   : > { %v1833_v60 = vadd.f32 %v2549_v58, %v1828_v59 }
 0x913   : > { %v1834_v61 = vpack.c.bf16 %v1833_v60, %v1833_v60 }
 0x915   : > { %1911 = vmatmul.bf16.vlgmr.msrb.gmra.mxu2 %v1834_v61 }
 0x998   : > { %v1912_v1 = vpop.f32.mrf.mxu2 }
 0x999   : > { %v1913_v9 = vadd.f32 %v2550_v0, %v1912_v1 }
 0x99b   : > { %v1916_v10 = vmax.f32 %v1913_v9, 0.0 }
 0x99d   : > { %v1917_v18 = vpack.c.bf16 %v1916_v10, %v1916_v10 }
 0x99f   : > { %1990 = vmatmul.bf16.vlgmr.msrb.gmra.mxu3 %v1917_v18 }
 0x9a0   : > { %v1914_v4 = vpop.f32.mrf.mxu2 }
 0xa22   : > { %v1991_v6 = vpop.f32.mrf.mxu3 }
 0xa23   : > { %v1995_v7 = vadd.f32 %v1991_v6, %v3040_v22 }
 0xa25   : > { %v2000_v24 = vadd.f32 %v2551_v5, %v1995_v7 }
 0xa27   : > { %2001 = vst [vmem:[%s735_s3] sm:$0xff] %v2000_v24 }
 0xa2a   : > { %v1993_v25 = vpop.f32.mrf.mxu3 }
 0xa2b PF: > { %s3154_s23 = sld [smem:[#allocation2_spill]] }
 0xa31   : > { %s32_s3 = sadd.s32 1, %s3154_s23  }
 0xa32   : > { %p29_p4 = scmp.ge.s32.totalorder %s32_s3, 4  }
 0xa34   :  { %31 = sbr.rel (!%p29_p4) target bundleno = 8 (0x8), region = 155 }

// kernel: query_transformer_block.4
= control target key start
LH: loop header
LB: loop body
LE: loop exit
PB: predicated region body
PF: predicated region fallthrough
CT: control target
= control target key end

     0   :  { %s3969_s27 = smov 0   ;;  %s3971_s28 = smov 0   ;;  %s5293_s0 = inlined_call_operand.vmem [shape: f32[2,64,128], index: 0, kind: input, shape index: {}]   ;;  %s5294_s1 = inlined_call_operand.vmem [shape: f32[2,64,128], index: 1, kind: input, shape index: {}]   ;;  %s5295_s2 = inlined_call_operand.vmem [shape: f32[2,8,128], index: 2, kind: input, shape index: {}]   ;;  %s5296_s3 = inlined_call_operand.vmem [shape: f32[2,8,128], index: 3, kind: input, shape index: {}]   ;;  %s5297_s4 = inlined_call_operand.vmem [shape: f32[2,64,128], index: 4, kind: input, shape index: {}]   ;;  %s5298_s5 = inlined_call_operand.vmem [shape: f32[2,64,128], index: 5, kind: input, shape index: {}]   ;;  %s5299_s6 = inlined_call_operand.vmem [shape: f32[1,128], index: 6, kind: input, shape index: {}]   ;;  %s5300_s7 = inlined_call_operand.vmem [shape: f32[1,128], index: 7, kind: input, shape index: {}]   ;;  %s5301_s8 = inlined_call_operand.vmem [shape: bf16[3,128,128], index: 8, kind: input, shape index: {}]   ;;  %s5302_s9 = inlined_call_operand.vmem [shape: f32[3,1,128], index: 9, kind: input, shape index: {}]   ;;  %s5303_s10 = inlined_call_operand.vmem [shape: bf16[128,128], index: 10, kind: input, shape index: {}]   ;;  %s5304_s11 = inlined_call_operand.vmem [shape: f32[1,128], index: 11, kind: input, shape index: {}]   ;;  %s5305_s12 = inlined_call_operand.vmem [shape: f32[1,128], index: 12, kind: input, shape index: {}]   ;;  %s5306_s13 = inlined_call_operand.vmem [shape: f32[1,128], index: 13, kind: input, shape index: {}]   ;;  %s5307_s14 = inlined_call_operand.vmem [shape: bf16[3,128,128], index: 14, kind: input, shape index: {}]   ;;  %s5308_s15 = inlined_call_operand.vmem [shape: f32[3,1,128], index: 15, kind: input, shape index: {}]   ;;  %s5309_s16 = inlined_call_operand.vmem [shape: bf16[128,128], index: 16, kind: input, shape index: {}]   ;;  %s5310_s17 = inlined_call_operand.vmem [shape: f32[1,128], index: 17, kind: input, shape index: {}]   ;;  %s5311_s18 = inlined_call_operand.vmem [shape: f32[2,64,128], index: 18, kind: output, shape index: {}]  }
   0x1   :  { %5319 = sst [smem:[#allocation13_spill]] %s5293_s0  ;;  %s3973_s29 = smov 0  }
   0x2   :  { %5320 = sst [smem:[#allocation14_spill]] %s5294_s1 }
   0x3   :  { %5321 = sst [smem:[#allocation15_spill]] %s5295_s2 }
   0x4 LB: > { %5322 = sst [smem:[#allocation2_spill]] %s3867_s28  ;;  %s40_s30 = sadd.s32 1, %s3867_s28  ;;  %s3871_s29 = sphi %s3973_s29, %s28_s29   ;;  %s3867_s28 = sphi %s3971_s28, %s5376_s28   ;;  %s3863_s27 = sphi %s3969_s27, %s5375_s27  }
   0x5   : > { %5323 = sst [smem:[#allocation3_spill]] %s3871_s29  ;;  %p3270_p0 = scmp.ge.s32.totalorder %s3871_s29, 1 }
   0x6   : > { %p42_p1 = scmp.ge.s32.totalorder %s40_s30, 2  ;;  %p588_p2 = scmp.lt.s32.totalorder %s3871_s29, 3 }
   0x8   : > { %s5378_s30 = smov (%p42_p1, %s40_s30), 0  ;;  %p589_p3 = pnand %p3270_p0, %p588_p2 }
   0x9   : > { %5324 = sst [smem:[#allocation4_spill]] %s5378_s30 }
   0xa   : > { %592 = sbr.rel (%p589_p3) target bundleno = 2132 (0x854), region = 92 }
   0xf   : > { %p678_p4 = scmp.lt.s32.totalorder %s3863_s27, 1  ;;  %s5325_s20 = sld [smem:[#allocation13_spill]]  ;;  %v3629_v6 = vld [vmem:[%s5301_s8 + $0x78] sm:$0xff]  ;;  %v3628_v7 = vld [vmem:[%s5301_s8 + $0x70] sm:$0xff]  ;;  %v3627_v11 = vld [vmem:[%s5301_s8 + $0x68] sm:$0xff] }
  0x10   : > { %1125 = vmatpush.bf16.msra.mxu1 %v3629_v6  ;;  %v3626_v19 = vld [vmem:[%s5301_s8 + $0x60] sm:$0xff]  ;;  %v3625_v20 = vld [vmem:[%s5301_s8 + $0x58] sm:$0xff]  ;;  %v3624_v21 = vld [vmem:[%s5301_s8 + $0x50] sm:$0xff]  ;;  %s5326_s28 = sld [smem:[#allocation15_spill]]  ;;  %s3873_s24 = smov 112  }
  0x11   : > { %s5380_s27 = smov (!%p678_p4, %s3863_s27), 1  ;;  %v3621_v22 = vld [vmem:[%s5301_s8 + $0x38] sm:$0xff]  ;;  %v3623_v23 = vld [vmem:[%s5301_s8 + $0x48] sm:$0xff]  ;;  %v3620_v24 = vld [vmem:[%s5301_s8 + $0x30] sm:$0xff]  ;;  %s5329_s1 = sld [smem:[#allocation14_spill]] }
  0x12   : > { %s3990_s0 = sshll.u32 %s5380_s27, 6  ;;  %s3275_s23 = sshll.u32 %s5380_s27, 3  ;;  %1024 = vmatpush.bf16.msra.mxu0 %v3621_v22  ;;  %v3622_v25 = vld [vmem:[%s5301_s8 + $0x40] sm:$0xff]  ;;  %v3619_v30 = vld [vmem:[%s5301_s8 + $0x28] sm:$0xff]  ;;  %v3617_v32 = vld [vmem:[%s5301_s8 + $0x18] sm:$0xff] }
  0x13   : > { %v3618_v31 = vld [vmem:[%s5301_s8 + $0x20] sm:$0xff]  ;;  %v3616_v37 = vld [vmem:[%s5301_s8 + $0x10] sm:$0xff]  ;;  %v3615_v41 = vld [vmem:[%s5301_s8 + $0x8] sm:$0xff] }
  0x14   : > { %1126 = vmatpush.bf16.msra.mxu1 %v3628_v7  ;;  %v3614_v47 = vld [vmem:[%s5301_s8] sm:$0xff] }
  0x15   : > { %s3996_s21 = scalar_lea.vmem %s5325_s20, %s3990_s0 }
  0x16   : > { %v3999_v0 = vld [vmem:[%s3996_s21] sm:$0xff]  ;;  %v4002_v1 = vld [vmem:[%s3996_s21 + $0x10] sm:$0xff]  ;;  %v4009_v3 = vld [vmem:[%s3996_s21 + $0x8] sm:$0xff]  ;;  %s700_s20 = scalar_lea.vmem %s5326_s28, %s3275_s23  ;;  %1025 = vmatpush.bf16.msra.mxu0 %v3620_v24 }
  0x17   : > { %742 = vadd.xlane.f32.xlu0 %v3999_v0  ;;  %746 = vadd.xlane.f32.xlu2 %v4002_v1  ;;  %v766_v2 = vmul.f32 %v3999_v0, %v3999_v0  ;;  %v4012_v4 = vld [vmem:[%s3996_s21 + $0x18] sm:$0xff]  ;;  %v767_v5 = vmul.f32 %v4009_v3, %v4009_v3  ;;  %v768_v8 = vmul.f32 %v4002_v1, %v4002_v1  ;;  %v4027_v9 = vld [vmem:[%s3996_s21 + $0x20] sm:$0xff]  ;;  %v4036_v12 = vld [vmem:[%s3996_s21 + $0x28] sm:$0xff] }
  0x18   : > { %v769_v10 = vmul.f32 %v4012_v4, %v4012_v4  ;;  %1127 = vmatpush.bf16.msra.mxu1 %v3627_v11  ;;  %v771_v13 = vmul.f32 %v4036_v12, %v4036_v12  ;;  %v770_v14 = vmul.f32 %v4027_v9, %v4027_v9  ;;  %v4044_v15 = vld [vmem:[%s3996_s21 + $0x30] sm:$0xff]  ;;  %v4049_v17 = vld [vmem:[%s3996_s21 + $0x38] sm:$0xff]  ;;  %s704_s21 = scalar_lea.vmem %s5296_s3, %s3275_s23  ;;  %v4083_v26 = vld [vmem:[%s700_s20] sm:$0xff]  ;;  %s4195_s20 = scalar_lea.vmem %s5329_s1, %s3990_s0 }
  0x19   : > { %774 = vadd.xlane.f32.xlu1 %v766_v2  ;;  %v772_v16 = vmul.f32 %v4044_v15, %v4044_v15  ;;  %v773_v18 = vmul.f32 %v4049_v17, %v4049_v17  ;;  %v919_v27 = vld [vmem:[%s704_s21] sm:$0xff]  ;;  %s709_s23 = scalar_lea.vmem %s5297_s4, %s3990_s0  ;;  %s4748_s1 = scalar_lea.vmem %s5298_s5, %s3990_s0 }
  0x1a   : > { %v1053_v28 = vadd.f32 %v919_v27, %v4083_v26  ;;  %1026 = vmatpush.bf16.msra.mxu0 %v3619_v30 }
  0x1c   : > { %1128 = vmatpush.bf16.msra.mxu1 %v3626_v19  ;;  %v1054_v29 = vpack.c.bf16 %v1053_v28, %v1053_v28 }
  0x1e   : > { %1027 = vmatpush.bf16.msra.mxu0 %v3618_v31 }
  0x1f   : > { %744 = vadd.xlane.f32.xlu0 %v4009_v3  ;;  %748 = vadd.xlane.f32.xlu2 %v4012_v4 }
  0x20   : > { %1129 = vmatpush.bf16.msra.mxu1 %v3625_v20 }
  0x21   : > { %776 = vadd.xlane.f32.xlu1 %v767_v5 }
  0x22   : > { %1028 = vmatpush.bf16.msra.mxu0 %v3617_v32 }
  0x24   : > { %1130 = vmatpush.bf16.msra.mxu1 %v3624_v21 }
  0x26   : > { %1029 = vmatpush.bf16.msra.mxu0 %v3616_v37 }
  0x27   : > { %778 = vadd.xlane.f32.xlu0 %v768_v8  ;;  %750 = vadd.xlane.f32.xlu2 %v4027_v9 }
  0x28   : > { %1131 = vmatpush.bf16.msra.mxu1 %v3623_v23 }
  0x29   : > { %780 = vadd.xlane.f32.xlu1 %v769_v10 }
  0x2a   : > { %1030 = vmatpush.bf16.msra.mxu0 %v3615_v41 }
  0x2c   : > { %1132 = vmatpush.bf16.msra.mxu1 %v3622_v25 }
  0x2e   : > { %1031 = vmatpush.bf16.msra.mxu0 %v3614_v47 }
  0x2f   : > { %752 = vadd.xlane.f32.xlu0 %v4036_v12  ;;  %784 = vadd.xlane.f32.xlu2 %v771_v13 }
  0x30   : > { %1133 = vmatmul.bf16.vlgmr.msra.gmra.mxu1 %v1054_v29 }
  0x31   : > { %782 = vadd.xlane.f32.xlu1 %v770_v14 }
  0x37   : > { %754 = vadd.xlane.f32.xlu0 %v4044_v15  ;;  %786 = vadd.xlane.f32.xlu2 %v772_v16 }
  0x39   : > { %756 = vadd.xlane.f32.xlu1 %v4049_v17 }
  0x3f   : > { %788 = vadd.xlane.f32.xlu0 %v773_v18 }
  0x8a   : > { %v743_v33 = vpop.xlane.xlu0 %742  ;;  %v747_v34 = vpop.xlane.xlu2 %746 }
  0x8b   : > { %v4095_v35 = vmul.f32 0.03125, %v743_v33  ;;  %v4110_v48 = vmul.f32 0.03125, %v747_v34 }
  0x8c   : > { %v775_v36 = vpop.xlane.xlu1 %774 }
  0x8d   : > { %v798_v38 = vmul.f32 %v4095_v35, %v4095_v35  ;;  %v790_v39 = vmul.f32 0.03125, %v775_v36  ;;  %v800_v53 = vmul.f32 %v4110_v48, %v4110_v48  ;;  %v814_v24 = vsub.f32 %v3999_v0, %v4095_v35  ;;  %v4149_v36 = vld [vmem:[%s5299_s6] ss:$0 sm:$0xff] }
  0x8e   : > { %v4156_v35 = vld [vmem:[%s5305_s12] ss:$0 sm:$0xff]  ;;  %v816_v41 = vsub.f32 %v4002_v1, %v4110_v48 }
  0x8f   : > { %v806_v40 = vsub.f32 %v790_v39, %v798_v38 }
  0x91   : > { %v822_v42 = vadd.f32 1e-05, %v806_v40 }
  0x92   : > { %v745_v43 = vpop.xlane.xlu0 %744  ;;  %v749_v44 = vpop.xlane.xlu2 %748 }
  0x93   : > { %v4105_v45 = vmul.f32 0.03125, %v745_v43  ;;  %3704 = vrsqrt.f32 %v822_v42  ;;  %v4114_v51 = vmul.f32 0.03125, %v749_v44  ;;  %vm836_vm1 = vweird.f32 %v822_v42 }
  0x94   : > { %v777_v46 = vpop.xlane.xlu1 %776 }
  0x95   : > { %v799_v49 = vmul.f32 %v4105_v45, %v4105_v45  ;;  %v791_v50 = vmul.f32 0.03125, %v777_v46  ;;  %v801_v60 = vmul.f32 %v4114_v51, %v4114_v51 }
  0x97   : > { %v807_v52 = vsub.f32 %v791_v50, %v799_v49 }
  0x99   : > { %v3705_v54 = vpop.eup %3704  ;;  %v4118_v55 = vadd.f32 1e-05, %v807_v52 }
  0x9a   : > { %v779_v56 = vpop.xlane.xlu0 %778  ;;  %v751_v57 = vpop.xlane.xlu2 %750  ;;  %v831_v58 = vmul.f32 %v3705_v54, %v822_v42  ;;  %vm837_vm0 = vweird.f32 %v3705_v54  ;;  %v815_v42 = vsub.f32 %v4009_v3, %v4105_v45  ;;  %v4178_v3 = vld [vmem:[%s5300_s7] ss:$0 sm:$0xff]  ;;  %v817_v45 = vsub.f32 %v4012_v4, %v4114_v51 }
  0x9b   : > { %v792_v59 = vmul.f32 0.03125, %v779_v56  ;;  %3706 = vrsqrt.f32 %v4118_v55  ;;  %v4125_v7 = vmul.f32 0.03125, %v751_v57  ;;  %vm838_vm2 = vmor %vm836_vm1, %vm837_vm0  ;;  %vm846_vm4 = vweird.f32 %v4118_v55 }
  0x9c   : > { %v781_v61 = vpop.xlane.xlu1 %780  ;;  %v832_v62 = vmul.f32 %v3705_v54, %v831_v58 }
  0x9d   : > { %v808_v63 = vsub.f32 %v792_v59, %v800_v53  ;;  %v793_v2 = vmul.f32 0.03125, %v781_v61  ;;  %v802_v20 = vmul.f32 %v4125_v7, %v4125_v7  ;;  %v4201_v59 = vld [vmem:[%s5306_s13] ss:$0 sm:$0xff] }
  0x9e   : > { %v833_v5 = vmul.f32 0.5, %v832_v62 }
  0x9f   : > { %v4123_v6 = vadd.f32 1e-05, %v808_v63  ;;  %v809_v8 = vsub.f32 %v793_v2, %v801_v60 }
  0xa0   : > { %v834_v10 = vsub.f32 1.5, %v833_v5 }
  0xa1   : > { %3708 = vrsqrt.f32 %v4123_v6  ;;  %v4128_v11 = vpop.eup %3706  ;;  %v4130_v13 = vadd.f32 1e-05, %v809_v8  ;;  %vm856_vm6 = vweird.f32 %v4123_v6  ;;  %v734_v8 = vld [vmem:[%s4195_s20] sm:$0xff] }
  0xa2   : > { %v753_v14 = vpop.xlane.xlu0 %752  ;;  %v785_v16 = vpop.xlane.xlu2 %784  ;;  %v835_v18 = vmul.f32 %v3705_v54, %v834_v10  ;;  %v841_v19 = vmul.f32 %v4128_v11, %v4118_v55  ;;  %vm847_vm3 = vweird.f32 %v4128_v11 }
  0xa3   : > { %v4136_v21 = vmul.f32 0.03125, %v753_v14  ;;  %3710 = vrsqrt.f32 %v4130_v13  ;;  %v795_v22 = vmul.f32 0.03125, %v785_v16  ;;  %vm4184_vm5 = vmor %vm846_vm4, %vm847_vm3  ;;  %vm866_vm7 = vweird.f32 %v4130_v13 }
  0xa4   : > { %v783_v23 = vpop.xlane.xlu1 %782  ;;  %v842_v25 = vmul.f32 %v4128_v11, %v841_v19  ;;  %v839_v29 = vsel %vm838_vm2, %v3705_v54, %v835_v18 }
  0xa5   : > { %v803_v27 = vmul.f32 %v4136_v21, %v4136_v21  ;;  %v794_v28 = vmul.f32 0.03125, %v783_v23  ;;  %v910_v34 = vmul.f32 %v839_v29, %v814_v24  ;;  %v819_v51 = vsub.f32 %v4036_v12, %v4136_v21 }
  0xa6   : > { %v843_v31 = vmul.f32 0.5, %v842_v25 }
  0xa7   : > { %v4144_v30 = vpop.eup %3708  ;;  %v811_v32 = vsub.f32 %v795_v22, %v803_v27  ;;  %v810_v33 = vsub.f32 %v794_v28, %v802_v20  ;;  %v924_v50 = vmul.f32 %v4149_v36, %v910_v34  ;;  %v1979_v55 = vmul.f32 %v4156_v35, %v910_v34 }
  0xa8   : > { %v851_v0 = vmul.f32 %v4144_v30, %v4123_v6  ;;  %v844_v37 = vsub.f32 1.5, %v843_v31  ;;  %vm857_vm8 = vweird.f32 %v4144_v30 }
  0xa9   : > { %v4158_v38 = vadd.f32 1e-05, %v811_v32  ;;  %v4160_v39 = vadd.f32 1e-05, %v810_v33  ;;  %v4162_v40 = vpop.eup %3710  ;;  %v4213_v5 = vadd.f32 %v4178_v3, %v924_v50  ;;  %v4222_v19 = vadd.f32 %v4201_v59, %v1979_v55  ;;  %v735_v32 = vld [vmem:[%s4195_s20 + $0x8] sm:$0xff]  ;;  %vm4239_vm12 = vmor %vm856_vm6, %vm857_vm8 }
  0xaa   : > { %v852_v43 = vmul.f32 %v4144_v30, %v851_v0  ;;  %v755_v44 = vpop.xlane.xlu0 %754  ;;  %v787_v46 = vpop.xlane.xlu2 %786  ;;  %v845_v47 = vmul.f32 %v4128_v11, %v844_v37  ;;  %v861_v49 = vmul.f32 %v4162_v40, %v4130_v13  ;;  %vm867_vm9 = vweird.f32 %v4162_v40 }
  0xab   : > { %3712 = vrsqrt.f32 %v4158_v38  ;;  %v4189_v57 = vmul.f32 0.03125, %v755_v44  ;;  %v796_v58 = vmul.f32 0.03125, %v787_v46  ;;  %vm886_vm10 = vweird.f32 %v4158_v38  ;;  %vm868_vm14 = vmor %vm866_vm7, %vm867_vm9 }
  0xac   : > { %v853_v52 = vmul.f32 0.5, %v852_v43  ;;  %3714 = vrsqrt.f32 %v4160_v39  ;;  %v757_v53 = vpop.xlane.xlu1 %756  ;;  %v862_v56 = vmul.f32 %v4162_v40, %v861_v49  ;;  %v849_v62 = vsel %vm4184_vm5, %v4128_v11, %v845_v47 }
  0xad   : > { %v4204_v61 = vmul.f32 0.03125, %v757_v53  ;;  %v804_v2 = vmul.f32 %v4189_v57, %v4189_v57  ;;  %v911_v10 = vmul.f32 %v849_v62, %v815_v42  ;;  %vm876_vm11 = vweird.f32 %v4160_v39 }
  0xae   : > { %v854_v60 = vsub.f32 1.5, %v853_v52  ;;  %v863_v63 = vmul.f32 0.5, %v862_v56  ;;  %v944_v33 = vadd.f32 %v4213_v5, %v734_v8  ;;  %v4262_v53 = vadd.f32 %v4222_v19, %v734_v8  ;;  %v736_v8 = vld [vmem:[%s4195_s20 + $0x10] sm:$0xff] }
  0xaf   : > { %v812_v18 = vsub.f32 %v796_v58, %v804_v2  ;;  %v805_v23 = vmul.f32 %v4204_v61, %v4204_v61  ;;  %v925_v25 = vmul.f32 %v4149_v36, %v911_v10  ;;  %v1980_v27 = vmul.f32 %v4156_v35, %v911_v10  ;;  %v737_v10 = vld [vmem:[%s4195_s20 + $0x18] sm:$0xff] }
  0xb0   : > { %v855_v11 = vmul.f32 %v4144_v30, %v854_v60  ;;  %v864_v16 = vsub.f32 1.5, %v863_v63  ;;  %v818_v63 = vsub.f32 %v4027_v9, %v4125_v7  ;;  %vm1228_vm8 = vcmask 130048  }
  0xb1   : > { %v3713_v14 = vpop.eup %3712  ;;  %v4231_v31 = vadd.f32 1e-05, %v812_v18  ;;  %v4244_v42 = vadd.f32 %v4178_v3, %v925_v25  ;;  %v4247_v43 = vadd.f32 %v4201_v59, %v1980_v27  ;;  %vm1281_vm9 = vcmask 64512  }
  0xb2   : > { %v3715_v20 = vpop.eup %3714  ;;  %v881_v22 = vmul.f32 %v3713_v14, %v4158_v38  ;;  %v789_v24 = vpop.xlane.xlu0 %788  ;;  %v865_v28 = vmul.f32 %v4162_v40, %v864_v16  ;;  %vm887_vm13 = vweird.f32 %v3713_v14  ;;  %v859_v6 = vsel %vm4239_vm12, %v4144_v30, %v855_v11 }
  0xb3   : > { %v871_v29 = vmul.f32 %v3715_v20, %v4160_v39  ;;  %v797_v37 = vmul.f32 0.03125, %v789_v24  ;;  %3716 = vrsqrt.f32 %v4231_v31  ;;  %v945_v49 = vadd.f32 %v4244_v42, %v735_v32  ;;  %vm4274_vm15 = vmor %vm886_vm10, %vm887_vm13 }
  0xb4   : > { %v882_v0 = vmul.f32 %v3713_v14, %v881_v22  ;;  %v4259_v50 = vadd.f32 %v4247_v43, %v735_v32  ;;  %v869_v54 = vsel %vm868_vm14, %v4162_v40, %v865_v28  ;;  %v912_v30 = vmul.f32 %v859_v6, %v816_v41  ;;  %v739_v32 = vld [vmem:[%s4195_s20 + $0x28] sm:$0xff] }
  0xb5   : > { %v872_v44 = vmul.f32 %v3715_v20, %v871_v29  ;;  %v813_v47 = vsub.f32 %v797_v37, %v805_v23  ;;  %v952_v58 = vpack.c.bf16 %v945_v49, %v944_v33  ;;  %v913_v55 = vmul.f32 %v869_v54, %v817_v45  ;;  %v738_v29 = vld [vmem:[%s4195_s20 + $0x20] sm:$0xff] }
  0xb6   : > { %v883_v46 = vmul.f32 0.5, %v882_v0  ;;  %vm877_vm0 = vweird.f32 %v3715_v20  ;;  %v2007_v1 = vpack.c.bf16 %v4259_v50, %v4262_v53  ;;  %v1981_v48 = vmul.f32 %v4156_v35, %v912_v30 }
  0xb7   : > { %v873_v52 = vmul.f32 0.5, %v872_v44  ;;  %v829_v13 = vadd.f32 1e-05, %v813_v47  ;;  %1032 = vmatmul.bf16.vlgmr.msra.gmra.mxu0 %v952_v58  ;;  %v1982_v45 = vmul.f32 %v4156_v35, %v913_v55  ;;  %vm878_vm1 = vmor %vm876_vm11, %vm877_vm0  ;;  %v927_v11 = vmul.f32 %v4149_v36, %v913_v55 }
  0xb8   : > { %v884_v56 = vsub.f32 1.5, %v883_v46  ;;  %v4285_v62 = vadd.f32 %v4201_v59, %v1981_v48  ;;  %v926_v7 = vmul.f32 %v4149_v36, %v912_v30  ;;  %vm896_vm2 = vweird.f32 %v4231_v31 }
  0xb9   : > { %v874_v40 = vsub.f32 1.5, %v873_v52  ;;  %3718 = vrsqrt.f32 %v829_v13  ;;  %v3717_v4 = vpop.eup %3716  ;;  %v4298_v18 = vadd.f32 %v4201_v59, %v1982_v45  ;;  %v4310_v25 = vadd.f32 %v4178_v3, %v927_v11 }
  0xba   : > { %v885_v41 = vmul.f32 %v3713_v14, %v884_v56  ;;  %v891_v2 = vmul.f32 %v3717_v4, %v4231_v31  ;;  %v4303_v22 = vadd.f32 %v4285_v62, %v736_v8  ;;  %vm897_vm3 = vweird.f32 %v3717_v4 }
  0xbb   : > { %v875_v38 = vmul.f32 %v3715_v20, %v874_v40  ;;  %v4306_v23 = vadd.f32 %v4298_v18, %v737_v10  ;;  %v4318_v0 = vadd.f32 %v4178_v3, %v926_v7  ;;  %vm898_vm4 = vmor %vm896_vm2, %vm897_vm3  ;;  %v947_v47 = vadd.f32 %v4310_v25, %v737_v10 }
  0xbc   : > { %v889_v12 = vsel %vm4274_vm15, %v3713_v14, %v885_v41  ;;  %v892_v9 = vmul.f32 %v3717_v4, %v891_v2  ;;  %v820_v54 = vsub.f32 %v4044_v15, %v4189_v57  ;;  %vm906_vm5 = vweird.f32 %v829_v13  ;;  %v741_v2 = vld [vmem:[%s4195_s20 + $0x38] sm:$0xff] }
  0xbd   : > { %v879_v21 = vsel %vm878_vm1, %v3715_v20, %v875_v38  ;;  %v915_v16 = vmul.f32 %v889_v12, %v819_v51  ;;  %v2008_v33 = vpack.c.bf16 %v4306_v23, %v4303_v22  ;;  %v946_v56 = vadd.f32 %v4318_v0, %v736_v8 }
  0xbe   : > { %v914_v39 = vmul.f32 %v879_v21, %v818_v63  ;;  %v893_v24 = vmul.f32 0.5, %v892_v9  ;;  %v821_v41 = vsub.f32 %v4049_v17, %v4204_v61  ;;  %v740_v63 = vld [vmem:[%s4195_s20 + $0x30] sm:$0xff]  ;;  %vm1490_vm10 = vcmask 1043456  }
  0xbf   : > { %v1984_v14 = vmul.f32 %v4156_v35, %v915_v16  ;;  %v3719_v20 = vpop.eup %3718  ;;  %v953_v40 = vpack.c.bf16 %v947_v47, %v946_v56 }
  0xc0   : > { %v1983_v27 = vmul.f32 %v4156_v35, %v914_v39  ;;  %v901_v28 = vmul.f32 %v3719_v20, %v829_v13  ;;  %v894_v34 = vsub.f32 1.5, %v893_v24  ;;  %vm907_vm6 = vweird.f32 %v3719_v20 }
  0xc1   : > { %v4324_v44 = vadd.f32 %v4201_v59, %v1984_v14  ;;  %vm908_vm7 = vmor %vm906_vm5, %vm907_vm6  ;;  %v928_v13 = vmul.f32 %v4149_v36, %v914_v39 }
  0xc2   : > { %v4321_v37 = vadd.f32 %v4201_v59, %v1983_v27  ;;  %v902_v6 = vmul.f32 %v3719_v20, %v901_v28  ;;  %v895_v46 = vmul.f32 %v3717_v4, %v894_v34  ;;  %v3696_v27 = vld [vmem:[%s5302_s9 + $0x1] ss:$0 sm:$0xff]  ;;  %v1134_v28 = vpop.f32.mrf.mxu1 }
  0xc3   : > { %5334 = vst [vmem:[#allocation5_spill] sm:$0xff] %v4324_v44  ;;  %v4333_v52 = vadd.f32 %v4324_v44, %v739_v32  ;;  %v4352_v8 = vadd.f32 %v4178_v3, %v928_v13  ;;  %v3634_v13 = vld [vmem:[%s5301_s8 + $0xa0] sm:$0xff] }
  0xc4   : > { %v4330_v49 = vadd.f32 %v4321_v37, %v738_v29  ;;  %v903_v30 = vmul.f32 0.5, %v902_v6  ;;  %v899_v31 = vsel %vm898_vm4, %v3717_v4, %v895_v46  ;;  %v929_v4 = vmul.f32 %v4149_v36, %v915_v16  ;;  %v3697_v6 = vld [vmem:[%s5302_s9] ss:$0 sm:$0xff] }
  0xc5   : > { %v916_v60 = vmul.f32 %v899_v31, %v820_v54 }
  0xc6   : > { %v2009_v58 = vpack.c.bf16 %v4333_v52, %v4330_v49  ;;  %v904_v55 = vsub.f32 1.5, %v903_v30  ;;  %v4355_v17 = vadd.f32 %v4178_v3, %v929_v4 }
  0xc7   : > { %1037 = vmatmul.bf16.gmra.mxu0 %v953_v40  ;;  %v1985_v15 = vmul.f32 %v4156_v35, %v916_v60  ;;  %v3637_v40 = vld [vmem:[%s5301_s8 + $0xb8] sm:$0xff] }
  0xc8   : > { %v905_v48 = vmul.f32 %v3719_v20, %v904_v55  ;;  %v949_v12 = vadd.f32 %v4355_v17, %v739_v32  ;;  %1209 = vmatpush.bf16.msra.mxu2 %v3637_v40 }
  0xc9   : > { %v4347_v45 = vadd.f32 %v4201_v59, %v1985_v15 }
  0xca   : > { %v909_v57 = vsel %vm908_vm7, %v3719_v20, %v905_v48 }
  0xcb   : > { %v917_v51 = vmul.f32 %v909_v57, %v821_v41  ;;  %5335 = vst [vmem:[#allocation6_spill] sm:$0xff] %v4347_v45  ;;  %v4361_v10 = vadd.f32 %v4347_v45, %v740_v63  ;;  %v3636_v41 = vld [vmem:[%s5301_s8 + $0xb0] sm:$0xff]  ;;  %v3635_v57 = vld [vmem:[%s5301_s8 + $0xa8] sm:$0xff] }
  0xcc   : > { %1210 = vmatpush.bf16.msra.mxu2 %v3636_v41 }
  0xcd   : > { %v1986_v38 = vmul.f32 %v4156_v35, %v917_v51  ;;  %v948_v35 = vadd.f32 %v4352_v8, %v738_v29  ;;  %v931_v9 = vmul.f32 %v4149_v36, %v917_v51  ;;  %v1135_v29 = vadd.f32 %v3696_v27, %v1134_v28  ;;  %v3633_v51 = vld [vmem:[%s5301_s8 + $0x98] sm:$0xff] }
  0xcf   : > { %v4358_v61 = vadd.f32 %v4201_v59, %v1986_v38  ;;  %v954_v16 = vpack.c.bf16 %v949_v12, %v948_v35  ;;  %v930_v59 = vmul.f32 %v4149_v36, %v916_v60  ;;  %v4373_v7 = vadd.f32 %v4178_v3, %v931_v9  ;;  %v1136_v36 = vpop.f32.mrf.mxu1  ;;  %v3632_v35 = vld [vmem:[%s5301_s8 + $0x90] sm:$0xff]  ;;  %v3630_v9 = vld [vmem:[%s5301_s8 + $0x80] sm:$0xff] }
  0xd0   : > { %v1226_v32 = vpack.c.bf16 %v1135_v29, %v1135_v29  ;;  %1211 = vmatpush.bf16.msra.mxu2 %v3635_v57  ;;  %v3646_v36 = vld [vmem:[%s5307_s14 + $0x30] sm:$0xff] }
  0xd1   : > { %5336 = vst [vmem:[#allocation7_spill] sm:$0xff] %v4358_v61  ;;  %v4364_v11 = vadd.f32 %v4358_v61, %v741_v2  ;;  %v4376_v39 = vadd.f32 %v4178_v3, %v930_v59  ;;  %v951_v14 = vadd.f32 %v4373_v7, %v741_v2  ;;  %v1138_v59 = vpack.c.bf16 %v4083_v26, %v4083_v26  ;;  %v3647_v26 = vld [vmem:[%s5307_s14 + $0x38] sm:$0xff] }
  0xd2   : > { %5337 = vst [vmem:[#allocation8_spill] sm:$0xff] %v4373_v7  ;;  %1542 = vrot.lane.b32.xlu1 %v1226_v32, %s3873_s24  ;;  %v1242_v3 = vsel %vm1228_vm8, %v1226_v32, 0 }
  0xd3   : > { %v2010_v21 = vpack.c.bf16 %v4364_v11, %v4361_v10  ;;  %5338 = vst [vmem:[#allocation9_spill] sm:$0xff] %v4376_v39  ;;  %v950_v20 = vadd.f32 %v4376_v39, %v740_v63  ;;  %1251 = vmatpush.bf16.xpose.msra.mxu3 %v1242_v3  ;;  %v3645_v3 = vld [vmem:[%s5307_s14 + $0x28] sm:$0xff] }
  0xd4   : > { %1212 = vmatpush.bf16.msra.mxu2 %v3634_v13 }
  0xd5   : > { %v955_v24 = vpack.c.bf16 %v951_v14, %v950_v20 }
  0xd7   : > { %1042 = vmatmul.bf16.gmra.mxu0 %v954_v16  ;;  %v3631_v16 = vld [vmem:[%s5301_s8 + $0x88] sm:$0xff] }
  0xd8   : > { %1213 = vmatpush.bf16.msra.mxu2 %v3633_v51 }
  0xdc   : > { %1214 = vmatpush.bf16.msra.mxu2 %v3632_v35 }
  0xe0   : > { %1215 = vmatpush.bf16.msra.mxu2 %v3631_v16 }
  0xe4   : > { %1216 = vmatpush.bf16.msra.mxu2 %v3630_v9 }
  0xe7   : > { %1047 = vmatmul.bf16.gmra.mxu0 %v955_v24  ;;  %1217 = vmatmul.bf16.vlgmr.msra.gmra.mxu2 %v1138_v59 }
 0x134   : > { %v1033_v34 = vpop.f32.mrf.mxu0 }
 0x135   : > { %v1034_v47 = vadd.f32 %v3697_v6, %v1033_v34  ;;  %v3644_v34 = vld [vmem:[%s5307_s14 + $0x20] sm:$0xff] }
 0x13c   : > { %v1035_v46 = vpop.f32.mrf.mxu0 }
 0x13d   : > { %v1036_v54 = vadd.f32 %v3697_v6, %v1035_v46 }
 0x13f   : > { %v1222_v30 = vpack.c.bf16 %v1036_v54, %v1034_v47  ;;  %v3643_v54 = vld [vmem:[%s5307_s14 + $0x18] sm:$0xff] }
 0x141   : > { %1533 = vrot.lane.b32.xlu2 %v1222_v30, %s3873_s24  ;;  %3413 = vmatmul.msk.bf16.vlgmr.msra.gmra.mxu3 %vm1228_vm8, %v1222_v30 }
 0x144   : > { %v1038_v56 = vpop.f32.mrf.mxu0  ;;  %v1543_v28 = vpop.permute.xlu1 %1542 }
 0x145   : > { %v1039_v55 = vadd.f32 %v3697_v6, %v1038_v56  ;;  %v1557_v29 = vsel %vm1228_vm8, %v1543_v28, 0  ;;  %v3642_v56 = vld [vmem:[%s5307_s14 + $0x10] sm:$0xff] }
 0x146   : > { %1566 = vmatpush.bf16.xpose.msrb.mxu2 %v1557_v29 }
 0x14c   : > { %v1040_v31 = vpop.f32.mrf.mxu0 }
 0x14d   : > { %v1041_v60 = vadd.f32 %v3697_v6, %v1040_v31 }
 0x14e   : > { %2079 = vmatpush.bf16.msra.mxu2 %v3647_v26 }
 0x14f   : > { %v1223_v48 = vpack.c.bf16 %v1041_v60, %v1039_v55  ;;  %v3641_v60 = vld [vmem:[%s5307_s14 + $0x8] sm:$0xff] }
 0x151   : > { %1535 = vrot.lane.b32.xlu0 %v1223_v48, %s3873_s24  ;;  %3414 = vmatmul.msk.bf16.gmra.mxu3 %vm1228_vm8, %v1223_v48  ;;  %v3640_v48 = vld [vmem:[%s5307_s14] sm:$0xff] }
 0x152   : > { %2080 = vmatpush.bf16.msra.mxu2 %v3646_v36 }
 0x154   : > { %v1043_v15 = vpop.f32.mrf.mxu0 }
 0x155   : > { %v1044_v38 = vadd.f32 %v3697_v6, %v1043_v15 }
 0x156   : > { %2081 = vmatpush.bf16.msra.mxu2 %v3645_v3 }
 0x15a   : > { %2082 = vmatpush.bf16.msra.mxu2 %v3644_v34 }
 0x15c   : > { %v1045_v4 = vpop.f32.mrf.mxu0 }
 0x15d   : > { %v1046_v63 = vadd.f32 %v3697_v6, %v1045_v4 }
 0x15e   : > { %2083 = vmatpush.bf16.msra.mxu2 %v3643_v54 }
 0x15f   : > { %v1224_v2 = vpack.c.bf16 %v1046_v63, %v1044_v38 }
 0x161   : > { %1537 = vrot.lane.b32.xlu2 %v1224_v2, %s3873_s24  ;;  %3415 = vmatmul.msk.bf16.gmra.mxu3 %vm1228_vm8, %v1224_v2 }
 0x162   : > { %2084 = vmatpush.bf16.msra.mxu2 %v3642_v56 }
 0x164   : > { %v1048_v12 = vpop.f32.mrf.mxu0 }
 0x165   : > { %v1049_v20 = vadd.f32 %v3697_v6, %v1048_v12 }
 0x166   : > { %2085 = vmatpush.bf16.msra.mxu2 %v3641_v60 }
 0x16a   : > { %2086 = vmatpush.bf16.msra.mxu2 %v3640_v48 }
 0x16c   : > { %v1050_v14 = vpop.f32.mrf.mxu0 }
 0x16d   : > { %v1051_v24 = vadd.f32 %v3697_v6, %v1050_v14  ;;  %v1218_v14 = vpop.f32.mrf.mxu2 }
 0x16f   : > { %v1225_v27 = vpack.c.bf16 %v1051_v24, %v1049_v20 }
 0x171   : > { %1539 = vrot.lane.b32.xlu1 %v1225_v27, %s3873_s24  ;;  %3416 = vmatmul.msk.bf16.gmra.mxu3 %vm1228_vm8, %v1225_v27 }
 0x175   : > { %v1220_v28 = vpop.f32.mrf.mxu2 }
 0x19b   : > { %v1534_v32 = vpop.permute.xlu2 %1533 }
 0x19c   : > { %3421 = vmatmul.msk.bf16.vlgmr.msrb.gmra.mxu2 %vm1228_vm8, %v1534_v32 }
 0x1bb   : > { %v1538_v41 = vpop.permute.xlu2 %1537 }
 0x1c3   : > { %v1536_v6 = vpop.permute.xlu0 %1535 }
 0x1c4   : > { %v1253_v46 = vpop.f32.mrf.mxu3  ;;  %3422 = vmatmul.msk.bf16.gmra.mxu2 %vm1228_vm8, %v1536_v6 }
 0x1c5   : > { %v1273_v47 = vmul.f32 0.25, %v1253_v46 }
 0x1c7   : > { %v1282_v30 = vsel %vm1281_vm9, %v1273_v47, -inf }
 0x1c8   : > { %1283 = vmax.xlane.f32.xlu0 %v1282_v30 }
 0x1cc   : > { %v1255_v31 = vpop.f32.mrf.mxu3 }
 0x1cd   : > { %v1274_v55 = vmul.f32 0.25, %v1255_v31 }
 0x1cf   : > { %v1285_v40 = vsel %vm1281_vm9, %v1274_v55, -inf }
 0x1d0   : > { %1286 = vmax.xlane.f32.xlu2 %v1285_v40 }
 0x1d4   : > { %v1258_v15 = vpop.f32.mrf.mxu3  ;;  %3423 = vmatmul.msk.bf16.gmra.mxu2 %vm1228_vm8, %v1538_v41 }
 0x1d5   : > { %v1275_v57 = vmul.f32 0.25, %v1258_v15 }
 0x1d7   : > { %v1288_v13 = vsel %vm1281_vm9, %v1275_v57, -inf }
 0x1d8   : > { %1289 = vmax.xlane.f32.xlu1 %v1288_v13 }
 0x1dc   : > { %v1260_v4 = vpop.f32.mrf.mxu3 }
 0x1dd   : > { %v1276_v51 = vmul.f32 0.25, %v1260_v4 }
 0x1df   : > { %v1291_v38 = vsel %vm1281_vm9, %v1276_v51, -inf }
 0x1e0   : > { %1292 = vmax.xlane.f32.xlu0 %v1291_v38 }
 0x1e3   : > { %v1540_v63 = vpop.permute.xlu1 %1539 }
 0x1e4   : > { %v1263_v2 = vpop.f32.mrf.mxu3  ;;  %3424 = vmatmul.msk.bf16.gmra.mxu2 %vm1228_vm8, %v1540_v63 }
 0x1e5   : > { %v1277_v35 = vmul.f32 0.25, %v1263_v2 }
 0x1e7   : > { %v1294_v12 = vsel %vm1281_vm9, %v1277_v35, -inf }
 0x1e8   : > { %1295 = vmax.xlane.f32.xlu2 %v1294_v12 }
 0x1ec   : > { %v1265_v16 = vpop.f32.mrf.mxu3 }
 0x1ed   : > { %v1278_v9 = vmul.f32 0.25, %v1265_v16 }
 0x1ef   : > { %v1297_v59 = vsel %vm1281_vm9, %v1278_v9, -inf }
 0x1f0   : > { %1298 = vmax.xlane.f32.xlu1 %v1297_v59 }
 0x1f4   : > { %v1268_v20 = vpop.f32.mrf.mxu3  ;;  %2087 = vmatmul.bf16.vlgmr.msra.gmra.mxu2 %v2007_v1  ;;  %v3698_v1 = vld [vmem:[%s5302_s9 + $0x2] ss:$0 sm:$0xff] }
 0x1f5   : > { %v4460_v24 = vmul.f32 0.25, %v1268_v20  ;;  %v1219_v3 = vadd.f32 %v3698_v1, %v1218_v14 }
 0x1f7   : > { %v1300_v27 = vsel %vm1281_vm9, %v4460_v24, -inf }
 0x1f8   : > { %1301 = vmax.xlane.f32.xlu0 %v1300_v27 }
 0x1fc   : > { %v1270_v29 = vpop.f32.mrf.mxu3 }
 0x1fd   : > { %v4464_v32 = vmul.f32 0.25, %v1270_v29 }
 0x1ff   : > { %v1303_v26 = vsel %vm1281_vm9, %v4464_v32, -inf }
 0x200   : > { %1304 = vmax.xlane.f32.xlu2 %v1303_v26 }
 0x204   : > { %2092 = vmatmul.bf16.gmra.mxu2 %v2008_v33  ;;  %v4480_v33 = vpack.c.bf16 %v1219_v3, %v1219_v3 }
 0x206   : > { %v1492_v10 = vsel %vm1490_vm10, %v4480_v33, 0 }
 0x207   : > { %1501 = vmatpush.bf16.msrb.mxu1 %v1492_v10 }
 0x214   : > { %2097 = vmatmul.bf16.gmra.mxu2 %v2009_v58 }
 0x21f   : > { %v1568_v22 = vpop.f32.mrf.mxu2 }
 0x224   : > { %2102 = vmatmul.bf16.gmra.mxu2 %v2010_v21 }
 0x227   : > { %v1570_v46 = vpop.f32.mrf.mxu2 }
 0x23b   : > { %v1284_v50 = vpop.xlane.xlu0 %1283 }
 0x23c   : > { %v1306_v53 = vsub.f32 %v1273_v47, %v1284_v50 }
 0x23e   : > { %v1314_v36 = vmul.f32 1.442695, %v1306_v53 }
 0x240   : > { %3720 = vpow2.f32 %v1314_v36  ;;  %v4518_v36 = vmul.f32 0.25, %v1570_v46 }
 0x243   : > { %v1287_v34 = vpop.xlane.xlu2 %1286 }
 0x244   : > { %v1307_v23 = vsub.f32 %v1274_v55, %v1287_v34 }
 0x246   : > { %v4482_v49 = vpop.eup %3720  ;;  %v1316_v52 = vmul.f32 1.442695, %v1307_v23  ;;  %v1599_v23 = vsel %vm1281_vm9, %v4518_v36, -inf }
 0x247   : > { %v1330_v58 = vsel %vm1281_vm9, %v4482_v49, 0.0  ;;  %v1573_v55 = vpop.f32.mrf.mxu2 }
 0x248   : > { %3722 = vpow2.f32 %v1316_v52  ;;  %1331 = vadd.xlane.f32.xlu1 %v1330_v58  ;;  %v4530_v58 = vmul.f32 0.25, %v1573_v55 }
 0x24b   : > { %v1290_v11 = vpop.xlane.xlu1 %1289 }
 0x24c   : > { %v1308_v21 = vsub.f32 %v1275_v57, %v1290_v11 }
 0x24e   : > { %v4488_v6 = vpop.eup %3722  ;;  %v1318_v47 = vmul.f32 1.442695, %v1308_v21  ;;  %v1602_v21 = vsel %vm1281_vm9, %v4530_v58, -inf }
 0x24f   : > { %v1333_v54 = vsel %vm1281_vm9, %v4488_v6, 0.0  ;;  %v1575_v4 = vpop.f32.mrf.mxu2 }
 0x250   : > { %3724 = vpow2.f32 %v1318_v47  ;;  %1334 = vadd.xlane.f32.xlu0 %v1333_v54  ;;  %v4520_v3 = vmul.f32 0.25, %v1575_v4 }
 0x252   : > { %v1605_v52 = vsel %vm1281_vm9, %v4520_v3, -inf }
 0x253   : > { %v1293_v30 = vpop.xlane.xlu0 %1292 }
 0x254   : > { %v1309_v56 = vsub.f32 %v1276_v51, %v1293_v30 }
 0x256   : > { %v4492_v31 = vpop.eup %3724  ;;  %v1320_v60 = vmul.f32 1.442695, %v1309_v56 }
 0x257   : > { %v1336_v40 = vsel %vm1281_vm9, %v4492_v31, 0.0 }
 0x258   : > { %3726 = vpow2.f32 %v1320_v60  ;;  %1337 = vadd.xlane.f32.xlu2 %v1336_v40 }
 0x25b   : > { %v1296_v48 = vpop.xlane.xlu2 %1295 }
 0x25c   : > { %v1310_v41 = vsub.f32 %v1277_v35, %v1296_v48  ;;  %v1578_v35 = vpop.f32.mrf.mxu2 }
 0x25d   : > { %v4532_v10 = vmul.f32 0.25, %v1578_v35 }
 0x25e   : > { %v4496_v15 = vpop.eup %3726  ;;  %v1322_v57 = vmul.f32 1.442695, %v1310_v41 }
 0x25f   : > { %v1339_v13 = vsel %vm1281_vm9, %v4496_v15, 0.0  ;;  %v1608_v46 = vsel %vm1281_vm9, %v4532_v10, -inf }
 0x260   : > { %3728 = vpow2.f32 %v1322_v57  ;;  %1340 = vadd.xlane.f32.xlu1 %v1339_v13 }
 0x263   : > { %v1299_v51 = vpop.xlane.xlu1 %1298 }
 0x264   : > { %v1311_v38 = vsub.f32 %v1278_v9, %v1299_v51  ;;  %v4509_v9 = vmul.f32 0.25, %v1568_v22  ;;  %v1580_v29 = vpop.f32.mrf.mxu2 }
 0x265   : > { %v4542_v30 = vmul.f32 0.25, %v1580_v29 }
 0x266   : > { %v4500_v63 = vpop.eup %3728  ;;  %v1324_v2 = vmul.f32 1.442695, %v1311_v38  ;;  %v1596_v1 = vsel %vm1281_vm9, %v4509_v9, -inf }
 0x267   : > { %v1342_v12 = vsel %vm1281_vm9, %v4500_v63, 0.0  ;;  %v1611_v55 = vsel %vm1281_vm9, %v4542_v30, -inf }
 0x268   : > { %3730 = vpow2.f32 %v1324_v2  ;;  %1343 = vadd.xlane.f32.xlu0 %v1342_v12 }
 0x26b   : > { %v1302_v16 = vpop.xlane.xlu0 %1301 }
 0x26c   : > { %v1312_v59 = vsub.f32 %v4460_v24, %v1302_v16  ;;  %v1583_v22 = vpop.f32.mrf.mxu2 }
 0x26d   : > { %v4534_v11 = vmul.f32 0.25, %v1583_v22 }
 0x26e   : > { %v4505_v14 = vpop.eup %3730  ;;  %v1326_v20 = vmul.f32 1.442695, %v1312_v59 }
 0x26f   : > { %v1345_v27 = vsel %vm1281_vm9, %v4505_v14, 0.0  ;;  %v1614_v54 = vsel %vm1281_vm9, %v4534_v11, -inf }
 0x270   : > { %3732 = vpow2.f32 %v1326_v20  ;;  %1346 = vadd.xlane.f32.xlu2 %v1345_v27 }
 0x273   : > { %v1305_v28 = vpop.xlane.xlu2 %1304 }
 0x274   : > { %v1313_v26 = vsub.f32 %v4464_v32, %v1305_v28  ;;  %v1585_v47 = vpop.f32.mrf.mxu2 }
 0x275   : > { %v4544_v56 = vmul.f32 0.25, %v1585_v47 }
 0x276   : > { %v4512_v50 = vpop.eup %3732  ;;  %v1328_v53 = vmul.f32 1.442695, %v1313_v26 }
 0x277   : > { %v1348_v24 = vsel %vm1281_vm9, %v4512_v50, 0.0  ;;  %v1617_v60 = vsel %vm1281_vm9, %v4544_v56, -inf }
 0x278   : > { %3734 = vpow2.f32 %v1328_v53  ;;  %1349 = vadd.xlane.f32.xlu1 %v1348_v24  ;;  %1597 = vmax.xlane.f32.xlu2 %v1596_v1 }
 0x27e   : > { %v4522_v34 = vpop.eup %3734 }
 0x27f   : > { %v1351_v32 = vsel %vm1281_vm9, %v4522_v34, 0.0 }
 0x280   : > { %1352 = vadd.xlane.f32.xlu0 %v1351_v32  ;;  %1600 = vmax.xlane.f32.xlu1 %v1599_v23 }
 0x281   : > { %1606 = vmax.xlane.f32.xlu2 %v1605_v52 }
 0x288   : > { %1603 = vmax.xlane.f32.xlu0 %v1602_v21  ;;  %1609 = vmax.xlane.f32.xlu1 %v1608_v46 }
 0x289   : > { %1615 = vmax.xlane.f32.xlu2 %v1614_v54 }
 0x290   : > { %1612 = vmax.xlane.f32.xlu0 %v1611_v55  ;;  %1618 = vmax.xlane.f32.xlu1 %v1617_v60 }
 0x2bb   : > { %v1332_v40 = vpop.xlane.xlu1 %1331 }
 0x2bc   : > { %3736 = vrcp.f32 %v1332_v40  ;;  %v1365_v35 = vand.u32 2147483648, %v1332_v40  ;;  %vm1359_vm12 = vweird.f32 %v1332_v40  ;;  %v1363_v59 = vand.u32 2147483647, %v1332_v40 }
 0x2be   : > { %v1366_v53 = vor.u32 1.1754944e-38, %v1365_v35  ;;  %vm1364_vm0 = vcmp.eq.f32.partialorder %v1363_v59, 8.507059e+37 }
 0x2c2   : > { %v3737_v48 = vpop.eup %3736 }
 0x2c3   : > { %v1355_v41 = vmul.f32 %v3737_v48, %v1332_v40  ;;  %v1335_v57 = vpop.xlane.xlu0 %1334  ;;  %vm1360_vm11 = vweird.f32 %v3737_v48 }
 0x2c4   : > { %3738 = vrcp.f32 %v1335_v57  ;;  %vm4550_vm13 = vmor %vm1359_vm12, %vm1360_vm11  ;;  %v1379_v28 = vand.u32 2147483648, %v1335_v57  ;;  %v1377_v26 = vand.u32 2147483647, %v1335_v57  ;;  %vm1373_vm15 = vweird.f32 %v1335_v57 }
 0x2c5   : > { %v1356_v13 = vsub.f32 1.0, %v1355_v41 }
 0x2c6   : > { %v1380_v32 = vor.u32 1.1754944e-38, %v1379_v28  ;;  %vm1378_vm2 = vcmp.eq.f32.partialorder %v1377_v26, 8.507059e+37 }
 0x2c7   : > { %v1357_v4 = vmul.f32 %v3737_v48, %v1356_v13 }
 0x2c9   : > { %v1358_v12 = vadd.f32 %v3737_v48, %v1357_v4 }
 0x2ca   : > { %v3739_v51 = vpop.eup %3738 }
 0x2cb   : > { %v1369_v38 = vmul.f32 %v3739_v51, %v1335_v57  ;;  %v1338_v2 = vpop.xlane.xlu2 %1337  ;;  %vm1374_vm14 = vweird.f32 %v3739_v51  ;;  %v1362_v29 = vsel %vm4550_vm13, %v3737_v48, %v1358_v12 }
 0x2cc   : > { %3740 = vrcp.f32 %v1338_v2  ;;  %vm1375_vm1 = vmor %vm1373_vm15, %vm1374_vm14  ;;  %v1367_v21 = vsel %vm1364_vm0, %v1366_v53, %v1362_v29  ;;  %v1393_v4 = vand.u32 2147483648, %v1338_v2  ;;  %vm1387_vm4 = vweird.f32 %v1338_v2 }
 0x2cd   : > { %v1370_v16 = vsub.f32 1.0, %v1369_v38  ;;  %v1466_v54 = vmul.f32 %v4482_v49, %v1367_v21  ;;  %v1391_v38 = vand.u32 2147483647, %v1338_v2 }
 0x2ce   : > { %v1394_v59 = vor.u32 1.1754944e-38, %v1393_v4 }
 0x2cf   : > { %v1371_v27 = vmul.f32 %v3739_v51, %v1370_v16  ;;  %vm1392_vm11 = vcmp.eq.f32.partialorder %v1391_v38, 8.507059e+37 }
 0x2d1   : > { %v1372_v24 = vadd.f32 %v3739_v51, %v1371_v27 }
 0x2d2   : > { %v3741_v1 = vpop.eup %3740 }
 0x2d3   : > { %v1376_v22 = vsel %vm1375_vm1, %v3739_v51, %v1372_v24  ;;  %v1383_v23 = vmul.f32 %v3741_v1, %v1338_v2  ;;  %v1341_v52 = vpop.xlane.xlu1 %1340  ;;  %vm1388_vm3 = vweird.f32 %v3741_v1 }
 0x2d4   : > { %3742 = vrcp.f32 %v1341_v52  ;;  %v1381_v47 = vsel %vm1378_vm2, %v1380_v32, %v1376_v22  ;;  %vm4559_vm5 = vmor %vm1387_vm4, %vm1388_vm3  ;;  %v1405_v35 = vand.u32 2147483647, %v1341_v52  ;;  %vm1401_vm7 = vweird.f32 %v1341_v52 }
 0x2d5   : > { %v1384_v46 = vsub.f32 1.0, %v1383_v23  ;;  %v1467_v55 = vmul.f32 %v4488_v6, %v1381_v47  ;;  %v1407_v6 = vand.u32 2147483648, %v1341_v52 }
 0x2d6   : > { %vm1406_vm13 = vcmp.eq.f32.partialorder %v1405_v35, 8.507059e+37 }
 0x2d7   : > { %v1385_v60 = vmul.f32 %v3741_v1, %v1384_v46  ;;  %v1474_v40 = vpack.c.bf16 %v1467_v55, %v1466_v54  ;;  %v1408_v28 = vor.u32 1.1754944e-38, %v1407_v6 }
 0x2d9   : > { %3417 = vmatmul.msk.bf16.vlgmr.msrb.gmra.mxu1 %vm1281_vm9, %v1474_v40  ;;  %v1386_v13 = vadd.f32 %v3741_v1, %v1385_v60 }
 0x2da   : > { %v3743_v48 = vpop.eup %3742 }
 0x2db   : > { %v1397_v41 = vmul.f32 %v3743_v48, %v1341_v52  ;;  %v1344_v57 = vpop.xlane.xlu0 %1343  ;;  %vm1402_vm6 = vweird.f32 %v3743_v48  ;;  %v1390_v16 = vsel %vm4559_vm5, %v3741_v1, %v1386_v13 }
 0x2dc   : > { %3744 = vrcp.f32 %v1344_v57  ;;  %vm1403_vm12 = vmor %vm1401_vm7, %vm1402_vm6  ;;  %v1395_v26 = vsel %vm1392_vm11, %v1394_v59, %v1390_v16  ;;  %v1421_v40 = vand.u32 2147483648, %v1344_v57  ;;  %vm1415_vm15 = vweird.f32 %v1344_v57 }
 0x2dd   : > { %v1398_v51 = vsub.f32 1.0, %v1397_v41  ;;  %v1468_v32 = vmul.f32 %v4492_v31, %v1395_v26  ;;  %v1419_v31 = vand.u32 2147483647, %v1344_v57 }
 0x2df   : > { %v1399_v49 = vmul.f32 %v3743_v48, %v1398_v51  ;;  %vm1420_vm3 = vcmp.eq.f32.partialorder %v1419_v31, 8.507059e+37 }
 0x2e1   : > { %v1400_v20 = vadd.f32 %v3743_v48, %v1399_v49 }
 0x2e2   : > { %v3745_v27 = vpop.eup %3744 }
 0x2e3   : > { %v1411_v29 = vmul.f32 %v3745_v27, %v1344_v57  ;;  %v1347_v2 = vpop.xlane.xlu2 %1346  ;;  %v1404_v53 = vsel %vm1403_vm12, %v3743_v48, %v1400_v20  ;;  %vm1416_vm14 = vweird.f32 %v3745_v27 }
 0x2e4   : > { %3746 = vrcp.f32 %v1347_v2  ;;  %v1409_v22 = vsel %vm1406_vm13, %v1408_v28, %v1404_v53  ;;  %vm4572_vm0 = vmor %vm1415_vm15, %vm1416_vm14  ;;  %v1435_v4 = vand.u32 2147483648, %v1347_v2  ;;  %v1433_v51 = vand.u32 2147483647, %v1347_v2 }
 0x2e5   : > { %v1412_v24 = vsub.f32 1.0, %v1411_v29  ;;  %v1469_v23 = vmul.f32 %v4496_v15, %v1409_v22  ;;  %vm1429_vm2 = vweird.f32 %v1347_v2 }
 0x2e6   : > { %v1436_v57 = vor.u32 1.1754944e-38, %v1435_v4  ;;  %vm1434_vm5 = vcmp.eq.f32.partialorder %v1433_v51, 8.507059e+37 }
 0x2e7   : > { %v1413_v1 = vmul.f32 %v3745_v27, %v1412_v24  ;;  %v1475_v21 = vpack.c.bf16 %v1469_v23, %v1468_v32 }
 0x2e9   : > { %3418 = vmatmul.msk.bf16.gmra.mxu1 %vm1281_vm9, %v1475_v21  ;;  %v1414_v55 = vadd.f32 %v3745_v27, %v1413_v1 }
 0x2ea   : > { %v3747_v46 = vpop.eup %3746 }
 0x2eb   : > { %v1425_v52 = vmul.f32 %v3747_v46, %v1347_v2  ;;  %v1598_v47 = vpop.xlane.xlu2 %1597  ;;  %v4568_v54 = vpop.xlane.xlu1 %1349  ;;  %vm1430_vm1 = vweird.f32 %v3747_v46  ;;  %v1418_v38 = vsel %vm4572_vm0, %v3745_v27, %v1414_v55 }
 0x2ec   : > { %v1620_v60 = vsub.f32 %v4509_v9, %v1598_v47  ;;  %3748 = vrcp.f32 %v4568_v54  ;;  %v1422_v9 = vor.u32 1.1754944e-38, %v1421_v40  ;;  %vm1431_vm4 = vmor %vm1429_vm2, %vm1430_vm1  ;;  %v1449_v47 = vand.u32 2147483648, %v4568_v54 }
 0x2ed   : > { %v1426_v48 = vsub.f32 1.0, %v1425_v52  ;;  %vm1443_vm7 = vweird.f32 %v4568_v54 }
 0x2ee   : > { %v1628_v15 = vmul.f32 1.442695, %v1620_v60  ;;  %v1423_v59 = vsel %vm1420_vm3, %v1422_v9, %v1418_v38  ;;  %v1447_v60 = vand.u32 2147483647, %v4568_v54 }
 0x2ef   : > { %v1427_v13 = vmul.f32 %v3747_v46, %v1426_v48  ;;  %v1470_v24 = vmul.f32 %v4500_v63, %v1423_v59 }
 0x2f0   : > { %3750 = vpow2.f32 %v1628_v15  ;;  %vm1448_vm13 = vcmp.eq.f32.partialorder %v1447_v60, 8.507059e+37 }
 0x2f1   : > { %v1428_v12 = vadd.f32 %v3747_v46, %v1427_v13 }
 0x2f2   : > { %v4578_v49 = vpop.eup %3748 }
 0x2f3   : > { %v1439_v6 = vmul.f32 %v4578_v49, %v4568_v54  ;;  %v1353_v35 = vpop.xlane.xlu0 %1352  ;;  %v1601_v16 = vpop.xlane.xlu1 %1600  ;;  %v1432_v20 = vsel %vm1431_vm4, %v3747_v46, %v1428_v12  ;;  %vm1444_vm6 = vweird.f32 %v4578_v49  ;;  %v1450_v54 = vor.u32 1.1754944e-38, %v1449_v47 }
 0x2f4   : > { %3752 = vrcp.f32 %v1353_v35  ;;  %v1607_v28 = vpop.xlane.xlu2 %1606  ;;  %v1621_v2 = vsub.f32 %v4518_v36, %v1601_v16  ;;  %v1437_v26 = vsel %vm1434_vm5, %v1436_v57, %v1432_v20  ;;  %vm4598_vm11 = vmor %vm1443_vm7, %vm1444_vm6  ;;  %v1463_v31 = vand.u32 2147483648, %v1353_v35 }
 0x2f5   : > { %v1440_v29 = vsub.f32 1.0, %v1439_v6  ;;  %v1623_v27 = vsub.f32 %v4520_v3, %v1607_v28  ;;  %v1471_v22 = vmul.f32 %v4505_v14, %v1437_v26  ;;  %v1461_v51 = vand.u32 2147483647, %v1353_v35 }
 0x2f6   : > { %v4584_v53 = vpop.eup %3750  ;;  %v1630_v1 = vmul.f32 1.442695, %v1621_v2  ;;  %vm1457_vm14 = vweird.f32 %v1353_v35  ;;  %v1464_v57 = vor.u32 1.1754944e-38, %v1463_v31 }
 0x2f7   : > { %v1441_v32 = vmul.f32 %v4578_v49, %v1440_v29  ;;  %v1634_v23 = vmul.f32 1.442695, %v1623_v27  ;;  %v1644_v21 = vsel %vm1281_vm9, %v4584_v53, 0.0  ;;  %v1476_v46 = vpack.c.bf16 %v1471_v22, %v1470_v24 }
 0x2f8   : > { %1645 = vadd.xlane.f32.xlu0 %v1644_v21  ;;  %vm1462_vm0 = vcmp.eq.f32.partialorder %v1461_v51, 8.507059e+37 }
 0x2f9   : > { %3754 = vpow2.f32 %v1634_v23  ;;  %3419 = vmatmul.msk.bf16.gmra.mxu1 %vm1281_vm9, %v1476_v46  ;;  %v1442_v36 = vadd.f32 %v4578_v49, %v1441_v32 }
 0x2fa   : > { %v3753_v3 = vpop.eup %3752  ;;  %3756 = vpow2.f32 %v1630_v1 }
 0x2fb   : > { %v1453_v63 = vmul.f32 %v3753_v3, %v1353_v35  ;;  %v1604_v14 = vpop.xlane.xlu0 %1603  ;;  %v1610_v52 = vpop.xlane.xlu1 %1609  ;;  %vm1458_vm12 = vweird.f32 %v3753_v3 }
 0x2fc   : > { %v1622_v55 = vsub.f32 %v4530_v58, %v1604_v14  ;;  %v1624_v41 = vsub.f32 %v4532_v10, %v1610_v52  ;;  %v1446_v58 = vsel %vm4598_vm11, %v4578_v49, %v1442_v36  ;;  %vm1459_vm15 = vmor %vm1457_vm14, %vm1458_vm12  ;;  %v1616_v6 = vpop.xlane.xlu2 %1615  ;;  %v3638_v14 = vld [vmem:[%s5303_s10] sm:$0xff] }
 0x2fd   : > { %v1454_v40 = vsub.f32 1.0, %v1453_v63  ;;  %v1451_v49 = vsel %vm1448_vm13, %v1450_v54, %v1446_v58  ;;  %v1626_v2 = vsub.f32 %v4534_v11, %v1616_v6  ;;  %1917 = vmatpush.bf16.msra.mxu1 %v3638_v14 }
 0x2fe   : > { %v1632_v15 = vmul.f32 1.442695, %v1622_v55  ;;  %v1636_v16 = vmul.f32 1.442695, %v1624_v41  ;;  %v1472_v35 = vmul.f32 %v4512_v50, %v1451_v49 }
 0x2ff   : > { %v4603_v13 = vpop.eup %3754  ;;  %v1455_v4 = vmul.f32 %v3753_v3, %v1454_v40 }
 0x300   : > { %v4608_v38 = vpop.eup %3756  ;;  %3758 = vpow2.f32 %v1632_v15  ;;  %v1653_v9 = vsel %vm1281_vm9, %v4603_v13, 0.0 }
 0x301   : > { %v1456_v12 = vadd.f32 %v3753_v3, %v1455_v4  ;;  %1654 = vadd.xlane.f32.xlu0 %v1653_v9  ;;  %v1647_v10 = vsel %vm1281_vm9, %v4608_v38, 0.0  ;;  %3760 = vpow2.f32 %v1636_v16 }
 0x302   : > { %1648 = vadd.xlane.f32.xlu2 %v1647_v10 }
 0x303   : > { %v1613_v59 = vpop.xlane.xlu0 %1612  ;;  %v1619_v20 = vpop.xlane.xlu1 %1618  ;;  %v1460_v28 = vsel %vm1459_vm15, %v3753_v3, %v1456_v12 }
 0x304   : > { %v1625_v29 = vsub.f32 %v4542_v30, %v1613_v59  ;;  %v1465_v27 = vsel %vm1462_vm0, %v1464_v57, %v1460_v28  ;;  %v1627_v32 = vsub.f32 %v4544_v56, %v1619_v20  ;;  %v1640_v30 = vmul.f32 1.442695, %v1626_v2 }
 0x305   : > { %v1473_v26 = vmul.f32 %v4522_v34, %v1465_v27 }
 0x306   : > { %v4618_v24 = vpop.eup %3758  ;;  %v1638_v22 = vmul.f32 1.442695, %v1625_v29  ;;  %v1642_v21 = vmul.f32 1.442695, %v1627_v32 }
 0x307   : > { %v1650_v23 = vsel %vm1281_vm9, %v4618_v24, 0.0  ;;  %v1477_v1 = vpack.c.bf16 %v1473_v26, %v1472_v35  ;;  %v4624_v11 = vpop.eup %3760 }
 0x308   : > { %3762 = vpow2.f32 %v1638_v22  ;;  %1651 = vadd.xlane.f32.xlu1 %v1650_v23  ;;  %v1656_v56 = vsel %vm1281_vm9, %v4624_v11, 0.0 }
 0x309   : > { %3420 = vmatmul.msk.bf16.gmra.mxu1 %vm1281_vm9, %v1477_v1  ;;  %3764 = vpow2.f32 %v1640_v30 }
 0x30a   : > { %3766 = vpow2.f32 %v1642_v21 }
 0x30e   : > { %v4626_v50 = vpop.eup %3762 }
 0x30f   : > { %v1659_v34 = vsel %vm1281_vm9, %v4626_v50, 0.0  ;;  %v4632_v46 = vpop.eup %3764 }
 0x310   : > { %1660 = vadd.xlane.f32.xlu0 %v1659_v34  ;;  %1657 = vadd.xlane.f32.xlu1 %v1656_v56  ;;  %v4634_v3 = vpop.eup %3766  ;;  %v1662_v36 = vsel %vm1281_vm9, %v4632_v46, 0.0 }
 0x311   : > { %v1665_v63 = vsel %vm1281_vm9, %v4634_v3, 0.0 }
 0x318   : > { %1663 = vadd.xlane.f32.xlu1 %v1662_v36  ;;  %1666 = vadd.xlane.f32.xlu0 %v1665_v63 }
 0x31a   : > { %1793 = vrot.lane.b32.xlu2 %v4480_v33, %s3873_s24 }
 0x356   : > { %v1503_v52 = vpop.f32.mrf.mxu1 }
 0x35e   : > { %v1505_v47 = vpop.f32.mrf.mxu1 }
 0x35f   : > { %v1523_v55 = vpack.c.bf16 %v1505_v47, %v1503_v52 }
 0x361   : > { %3441 = vmatmul.msk.bf16.vlgmr.msra.gmra.mxu1 %vm1228_vm8, %v1523_v55 }
 0x366   : > { %v1508_v60 = vpop.f32.mrf.mxu1 }
 0x36b   : > { %v1646_v40 = vpop.xlane.xlu0 %1645 }
 0x36c   : > { %3768 = vrcp.f32 %v1646_v40  ;;  %v1679_v49 = vand.u32 2147483648, %v1646_v40  ;;  %vm1673_vm2 = vweird.f32 %v1646_v40  ;;  %v1677_v20 = vand.u32 2147483647, %v1646_v40 }
 0x36e   : > { %v1510_v48 = vpop.f32.mrf.mxu1  ;;  %v1680_v32 = vor.u32 1.1754944e-38, %v1679_v49  ;;  %vm1678_vm5 = vcmp.eq.f32.partialorder %v1677_v20, 8.507059e+37 }
 0x36f   : > { %v1524_v31 = vpack.c.bf16 %v1510_v48, %v1508_v60 }
 0x371   : > { %3442 = vmatmul.msk.bf16.gmra.mxu1 %vm1228_vm8, %v1524_v31 }
 0x372   : > { %v3769_v15 = vpop.eup %3768 }
 0x373   : > { %v1669_v41 = vmul.f32 %v3769_v15, %v1646_v40  ;;  %vm1674_vm1 = vweird.f32 %v3769_v15 }
 0x374   : > { %v4647_v51 = vpop.xlane.xlu0 %1654  ;;  %vm4656_vm3 = vmor %vm1673_vm2, %vm1674_vm1 }
 0x375   : > { %v1649_v33 = vpop.xlane.xlu2 %1648  ;;  %v1670_v4 = vsub.f32 1.0, %v1669_v41  ;;  %vm1715_vm14 = vweird.f32 %v4647_v51 }
 0x376   : > { %3770 = vrcp.f32 %v1649_v33  ;;  %v1693_v27 = vand.u32 2147483648, %v1649_v33  ;;  %v1691_v22 = vand.u32 2147483647, %v1649_v33 }
 0x377   : > { %3772 = vrcp.f32 %v4647_v51  ;;  %v1671_v58 = vmul.f32 %v3769_v15, %v1670_v4 }
 0x378   : > { %v1694_v56 = vor.u32 1.1754944e-38, %v1693_v27  ;;  %vm1692_vm7 = vcmp.eq.f32.partialorder %v1691_v22, 8.507059e+37 }
 0x379   : > { %v1672_v57 = vadd.f32 %v3769_v15, %v1671_v58  ;;  %v1719_v58 = vand.u32 2147483647, %v4647_v51 }
 0x37b   : > { %v4650_v54 = vpop.xlane.xlu1 %1651  ;;  %v1676_v35 = vsel %vm4656_vm3, %v3769_v15, %v1672_v57  ;;  %vm1720_vm2 = vcmp.eq.f32.partialorder %v1719_v58, 8.507059e+37 }
 0x37c   : > { %v3771_v9 = vpop.eup %3770  ;;  %3774 = vrcp.f32 %v4650_v54  ;;  %v1681_v63 = vsel %vm1678_vm5, %v1680_v32, %v1676_v35  ;;  %vm1701_vm13 = vweird.f32 %v4650_v54 }
 0x37d   : > { %v1683_v12 = vmul.f32 %v3771_v9, %v1649_v33  ;;  %v1794_v10 = vpop.permute.xlu2 %1793  ;;  %v4654_v16 = vpop.eup %3772  ;;  %vm1688_vm4 = vweird.f32 %v3771_v9  ;;  %v1780_v55 = vmul.f32 %v4584_v53, %v1681_v63  ;;  %v1705_v53 = vand.u32 2147483647, %v4650_v54 }
 0x37e   : > { %v1808_v6 = vsel %vm1490_vm10, %v1794_v10, 0  ;;  %v1711_v26 = vmul.f32 %v4654_v16, %v4647_v51  ;;  %vm1687_vm10 = vweird.f32 %v1649_v33  ;;  %v1707_v33 = vand.u32 2147483648, %v4650_v54 }
 0x37f   : > { %v1684_v59 = vsub.f32 1.0, %v1683_v12  ;;  %1817 = vmatpush.bf16.msrb.mxu3 %v1808_v6  ;;  %vm1689_vm6 = vmor %vm1687_vm10, %vm1688_vm4  ;;  %vm1716_vm12 = vweird.f32 %v4654_v16  ;;  %vm1706_vm1 = vcmp.eq.f32.partialorder %v1705_v53, 8.507059e+37 }
 0x380   : > { %vm1717_vm0 = vmor %vm1715_vm14, %vm1716_vm12  ;;  %v1708_v57 = vor.u32 1.1754944e-38, %v1707_v33 }
 0x381   : > { %v1685_v29 = vmul.f32 %v3771_v9, %v1684_v59 }
 0x382   : > { %v3775_v2 = vpop.eup %3774 }
 0x383   : > { %3666 = vmatpush.bf16.msra.mxu3 %v3638_v14  ;;  %v1686_v23 = vadd.f32 %v3771_v9, %v1685_v29  ;;  %v1697_v1 = vmul.f32 %v3775_v2, %v4650_v54  ;;  %v4665_v30 = vpop.xlane.xlu0 %1660  ;;  %v4667_v21 = vpop.xlane.xlu1 %1657  ;;  %v1712_v14 = vsub.f32 1.0, %v1711_v26  ;;  %vm1702_vm11 = vweird.f32 %v3775_v2 }
 0x384   : > { %3776 = vrcp.f32 %v4665_v30  ;;  %vm1703_vm15 = vmor %vm1701_vm13, %vm1702_vm11  ;;  %vm1743_vm10 = vweird.f32 %v4665_v30 }
 0x385   : > { %v1690_v34 = vsel %vm1689_vm6, %v3771_v9, %v1686_v23  ;;  %v1698_v36 = vsub.f32 1.0, %v1697_v1  ;;  %3778 = vrcp.f32 %v4667_v21  ;;  %v1713_v40 = vmul.f32 %v4654_v16, %v1712_v14 }
 0x386   : > { %v1695_v52 = vsel %vm1692_vm7, %v1694_v56, %v1690_v34  ;;  %v1749_v34 = vand.u32 2147483648, %v4665_v30  ;;  %v1747_v56 = vand.u32 2147483647, %v4665_v30  ;;  %vm1729_vm6 = vweird.f32 %v4667_v21 }
 0x387   : > { %v1699_v47 = vmul.f32 %v3775_v2, %v1698_v36  ;;  %v1781_v60 = vmul.f32 %v4608_v38, %v1695_v52  ;;  %v1714_v4 = vadd.f32 %v4654_v16, %v1713_v40  ;;  %v1721_v38 = vand.u32 2147483648, %v4647_v51 }
 0x388   : > { %vm1748_vm11 = vcmp.eq.f32.partialorder %v1747_v56, 8.507059e+37  ;;  %v4752_v56 = vld [vmem:[%s709_s23 + $0x8] sm:$0xff] }
 0x389   : > { %v1788_v48 = vpack.c.bf16 %v1781_v60, %v1780_v55  ;;  %v1700_v15 = vadd.f32 %v3775_v2, %v1699_v47  ;;  %v1718_v6 = vsel %vm1717_vm0, %v4654_v16, %v1714_v4  ;;  %v1722_v49 = vor.u32 1.1754944e-38, %v1721_v38 }
 0x38a   : > { %v3777_v31 = vpop.eup %3776  ;;  %v1750_v47 = vor.u32 1.1754944e-38, %v1749_v34 }
 0x38b   : > { %3425 = vmatmul.msk.bf16.vlgmr.msrb.gmra.mxu3 %vm1281_vm9, %v1788_v48  ;;  %v3779_v41 = vpop.eup %3778  ;;  %v1739_v9 = vmul.f32 %v3777_v31, %v4665_v30  ;;  %v1704_v10 = vsel %vm1703_vm15, %v3775_v2, %v1700_v15  ;;  %v4686_v59 = vpop.xlane.xlu0 %1666  ;;  %v1723_v27 = vsel %vm1720_vm2, %v1722_v49, %v1718_v6  ;;  %vm1744_vm3 = vweird.f32 %v3777_v31 }
 0x38c   : > { %v1725_v12 = vmul.f32 %v3779_v41, %v4667_v21  ;;  %v1709_v54 = vsel %vm1706_vm1, %v1708_v57, %v1704_v10  ;;  %v1664_v29 = vpop.xlane.xlu1 %1663  ;;  %3780 = vrcp.f32 %v4686_v59  ;;  %v1783_v26 = vmul.f32 %v4603_v13, %v1723_v27  ;;  %vm1745_vm5 = vmor %vm1743_vm10, %vm1744_vm3  ;;  %v3654_v10 = vld [vmem:[%s5307_s14 + $0x70] sm:$0xff] }
 0x38d   : > { %v1740_v20 = vsub.f32 1.0, %v1739_v9  ;;  %v1782_v51 = vmul.f32 %v4618_v24, %v1709_v54  ;;  %3782 = vrcp.f32 %v1664_v29  ;;  %vm1730_vm4 = vweird.f32 %v3779_v41 }
 0x38e   : > { %v1726_v28 = vsub.f32 1.0, %v1725_v12  ;;  %v1735_v24 = vand.u32 2147483648, %v4667_v21  ;;  %v1733_v13 = vand.u32 2147483647, %v4667_v21  ;;  %vm1731_vm7 = vmor %vm1729_vm6, %vm1730_vm4  ;;  %vm1771_vm15 = vweird.f32 %v4686_v59 }
 0x38f   : > { %v1741_v2 = vmul.f32 %v3777_v31, %v1740_v20  ;;  %v1789_v22 = vpack.c.bf16 %v1783_v26, %v1782_v51  ;;  %v1775_v9 = vand.u32 2147483647, %v4686_v59  ;;  %vm1757_vm1 = vweird.f32 %v1664_v29  ;;  %v3652_v51 = vld [vmem:[%s5307_s14 + $0x60] sm:$0xff]  ;;  %v3651_v26 = vld [vmem:[%s5307_s14 + $0x58] sm:$0xff] }
 0x390   : > { %v1727_v35 = vmul.f32 %v3779_v41, %v1726_v28  ;;  %v1736_v55 = vor.u32 1.1754944e-38, %v1735_v24  ;;  %vm1734_vm12 = vcmp.eq.f32.partialorder %v1733_v13, 8.507059e+37  ;;  %v1761_v12 = vand.u32 2147483647, %v1664_v29  ;;  %v4750_v24 = vld [vmem:[%s709_s23] sm:$0xff] }
 0x391   : > { %v1742_v32 = vadd.f32 %v3777_v31, %v1741_v2  ;;  %vm1776_vm3 = vcmp.eq.f32.partialorder %v1775_v9, 8.507059e+37  ;;  %v1513_v2 = vpop.f32.mrf.mxu1  ;;  %v1967_v13 = vld [vmem:[%s4748_s1] sm:$0xff]  ;;  %v4779_v9 = vld [vmem:[%s709_s23 + $0x38] sm:$0xff] }
 0x392   : > { %v3781_v16 = vpop.eup %3780  ;;  %v1728_v23 = vadd.f32 %v3779_v41, %v1727_v35  ;;  %vm1762_vm4 = vcmp.eq.f32.partialorder %v1761_v12, 8.507059e+37  ;;  %v1973_v12 = vld [vmem:[%s4748_s1 + $0x30] sm:$0xff] }
 0x393   : > { %v3783_v1 = vpop.eup %3782  ;;  %v1767_v36 = vmul.f32 %v3781_v16, %v4686_v59  ;;  %v1746_v52 = vsel %vm1745_vm5, %v3777_v31, %v1742_v32  ;;  %vm1772_vm13 = vweird.f32 %v3781_v16  ;;  %v3655_v31 = vld [vmem:[%s5307_s14 + $0x78] sm:$0xff] }
 0x394   : > { %v1753_v63 = vmul.f32 %v3783_v1, %v1664_v29  ;;  %v1732_v14 = vsel %vm1731_vm7, %v3779_v41, %v1728_v23  ;;  %v1751_v40 = vsel %vm1748_vm11, %v1750_v47, %v1746_v52  ;;  %vm1758_vm14 = vweird.f32 %v3783_v1  ;;  %vm4707_vm0 = vmor %vm1771_vm15, %vm1772_vm13  ;;  %2190 = vmatpush.bf16.msrb.mxu3 %v3655_v31  ;;  %v4758_v47 = vld [vmem:[%s709_s23 + $0x10] sm:$0xff] }
 0x395   : > { %v1737_v60 = vsel %vm1734_vm12, %v1736_v55, %v1732_v14  ;;  %v1768_v48 = vsub.f32 1.0, %v1767_v36  ;;  %v1785_v33 = vmul.f32 %v4626_v50, %v1751_v40  ;;  %v1777_v41 = vand.u32 2147483648, %v4686_v59  ;;  %vm1759_vm2 = vmor %vm1757_vm1, %vm1758_vm14  ;;  %v3653_v59 = vld [vmem:[%s5307_s14 + $0x68] sm:$0xff]  ;;  %v4760_v55 = vld [vmem:[%s709_s23 + $0x18] sm:$0xff] }
 0x396   : > { %v1754_v15 = vsub.f32 1.0, %v1753_v63  ;;  %v1784_v30 = vmul.f32 %v4624_v11, %v1737_v60  ;;  %v1763_v11 = vand.u32 2147483648, %v1664_v29  ;;  %v1968_v36 = vld [vmem:[%s4748_s1 + $0x8] sm:$0xff]  ;;  %v2108_v63 = vadd.f32 %v1967_v13, %v4750_v24  ;;  %v1969_v60 = vld [vmem:[%s4748_s1 + $0x10] sm:$0xff]  ;;  %v1970_v40 = vld [vmem:[%s4748_s1 + $0x18] sm:$0xff] }
 0x397   : > { %v1769_v4 = vmul.f32 %v3781_v16, %v1768_v48  ;;  %v1778_v49 = vor.u32 1.1754944e-38, %v1777_v41  ;;  %v2109_v14 = vadd.f32 %v1968_v36, %v4752_v56  ;;  %v2110_v48 = vadd.f32 %v1969_v60, %v4758_v47  ;;  %v4777_v50 = vld [vmem:[%s709_s23 + $0x30] sm:$0xff]  ;;  %v3700_v60 = vld [vmem:[%s5308_s15 + $0x1] ss:$0 sm:$0xff] }
 0x398   : > { %v1755_v21 = vmul.f32 %v3783_v1, %v1754_v15  ;;  %v1790_v53 = vpack.c.bf16 %v1785_v33, %v1784_v30  ;;  %v1764_v54 = vor.u32 1.1754944e-38, %v1763_v11  ;;  %2191 = vmatpush.bf16.msrb.mxu3 %v3654_v10  ;;  %v2111_v15 = vadd.f32 %v1970_v40, %v4760_v55  ;;  %v3639_v30 = vld [vmem:[%s5303_s10 + $0x8] sm:$0xff]  ;;  %v1974_v10 = vld [vmem:[%s4748_s1 + $0x38] sm:$0xff] }
 0x399   : > { %v1770_v38 = vadd.f32 %v3781_v16, %v1769_v4  ;;  %v2116_v52 = vpack.c.bf16 %v2109_v14, %v2108_v63  ;;  %1870 = vmatpush.bf16.msrb.mxu0 %v3639_v30  ;;  %v4769_v4 = vld [vmem:[%s709_s23 + $0x20] sm:$0xff] }
 0x39a   : > { %v1756_v58 = vadd.f32 %v3783_v1, %v1755_v21  ;;  %v2117_v33 = vpack.c.bf16 %v2111_v15, %v2110_v48  ;;  %v4771_v21 = vld [vmem:[%s709_s23 + $0x28] sm:$0xff]  ;;  %s5240_s23 = scalar_lea.vmem %s5311_s18, %s3990_s0 }
 0x39b   : > { %3426 = vmatmul.msk.bf16.gmra.mxu3 %vm1281_vm9, %v1789_v22  ;;  %v1774_v6 = vsel %vm4707_vm0, %v3781_v16, %v1770_v38  ;;  %v1515_v22 = vpop.f32.mrf.mxu1  ;;  %v3648_v16 = vld [vmem:[%s5307_s14 + $0x40] sm:$0xff]  ;;  %v1972_v38 = vld [vmem:[%s4748_s1 + $0x28] sm:$0xff] }
 0x39c   : > { %v1760_v57 = vsel %vm1759_vm2, %v3783_v1, %v1756_v58  ;;  %v1779_v28 = vsel %vm1776_vm3, %v1778_v49, %v1774_v6  ;;  %2192 = vmatpush.bf16.msrb.mxu3 %v3653_v59  ;;  %v1525_v32 = vpack.c.bf16 %v1515_v22, %v1513_v2  ;;  %v2113_v31 = vadd.f32 %v1972_v38, %v4771_v21  ;;  %v2088_v22 = vpop.f32.mrf.mxu2 }
 0x39d   : > { %v1765_v20 = vsel %vm1762_vm4, %v1764_v54, %v1760_v57  ;;  %v1787_v27 = vmul.f32 %v4634_v3, %v1779_v28  ;;  %v3649_v3 = vld [vmem:[%s5307_s14 + $0x48] sm:$0xff]  ;;  %v2114_v57 = vadd.f32 %v1973_v12, %v4777_v50  ;;  %v2115_v6 = vadd.f32 %v1974_v10, %v4779_v9 }
 0x39e   : > { %v1786_v29 = vmul.f32 %v4632_v46, %v1765_v20  ;;  %v3650_v46 = vld [vmem:[%s5307_s14 + $0x50] sm:$0xff] }
 0x39f   : > { %v2119_v59 = vpack.c.bf16 %v2115_v6, %v2114_v57 }
 0x3a0   : > { %v1791_v35 = vpack.c.bf16 %v1787_v27, %v1786_v29  ;;  %2193 = vmatpush.bf16.msrb.mxu3 %v3652_v51 }
 0x3a3   : > { %v1518_v23 = vpop.f32.mrf.mxu1 }
 0x3a4   : > { %2194 = vmatpush.bf16.msrb.mxu3 %v3651_v26 }
 0x3a8   : > { %2195 = vmatpush.bf16.msrb.mxu3 %v3650_v46 }
 0x3ab   : > { %3427 = vmatmul.msk.bf16.gmra.mxu3 %vm1281_vm9, %v1790_v53  ;;  %v1520_v1 = vpop.f32.mrf.mxu1  ;;  %v1971_v53 = vld [vmem:[%s4748_s1 + $0x20] sm:$0xff] }
 0x3ac   : > { %2196 = vmatpush.bf16.msrb.mxu3 %v3649_v3  ;;  %v1526_v34 = vpack.c.bf16 %v1520_v1, %v1518_v23  ;;  %v2112_v58 = vadd.f32 %v1971_v53, %v4769_v4 }
 0x3ae   : > { %v2118_v41 = vpack.c.bf16 %v2113_v31, %v2112_v58 }
 0x3b0   : > { %2197 = vmatpush.bf16.msrb.mxu3 %v3648_v16 }
 0x3bb   : > { %3428 = vmatmul.msk.bf16.gmra.mxu3 %vm1281_vm9, %v1791_v35  ;;  %vm2395_vm9 = vcmask 523264  }
 0x3cb   : > { %3443 = vmatmul.msk.bf16.vlgmr.msra.gmra.mxu3 %vm1228_vm8, %v1525_v32  ;;  %v2090_v32 = vpop.f32.mrf.mxu2 }
 0x3db   : > { %3444 = vmatmul.msk.bf16.gmra.mxu3 %vm1228_vm8, %v1526_v34  ;;  %v2093_v34 = vpop.f32.mrf.mxu2 }
 0x3e3   : > { %v2095_v36 = vpop.f32.mrf.mxu2 }
 0x3eb   : > { %2198 = vmatmul.bf16.vlgmr.msrb.gmra.mxu3 %v2116_v52  ;;  %v2098_v14 = vpop.f32.mrf.mxu2 }
 0x3f3   : > { %v2100_v40 = vpop.f32.mrf.mxu2 }
 0x3fb   : > { %2203 = vmatmul.bf16.gmra.mxu3 %v2117_v33  ;;  %v2103_v31 = vpop.f32.mrf.mxu2 }
 0x40b   : > { %2208 = vmatmul.bf16.gmra.mxu3 %v2118_v41 }
 0x40e   : > { %v1819_v11 = vpop.f32.mrf.mxu3 }
 0x416   : > { %v1821_v49 = vpop.f32.mrf.mxu3 }
 0x417   : > { %v1839_v54 = vpack.c.bf16 %v1821_v49, %v1819_v11  ;;  %v3699_v11 = vld [vmem:[%s5308_s15] ss:$0 sm:$0xff] }
 0x418   : > { %v2091_v12 = vadd.f32 %v3699_v11, %v2090_v32  ;;  %v2089_v6 = vadd.f32 %v3699_v11, %v2088_v22 }
 0x419   : > { %3433 = vmatmul.msk.bf16.vlgmr.msrb.gmra.mxu0 %vm1228_vm8, %v1839_v54 }
 0x41b   : > { %2213 = vmatmul.bf16.gmra.mxu3 %v2119_v59  ;;  %v2322_v59 = vpack.c.bf16 %v2091_v12, %v2089_v6 }
 0x41e   : > { %v1824_v20 = vpop.f32.mrf.mxu3 }
 0x426   : > { %v1826_v28 = vpop.f32.mrf.mxu3 }
 0x427   : > { %v1840_v29 = vpack.c.bf16 %v1826_v28, %v1824_v20  ;;  %v2105_v28 = vpop.f32.mrf.mxu2 }
 0x429   : > { %3434 = vmatmul.msk.bf16.gmra.mxu0 %vm1228_vm8, %v1840_v29  ;;  %v2096_v29 = vadd.f32 %v3699_v11, %v2095_v36 }
 0x42e   : > { %v1829_v27 = vpop.f32.mrf.mxu3 }
 0x436   : > { %v1831_v51 = vpop.f32.mrf.mxu3 }
 0x437   : > { %v1841_v2 = vpack.c.bf16 %v1831_v51, %v1829_v27  ;;  %v2106_v27 = vadd.f32 %v3699_v11, %v2105_v28 }
 0x439   : > { %3435 = vmatmul.msk.bf16.gmra.mxu0 %vm1228_vm8, %v1841_v2 }
 0x43e   : > { %v1834_v35 = vpop.f32.mrf.mxu3 }
 0x446   : > { %v1836_v26 = vpop.f32.mrf.mxu3 }
 0x447   : > { %v1842_v46 = vpack.c.bf16 %v1836_v26, %v1834_v35  ;;  %v2094_v35 = vadd.f32 %v3699_v11, %v2093_v34  ;;  %v2104_v26 = vadd.f32 %v3699_v11, %v2103_v31 }
 0x449   : > { %3436 = vmatmul.msk.bf16.gmra.mxu0 %vm1228_vm8, %v1842_v46  ;;  %v2323_v46 = vpack.c.bf16 %v2096_v29, %v2094_v35  ;;  %v2325_v32 = vpack.c.bf16 %v2106_v27, %v2104_v26  ;;  %v3662_v27 = vld [vmem:[%s5307_s14 + $0xb0] sm:$0xff]  ;;  %v3661_v35 = vld [vmem:[%s5307_s14 + $0xa8] sm:$0xff] }
 0x44e   : > { %v4789_v3 = vpop.f32.mrf.mxu3 }
 0x456   : > { %v4791_v16 = vpop.f32.mrf.mxu3 }
 0x45e   : > { %v4793_v23 = vpop.f32.mrf.mxu3 }
 0x466   : > { %v4795_v1 = vpop.f32.mrf.mxu3 }
 0x467   : > { %5351 = vst [vmem:[#allocation10_spill] sm:$0xff] %v4795_v1 }
 0x46e   : > { %v2199_v13 = vpop.f32.mrf.mxu3 }
 0x46f   : > { %v2200_v58 = vadd.f32 %v3700_v60, %v2199_v13 }
 0x476   : > { %v2201_v63 = vpop.f32.mrf.mxu3 }
 0x477   : > { %v2202_v53 = vadd.f32 %v3700_v60, %v2201_v63 }
 0x479   : > { %v2326_v41 = vpack.c.bf16 %v2202_v53, %v2200_v58 }
 0x47b   : > { %v2347_v6 = vsel %vm1228_vm8, %v2326_v41, 0 }
 0x47e   : > { %v2204_v52 = vpop.f32.mrf.mxu3 }
 0x47f   : > { %v2205_v15 = vadd.f32 %v3700_v60, %v2204_v52 }
 0x486   : > { %v2206_v48 = vpop.f32.mrf.mxu3 }
 0x487   : > { %v2207_v30 = vadd.f32 %v3700_v60, %v2206_v48 }
 0x489   : > { %v2327_v33 = vpack.c.bf16 %v2207_v30, %v2205_v15  ;;  %v2101_v15 = vadd.f32 %v3699_v11, %v2100_v40  ;;  %v2099_v30 = vadd.f32 %v3699_v11, %v2098_v14 }
 0x48b   : > { %2657 = vrot.lane.b32.xlu2 %v2327_v33, %s3873_s24  ;;  %v2324_v53 = vpack.c.bf16 %v2101_v15, %v2099_v30  ;;  %v2350_v40 = vsel %vm1228_vm8, %v2327_v33, 0  ;;  %v4840_v33 = vpop.f32.mrf.mxu1  ;;  %v3657_v15 = vld [vmem:[%s5307_s14 + $0x88] sm:$0xff]  ;;  %v3656_v30 = vld [vmem:[%s5307_s14 + $0x80] sm:$0xff] }
 0x48e   : > { %v2209_v38 = vpop.f32.mrf.mxu3 }
 0x48f   : > { %v2210_v49 = vadd.f32 %v3700_v60, %v2209_v38 }
 0x493   : > { %2655 = vrot.lane.b32.xlu2 %v2326_v41, %s3873_s24  ;;  %v4846_v29 = vpop.f32.mrf.mxu1 }
 0x496   : > { %v4805_v10 = vpop.f32.mrf.mxu0  ;;  %v2211_v57 = vpop.f32.mrf.mxu3 }
 0x497   : > { %v2212_v54 = vadd.f32 %v3700_v60, %v2211_v57 }
 0x499   : > { %v2328_v20 = vpack.c.bf16 %v2212_v54, %v2210_v49 }
 0x49b   : > { %2659 = vrot.lane.b32.xlu0 %v2328_v20, %s3873_s24  ;;  %2643 = vrot.lane.b32.xlu2 %v2322_v59, %s3873_s24  ;;  %v2353_v38 = vsel %vm1228_vm8, %v2328_v20, 0 }
 0x49e   : > { %v4809_v51 = vpop.f32.mrf.mxu0  ;;  %v2214_v2 = vpop.f32.mrf.mxu3 }
 0x49f   : > { %v2215_v63 = vadd.f32 %v3700_v60, %v2214_v2 }
 0x4a3   : > { %2645 = vrot.lane.b32.xlu0 %v2323_v46, %s3873_s24  ;;  %2649 = vrot.lane.b32.xlu2 %v2325_v32, %s3873_s24 }
 0x4a6   : > { %v4813_v22 = vpop.f32.mrf.mxu0  ;;  %v2216_v13 = vpop.f32.mrf.mxu3 }
 0x4a7   : > { %v2217_v52 = vadd.f32 %v3700_v60, %v2216_v13  ;;  %v3701_v60 = vld [vmem:[%s5304_s11] ss:$0 sm:$0xff] }
 0x4a9   : > { %v2329_v48 = vpack.c.bf16 %v2217_v52, %v2215_v63  ;;  %v3659_v63 = vld [vmem:[%s5307_s14 + $0x98] sm:$0xff]  ;;  %v3658_v52 = vld [vmem:[%s5307_s14 + $0x90] sm:$0xff] }
 0x4ab   : > { %2661 = vrot.lane.b32.xlu1 %v2329_v48, %s3873_s24  ;;  %v2356_v36 = vsel %vm1228_vm8, %v2329_v48, 0 }
 0x4ac   : > { %2362 = vmatpush.bf16.xpose.msrb.mxu1 %v2356_v36 }
 0x4ae   : > { %v4817_v34 = vpop.f32.mrf.mxu0 }
 0x4b3   : > { %2647 = vrot.lane.b32.xlu1 %v2324_v53, %s3873_s24 }
 0x4b4   : > { %2363 = vmatpush.bf16.xpose.msrb.mxu1 %v2353_v38 }
 0x4b6   : > { %v1882_v58 = vpop.f32.mrf.mxu0 }
 0x4b7   : > { %v1930_v31 = vadd.f32 %v4789_v3, %v1882_v58 }
 0x4b9   : > { %v4825_v12 = vadd.f32 %v3701_v60, %v1930_v31 }
 0x4bc   : > { %2364 = vmatpush.bf16.xpose.msrb.mxu1 %v2350_v40 }
 0x4be   : > { %v1884_v57 = vpop.f32.mrf.mxu0 }
 0x4bf   : > { %v1932_v14 = vadd.f32 %v4791_v16, %v1884_v57 }
 0x4c1   : > { %v4829_v11 = vadd.f32 %v3701_v60, %v1932_v14 }
 0x4c4   : > { %2365 = vmatpush.bf16.xpose.msrb.mxu1 %v2347_v6  ;;  %v2220_v6 = vpack.c.bf16 %v4760_v55, %v4758_v47 }
 0x4c6   : > { %v1887_v49 = vpop.f32.mrf.mxu0 }
 0x4c7   : > { %v1935_v54 = vadd.f32 %v4793_v23, %v1887_v49  ;;  %v3663_v23 = vld [vmem:[%s5307_s14 + $0xb8] sm:$0xff] }
 0x4c8   : > { %2293 = vmatpush.bf16.msra.mxu0 %v3663_v23 }
 0x4c9   : > { %v4833_v20 = vadd.f32 %v3701_v60, %v1935_v54 }
 0x4cb   : > { %5352 = vst [vmem:[#allocation11_spill] sm:$0xff] %v4833_v20  ;;  %3575 = vmatmul.msk.bf16.vlgmr.msrb.gmra.mxu1 %vm1228_vm8, %v2322_v59 }
 0x4cc   : > { %2294 = vmatpush.bf16.msra.mxu0 %v3662_v27 }
 0x4d0   : > { %2295 = vmatpush.bf16.msra.mxu0 %v3661_v35 }
 0x4db   : > { %3576 = vmatmul.msk.bf16.gmra.mxu1 %vm1228_vm8, %v2323_v46  ;;  %v3660_v46 = vld [vmem:[%s5307_s14 + $0xa0] sm:$0xff] }
 0x4dc   : > { %2296 = vmatpush.bf16.msra.mxu0 %v3660_v46 }
 0x4e0   : > { %2297 = vmatpush.bf16.msra.mxu0 %v3659_v63 }
 0x4e4   : > { %2298 = vmatpush.bf16.msra.mxu0 %v3658_v52 }
 0x4e5   : > { %v2658_v59 = vpop.permute.xlu2 %2657 }
 0x4e6   : > { %v2679_v2 = vsel %vm1228_vm8, %v2658_v59, 0 }
 0x4e8   : > { %2299 = vmatpush.bf16.msra.mxu0 %v3657_v15 }
 0x4eb   : > { %3577 = vmatmul.msk.bf16.gmra.mxu1 %vm1228_vm8, %v2324_v53  ;;  %v2219_v53 = vpack.c.bf16 %v4752_v56, %v4750_v24 }
 0x4ec   : > { %2300 = vmatpush.bf16.msra.mxu0 %v3656_v30 }
 0x4ed   : > { %v2656_v26 = vpop.permute.xlu2 %2655 }
 0x4ee   : > { %v2676_v13 = vsel %vm1228_vm8, %v2656_v26, 0 }
 0x4ef   : > { %2301 = vmatmul.bf16.vlgmr.msra.gmra.mxu0 %v2219_v53 }
 0x4f5   : > { %v2644_v48 = vpop.permute.xlu2 %2643 }
 0x4fb   : > { %3578 = vmatmul.msk.bf16.gmra.mxu1 %vm1228_vm8, %v2325_v32  ;;  %v4858_v32 = vpop.f32.mrf.mxu1 }
 0x4fd   : > { %v2650_v55 = vpop.permute.xlu2 %2649 }
 0x4ff   : > { %2306 = vmatmul.bf16.gmra.mxu0 %v2220_v6 }
 0x503   : > { %v4868_v36 = vpop.f32.mrf.mxu1 }
 0x50d   : > { %v2660_v41 = vpop.permute.xlu0 %2659 }
 0x50e   : > { %v2682_v28 = vsel %vm1228_vm8, %v2660_v41, 0 }
 0x515   : > { %v2646_v31 = vpop.permute.xlu0 %2645 }
 0x51d   : > { %v2662_v3 = vpop.permute.xlu1 %2661 }
 0x51e   : > { %v2685_v16 = vsel %vm1228_vm8, %v2662_v3, 0 }
 0x51f   : > { %2691 = vmatpush.bf16.xpose.msra.mxu3 %v2685_v16 }
 0x525   : > { %v2648_v54 = vpop.permute.xlu1 %2647 }
 0x527   : > { %2692 = vmatpush.bf16.xpose.msra.mxu3 %v2682_v28  ;;  %v2221_v28 = vpack.c.bf16 %v4771_v21, %v4769_v4  ;;  %v2222_v4 = vpack.c.bf16 %v4779_v9, %v4777_v50 }
 0x529   : > { %2311 = vmatmul.bf16.gmra.mxu0 %v2221_v28 }
 0x52f   : > { %2693 = vmatpush.bf16.xpose.msra.mxu3 %v2679_v2 }
 0x537   : > { %2694 = vmatpush.bf16.xpose.msra.mxu3 %v2676_v13 }
 0x539   : > { %2316 = vmatmul.bf16.gmra.mxu0 %v2222_v4 }
 0x53e   : > { %3583 = vmatmul.msk.bf16.vlgmr.msra.gmra.mxu3 %vm1228_vm8, %v2644_v48  ;;  %v4907_v48 = vpop.f32.mrf.mxu0 }
 0x53f   : > { %5353 = vst [vmem:[#allocation12_spill] sm:$0xff] %v4907_v48 }
 0x548   : > { %v2367_v38 = vpop.f32.mrf.mxu1 }
 0x549   : > { %v2387_v58 = vmul.f32 0.25, %v2367_v38 }
 0x54b   : > { %v2396_v60 = vsel %vm2395_vm9, %v2387_v58, -inf }
 0x54c   : > { %2397 = vmax.xlane.f32.xlu0 %v2396_v60 }
 0x54e   : > { %3584 = vmatmul.msk.bf16.gmra.mxu3 %vm1228_vm8, %v2646_v31 }
 0x550   : > { %v2369_v40 = vpop.f32.mrf.mxu1 }
 0x551   : > { %v2388_v57 = vmul.f32 0.25, %v2369_v40 }
 0x553   : > { %v2399_v14 = vsel %vm2395_vm9, %v2388_v57, -inf }
 0x554   : > { %2400 = vmax.xlane.f32.xlu1 %v2399_v14 }
 0x558   : > { %v2372_v49 = vpop.f32.mrf.mxu1 }
 0x559   : > { %v2389_v24 = vmul.f32 0.25, %v2372_v49 }
 0x55b   : > { %v2402_v56 = vsel %vm2395_vm9, %v2389_v24, -inf }
 0x55c   : > { %2403 = vmax.xlane.f32.xlu1 %v2402_v56 }
 0x55e   : > { %3585 = vmatmul.msk.bf16.gmra.mxu3 %vm1228_vm8, %v2648_v54 }
 0x560   : > { %v2374_v3 = vpop.f32.mrf.mxu1 }
 0x561   : > { %v2390_v16 = vmul.f32 0.25, %v2374_v3 }
 0x563   : > { %v2405_v41 = vsel %vm2395_vm9, %v2390_v16, -inf }
 0x564   : > { %2406 = vmax.xlane.f32.xlu2 %v2405_v41 }
 0x568   : > { %v2377_v23 = vpop.f32.mrf.mxu1 }
 0x569   : > { %v4888_v59 = vmul.f32 0.25, %v2377_v23 }
 0x56b   : > { %v2408_v47 = vsel %vm2395_vm9, %v4888_v59, -inf }
 0x56c   : > { %2409 = vmax.xlane.f32.xlu2 %v2408_v47  ;;  %v4913_v60 = vpop.f32.mrf.mxu0 }
 0x56e   : > { %3586 = vmatmul.msk.bf16.gmra.mxu3 %vm1228_vm8, %v2650_v55 }
 0x570   : > { %v2379_v27 = vpop.f32.mrf.mxu1 }
 0x571   : > { %v4893_v2 = vmul.f32 0.25, %v2379_v27 }
 0x573   : > { %v2411_v35 = vsel %vm2395_vm9, %v4893_v2, -inf }
 0x574   : > { %2412 = vmax.xlane.f32.xlu0 %v2411_v35  ;;  %v2304_v3 = vpop.f32.mrf.mxu0 }
 0x578   : > { %v2382_v21 = vpop.f32.mrf.mxu1 }
 0x579   : > { %v4899_v26 = vmul.f32 0.25, %v2382_v21 }
 0x57b   : > { %v2414_v46 = vsel %vm2395_vm9, %v4899_v26, -inf }
 0x57c   : > { %2415 = vmax.xlane.f32.xlu0 %v2414_v46  ;;  %v2307_v27 = vpop.f32.mrf.mxu0 }
 0x580   : > { %v2384_v13 = vpop.f32.mrf.mxu1 }
 0x581   : > { %v4903_v63 = vmul.f32 0.25, %v2384_v13 }
 0x583   : > { %v2417_v52 = vsel %vm2395_vm9, %v4903_v63, -inf }
 0x584   : > { %2418 = vmax.xlane.f32.xlu1 %v2417_v52 }
 0x5bf   : > { %v2398_v15 = vpop.xlane.xlu0 %2397 }
 0x5c0   : > { %v2420_v30 = vsub.f32 %v2387_v58, %v2398_v15 }
 0x5c1   : > { %v2696_v50 = vpop.f32.mrf.mxu3 }
 0x5c2   : > { %v2428_v9 = vmul.f32 1.442695, %v2420_v30  ;;  %v4909_v53 = vmul.f32 0.25, %v2696_v50 }
 0x5c4   : > { %3784 = vpow2.f32 %v2428_v9  ;;  %v2724_v38 = vsel %vm2395_vm9, %v4909_v53, -inf }
 0x5c5   : > { %2725 = vmax.xlane.f32.xlu2 %v2724_v38 }
 0x5c7   : > { %v2401_v31 = vpop.xlane.xlu1 %2400 }
 0x5c8   : > { %v2421_v40 = vsub.f32 %v2388_v57, %v2401_v31 }
 0x5c9   : > { %v2698_v14 = vpop.f32.mrf.mxu3 }
 0x5ca   : > { %v4915_v6 = vpop.eup %3784  ;;  %v2430_v49 = vmul.f32 1.442695, %v2421_v40  ;;  %v4917_v56 = vmul.f32 0.25, %v2698_v14 }
 0x5cb   : > { %v2444_v58 = vsel %vm2395_vm9, %v4915_v6, 0.0 }
 0x5cc   : > { %3786 = vpow2.f32 %v2430_v49  ;;  %v2727_v54 = vsel %vm2395_vm9, %v4917_v56, -inf }
 0x5cd   : > { %2445 = vadd.xlane.f32.xlu2 %v2444_v58  ;;  %2728 = vmax.xlane.f32.xlu0 %v2727_v54 }
 0x5cf   : > { %v2404_v41 = vpop.xlane.xlu1 %2403 }
 0x5d0   : > { %v2422_v28 = vsub.f32 %v2389_v24, %v2404_v41 }
 0x5d1   : > { %v2701_v23 = vpop.f32.mrf.mxu3 }
 0x5d2   : > { %v4923_v57 = vpop.eup %3786  ;;  %v2432_v47 = vmul.f32 1.442695, %v2422_v28  ;;  %v4927_v4 = vmul.f32 0.25, %v2701_v23 }
 0x5d3   : > { %v2447_v55 = vsel %vm2395_vm9, %v4923_v57, 0.0 }
 0x5d4   : > { %3788 = vpow2.f32 %v2432_v47  ;;  %v2730_v30 = vsel %vm2395_vm9, %v4927_v4, -inf }
 0x5d5   : > { %2448 = vadd.xlane.f32.xlu0 %v2447_v55 }
 0x5d7   : > { %v2407_v35 = vpop.xlane.xlu2 %2406 }
 0x5d8   : > { %v2423_v21 = vsub.f32 %v2390_v16, %v2407_v35  ;;  %v2309_v16 = vpop.f32.mrf.mxu0 }
 0x5d9   : > { %v2703_v46 = vpop.f32.mrf.mxu3 }
 0x5da   : > { %v4929_v13 = vpop.eup %3788  ;;  %v2434_v52 = vmul.f32 1.442695, %v2423_v21  ;;  %v4931_v15 = vmul.f32 0.25, %v2703_v46 }
 0x5db   : > { %v2450_v24 = vsel %vm2395_vm9, %v4929_v13, 0.0 }
 0x5dc   : > { %3790 = vpow2.f32 %v2434_v52  ;;  %2451 = vadd.xlane.f32.xlu2 %v2450_v24  ;;  %v2733_v50 = vsel %vm2395_vm9, %v4931_v15, -inf  ;;  %v3702_v24 = vld [vmem:[%s5308_s15 + $0x2] ss:$0 sm:$0xff] }
 0x5dd   : > { %2731 = vmax.xlane.f32.xlu0 %v2730_v30  ;;  %2734 = vmax.xlane.f32.xlu1 %v2733_v50  ;;  %v2303_v61 = vadd.f32 %v3702_v24, %v4913_v60  ;;  %v2305_v7 = vadd.f32 %v3702_v24, %v2304_v3 }
 0x5e0   : > { %v2312_v49 = vpop.f32.mrf.mxu0 }
 0x5e1   : > { %v2706_v9 = vpop.f32.mrf.mxu3 }
 0x5e2   : > { %v4939_v38 = vpop.eup %3790  ;;  %v4941_v31 = vmul.f32 0.25, %v2706_v9 }
 0x5e3   : > { %v2453_v40 = vsel %vm2395_vm9, %v4939_v38, 0.0 }
 0x5e4   : > { %v2736_v14 = vsel %vm2395_vm9, %v4941_v31, -inf }
 0x5e5   : > { %2454 = vadd.xlane.f32.xlu0 %v2453_v40  ;;  %2737 = vmax.xlane.f32.xlu1 %v2736_v14  ;;  %v2313_v40 = vadd.f32 %v3702_v24, %v2312_v49 }
 0x5e7   : > { %v4971_v49 = vpop.xlane.xlu0 %2412 }
 0x5e8   : > { %v2314_v28 = vpop.f32.mrf.mxu0 }
 0x5e9   : > { %v2708_v58 = vpop.f32.mrf.mxu3  ;;  %v2315_v14 = vadd.f32 %v3702_v24, %v2314_v28 }
 0x5ea   : > { %v4947_v54 = vmul.f32 0.25, %v2708_v58 }
 0x5ec   : > { %v2739_v41 = vsel %vm2395_vm9, %v4947_v54, -inf }
 0x5ed   : > { %2740 = vmax.xlane.f32.xlu2 %v2739_v41  ;;  %v2308_v41 = vadd.f32 %v3702_v24, %v2307_v27  ;;  %v2410_v27 = vpop.xlane.xlu2 %2409 }
 0x5f0   : > { %v2317_v35 = vpop.f32.mrf.mxu0 }
 0x5f1   : > { %v2711_v23 = vpop.f32.mrf.mxu3  ;;  %v2318_v50 = vadd.f32 %v3702_v24, %v2317_v35  ;;  %v4974_v35 = vpop.xlane.xlu0 %2415 }
 0x5f2   : > { %v4951_v47 = vmul.f32 0.25, %v2711_v23  ;;  %v2310_v23 = vadd.f32 %v3702_v24, %v2309_v16  ;;  %v2424_v16 = vsub.f32 %v4888_v59, %v2410_v27 }
 0x5f4   : > { %v2742_v55 = vsel %vm2395_vm9, %v4951_v47, -inf  ;;  %v2436_v28 = vmul.f32 1.442695, %v2424_v16 }
 0x5f5   : > { %2743 = vmax.xlane.f32.xlu1 %v2742_v55  ;;  %v2332_v55 = vpack.c.bf16 %v2315_v14, %v2313_v40 }
 0x5f6   : > { %3792 = vpow2.f32 %v2436_v28 }
 0x5f8   : > { %v2319_v30 = vpop.f32.mrf.mxu0 }
 0x5f9   : > { %v2713_v21 = vpop.f32.mrf.mxu3  ;;  %v2320_v9 = vadd.f32 %v3702_v24, %v2319_v30 }
 0x5fa   : > { %v4955_v46 = vmul.f32 0.25, %v2713_v21  ;;  %v4965_v21 = vpack.c.bf16 %v2310_v23, %v2308_v41 }
 0x5fb   : > { %v4962_v58 = vpack.c.bf16 %v2320_v9, %v2318_v50  ;;  %v2419_v50 = vpop.xlane.xlu1 %2418 }
 0x5fc   : > { %v2745_v52 = vsel %vm2395_vm9, %v4955_v46, -inf  ;;  %v4978_v40 = vpop.eup %3792 }
 0x5fd   : > { %2746 = vmax.xlane.f32.xlu2 %v2745_v52  ;;  %2608 = vmatpush.bf16.msrb.mxu2 %v4962_v58  ;;  %v2330_v52 = vpack.c.bf16 %v2305_v7, %v2303_v61  ;;  %v2427_v61 = vsub.f32 %v4903_v63, %v2419_v50  ;;  %v2456_v63 = vsel %vm2395_vm9, %v4978_v40, 0.0 }
 0x5ff   : > { %v2442_v7 = vmul.f32 1.442695, %v2427_v61 }
 0x601   : > { %2609 = vmatpush.bf16.msrb.mxu2 %v2332_v55 }
 0x605   : > { %2610 = vmatpush.bf16.msrb.mxu2 %v4965_v21 }
 0x609   : > { %2611 = vmatpush.bf16.msrb.mxu2 %v2330_v52 }
 0x615   : > { %2928 = vrot.lane.b32.xlu2 %v2332_v55, %s3873_s24 }
 0x61d   : > { %2924 = vrot.lane.b32.xlu2 %v2330_v52, %s3873_s24 }
 0x638   : > { %v2726_v30 = vpop.xlane.xlu2 %2725 }
 0x639   : > { %v2748_v60 = vsub.f32 %v4909_v53, %v2726_v30 }
 0x63b   : > { %v2756_v3 = vmul.f32 1.442695, %v2748_v60 }
 0x63d   : > { %3794 = vpow2.f32 %v2756_v3 }
 0x640   : > { %v2446_v24 = vpop.xlane.xlu2 %2445  ;;  %v2729_v9 = vpop.xlane.xlu0 %2728 }
 0x641   : > { %3796 = vrcp.f32 %v2446_v24  ;;  %v2749_v59 = vsub.f32 %v4917_v56, %v2729_v9  ;;  %vm2473_vm5 = vweird.f32 %v2446_v24 }
 0x642   : > { %3798 = vpow2.f32 %v2442_v7 }
 0x643   : > { %v4981_v14 = vpop.eup %3794  ;;  %v2758_v41 = vmul.f32 1.442695, %v2749_v59  ;;  %v2479_v59 = vand.u32 2147483648, %v2446_v24 }
 0x644   : > { %v2772_v53 = vsel %vm2395_vm9, %v4981_v14, 0.0 }
 0x645   : > { %2773 = vadd.xlane.f32.xlu0 %v2772_v53  ;;  %3800 = vpow2.f32 %v2758_v41  ;;  %v2477_v41 = vand.u32 2147483647, %v2446_v24 }
 0x646   : > { %2457 = vadd.xlane.f32.xlu2 %v2456_v63 }
 0x647   : > { %v3797_v23 = vpop.eup %3796  ;;  %vm2478_vm11 = vcmp.eq.f32.partialorder %v2477_v41, 8.507059e+37 }
 0x648   : > { %v2469_v55 = vmul.f32 %v3797_v23, %v2446_v24  ;;  %v2449_v52 = vpop.xlane.xlu0 %2448  ;;  %v4987_v27 = vpop.eup %3798  ;;  %vm2474_vm10 = vweird.f32 %v3797_v23 }
 0x649   : > { %3802 = vrcp.f32 %v2449_v52  ;;  %v2465_v50 = vsel %vm2395_vm9, %v4987_v27, 0.0  ;;  %vm2475_vm6 = vmor %vm2473_vm5, %vm2474_vm10  ;;  %v2493_v63 = vand.u32 2147483648, %v2449_v52  ;;  %v2491_v45 = vand.u32 2147483647, %v2449_v52 }
 0x64a   : > { %v2470_v56 = vsub.f32 1.0, %v2469_v55  ;;  %vm2487_vm12 = vweird.f32 %v2449_v52 }
 0x64b   : > { %v4989_v16 = vpop.eup %3800  ;;  %v2494_v48 = vor.u32 1.1754944e-38, %v2493_v63  ;;  %vm2492_vm14 = vcmp.eq.f32.partialorder %v2491_v45, 8.507059e+37 }
 0x64c   : > { %v2471_v28 = vmul.f32 %v3797_v23, %v2470_v56  ;;  %v2775_v30 = vsel %vm2395_vm9, %v4989_v16, 0.0 }
 0x64d   : > { %2776 = vadd.xlane.f32.xlu1 %v2775_v30  ;;  %v2480_v30 = vor.u32 1.1754944e-38, %v2479_v59 }
 0x64e   : > { %2466 = vadd.xlane.f32.xlu2 %v2465_v50  ;;  %v2472_v61 = vadd.f32 %v3797_v23, %v2471_v28 }
 0x64f   : > { %v3803_v60 = vpop.eup %3802  ;;  %v2452_v3 = vpop.xlane.xlu2 %2451 }
 0x650   : > { %v2483_v7 = vmul.f32 %v3803_v60, %v2449_v52  ;;  %3804 = vrcp.f32 %v2452_v3  ;;  %v4995_v9 = vpop.xlane.xlu0 %2731  ;;  %v2476_v55 = vsel %vm2475_vm6, %v3797_v23, %v2472_v61  ;;  %vm2488_vm7 = vweird.f32 %v3803_v60 }
 0x651   : > { %v2481_v28 = vsel %vm2478_vm11, %v2480_v30, %v2476_v55  ;;  %vm2489_vm13 = vmor %vm2487_vm12, %vm2488_vm7  ;;  %v2507_v45 = vand.u32 2147483648, %v2452_v3  ;;  %vm2501_vm0 = vweird.f32 %v2452_v3 }
 0x652   : > { %v2484_v53 = vsub.f32 1.0, %v2483_v7  ;;  %v2580_v23 = vmul.f32 %v4915_v6, %v2481_v28 }
 0x653   : > { %v2508_v63 = vor.u32 1.1754944e-38, %v2507_v45 }
 0x654   : > { %v2485_v56 = vmul.f32 %v3803_v60, %v2484_v53 }
 0x656   : > { %v3805_v50 = vpop.eup %3804  ;;  %v2486_v1 = vadd.f32 %v3803_v60, %v2485_v56 }
 0x657   : > { %v2497_v20 = vmul.f32 %v3805_v50, %v2452_v3  ;;  %vm2502_vm15 = vweird.f32 %v3805_v50 }
 0x658   : > { %v2490_v39 = vsel %vm2489_vm13, %v3803_v60, %v2486_v1  ;;  %v2455_v44 = vpop.xlane.xlu0 %2454  ;;  %vm2503_vm1 = vmor %vm2501_vm0, %vm2502_vm15 }
 0x659   : > { %v2495_v24 = vsel %vm2492_vm14, %v2494_v48, %v2490_v39  ;;  %v2498_v7 = vsub.f32 1.0, %v2497_v20  ;;  %3806 = vrcp.f32 %v2455_v44  ;;  %2926 = vrot.lane.b32.xlu0 %v4965_v21, %s3873_s24  ;;  %v2505_v39 = vand.u32 2147483647, %v2452_v3 }
 0x65a   : > { %v2581_v61 = vmul.f32 %v4923_v57, %v2495_v24  ;;  %v2521_v48 = vand.u32 2147483648, %v2455_v44  ;;  %v2519_v21 = vand.u32 2147483647, %v2455_v44  ;;  %vm2515_vm4 = vweird.f32 %v2455_v44 }
 0x65b   : > { %v2499_v59 = vmul.f32 %v3805_v50, %v2498_v7  ;;  %vm2506_vm3 = vcmp.eq.f32.partialorder %v2505_v39, 8.507059e+37  ;;  %v2735_v7 = vpop.xlane.xlu1 %2734 }
 0x65c   : > { %v2588_v41 = vpack.c.bf16 %v2581_v61, %v2580_v23  ;;  %v2522_v55 = vor.u32 1.1754944e-38, %v2521_v48  ;;  %vm2520_vm5 = vcmp.eq.f32.partialorder %v2519_v21, 8.507059e+37 }
 0x65d   : > { %v2500_v53 = vadd.f32 %v3805_v50, %v2499_v59 }
 0x65e   : > { %3579 = vmatmul.msk.bf16.vlgmr.msrb.gmra.mxu2 %vm2395_vm9, %v2588_v41 }
 0x65f   : > { %v3807_v52 = vpop.eup %3806  ;;  %v2504_v6 = vsel %vm2503_vm1, %v3805_v50, %v2500_v53  ;;  %v2751_v50 = vsub.f32 %v4931_v15, %v2735_v7 }
 0x660   : > { %v2511_v1 = vmul.f32 %v3807_v52, %v2455_v44  ;;  %vm2516_vm2 = vweird.f32 %v3807_v52  ;;  %v2509_v56 = vsel %vm2506_vm3, %v2508_v63, %v2504_v6  ;;  %v2741_v41 = vpop.xlane.xlu2 %2740 }
 0x661   : > { %vm2517_vm10 = vmor %vm2515_vm4, %vm2516_vm2  ;;  %v2582_v28 = vmul.f32 %v4929_v13, %v2509_v56  ;;  %v2762_v44 = vmul.f32 1.442695, %v2751_v50  ;;  %v2750_v13 = vsub.f32 %v4927_v4, %v4995_v9 }
 0x662   : > { %v2512_v20 = vsub.f32 1.0, %v2511_v1 }
 0x663   : > { %v2738_v61 = vpop.xlane.xlu1 %2737  ;;  %3808 = vpow2.f32 %v2762_v44  ;;  %v2760_v15 = vmul.f32 1.442695, %v2750_v13 }
 0x664   : > { %v2513_v60 = vmul.f32 %v3807_v52, %v2512_v20  ;;  %v2752_v59 = vsub.f32 %v4941_v31, %v2738_v61  ;;  %v2425_v31 = vsub.f32 %v4893_v2, %v4971_v49 }
 0x666   : > { %v2514_v57 = vadd.f32 %v3807_v52, %v2513_v60  ;;  %2930 = vrot.lane.b32.xlu1 %v4962_v58, %s3873_s24  ;;  %v2764_v58 = vmul.f32 1.442695, %v2752_v59  ;;  %v2753_v60 = vsub.f32 %v4947_v54, %v2741_v41 }
 0x668   : > { %v2518_v30 = vsel %vm2517_vm10, %v3807_v52, %v2514_v57  ;;  %3810 = vpow2.f32 %v2764_v58  ;;  %v2766_v49 = vmul.f32 1.442695, %v2753_v60 }
 0x669   : > { %v2523_v3 = vsel %vm2520_vm5, %v2522_v55, %v2518_v30  ;;  %v5009_v53 = vpop.eup %3808  ;;  %3812 = vpow2.f32 %v2760_v15 }
 0x66a   : > { %v2583_v24 = vmul.f32 %v4939_v38, %v2523_v3  ;;  %v2426_v38 = vsub.f32 %v4899_v26, %v4974_v35  ;;  %v2781_v52 = vsel %vm2395_vm9, %v5009_v53, 0.0  ;;  %v2438_v35 = vmul.f32 1.442695, %v2425_v31 }
 0x66b   : > { %v2744_v21 = vpop.xlane.xlu1 %2743 }
 0x66c   : > { %v2589_v23 = vpack.c.bf16 %v2583_v24, %v2582_v28  ;;  %v2440_v1 = vmul.f32 1.442695, %v2426_v38  ;;  %v2754_v57 = vsub.f32 %v4951_v47, %v2744_v21 }
 0x66e   : > { %3580 = vmatmul.msk.bf16.gmra.mxu2 %vm2395_vm9, %v2589_v23  ;;  %v5017_v39 = vpop.eup %3810  ;;  %3814 = vpow2.f32 %v2440_v1  ;;  %v2768_v56 = vmul.f32 1.442695, %v2754_v57 }
 0x66f   : > { %v2784_v26 = vsel %vm2395_vm9, %v5017_v39, 0.0  ;;  %v5024_v9 = vpop.eup %3812  ;;  %3816 = vpow2.f32 %v2438_v35 }
 0x670   : > { %v2747_v45 = vpop.xlane.xlu2 %2746  ;;  %v2778_v2 = vsel %vm2395_vm9, %v5024_v9, 0.0 }
 0x671   : > { %v2755_v4 = vsub.f32 %v4955_v46, %v2747_v45 }
 0x673   : > { %v2770_v20 = vmul.f32 1.442695, %v2755_v4 }
 0x674   : > { %v5026_v48 = vpop.eup %3814 }
 0x675   : > { %3818 = vpow2.f32 %v2770_v20  ;;  %v2462_v46 = vsel %vm2395_vm9, %v5026_v48, 0.0  ;;  %v5033_v6 = vpop.eup %3816 }
 0x676   : > { %3820 = vpow2.f32 %v2766_v49  ;;  %v2459_v54 = vsel %vm2395_vm9, %v5033_v6, 0.0 }
 0x677   : > { %3822 = vpow2.f32 %v2768_v56 }
 0x678   : > { %v2929_v1 = vpop.permute.xlu2 %2928 }
 0x67b   : > { %v5035_v63 = vpop.eup %3818 }
 0x67c   : > { %v2793_v55 = vsel %vm2395_vm9, %v5035_v63, 0.0  ;;  %v5042_v30 = vpop.eup %3820 }
 0x67d   : > { %v2787_v3 = vsel %vm2395_vm9, %v5042_v30, 0.0  ;;  %v5046_v28 = vpop.eup %3822 }
 0x67e   : > { %v2790_v47 = vsel %vm2395_vm9, %v5046_v28, 0.0 }
 0x683   : > { %2782 = vadd.xlane.f32.xlu0 %v2781_v52 }
 0x68b   : > { %2785 = vadd.xlane.f32.xlu0 %v2784_v26 }
 0x690   : > { %2779 = vadd.xlane.f32.xlu1 %v2778_v2 }
 0x693   : > { %2463 = vadd.xlane.f32.xlu0 %v2462_v46 }
 0x698   : > { %2460 = vadd.xlane.f32.xlu1 %v2459_v54  ;;  %v2925_v54 = vpop.permute.xlu2 %2924 }
 0x69b   : > { %2794 = vadd.xlane.f32.xlu0 %v2793_v55 }
 0x6a0   : > { %2788 = vadd.xlane.f32.xlu1 %v2787_v3 }
 0x6a8   : > { %2791 = vadd.xlane.f32.xlu1 %v2790_v47 }
 0x6b8   : > { %v2774_v7 = vpop.xlane.xlu0 %2773 }
 0x6b9   : > { %v2807_v4 = vand.u32 2147483648, %v2774_v7  ;;  %vm2801_vm13 = vweird.f32 %v2774_v7  ;;  %v2805_v26 = vand.u32 2147483647, %v2774_v7  ;;  %v5053_v47 = vpop.xlane.xlu2 %2457 }
 0x6bb   : > { %v2808_v2 = vor.u32 1.1754944e-38, %v2807_v4  ;;  %vm2806_vm0 = vcmp.eq.f32.partialorder %v2805_v26, 8.507059e+37 }
 0x6c0   : > { %v2777_v24 = vpop.xlane.xlu1 %2776 }
 0x6c1   : > { %3824 = vrcp.f32 %v2777_v24  ;;  %v2821_v15 = vand.u32 2147483648, %v2777_v24  ;;  %vm2815_vm11 = vweird.f32 %v2777_v24  ;;  %v2819_v31 = vand.u32 2147483647, %v2777_v24 }
 0x6c2   : > { %3826 = vrcp.f32 %v2774_v7 }
 0x6c3   : > { %v2822_v20 = vor.u32 1.1754944e-38, %v2821_v15  ;;  %vm2820_vm15 = vcmp.eq.f32.partialorder %v2819_v31, 8.507059e+37 }
 0x6c7   : > { %v3825_v23 = vpop.eup %3824 }
 0x6c8   : > { %v3827_v50 = vpop.eup %3826  ;;  %v2811_v44 = vmul.f32 %v3825_v23, %v2777_v24  ;;  %vm2816_vm6 = vweird.f32 %v3825_v23 }
 0x6c9   : > { %v2797_v61 = vmul.f32 %v3827_v50, %v2774_v7  ;;  %vm2802_vm7 = vweird.f32 %v3827_v50  ;;  %vm2817_vm12 = vmor %vm2815_vm11, %vm2816_vm6  ;;  %vm2529_vm11 = vweird.f32 %v5053_v47 }
 0x6ca   : > { %v2812_v59 = vsub.f32 1.0, %v2811_v44  ;;  %vm2803_vm14 = vmor %vm2801_vm13, %vm2802_vm7 }
 0x6cb   : > { %v2798_v58 = vsub.f32 1.0, %v2797_v61  ;;  %v2927_v49 = vpop.permute.xlu0 %2926 }
 0x6cc   : > { %v2813_v41 = vmul.f32 %v3825_v23, %v2812_v59 }
 0x6cd   : > { %v2799_v13 = vmul.f32 %v3827_v50, %v2798_v58 }
 0x6ce   : > { %v2814_v38 = vadd.f32 %v3825_v23, %v2813_v41 }
 0x6cf   : > { %v2800_v45 = vadd.f32 %v3827_v50, %v2799_v13 }
 0x6d0   : > { %v2818_v35 = vsel %vm2817_vm12, %v3825_v23, %v2814_v38 }
 0x6d1   : > { %v2804_v60 = vsel %vm2803_vm14, %v3827_v50, %v2800_v45  ;;  %v2823_v46 = vsel %vm2820_vm15, %v2822_v20, %v2818_v35 }
 0x6d2   : > { %v2809_v21 = vsel %vm2806_vm0, %v2808_v2, %v2804_v60  ;;  %v2909_v57 = vmul.f32 %v4989_v16, %v2823_v46 }
 0x6d3   : > { %v2908_v55 = vmul.f32 %v4981_v14, %v2809_v21 }
 0x6d5   : > { %v2916_v56 = vpack.c.bf16 %v2909_v57, %v2908_v55 }
 0x6d8   : > { %v2931_v52 = vpop.permute.xlu1 %2930 }
 0x6d9   : > { %2952 = vmatpush.bf16.msrb.mxu0 %v2931_v52 }
 0x6dd   : > { %2953 = vmatpush.bf16.msrb.mxu0 %v2929_v1  ;;  %v5070_v1 = vpop.xlane.xlu2 %2466 }
 0x6e1   : > { %2954 = vmatpush.bf16.msrb.mxu0 %v2927_v49 }
 0x6e5   : > { %2955 = vmatpush.bf16.msrb.mxu0 %v2925_v54 }
 0x6e8   : > { %3587 = vmatmul.msk.bf16.vlgmr.msrb.gmra.mxu0 %vm2395_vm9, %v2916_v56 }
 0x6f6   : > { %v2783_v3 = vpop.xlane.xlu0 %2782 }
 0x6f7   : > { %3828 = vrcp.f32 %v2783_v3  ;;  %v2849_v31 = vand.u32 2147483648, %v2783_v3  ;;  %vm2843_vm2 = vweird.f32 %v2783_v3  ;;  %v2847_v26 = vand.u32 2147483647, %v2783_v3 }
 0x6f8   : > { %3830 = vrcp.f32 %v5053_v47 }
 0x6f9   : > { %v2850_v21 = vor.u32 1.1754944e-38, %v2849_v31  ;;  %vm2848_vm6 = vcmp.eq.f32.partialorder %v2847_v26, 8.507059e+37 }
 0x6fd   : > { %v3829_v24 = vpop.eup %3828 }
 0x6fe   : > { %v2839_v7 = vmul.f32 %v3829_v24, %v2783_v3  ;;  %v5056_v23 = vpop.xlane.xlu0 %2785  ;;  %v5058_v50 = vpop.eup %3830  ;;  %vm2844_vm1 = vweird.f32 %v3829_v24 }
 0x6ff   : > { %v2525_v14 = vmul.f32 %v5058_v50, %v5053_v47  ;;  %vm5077_vm3 = vmor %vm2843_vm2, %vm2844_vm1  ;;  %vm2530_vm10 = vweird.f32 %v5058_v50 }
 0x700   : > { %v2840_v44 = vsub.f32 1.0, %v2839_v7  ;;  %vm5099_vm12 = vmor %vm2529_vm11, %vm2530_vm10 }
 0x701   : > { %v2526_v61 = vsub.f32 1.0, %v2525_v14 }
 0x702   : > { %v2841_v59 = vmul.f32 %v3829_v24, %v2840_v44 }
 0x703   : > { %v2780_v16 = vpop.xlane.xlu1 %2779  ;;  %v2527_v15 = vmul.f32 %v5058_v50, %v2526_v61 }
 0x704   : > { %3832 = vrcp.f32 %v2780_v16  ;;  %v2842_v45 = vadd.f32 %v3829_v24, %v2841_v59  ;;  %v2835_v49 = vand.u32 2147483648, %v2780_v16  ;;  %vm2829_vm5 = vweird.f32 %v2780_v16 }
 0x705   : > { %3834 = vrcp.f32 %v5056_v23  ;;  %v2528_v2 = vadd.f32 %v5058_v50, %v2527_v15  ;;  %v2833_v54 = vand.u32 2147483647, %v2780_v16  ;;  %v2535_v59 = vand.u32 2147483648, %v5053_v47 }
 0x706   : > { %v5063_v41 = vpop.xlane.xlu0 %2463  ;;  %v2846_v46 = vsel %vm5077_vm3, %v3829_v24, %v2842_v45 }
 0x707   : > { %v2851_v61 = vsel %vm2848_vm6, %v2850_v21, %v2846_v46  ;;  %vm2834_vm13 = vcmp.eq.f32.partialorder %v2833_v54, 8.507059e+37  ;;  %v2536_v21 = vor.u32 1.1754944e-38, %v2535_v59 }
 0x70a   : > { %v3833_v58 = vpop.eup %3832 }
 0x70b   : > { %v5065_v13 = vpop.eup %3834  ;;  %v2825_v38 = vmul.f32 %v3833_v58, %v2780_v16  ;;  %v5067_v52 = vpop.xlane.xlu1 %2460  ;;  %vm2830_vm4 = vweird.f32 %v3833_v58 }
 0x70c   : > { %3836 = vrcp.f32 %v5067_v52  ;;  %v2853_v35 = vmul.f32 %v5065_v13, %v5056_v23  ;;  %vm5085_vm7 = vmor %vm2829_vm5, %vm2830_vm4  ;;  %vm2543_vm0 = vweird.f32 %v5067_v52  ;;  %vm2858_vm1 = vweird.f32 %v5065_v13 }
 0x70d   : > { %v2826_v4 = vsub.f32 1.0, %v2825_v38  ;;  %3838 = vrcp.f32 %v5063_v41  ;;  %v2836_v38 = vor.u32 1.1754944e-38, %v2835_v49  ;;  %vm2857_vm4 = vweird.f32 %v5056_v23 }
 0x70e   : > { %3840 = vrcp.f32 %v5070_v1  ;;  %v2854_v56 = vsub.f32 1.0, %v2853_v35  ;;  %v5108_v31 = vpop.xlane.xlu0 %2794  ;;  %vm5149_vm10 = vmor %vm2857_vm4, %vm2858_vm1  ;;  %vm2571_vm1 = vweird.f32 %v5070_v1 }
 0x70f   : > { %v2827_v60 = vmul.f32 %v3833_v58, %v2826_v4  ;;  %v2532_v4 = vsel %vm5099_vm12, %v5058_v50, %v2528_v2  ;;  %v2547_v50 = vand.u32 2147483647, %v5067_v52 }
 0x710   : > { %v2855_v26 = vmul.f32 %v5065_v13, %v2854_v56  ;;  %v2577_v56 = vand.u32 2147483648, %v5070_v1 }
 0x711   : > { %v2828_v57 = vadd.f32 %v3833_v58, %v2827_v60  ;;  %v2911_v60 = vmul.f32 %v5009_v53, %v2851_v61  ;;  %vm2548_vm3 = vcmp.eq.f32.partialorder %v2547_v50, 8.507059e+37 }
 0x712   : > { %v3837_v55 = vpop.eup %3836 }
 0x713   : > { %v5089_v7 = vpop.eup %3838  ;;  %v2832_v14 = vsel %vm5085_vm7, %v3833_v58, %v2828_v57  ;;  %v2539_v24 = vmul.f32 %v3837_v55, %v5067_v52  ;;  %v5095_v44 = vpop.xlane.xlu1 %2788  ;;  %v2533_v58 = vand.u32 2147483647, %v5053_v47  ;;  %vm2544_vm14 = vweird.f32 %v3837_v55 }
 0x714   : > { %3842 = vrcp.f32 %v5095_v44  ;;  %v5105_v15 = vpop.eup %3840  ;;  %v2553_v35 = vmul.f32 %v5089_v7, %v5063_v41  ;;  %v2837_v20 = vsel %vm2834_vm13, %v2836_v38, %v2832_v14  ;;  %v2549_v47 = vand.u32 2147483648, %v5067_v52  ;;  %vm5127_vm2 = vmor %vm2543_vm0, %vm2544_vm14  ;;  %v3664_v38 = vld [vmem:[%s5309_s16] sm:$0xff] }
 0x715   : > { %v2540_v45 = vsub.f32 1.0, %v2539_v24  ;;  %v2910_v49 = vmul.f32 %v5024_v9, %v2837_v20  ;;  %v2567_v57 = vmul.f32 %v5105_v15, %v5070_v1  ;;  %3844 = vrcp.f32 %v5108_v31  ;;  %3055 = vmatpush.bf16.msra.mxu2 %v3664_v38 }
 0x716   : > { %vm2534_vm15 = vcmp.eq.f32.partialorder %v2533_v58, 8.507059e+37  ;;  %v2554_v3 = vsub.f32 1.0, %v2553_v35  ;;  %v2856_v24 = vadd.f32 %v5065_v13, %v2855_v26  ;;  %v2550_v61 = vor.u32 1.1754944e-38, %v2549_v47 }
 0x717   : > { %v2541_v46 = vmul.f32 %v3837_v55, %v2540_v45  ;;  %v2917_v54 = vpack.c.bf16 %v2911_v60, %v2910_v49  ;;  %v2537_v14 = vsel %vm2534_vm15, %v2536_v21, %v2532_v4  ;;  %v2568_v58 = vsub.f32 1.0, %v2567_v57 }
 0x718   : > { %v2863_v45 = vand.u32 2147483648, %v5056_v23  ;;  %v2861_v4 = vand.u32 2147483647, %v5056_v23  ;;  %v2555_v60 = vmul.f32 %v5089_v7, %v2554_v3  ;;  %v2584_v47 = vmul.f32 %v4978_v40, %v2537_v14 }
 0x719   : > { %v2542_v2 = vadd.f32 %v3837_v55, %v2541_v46  ;;  %3588 = vmatmul.msk.bf16.gmra.mxu0 %vm2395_vm9, %v2917_v54  ;;  %v2877_v46 = vand.u32 2147483648, %v5095_v44  ;;  %v2860_v23 = vsel %vm5149_vm10, %v5065_v13, %v2856_v24  ;;  %v2875_v57 = vand.u32 2147483647, %v5095_v44 }
 0x71a   : > { %v3843_v53 = vpop.eup %3842  ;;  %v2569_v50 = vmul.f32 %v5105_v15, %v2568_v58  ;;  %vm2572_vm6 = vweird.f32 %v5105_v15  ;;  %vm2862_vm7 = vcmp.eq.f32.partialorder %v2861_v4, 8.507059e+37  ;;  %vm2871_vm11 = vweird.f32 %v5095_v44 }
 0x71b   : > { %v2867_v16 = vmul.f32 %v3843_v53, %v5095_v44  ;;  %v5134_v52 = vpop.xlane.xlu1 %2791  ;;  %v2546_v59 = vsel %vm5127_vm2, %v3837_v55, %v2542_v2  ;;  %v5145_v20 = vpop.eup %3844  ;;  %vm2872_vm5 = vweird.f32 %v3843_v53  ;;  %v2864_v2 = vor.u32 1.1754944e-38, %v2863_v45  ;;  %vm2573_vm2 = vmor %vm2571_vm1, %vm2572_vm6 }
 0x71c   : > { %3846 = vrcp.f32 %v5134_v52  ;;  %v2551_v35 = vsel %vm2548_vm3, %v2550_v61, %v2546_v59  ;;  %v2895_v40 = vmul.f32 %v5145_v20, %v5108_v31  ;;  %v2556_v13 = vadd.f32 %v5089_v7, %v2555_v60  ;;  %vm2873_vm13 = vmor %vm2871_vm11, %vm2872_vm5 }
 0x71d   : > { %v2868_v26 = vsub.f32 1.0, %v2867_v16  ;;  %v2585_v49 = vmul.f32 %v5033_v6, %v2551_v35  ;;  %vm2558_vm12 = vweird.f32 %v5089_v7  ;;  %v2878_v9 = vor.u32 1.1754944e-38, %v2877_v46 }
 0x71e   : > { %v2865_v14 = vsel %vm2862_vm7, %v2864_v2, %v2860_v23  ;;  %v2563_v24 = vand.u32 2147483648, %v5063_v41  ;;  %vm2876_vm14 = vcmp.eq.f32.partialorder %v2875_v57, 8.507059e+37  ;;  %v2570_v59 = vadd.f32 %v5105_v15, %v2569_v50  ;;  %v2613_v2 = vpop.f32.mrf.mxu2 }
 0x71f   : > { %v2869_v21 = vmul.f32 %v3843_v53, %v2868_v26  ;;  %v2590_v54 = vpack.c.bf16 %v2585_v49, %v2584_v47  ;;  %vm2557_vm15 = vweird.f32 %v5063_v41  ;;  %v2561_v44 = vand.u32 2147483647, %v5063_v41 }
 0x720   : > { %vm5174_vm0 = vmor %vm2557_vm15, %vm2558_vm12  ;;  %v2896_v45 = vsub.f32 1.0, %v2895_v40  ;;  %v2912_v26 = vmul.f32 %v5017_v39, %v2865_v14  ;;  %v2575_v35 = vand.u32 2147483647, %v5070_v1  ;;  %v2564_v41 = vor.u32 1.1754944e-38, %v2563_v24 }
 0x721   : > { %v2870_v3 = vadd.f32 %v3843_v53, %v2869_v21  ;;  %3581 = vmatmul.msk.bf16.gmra.mxu2 %vm2395_vm9, %v2590_v54  ;;  %v2560_v55 = vsel %vm5174_vm0, %v5089_v7, %v2556_v13  ;;  %v2574_v47 = vsel %vm2573_vm2, %v5105_v15, %v2570_v59  ;;  %vm2562_vm3 = vcmp.eq.f32.partialorder %v2561_v44, 8.507059e+37  ;;  %v3665_v59 = vld [vmem:[%s5309_s16 + $0x8] sm:$0xff] }
 0x722   : > { %v3847_v6 = vpop.eup %3846  ;;  %v2578_v39 = vor.u32 1.1754944e-38, %v2577_v56  ;;  %v2565_v49 = vsel %vm2562_vm3, %v2564_v41, %v2560_v55  ;;  %vm2576_vm4 = vcmp.eq.f32.partialorder %v2575_v35, 8.507059e+37  ;;  %v2891_v7 = vand.u32 2147483648, %v5134_v52  ;;  %3008 = vmatpush.bf16.msra.mxu1 %v3665_v59 }
 0x723   : > { %v2874_v61 = vsel %vm2873_vm13, %v3843_v53, %v2870_v3  ;;  %v2881_v16 = vmul.f32 %v3847_v6, %v5134_v52  ;;  %vm2886_vm10 = vweird.f32 %v3847_v6  ;;  %v2586_v57 = vmul.f32 %v5026_v48, %v2565_v49 }
 0x724   : > { %v2879_v38 = vsel %vm2876_vm14, %v2878_v9, %v2874_v61  ;;  %v2579_v23 = vsel %vm2576_vm4, %v2578_v39, %v2574_v47  ;;  %vm2900_vm5 = vweird.f32 %v5145_v20  ;;  %vm2885_vm6 = vweird.f32 %v5134_v52 }
 0x725   : > { %v2882_v4 = vsub.f32 1.0, %v2881_v16  ;;  %v2913_v53 = vmul.f32 %v5042_v30, %v2879_v38  ;;  %v2897_v30 = vmul.f32 %v5145_v20, %v2896_v45  ;;  %v2889_v1 = vand.u32 2147483647, %v5134_v52  ;;  %vm2887_vm7 = vmor %vm2885_vm6, %vm2886_vm10 }
 0x726   : > { %v2905_v15 = vand.u32 2147483648, %v5108_v31  ;;  %v2587_v56 = vmul.f32 %v4987_v27, %v2579_v23  ;;  %vm2899_vm11 = vweird.f32 %v5108_v31  ;;  %v2903_v54 = vand.u32 2147483647, %v5108_v31  ;;  %v2615_v61 = vpop.f32.mrf.mxu2 }
 0x727   : > { %v2883_v60 = vmul.f32 %v3847_v6, %v2882_v4  ;;  %v2918_v46 = vpack.c.bf16 %v2913_v53, %v2912_v26  ;;  %v2898_v50 = vadd.f32 %v5145_v20, %v2897_v30  ;;  %vm2901_vm12 = vmor %vm2899_vm11, %vm2900_vm5  ;;  %v2892_v48 = vor.u32 1.1754944e-38, %v2891_v7 }
 0x728   : > { %v2591_v3 = vpack.c.bf16 %v2587_v56, %v2586_v57  ;;  %vm2890_vm13 = vcmp.eq.f32.partialorder %v2889_v1, 8.507059e+37  ;;  %v2906_v9 = vor.u32 1.1754944e-38, %v2905_v15  ;;  %vm2904_vm14 = vcmp.eq.f32.partialorder %v2903_v54, 8.507059e+37  ;;  %v5223_v57 = vld [vmem:[%s5310_s17] ss:$0 sm:$0xff] }
 0x729   : > { %v2884_v21 = vadd.f32 %v3847_v6, %v2883_v60  ;;  %3589 = vmatmul.msk.bf16.gmra.mxu0 %vm2395_vm9, %v2918_v46  ;;  %v2902_v13 = vsel %vm2901_vm12, %v5145_v20, %v2898_v50  ;;  %v2633_v31 = vpack.c.bf16 %v2615_v61, %v2613_v2  ;;  %v5228_v1 = vld [vmem:[%s5304_s11] ss:$0 sm:$0xff] }
 0x72a   : > { %v2907_v52 = vsel %vm2904_vm14, %v2906_v9, %v2902_v13 }
 0x72b   : > { %v2888_v40 = vsel %vm2887_vm7, %v3847_v6, %v2884_v21  ;;  %v2915_v24 = vmul.f32 %v5035_v63, %v2907_v52  ;;  %v1920_v21 = vadd.f32 %v4840_v33, %v4805_v10  ;;  %v1922_v10 = vadd.f32 %v4846_v29, %v4809_v51 }
 0x72c   : > { %v2893_v14 = vsel %vm2890_vm13, %v2892_v48, %v2888_v40 }
 0x72d   : > { %v2914_v27 = vmul.f32 %v5046_v28, %v2893_v14  ;;  %v1943_v15 = vadd.f32 %v5228_v1, %v1920_v21  ;;  %v1944_v13 = vadd.f32 %v5228_v1, %v1922_v10  ;;  %v1925_v14 = vadd.f32 %v4858_v32, %v4813_v22  ;;  %v5372_v10 = vld [vmem:[#allocation8_spill] sm:$0xff] }
 0x72e   : > { %v2618_v6 = vpop.f32.mrf.mxu2 }
 0x72f   : > { %v2919_v16 = vpack.c.bf16 %v2915_v24, %v2914_v27  ;;  %v1951_v54 = vadd.f32 %v1943_v15, %v4213_v5  ;;  %v1952_v51 = vadd.f32 %v1944_v13, %v4244_v42  ;;  %v1945_v24 = vadd.f32 %v5228_v1, %v1925_v14 }
 0x730   : > { %v1927_v42 = vadd.f32 %v4868_v36, %v4817_v34 }
 0x731   : > { %3582 = vmatmul.msk.bf16.gmra.mxu2 %vm2395_vm9, %v2591_v3 }
 0x732   : > { %v1946_v22 = vadd.f32 %v5228_v1, %v1927_v42 }
 0x736   : > { %v2620_v20 = vpop.f32.mrf.mxu2 }
 0x737   : > { %v2634_v44 = vpack.c.bf16 %v2620_v20, %v2618_v6 }
 0x739   : > { %3590 = vmatmul.msk.bf16.gmra.mxu0 %vm2395_vm9, %v2919_v16 }
 0x741   : > { %3603 = vmatmul.msk.bf16.vlgmr.msra.gmra.mxu2 %vm1228_vm8, %v2633_v31  ;;  %v1953_v31 = vadd.f32 %v1945_v24, %v4318_v0 }
 0x751   : > { %3604 = vmatmul.msk.bf16.gmra.mxu2 %vm1228_vm8, %v2634_v44 }
 0x765   : > { %v2957_v28 = vpop.f32.mrf.mxu0 }
 0x76d   : > { %v2959_v38 = vpop.f32.mrf.mxu0 }
 0x76e   : > { %v2977_v63 = vpack.c.bf16 %v2959_v38, %v2957_v28  ;;  %v1954_v28 = vadd.f32 %v1946_v22, %v4310_v25 }
 0x770   : > { %3595 = vmatmul.msk.bf16.vlgmr.msra.gmra.mxu1 %vm1228_vm8, %v2977_v63 }
 0x796   : > { %v2962_v58 = vpop.f32.mrf.mxu0 }
 0x79e   : > { %v2964_v45 = vpop.f32.mrf.mxu0 }
 0x79f   : > { %v2978_v4 = vpack.c.bf16 %v2964_v45, %v2962_v58  ;;  %v1955_v58 = vadd.f32 %v4825_v12, %v4352_v8  ;;  %v5367_v12 = vld [vmem:[#allocation9_spill] sm:$0xff] }
 0x7a1   : > { %3596 = vmatmul.msk.bf16.gmra.mxu1 %vm1228_vm8, %v2978_v4 }
 0x7a4   : > { %v2623_v26 = vpop.f32.mrf.mxu2 }
 0x7a6   : > { %v2967_v53 = vpop.f32.mrf.mxu0 }
 0x7ac   : > { %v2625_v35 = vpop.f32.mrf.mxu2 }
 0x7ad   : > { %v2635_v55 = vpack.c.bf16 %v2625_v35, %v2623_v26  ;;  %v1956_v35 = vadd.f32 %v4829_v11, %v4355_v17 }
 0x7ae   : > { %v2969_v41 = vpop.f32.mrf.mxu0 }
 0x7af   : > { %3605 = vmatmul.msk.bf16.gmra.mxu2 %vm1228_vm8, %v2635_v55  ;;  %v2979_v60 = vpack.c.bf16 %v2969_v41, %v2967_v53  ;;  %v5366_v55 = vld [vmem:[#allocation5_spill] sm:$0xff] }
 0x7b1   : > { %3597 = vmatmul.msk.bf16.gmra.mxu1 %vm1228_vm8, %v2979_v60 }
 0x7b4   : > { %v2628_v46 = vpop.f32.mrf.mxu2 }
 0x7b6   : > { %v2972_v47 = vpop.f32.mrf.mxu0 }
 0x7bc   : > { %v2630_v39 = vpop.f32.mrf.mxu2 }
 0x7bd   : > { %v2636_v30 = vpack.c.bf16 %v2630_v39, %v2628_v46  ;;  %v5368_v39 = vld [vmem:[#allocation11_spill] sm:$0xff] }
 0x7be   : > { %v2974_v49 = vpop.f32.mrf.mxu0 }
 0x7bf   : > { %3606 = vmatmul.msk.bf16.gmra.mxu2 %vm1228_vm8, %v2636_v30  ;;  %v2980_v23 = vpack.c.bf16 %v2974_v49, %v2972_v47  ;;  %v1957_v30 = vadd.f32 %v5368_v39, %v5367_v12  ;;  %v5369_v49 = vld [vmem:[#allocation12_spill] sm:$0xff] }
 0x7c1   : > { %3598 = vmatmul.msk.bf16.gmra.mxu1 %vm1228_vm8, %v2980_v23  ;;  %v5370_v23 = vld [vmem:[#allocation10_spill] sm:$0xff] }
 0x7c2   : > { %v1937_v21 = vadd.f32 %v5370_v23, %v5369_v49 }
 0x7c4   : > { %v3057_v7 = vpop.f32.mrf.mxu2 }
 0x7cc   : > { %v3059_v48 = vpop.f32.mrf.mxu2 }
 0x7d4   : > { %v3062_v52 = vpop.f32.mrf.mxu2 }
 0x7dc   : > { %v3064_v20 = vpop.f32.mrf.mxu2 }
 0x7ed   : > { %v3010_v50 = vpop.f32.mrf.mxu1 }
 0x7ee   : > { %v3058_v56 = vadd.f32 %v3057_v7, %v3010_v50  ;;  %v5371_v7 = vld [vmem:[#allocation6_spill] sm:$0xff] }
 0x7f0   : > { %v3081_v2 = vadd.f32 %v5223_v57, %v3058_v56  ;;  %v1950_v56 = vadd.f32 %v5228_v1, %v1937_v21 }
 0x7f2   : > { %v3089_v33 = vadd.f32 %v3081_v2, %v4222_v19 }
 0x7f4   : > { %v3097_v40 = vadd.f32 %v3089_v33, %v1951_v54  ;;  %v1958_v33 = vadd.f32 %v1950_v56, %v5372_v10 }
 0x7f5   : > { %v3012_v3 = vpop.f32.mrf.mxu1 }
 0x7f6   : > { %3105 = vst [vmem:[%s5240_s23] sm:$0xff] %v3097_v40  ;;  %v3060_v9 = vadd.f32 %v3059_v48, %v3012_v3  ;;  %v5373_v40 = vld [vmem:[#allocation7_spill] sm:$0xff] }
 0x7f8   : > { %v3082_v5 = vadd.f32 %v5223_v57, %v3060_v9 }
 0x7fa   : > { %v3090_v19 = vadd.f32 %v3082_v5, %v4247_v43 }
 0x7fc   : > { %v3098_v29 = vadd.f32 %v3090_v19, %v1952_v51 }
 0x7fe   : > { %3106 = vst [vmem:[%s5240_s23 + $0x8] sm:$0xff] %v3098_v29 }
 0x81e   : > { %v3015_v27 = vpop.f32.mrf.mxu1 }
 0x81f   : > { %v3063_v61 = vadd.f32 %v3062_v52, %v3015_v27 }
 0x821   : > { %v3083_v16 = vadd.f32 %v5223_v57, %v3063_v61 }
 0x823   : > { %v3091_v43 = vadd.f32 %v3083_v16, %v4285_v62 }
 0x825   : > { %v3099_v6 = vadd.f32 %v3091_v43, %v1953_v31 }
 0x826   : > { %v3017_v59 = vpop.f32.mrf.mxu1 }
 0x827   : > { %3107 = vst [vmem:[%s5240_s23 + $0x10] sm:$0xff] %v3099_v6  ;;  %v3065_v32 = vadd.f32 %v3064_v20, %v3017_v59 }
 0x829   : > { %v3084_v44 = vadd.f32 %v5223_v57, %v3065_v32 }
 0x82b   : > { %v3092_v38 = vadd.f32 %v3084_v44, %v4298_v18 }
 0x82d   : > { %v3100_v0 = vadd.f32 %v3092_v38, %v1954_v28 }
 0x82e   : > { %v3020_v63 = vpop.f32.mrf.mxu1 }
 0x82f   : > { %3108 = vst [vmem:[%s5240_s23 + $0x18] sm:$0xff] %v3100_v0 }
 0x832   : > { %v3067_v34 = vpop.f32.mrf.mxu2 }
 0x833   : > { %v3068_v62 = vadd.f32 %v3067_v34, %v3020_v63 }
 0x835   : > { %v3085_v36 = vadd.f32 %v5223_v57, %v3068_v62 }
 0x836   : > { %v3022_v4 = vpop.f32.mrf.mxu1 }
 0x837   : > { %v3093_v45 = vadd.f32 %v3085_v36, %v4321_v37 }
 0x839   : > { %v3101_v26 = vadd.f32 %v3093_v45, %v1955_v58 }
 0x83a   : > { %v3069_v53 = vpop.f32.mrf.mxu2 }
 0x83b   : > { %3109 = vst [vmem:[%s5240_s23 + $0x20] sm:$0xff] %v3101_v26  ;;  %v3070_v25 = vadd.f32 %v3069_v53, %v3022_v4 }
 0x83d   : > { %v3086_v18 = vadd.f32 %v5223_v57, %v3070_v25 }
 0x83e   : > { %v3025_v60 = vpop.f32.mrf.mxu1 }
 0x83f   : > { %v3094_v41 = vadd.f32 %v3086_v18, %v5366_v55 }
 0x841   : > { %v3102_v46 = vadd.f32 %v3094_v41, %v1956_v35 }
 0x842   : > { %v3072_v47 = vpop.f32.mrf.mxu2 }
 0x843   : > { %3110 = vst [vmem:[%s5240_s23 + $0x28] sm:$0xff] %v3102_v46  ;;  %v3073_v8 = vadd.f32 %v3072_v47, %v3025_v60 }
 0x845   : > { %v3087_v37 = vadd.f32 %v5223_v57, %v3073_v8 }
 0x846   : > { %v3027_v17 = vpop.f32.mrf.mxu1 }
 0x847   : > { %v3095_v50 = vadd.f32 %v3087_v37, %v5371_v7 }
 0x849   : > { %v3103_v15 = vadd.f32 %v3095_v50, %v1957_v30 }
 0x84a   : > { %v3074_v11 = vpop.f32.mrf.mxu2 }
 0x84b   : > { %3111 = vst [vmem:[%s5240_s23 + $0x30] sm:$0xff] %v3103_v15  ;;  %v3075_v2 = vadd.f32 %v3074_v11, %v3027_v17 }
 0x84d   : > { %v3088_v54 = vadd.f32 %v5223_v57, %v3075_v2 }
 0x84f   : > { %v3096_v48 = vadd.f32 %v3088_v54, %v5373_v40 }
 0x851   : > { %v3104_v3 = vadd.f32 %v3096_v48, %v1958_v33 }
 0x853   : > { %3112 = vst [vmem:[%s5240_s23 + $0x38] sm:$0xff] %v3104_v3 }
 0x854 PF: > { %s5374_s0 = sld [smem:[#allocation3_spill]] }
 0x855   : > { %s5375_s27 = sld [smem:[#allocation2_spill]] }
 0x856   : > { %s5376_s28 = sld [smem:[#allocation4_spill]] }
 0x85a   : > { %s28_s29 = sadd.s32 1, %s5374_s0  }
 0x85b   : > { %p25_p5 = scmp.ge.s32.totalorder %s28_s29, 4  }
 0x85d   :  { %27 = sbr.rel (!%p25_p5) target bundleno = 4 (0x4), region = 145 }

// kernel: query_transformer_block.5
= control target key start
LH: loop header
LB: loop body
LE: loop exit
PB: predicated region body
PF: predicated region fallthrough
CT: control target
= control target key end

     0   :  { %s3919_s24 = smov 0   ;;  %s5131_s0 = inlined_call_operand.vmem [shape: f32[2,64,128], index: 0, kind: input, shape index: {}]   ;;  %s5132_s1 = inlined_call_operand.vmem [shape: f32[2,64,128], index: 1, kind: input, shape index: {}]   ;;  %s5133_s2 = inlined_call_operand.vmem [shape: bf16[9,128,128], index: 2, kind: input, shape index: {}]   ;;  %s5134_s3 = inlined_call_operand.vmem [shape: f32[1,128], index: 3, kind: input, shape index: {}]   ;;  %s5135_s4 = inlined_call_operand.vmem [shape: bf16[9,128,128], index: 4, kind: input, shape index: {}]   ;;  %s5136_s5 = inlined_call_operand.vmem [shape: f32[1,128], index: 5, kind: input, shape index: {}]   ;;  %s5137_s6 = inlined_call_operand.vmem [shape: f32[128,128], index: 6, kind: input, shape index: {}]   ;;  %s5138_s7 = inlined_call_operand.vmem [shape: f32[2,64,128], index: 7, kind: output, shape index: {}]  }
   0x1 LB: > { %s2829_s25 = sadd.s32 4294967295, %s3876_s24   ;;  %p2833_p0 = scmp.ge.s32.totalorder %s3876_s24, 1  ;;  %s3876_s24 = sphi %s3919_s24, %s17_s24  }
   0x2   : > { %p247_p1 = scmp.lt.s32.totalorder %s3876_s24, 3 }
   0x4   : > { %p248_p2 = pnand %p2833_p0, %p247_p1 }
   0x6   : > { %251 = sbr.rel (%p248_p2) target bundleno = 794 (0x31a), region = 48 }
   0xb   : > { %v3701_v0 = vld [vmem:[%s5133_s2 + $0x38] sm:$0xff]  ;;  %p284_p3 = scmp.lt.s32.totalorder %s2829_s25, 1  ;;  %v3878_v2 = vmov 0.0   ;;  %v3700_v3 = vld [vmem:[%s5133_s2 + $0x30] sm:$0xff]  ;;  %v303_v5 = vlaneseq  ;;  %v3699_v6 = vld [vmem:[%s5133_s2 + $0x28] sm:$0xff] }
   0xc   : > { %v3709_v1 = vld [vmem:[%s5133_s2 + $0x78] sm:$0xff]  ;;  %299 = vst [vmem:[#allocation2] sm:$0xff] %v3878_v2  ;;  %3838 = vmatpush.bf16.msra.mxu3 %v3701_v0  ;;  %v3708_v4 = vld [vmem:[%s5133_s2 + $0x70] sm:$0xff]  ;;  %585 = vmatpush.bf16.msra.mxu0 %v3701_v0  ;;  %v3707_v7 = vld [vmem:[%s5133_s2 + $0x68] sm:$0xff] }
   0xd   : > { %3846 = vmatpush.bf16.msra.mxu2 %v3709_v1  ;;  %s5178_s25 = smov (!%p284_p3, %s2829_s25), 1  ;;  %301 = vst [vmem:[#allocation2 + $0x49] sm:$0xff] %v3878_v2  ;;  %699 = vmatpush.bf16.msra.mxu1 %v3709_v1  ;;  %v3966_v11 = vshrl.u32 %v303_v5, 7  ;;  %v3698_v20 = vld [vmem:[%s5133_s2 + $0x20] sm:$0xff]  ;;  %v3697_v28 = vld [vmem:[%s5133_s2 + $0x18] sm:$0xff]  ;;  %v3696_v47 = vld [vmem:[%s5133_s2 + $0x10] sm:$0xff] }
   0xe   : > { %300 = vst [vmem:[#allocation2 + $0x8] sm:$0x1] %v3878_v2  ;;  %s3942_s11 = sshll.u32 %s5178_s25, 6  ;;  %v3706_v21 = vld [vmem:[%s5133_s2 + $0x60] sm:$0xff]  ;;  %v3705_v34 = vld [vmem:[%s5133_s2 + $0x58] sm:$0xff]  ;;  %v3704_v48 = vld [vmem:[%s5133_s2 + $0x50] sm:$0xff] }
   0xf   : > { %s3954_s18 = scalar_lea.vmem %s5131_s0, %s3942_s11  ;;  %s3960_s21 = scalar_lea.vmem %s5132_s1, %s3942_s11  ;;  %302 = vst [vmem:[#allocation2 + $0x51] sm:$0x1] %v3878_v2  ;;  %v3992_v24 = vadd.s32 32, %v3966_v11  ;;  %v3995_v25 = vadd.s32 40, %v3966_v11  ;;  %v4007_v29 = vadd.s32 8, %v3966_v11  ;;  %v316_v42 = vand.u32 7, %v3966_v11 }
  0x10   : > { %3839 = vmatpush.bf16.msra.mxu3 %v3700_v3  ;;  %v458_v8 = vld [vmem:[%s3954_s18 + $0x10] sm:$0xff]  ;;  %v459_v9 = vld [vmem:[%s3954_s18 + $0x18] sm:$0xff]  ;;  %v460_v10 = vld [vmem:[%s3954_s18 + $0x20] sm:$0xff]  ;;  %586 = vmatpush.bf16.msra.mxu0 %v3700_v3  ;;  %v4101_v3 = vadd.s32 48, %v3966_v11  ;;  %s298_s30 = scalar_lea.vmem %s5138_s7, %s3942_s11 }
  0x11   : > { %3847 = vmatpush.bf16.msra.mxu2 %v3708_v4  ;;  %700 = vmatpush.bf16.msra.mxu1 %v3708_v4  ;;  %v466_v12 = vld [vmem:[%s3960_s21 + $0x10] sm:$0xff]  ;;  %v467_v13 = vld [vmem:[%s3960_s21 + $0x18] sm:$0xff]  ;;  %v468_v14 = vld [vmem:[%s3960_s21 + $0x20] sm:$0xff]  ;;  %v344_v38 = vand.u32 7, %v3992_v24  ;;  %v351_v39 = vand.u32 7, %v3995_v25  ;;  %v323_v43 = vand.u32 7, %v4007_v29 }
  0x12   : > { %v3971_v15 = vadd.f32 %v466_v12, %v458_v8  ;;  %v3973_v16 = vadd.f32 %v467_v13, %v459_v9  ;;  %v456_v17 = vld [vmem:[%s3954_s18] sm:$0xff]  ;;  %v3977_v19 = vadd.f32 %v468_v14, %v460_v10  ;;  %v461_v31 = vld [vmem:[%s3954_s18 + $0x28] sm:$0xff]  ;;  %v462_v32 = vld [vmem:[%s3954_s18 + $0x30] sm:$0xff]  ;;  %vm408_vm2 = vcmp.ge.s32.totalorder %v316_v42, 1 }
  0x13   : > { %v464_v18 = vld [vmem:[%s3960_s21] sm:$0xff]  ;;  %v469_v33 = vld [vmem:[%s3960_s21 + $0x28] sm:$0xff]  ;;  %v470_v35 = vld [vmem:[%s3960_s21 + $0x30] sm:$0xff]  ;;  %vm412_vm0 = vcmp.ge.s32.totalorder %v344_v38, 1  ;;  %vm413_vm1 = vcmp.ge.s32.totalorder %v351_v39, 1  ;;  %vm409_vm3 = vcmp.ge.s32.totalorder %v323_v43, 1 }
  0x14   : > { %5154 = vst [vmem:[#allocation3_spill] sm:$0xff] %v3971_v15  ;;  %3840 = vmatpush.bf16.msra.mxu3 %v3699_v6  ;;  %v3986_v22 = vmax.f32 %v3971_v15, 0.0  ;;  %v3989_v23 = vmax.f32 %v3973_v16, 0.0  ;;  %587 = vmatpush.bf16.msra.mxu0 %v3699_v6  ;;  %v3998_v26 = vmax.f32 %v3977_v19, 0.0  ;;  %v4000_v27 = vadd.f32 %v464_v18, %v456_v17  ;;  %v457_v37 = vld [vmem:[%s3954_s18 + $0x8] sm:$0xff]  ;;  %v3694_v61 = vld [vmem:[%s5133_s2] sm:$0xff] }
  0x15   : > { %5155 = vst [vmem:[#allocation4_spill] sm:$0xff] %v3973_v16  ;;  %3848 = vmatpush.bf16.msra.mxu2 %v3707_v7  ;;  %701 = vmatpush.bf16.msra.mxu1 %v3707_v7  ;;  %v4021_v36 = vadd.f32 %v469_v33, %v461_v31  ;;  %v4027_v40 = vadd.f32 %v470_v35, %v462_v32  ;;  %v465_v41 = vld [vmem:[%s3960_s21 + $0x8] sm:$0xff]  ;;  %v4067_v52 = vsel %vm412_vm0, 1.0, %v3878_v2  ;;  %v4070_v53 = vsel %vm413_vm1, 1.0, %v3878_v2  ;;  %v3702_v62 = vld [vmem:[%s5133_s2 + $0x40] sm:$0xff]  ;;  %v3717_v1 = vld [vmem:[%s5133_s2 + $0xb8] sm:$0xff] }
  0x16   : > { %5156 = vst [vmem:[#allocation5_spill] sm:$0xff] %v3977_v19  ;;  %v4011_v30 = vmax.f32 %v4000_v27, 0.0  ;;  %v4035_v45 = vadd.f32 %v465_v41, %v457_v37  ;;  %v3695_v50 = vld [vmem:[%s5133_s2 + $0x8] sm:$0xff]  ;;  %v4077_v56 = vsel %vm408_vm2, 1.0, %v3878_v2  ;;  %v4080_v57 = vsel %vm409_vm3, 1.0, %v3878_v2  ;;  %v3725_v5 = vld [vmem:[%s5133_s2 + $0xf8] sm:$0xff] }
  0x17   : > { %5157 = vst [vmem:[#allocation6_spill] sm:$0xff] %v4000_v27  ;;  %v4033_v44 = vmax.f32 %v4021_v36, 0.0  ;;  %v4038_v46 = vmax.f32 %v4027_v40, 0.0  ;;  %v3703_v51 = vld [vmem:[%s5133_s2 + $0x48] sm:$0xff]  ;;  %v509_v63 = vmul.f32 0.0, %v4077_v56  ;;  %v4104_v4 = vadd.s32 56, %v3966_v11 }
  0x18   : > { %490 = vst [vmem:[#allocation2 + $0x19] sm:$0xff] %v3986_v22  ;;  %3841 = vmatpush.bf16.msra.mxu3 %v3698_v20  ;;  %588 = vmatpush.bf16.msra.mxu0 %v3698_v20  ;;  %v4048_v49 = vmax.f32 %v4035_v45, 0.0  ;;  %v622_v6 = vld [vmem:[#allocation2 + $0x1] sm:$0xff]  ;;  %v4110_v7 = vadd.s32 16, %v3966_v11  ;;  %v4113_v8 = vadd.s32 24, %v3966_v11  ;;  %v4117_v10 = vpack.c.bf16 %v3998_v26, %v3989_v23  ;;  %v3741_v13 = vld [vmem:[%s5133_s2 + $0x178] sm:$0xff] }
  0x19   : > { %491 = vst [vmem:[#allocation2 + $0x21] sm:$0xff] %v3989_v23  ;;  %3849 = vmatpush.bf16.msra.mxu2 %v3706_v21  ;;  %702 = vmatpush.bf16.msra.mxu1 %v3706_v21  ;;  %v3733_v14 = vld [vmem:[%s5133_s2 + $0x138] sm:$0xff]  ;;  %v630_v17 = vpack.c.bf16 %v4011_v30, %v622_v6  ;;  %v358_v18 = vand.u32 7, %v4101_v3  ;;  %v5139_v20 = vand.u32 7, %v4104_v4  ;;  %v3716_v21 = vld [vmem:[%s5133_s2 + $0xb0] sm:$0xff]  ;;  %v3715_v35 = vld [vmem:[%s5133_s2 + $0xa8] sm:$0xff] }
  0x1a   : > { %492 = vst [vmem:[#allocation2 + $0x29] sm:$0xff] %v3998_v26  ;;  %v330_v31 = vand.u32 7, %v4110_v7  ;;  %v337_v32 = vand.u32 7, %v4113_v8  ;;  %v3740_v33 = vld [vmem:[%s5133_s2 + $0x170] sm:$0xff]  ;;  %v3723_v37 = vld [vmem:[%s5133_s2 + $0xe8] sm:$0xff]  ;;  %vm432_vm8 = vcmp.le.s32.totalorder %v316_v42, 6 }
  0x1b   : > { %5158 = vst [vmem:[#allocation7_spill] sm:$0xff] %v4021_v36  ;;  %vm414_vm4 = vcmp.ge.s32.totalorder %v358_v18, 1  ;;  %vm415_vm5 = vcmp.ge.s32.totalorder %v5139_v20, 1  ;;  %vm433_vm9 = vcmp.le.s32.totalorder %v323_v43, 6  ;;  %v3735_v29 = vld [vmem:[%s5133_s2 + $0x148] sm:$0xff]  ;;  %vm436_vm12 = vcmp.le.s32.totalorder %v344_v38, 6 }
  0x1c   : > { %488 = vst [vmem:[#allocation2 + $0x9] sm:$0xff] %v4011_v30  ;;  %3842 = vmatpush.bf16.msra.mxu3 %v3697_v28  ;;  %589 = vmatpush.bf16.msra.mxu0 %v3697_v28  ;;  %v3724_v28 = vld [vmem:[%s5133_s2 + $0xf0] sm:$0xff]  ;;  %vm410_vm6 = vcmp.ge.s32.totalorder %v330_v31, 1  ;;  %vm411_vm7 = vcmp.ge.s32.totalorder %v337_v32, 1  ;;  %v4158_v41 = vsel %vm414_vm4, 1.0, %v3878_v2  ;;  %v3727_v43 = vld [vmem:[%s5133_s2 + $0x108] sm:$0xff] }
  0x1d   : > { %5159 = vst [vmem:[#allocation8_spill] sm:$0xff] %v4027_v40  ;;  %3850 = vmatpush.bf16.msra.mxu2 %v3705_v34  ;;  %703 = vmatpush.bf16.msra.mxu1 %v3705_v34  ;;  %v3732_v34 = vld [vmem:[%s5133_s2 + $0x130] sm:$0xff]  ;;  %vm434_vm10 = vcmp.le.s32.totalorder %v330_v31, 6  ;;  %vm435_vm11 = vcmp.le.s32.totalorder %v337_v32, 6  ;;  %v3746_v32 = vld [vmem:[%s5133_s2 + $0x1a0] sm:$0xff]  ;;  %vm437_vm13 = vcmp.le.s32.totalorder %v351_v39, 6 }
  0x1e   : > { %5160 = vst [vmem:[#allocation9_spill] sm:$0xff] %v4035_v45  ;;  %v4328_v7 = vsel %vm434_vm10, 1.0, %v3878_v2  ;;  %v4331_v8 = vsel %vm435_vm11, 1.0, %v3878_v2  ;;  %v3742_v25 = vld [vmem:[%s5133_s2 + $0x180] sm:$0xff]  ;;  %vm438_vm14 = vcmp.le.s32.totalorder %v358_v18, 6  ;;  %v3792_v36 = vld [vmem:[%s5135_s4 + $0xd0] sm:$0xff] }
  0x1f   : > { %493 = vst [vmem:[#allocation2 + $0x31] sm:$0xff] %v4033_v44  ;;  %v3750_v38 = vld [vmem:[%s5133_s2 + $0x1c0] sm:$0xff]  ;;  %v3783_v19 = vld [vmem:[%s5135_s4 + $0x88] sm:$0xff] }
  0x20   : > { %494 = vst [vmem:[#allocation2 + $0x39] sm:$0xff] %v4038_v46  ;;  %3843 = vmatpush.bf16.msra.mxu3 %v3696_v47  ;;  %v4072_v54 = vld [vmem:[#allocation2 + $0x20] sm:$0xff]  ;;  %590 = vmatpush.bf16.msra.mxu0 %v3696_v47  ;;  %v4161_v47 = vsel %vm415_vm5, 1.0, %v3878_v2  ;;  %v3791_v16 = vld [vmem:[%s5135_s4 + $0xc8] sm:$0xff] }
  0x21   : > { %489 = vst [vmem:[#allocation2 + $0x11] sm:$0xff] %v4048_v49  ;;  %3851 = vmatpush.bf16.msra.mxu2 %v3704_v48  ;;  %v4074_v55 = vld [vmem:[#allocation2 + $0x28] sm:$0xff]  ;;  %704 = vmatpush.bf16.msra.mxu1 %v3704_v48  ;;  %v513_v59 = vmul.f32 %v4067_v52, %v4072_v54  ;;  %v4333_v31 = vld [vmem:[#allocation2 + $0x1a] sm:$0xff] }
  0x22   : > { %v514_v60 = vmul.f32 %v4070_v53, %v4074_v55  ;;  %5161 = vst [vmem:[#allocation10_spill] sm:$0xff] %v4161_v47 }
  0x23   : > { %v4082_v58 = vld [vmem:[#allocation2 + $0x8] sm:$0xff] }
  0x24   : > { %3844 = vmatpush.bf16.msra.mxu3 %v3695_v50  ;;  %v510_v0 = vmul.f32 %v4080_v57, %v4082_v58  ;;  %591 = vmatpush.bf16.msra.mxu0 %v3695_v50  ;;  %v519_v9 = vpack.c.bf16 %v514_v60, %v513_v59  ;;  %v3731_v59 = vld [vmem:[%s5133_s2 + $0x128] sm:$0xff]  ;;  %v4174_v60 = vsel %vm410_vm6, 1.0, %v3878_v2 }
  0x25   : > { %3852 = vmatpush.bf16.msra.mxu2 %v3703_v51  ;;  %705 = vmatpush.bf16.msra.mxu1 %v3703_v51  ;;  %v3739_v51 = vld [vmem:[%s5133_s2 + $0x168] sm:$0xff] }
  0x26   : > { %v517_v12 = vpack.c.bf16 %v510_v0, %v509_v63  ;;  %v4163_v48 = vld [vmem:[#allocation2 + $0x30] sm:$0xff]  ;;  %v3714_v0 = vld [vmem:[%s5133_s2 + $0xa0] sm:$0xff] }
  0x27   : > { %v4165_v50 = vld [vmem:[#allocation2 + $0x38] sm:$0xff]  ;;  %v736_v11 = vld [vmem:[#allocation2 + $0x2] sm:$0xff]  ;;  %v741_v24 = vld [vmem:[#allocation2 + $0x2a] sm:$0xff] }
  0x28   : > { %3845 = vmatpush.bf16.msra.mxu3 %v3694_v61  ;;  %592 = vmatpush.bf16.msra.mxu0 %v3694_v61  ;;  %v4177_v61 = vsel %vm411_vm7, 1.0, %v3878_v2  ;;  %v4181_v63 = vld [vmem:[#allocation2 + $0x18] sm:$0xff]  ;;  %v516_v6 = vmul.f32 %v4161_v47, %v4165_v50  ;;  %v737_v42 = vld [vmem:[#allocation2 + $0xa] sm:$0xff] }
  0x29   : > { %3853 = vmatpush.bf16.msra.mxu2 %v3702_v62  ;;  %706 = vmatpush.bf16.msra.mxu1 %v3702_v62  ;;  %v4179_v62 = vld [vmem:[#allocation2 + $0x10] sm:$0xff] }
  0x2a   : > { %v1099_v39 = vld [vmem:[#allocation2 + $0x32] sm:$0xff] }
  0x2b   : > { %603 = vmatmul.bf16.vlgmr.msra.gmra.mxu3 %v519_v9  ;;  %593 = vmatmul.bf16.vlgmr.msra.gmra.mxu0 %v517_v12  ;;  %v511_v9 = vmul.f32 %v4174_v60, %v4179_v62  ;;  %v512_v12 = vmul.f32 %v4177_v61, %v4181_v63 }
  0x2c   : > { %943 = vmatpush.bf16.msrb.mxu3 %v3725_v5  ;;  %717 = vmatmul.bf16.vlgmr.msra.gmra.mxu2 %v4117_v10  ;;  %v515_v5 = vmul.f32 %v4158_v41, %v4163_v48 }
  0x2d   : > { %821 = vmatpush.bf16.msrb.mxu2 %v3717_v1  ;;  %1179 = vmatpush.bf16.msrb.mxu1 %v3741_v13  ;;  %v3722_v1 = vld [vmem:[%s5133_s2 + $0xe0] sm:$0xff] }
  0x2e   : > { %1057 = vmatpush.bf16.msrb.mxu0 %v3733_v14  ;;  %707 = vmatmul.bf16.vlgmr.msra.gmra.mxu1 %v630_v17  ;;  %v3738_v13 = vld [vmem:[%s5133_s2 + $0x160] sm:$0xff]  ;;  %v3713_v17 = vld [vmem:[%s5133_s2 + $0x98] sm:$0xff] }
  0x2f   : > { %v3730_v14 = vld [vmem:[%s5133_s2 + $0x120] sm:$0xff] }
  0x30   : > { %944 = vmatpush.bf16.msrb.mxu3 %v3724_v28  ;;  %v520_v28 = vpack.c.bf16 %v516_v6, %v515_v5  ;;  %v3736_v5 = vld [vmem:[%s5133_s2 + $0x150] sm:$0xff] }
  0x31   : > { %822 = vmatpush.bf16.msrb.mxu2 %v3716_v21  ;;  %1180 = vmatpush.bf16.msrb.mxu1 %v3740_v33  ;;  %v3721_v21 = vld [vmem:[%s5133_s2 + $0xd8] sm:$0xff]  ;;  %v4211_v33 = vpack.c.bf16 %v4038_v46, %v4033_v44  ;;  %v3728_v6 = vld [vmem:[%s5133_s2 + $0x110] sm:$0xff] }
  0x32   : > { %1058 = vmatpush.bf16.msrb.mxu0 %v3732_v34  ;;  %v518_v34 = vpack.c.bf16 %v512_v12, %v511_v9  ;;  %v3711_v9 = vld [vmem:[%s5133_s2 + $0x88] sm:$0xff] }
  0x33   : > { %v3719_v12 = vld [vmem:[%s5133_s2 + $0xc8] sm:$0xff] }
  0x34   : > { %945 = vmatpush.bf16.msrb.mxu3 %v3723_v37  ;;  %v3729_v37 = vld [vmem:[%s5133_s2 + $0x118] sm:$0xff] }
  0x35   : > { %823 = vmatpush.bf16.msrb.mxu2 %v3715_v35  ;;  %1181 = vmatpush.bf16.msrb.mxu1 %v3739_v51  ;;  %v3737_v35 = vld [vmem:[%s5133_s2 + $0x158] sm:$0xff]  ;;  %v4221_v51 = vpack.c.bf16 %v3986_v22, %v4048_v49 }
  0x36   : > { %1059 = vmatpush.bf16.msrb.mxu0 %v3731_v59  ;;  %v3712_v59 = vld [vmem:[%s5133_s2 + $0x90] sm:$0xff] }
  0x38   : > { %946 = vmatpush.bf16.msrb.mxu3 %v3722_v1  ;;  %v989_v1 = vpack.c.bf16 %v3989_v23, %v3986_v22  ;;  %v3751_v22 = vld [vmem:[%s5133_s2 + $0x1c8] sm:$0xff] }
  0x39   : > { %824 = vmatpush.bf16.msrb.mxu2 %v3714_v0  ;;  %1182 = vmatpush.bf16.msrb.mxu1 %v3738_v13  ;;  %v3720_v0 = vld [vmem:[%s5133_s2 + $0xd0] sm:$0xff]  ;;  %v4250_v13 = vsel %vm432_vm8, 1.0, %v3878_v2  ;;  %v3759_v23 = vld [vmem:[%s5133_s2 + $0x208] sm:$0xff] }
  0x3a   : > { %1060 = vmatpush.bf16.msrb.mxu0 %v3730_v14  ;;  %v4253_v14 = vsel %vm433_vm9, 1.0, %v3878_v2 }
  0x3b   : > { %608 = vmatmul.bf16.gmra.mxu3 %v520_v28  ;;  %598 = vmatmul.bf16.gmra.mxu0 %v518_v34  ;;  %v4267_v28 = vld [vmem:[#allocation2 + $0x12] sm:$0xff]  ;;  %v744_v34 = vmul.f32 %v4250_v13, %v736_v11 }
  0x3c   : > { %947 = vmatpush.bf16.msrb.mxu3 %v3721_v21  ;;  %722 = vmatmul.bf16.gmra.mxu2 %v4211_v33  ;;  %v3718_v21 = vld [vmem:[%s5133_s2 + $0xc0] sm:$0xff]  ;;  %v3765_v11 = vld [vmem:[%s5133_s2 + $0x238] sm:$0xff] }
  0x3d   : > { %825 = vmatpush.bf16.msrb.mxu2 %v3713_v17  ;;  %1183 = vmatpush.bf16.msrb.mxu1 %v3737_v35  ;;  %v3710_v17 = vld [vmem:[%s5133_s2 + $0x80] sm:$0xff]  ;;  %v745_v35 = vmul.f32 %v4253_v14, %v737_v42 }
  0x3e   : > { %1061 = vmatpush.bf16.msrb.mxu0 %v3729_v37  ;;  %712 = vmatmul.bf16.gmra.mxu1 %v4221_v51  ;;  %v866_v37 = vmul.f32 %v4077_v56, %v4082_v58  ;;  %v3726_v58 = vld [vmem:[%s5133_s2 + $0x100] sm:$0xff] }
  0x40   : > { %948 = vmatpush.bf16.msrb.mxu3 %v3720_v0  ;;  %v3749_v0 = vld [vmem:[%s5133_s2 + $0x1b8] sm:$0xff] }
  0x41   : > { %826 = vmatpush.bf16.msrb.mxu2 %v3712_v59  ;;  %1184 = vmatpush.bf16.msrb.mxu1 %v3736_v5  ;;  %v867_v59 = vmul.f32 %v4080_v57, %v4179_v62  ;;  %v3757_v5 = vld [vmem:[%s5133_s2 + $0x1f8] sm:$0xff] }
  0x42   : > { %1062 = vmatpush.bf16.msrb.mxu0 %v3728_v6  ;;  %v3734_v6 = vld [vmem:[%s5133_s2 + $0x140] sm:$0xff] }
  0x43   : > { %v874_v20 = vpack.c.bf16 %v867_v59, %v866_v37  ;;  %v471_v37 = vld [vmem:[%s3960_s21 + $0x38] sm:$0xff]  ;;  %v3747_v59 = vld [vmem:[%s5133_s2 + $0x1a8] sm:$0xff] }
  0x44   : > { %949 = vmatpush.bf16.msrb.mxu3 %v3719_v12  ;;  %v1103_v12 = vmul.f32 %v4253_v14, %v4267_v28 }
  0x45   : > { %827 = vmatpush.bf16.msrb.mxu2 %v3711_v9  ;;  %1185 = vmatpush.bf16.msrb.mxu1 %v3735_v29  ;;  %v1102_v9 = vmul.f32 %v4250_v13, %v737_v42  ;;  %v752_v29 = vpack.c.bf16 %v745_v35, %v744_v34  ;;  %v3748_v42 = vld [vmem:[%s5133_s2 + $0x1b0] sm:$0xff]  ;;  %v463_v35 = vld [vmem:[%s3954_s18 + $0x38] sm:$0xff] }
  0x46   : > { %1063 = vmatpush.bf16.msrb.mxu0 %v3727_v43  ;;  %v988_v43 = vpack.c.bf16 %v4048_v49, %v4011_v30  ;;  %v3764_v34 = vld [vmem:[%s5133_s2 + $0x230] sm:$0xff]  ;;  %v990_v30 = vpack.c.bf16 %v4033_v44, %v3998_v26  ;;  %v4308_v49 = vadd.f32 %v471_v37, %v463_v35  ;;  %v3761_v35 = vld [vmem:[%s5133_s2 + $0x218] sm:$0xff]  ;;  %v872_v44 = vmul.f32 %v4158_v41, %v4165_v50 }
  0x48   : > { %950 = vmatpush.bf16.msrb.mxu3 %v3718_v21  ;;  %v1110_v21 = vpack.c.bf16 %v1103_v12, %v1102_v9  ;;  %5162 = vst [vmem:[#allocation11_spill] sm:$0xff] %v4308_v49  ;;  %v3762_v9 = vld [vmem:[%s5133_s2 + $0x220] sm:$0xff]  ;;  %v746_v12 = vmul.f32 %v4328_v7, %v4267_v28 }
  0x49   : > { %828 = vmatpush.bf16.msrb.mxu2 %v3710_v17  ;;  %1186 = vmatpush.bf16.msrb.mxu1 %v3734_v6  ;;  %v3756_v17 = vld [vmem:[%s5133_s2 + $0x1f0] sm:$0xff]  ;;  %v3754_v6 = vld [vmem:[%s5133_s2 + $0x1e0] sm:$0xff] }
  0x4a   : > { %1064 = vmatpush.bf16.msrb.mxu0 %v3726_v58  ;;  %v4341_v58 = vld [vmem:[#allocation2 + $0x22] sm:$0xff] }
  0x4b   : > { %951 = vmatmul.bf16.vlgmr.msrb.gmra.mxu3 %v874_v20  ;;  %v3755_v20 = vld [vmem:[%s5133_s2 + $0x1e8] sm:$0xff] }
  0x4c   : > { %1415 = vmatpush.bf16.msra.mxu3 %v3757_v5  ;;  %829 = vmatmul.bf16.vlgmr.msrb.gmra.mxu2 %v752_v29  ;;  %v3763_v5 = vld [vmem:[%s5133_s2 + $0x228] sm:$0xff]  ;;  %v868_v29 = vmul.f32 %v4174_v60, %v4181_v63 }
  0x4d   : > { %1301 = vmatpush.bf16.msra.mxu2 %v3749_v0  ;;  %1065 = vmatmul.bf16.vlgmr.msrb.gmra.mxu0 %v988_v43  ;;  %v4321_v0 = vmax.f32 %v4308_v49, 0.0  ;;  %v869_v43 = vmul.f32 %v4177_v61, %v4072_v54 }
  0x4e   : > { %1537 = vmatpush.bf16.msra.mxu0 %v3765_v11  ;;  %1187 = vmatmul.bf16.vlgmr.msrb.gmra.mxu1 %v1110_v21  ;;  %v747_v11 = vmul.f32 %v4331_v8, %v4333_v31  ;;  %v1105_v21 = vmul.f32 %v4331_v8, %v4341_v58 }
  0x4f   : > { %495 = vst [vmem:[#allocation2 + $0x41] sm:$0xff] %v4321_v0 }
  0x50   : > { %1416 = vmatpush.bf16.msra.mxu3 %v3756_v17  ;;  %v1104_v17 = vmul.f32 %v4328_v7, %v4333_v31  ;;  %v753_v37 = vpack.c.bf16 %v747_v11, %v746_v12  ;;  %v4396_v12 = vsel %vm437_vm13, 1.0, %v3878_v2  ;;  %v3758_v11 = vld [vmem:[%s5133_s2 + $0x200] sm:$0xff] }
  0x51   : > { %1302 = vmatpush.bf16.msra.mxu2 %v3748_v42  ;;  %v3745_v42 = vld [vmem:[%s5133_s2 + $0x198] sm:$0xff] }
  0x52   : > { %1538 = vmatpush.bf16.msra.mxu0 %v3764_v34  ;;  %v3753_v34 = vld [vmem:[%s5133_s2 + $0x1d8] sm:$0xff] }
  0x54   : > { %1417 = vmatpush.bf16.msra.mxu3 %v3755_v20  ;;  %v3744_v20 = vld [vmem:[%s5133_s2 + $0x190] sm:$0xff] }
  0x55   : > { %1303 = vmatpush.bf16.msra.mxu2 %v3747_v59  ;;  %v875_v59 = vpack.c.bf16 %v869_v43, %v868_v29  ;;  %v749_v43 = vmul.f32 %v4396_v12, %v741_v24 }
  0x56   : > { %1539 = vmatpush.bf16.msra.mxu0 %v3763_v5  ;;  %v1111_v5 = vpack.c.bf16 %v1105_v21, %v1104_v17  ;;  %v871_v17 = vmul.f32 %v4070_v53, %v4163_v48 }
  0x58   : > { %1418 = vmatpush.bf16.msra.mxu3 %v3754_v6  ;;  %v3743_v6 = vld [vmem:[%s5133_s2 + $0x188] sm:$0xff] }
  0x59   : > { %1304 = vmatpush.bf16.msra.mxu2 %v3746_v32  ;;  %v3752_v32 = vld [vmem:[%s5133_s2 + $0x1d0] sm:$0xff] }
  0x5a   : > { %1540 = vmatpush.bf16.msra.mxu0 %v3762_v9  ;;  %v3760_v9 = vld [vmem:[%s5133_s2 + $0x210] sm:$0xff] }
  0x5b   : > { %956 = vmatmul.bf16.gmra.mxu3 %v875_v59 }
  0x5c   : > { %1419 = vmatpush.bf16.msra.mxu3 %v3753_v34  ;;  %834 = vmatmul.bf16.gmra.mxu2 %v753_v37  ;;  %v1107_v34 = vmul.f32 %v4396_v12, %v1099_v39 }
  0x5d   : > { %1305 = vmatpush.bf16.msra.mxu2 %v3745_v42  ;;  %1070 = vmatmul.bf16.gmra.mxu0 %v989_v1  ;;  %v4393_v1 = vsel %vm436_vm12, 1.0, %v3878_v2  ;;  %v870_v42 = vmul.f32 %v4067_v52, %v4074_v55 }
  0x5e   : > { %1541 = vmatpush.bf16.msra.mxu0 %v3761_v35  ;;  %1192 = vmatmul.bf16.gmra.mxu1 %v1111_v5  ;;  %v748_v29 = vmul.f32 %v4393_v1, %v4341_v58  ;;  %v1106_v21 = vmul.f32 %v4393_v1, %v741_v24  ;;  %v4424_v5 = vsel %vm438_vm14, 1.0, %v3878_v2 }
  0x5f   : > { %v876_v37 = vpack.c.bf16 %v871_v17, %v870_v42  ;;  %5164 = vst [vmem:[#allocation12_spill] sm:$0xff] %v4424_v5  ;;  %v1461_v42 = vmul.f32 %v4253_v14, %v4333_v31  ;;  %v1464_v31 = vmul.f32 %v4393_v1, %v1099_v39 }
  0x60   : > { %1420 = vmatpush.bf16.msra.mxu3 %v3752_v32  ;;  %v754_v35 = vpack.c.bf16 %v749_v43, %v748_v29  ;;  %v1112_v59 = vpack.c.bf16 %v1107_v34, %v1106_v21  ;;  %v1225_v29 = vmul.f32 %v4080_v57, %v4181_v63  ;;  %v1460_v43 = vmul.f32 %v4250_v13, %v4267_v28 }
  0x61   : > { %1306 = vmatpush.bf16.msra.mxu2 %v3744_v20  ;;  %v5163_v20 = vand.u32 7, %v4104_v4  ;;  %v1462_v63 = vmul.f32 %v4328_v7, %v4341_v58  ;;  %v1463_v28 = vmul.f32 %v4331_v8, %v741_v24  ;;  %v4466_v24 = vld [vmem:[%s5134_s3] ss:$0 sm:$0xff] }
  0x62   : > { %1542 = vmatpush.bf16.msra.mxu0 %v3760_v9  ;;  %v865_v9 = vld [vmem:[#allocation2 + $0x40] sm:$0xff]  ;;  %v1468_v21 = vpack.c.bf16 %v1461_v42, %v1460_v43  ;;  %v3773_v42 = vld [vmem:[%s5135_s4 + $0x38] sm:$0xff] }
  0x63   : > { %vm439_vm15 = vcmp.le.s32.totalorder %v5163_v20, 6  ;;  %v873_v3 = vmul.f32 %v4161_v47, %v865_v9  ;;  %1679 = vmatpush.bf16.msra.mxu1 %v3773_v42  ;;  %v3776_v42 = vld [vmem:[%s5135_s4 + $0x50] sm:$0xff] }
  0x64   : > { %1421 = vmatpush.bf16.msra.mxu3 %v3751_v22  ;;  %v4427_v32 = vsel %vm439_vm15, 1.0, %v3878_v2  ;;  %v1101_v22 = vld [vmem:[#allocation2 + $0x42] sm:$0xff]  ;;  %v991_v2 = vpack.c.bf16 %v4321_v0, %v4038_v46  ;;  %v1226_v46 = vmul.f32 %v4174_v60, %v4072_v54  ;;  %v1229_v54 = vmul.f32 %v4070_v53, %v4165_v50 }
  0x65   : > { %1307 = vmatpush.bf16.msra.mxu2 %v3743_v6  ;;  %5165 = vst [vmem:[#allocation13_spill] sm:$0xff] %v4427_v32  ;;  %v743_v6 = vld [vmem:[#allocation2 + $0x3a] sm:$0xff]  ;;  %v1109_v18 = vmul.f32 %v4427_v32, %v1101_v22 }
  0x66   : > { %1543 = vmatpush.bf16.msra.mxu0 %v3759_v23  ;;  %v750_v23 = vmul.f32 %v4424_v5, %v1099_v39  ;;  %v751_v26 = vmul.f32 %v4427_v32, %v743_v6  ;;  %v1108_v4 = vmul.f32 %v4424_v5, %v743_v6  ;;  %v1223_v39 = vld [vmem:[#allocation2 + $0x48] sm:$0xff] }
  0x68   : > { %1422 = vmatpush.bf16.msra.mxu3 %v3750_v38  ;;  %v1113_v38 = vpack.c.bf16 %v1109_v18, %v1108_v4 }
  0x69   : > { %1308 = vmatpush.bf16.msra.mxu2 %v3742_v25  ;;  %v877_v25 = vpack.c.bf16 %v873_v3, %v872_v44  ;;  %v1231_v44 = vmul.f32 %v4161_v47, %v1223_v39  ;;  %v1466_v3 = vmul.f32 %v4424_v5, %v1101_v22  ;;  %v3779_v39 = vld [vmem:[%s5135_s4 + $0x68] sm:$0xff] }
  0x6a   : > { %1544 = vmatpush.bf16.msra.mxu0 %v3758_v11  ;;  %v1224_v11 = vmul.f32 %v4077_v56, %v4179_v62  ;;  %v1227_v62 = vmul.f32 %v4177_v61, %v4074_v55  ;;  %v1465_v55 = vmul.f32 %v4396_v12, %v743_v6 }
  0x6b   : > { %961 = vmatmul.bf16.gmra.mxu3 %v876_v37 }
  0x6c   : > { %839 = vmatmul.bf16.gmra.mxu2 %v754_v35  ;;  %v1232_v17 = vpack.c.bf16 %v1225_v29, %v1224_v11  ;;  %v1233_v34 = vpack.c.bf16 %v1227_v62, %v1226_v46  ;;  %v1469_v35 = vpack.c.bf16 %v1463_v28, %v1462_v63  ;;  %v1470_v58 = vpack.c.bf16 %v1465_v55, %v1464_v31  ;;  %v3772_v46 = vld [vmem:[%s5135_s4 + $0x30] sm:$0xff]  ;;  %v3781_v31 = vld [vmem:[%s5135_s4 + $0x78] sm:$0xff] }
  0x6d   : > { %1075 = vmatmul.bf16.gmra.mxu0 %v990_v30  ;;  %v755_v30 = vpack.c.bf16 %v751_v26, %v750_v23  ;;  %v1459_v23 = vld [vmem:[#allocation2 + $0x4a] sm:$0xff]  ;;  %v1230_v26 = vmul.f32 %v4158_v41, %v865_v9  ;;  %1680 = vmatpush.bf16.msra.mxu1 %v3772_v46 }
  0x6e   : > { %1197 = vmatmul.bf16.gmra.mxu1 %v1112_v59  ;;  %v1467_v4 = vmul.f32 %v4427_v32, %v1459_v23  ;;  %1793 = vmatpush.bf16.msrb.mxu2 %v3781_v31  ;;  %v3788_v31 = vld [vmem:[%s5135_s4 + $0xb0] sm:$0xff] }
  0x7b   : > { %966 = vmatmul.bf16.gmra.mxu3 %v877_v25  ;;  %v1349_v25 = vpack.c.bf16 0.0, %v4321_v0 }
  0x7c   : > { %844 = vmatmul.bf16.gmra.mxu2 %v755_v30  ;;  %v1235_v30 = vpack.c.bf16 %v1231_v44, %v1230_v26  ;;  %v3769_v26 = vld [vmem:[%s5135_s4 + $0x18] sm:$0xff]  ;;  %v3778_v44 = vld [vmem:[%s5135_s4 + $0x60] sm:$0xff] }
  0x7d   : > { %1080 = vmatmul.bf16.gmra.mxu0 %v991_v2  ;;  %v1471_v2 = vpack.c.bf16 %v1467_v4, %v1466_v3 }
  0x7e   : > { %1202 = vmatmul.bf16.gmra.mxu1 %v1113_v38 }
  0x8b   : > { %1423 = vmatmul.bf16.vlgmr.msra.gmra.mxu3 %v4221_v51  ;;  %v1228_v51 = vmul.f32 %v4067_v52, %v4163_v48 }
  0x8c   : > { %1309 = vmatmul.bf16.vlgmr.msra.gmra.mxu2 %v1232_v17 }
  0x8d   : > { %1545 = vmatmul.bf16.vlgmr.msra.gmra.mxu0 %v1468_v21  ;;  %v1234_v37 = vpack.c.bf16 %v1229_v54, %v1228_v51 }
  0x9b   : > { %1428 = vmatmul.bf16.gmra.mxu3 %v4117_v10 }
  0x9c   : > { %1314 = vmatmul.bf16.gmra.mxu2 %v1233_v34  ;;  %v3771_v34 = vld [vmem:[%s5135_s4 + $0x28] sm:$0xff] }
  0x9d   : > { %1550 = vmatmul.bf16.gmra.mxu0 %v1469_v35  ;;  %1681 = vmatpush.bf16.msra.mxu1 %v3771_v34 }
  0xa8   : > { %v4461_v59 = vpop.f32.mrf.mxu0 }
  0xab   : > { %1433 = vmatmul.bf16.gmra.mxu3 %v4211_v33  ;;  %v4511_v35 = vpop.f32.mrf.mxu1 }
  0xac   : > { %1319 = vmatmul.bf16.gmra.mxu2 %v1234_v37  ;;  %v3770_v37 = vld [vmem:[%s5135_s4 + $0x20] sm:$0xff] }
  0xad   : > { %1555 = vmatmul.bf16.gmra.mxu0 %v1470_v58  ;;  %1682 = vmatpush.bf16.msra.mxu1 %v3770_v37  ;;  %v3780_v58 = vld [vmem:[%s5135_s4 + $0x70] sm:$0xff] }
  0xae   : > { %v604_v10 = vpop.f32.mrf.mxu3  ;;  %1794 = vmatpush.bf16.msrb.mxu2 %v3780_v58  ;;  %v3796_v37 = vld [vmem:[%s5135_s4 + $0xf0] sm:$0xff]  ;;  %v3775_v58 = vld [vmem:[%s5135_s4 + $0x48] sm:$0xff] }
  0xaf   : > { %v718_v48 = vpop.f32.mrf.mxu2  ;;  %v618_v50 = vadd.f32 %v4466_v24, %v604_v10 }
  0xb0   : > { %v4472_v6 = vpop.f32.mrf.mxu0 }
  0xb1   : > { %v4470_v20 = vadd.f32 %v718_v48, %v618_v50  ;;  %1683 = vmatpush.bf16.msra.mxu1 %v3769_v26  ;;  %v3787_v26 = vld [vmem:[%s5135_s4 + $0xa8] sm:$0xff]  ;;  %v615_v15 = vadd.f32 %v4466_v24, %v4472_v6 }
  0xb2   : > { %1795 = vmatpush.bf16.msrb.mxu2 %v3779_v39 }
  0xb3   : > { %v4532_v50 = vpop.f32.mrf.mxu1 }
  0xb6   : > { %v4478_v33 = vpop.f32.mrf.mxu3  ;;  %1796 = vmatpush.bf16.msrb.mxu2 %v3778_v44  ;;  %v3795_v44 = vld [vmem:[%s5135_s4 + $0xe8] sm:$0xff] }
  0xb7   : > { %v4480_v18 = vpop.f32.mrf.mxu2 }
  0xb8   : > { %v4483_v38 = vpop.f32.mrf.mxu0 }
  0xbb   : > { %1438 = vmatmul.bf16.gmra.mxu3 %v1349_v25  ;;  %v4552_v25 = vpop.f32.mrf.mxu1 }
  0xbc   : > { %1324 = vmatmul.bf16.gmra.mxu2 %v1235_v30  ;;  %v3777_v30 = vld [vmem:[%s5135_s4 + $0x58] sm:$0xff] }
  0xbd   : > { %1560 = vmatmul.bf16.gmra.mxu0 %v1471_v2  ;;  %1797 = vmatpush.bf16.msrb.mxu2 %v3777_v30 }
  0xbe   : > { %v609_v9 = vpop.f32.mrf.mxu3 }
  0xbf   : > { %v723_v11 = vpop.f32.mrf.mxu2  ;;  %v620_v29 = vadd.f32 %v4466_v24, %v609_v9  ;;  %v3768_v9 = vld [vmem:[%s5135_s4 + $0x10] sm:$0xff] }
  0xc0   : > { %v4488_v43 = vpop.f32.mrf.mxu0  ;;  %1684 = vmatpush.bf16.msra.mxu1 %v3768_v9  ;;  %v3774_v9 = vld [vmem:[%s5135_s4 + $0x40] sm:$0xff] }
  0xc1   : > { %v4486_v22 = vadd.f32 %v723_v11, %v620_v29  ;;  %v3789_v11 = vld [vmem:[%s5135_s4 + $0xb8] sm:$0xff]  ;;  %1798 = vmatpush.bf16.msrb.mxu2 %v3776_v42  ;;  %v3786_v42 = vld [vmem:[%s5135_s4 + $0xa0] sm:$0xff] }
  0xc2   : > { %v3797_v29 = vld [vmem:[%s5135_s4 + $0xf8] sm:$0xff]  ;;  %1915 = vmatpush.bf16.msrb.mxu3 %v3789_v11 }
  0xc3   : > { %2037 = vmatpush.bf16.msrb.mxu0 %v3797_v29  ;;  %v4589_v30 = vpop.f32.mrf.mxu1 }
  0xc5   : > { %1799 = vmatpush.bf16.msrb.mxu2 %v3775_v58 }
  0xc6   : > { %v4493_v0 = vpop.f32.mrf.mxu3  ;;  %1916 = vmatpush.bf16.msrb.mxu3 %v3788_v31  ;;  %v3794_v31 = vld [vmem:[%s5135_s4 + $0xe0] sm:$0xff] }
  0xc7   : > { %v4495_v17 = vpop.f32.mrf.mxu2  ;;  %2038 = vmatpush.bf16.msrb.mxu0 %v3796_v37  ;;  %v3767_v37 = vld [vmem:[%s5135_s4 + $0x8] sm:$0xff] }
  0xc8   : > { %1685 = vmatpush.bf16.msra.mxu1 %v3767_v37  ;;  %v3784_v37 = vld [vmem:[%s5135_s4 + $0x90] sm:$0xff] }
  0xc9   : > { %1800 = vmatpush.bf16.msrb.mxu2 %v3774_v9  ;;  %v614_v9 = vadd.f32 %v4466_v24, %v4461_v59 }
  0xca   : > { %v4497_v21 = vpop.f32.mrf.mxu0  ;;  %1917 = vmatpush.bf16.msrb.mxu3 %v3787_v26  ;;  %v3785_v26 = vld [vmem:[%s5135_s4 + $0x98] sm:$0xff] }
  0xcb   : > { %2039 = vmatpush.bf16.msrb.mxu0 %v3795_v44  ;;  %v3793_v44 = vld [vmem:[%s5135_s4 + $0xd8] sm:$0xff]  ;;  %v1188_v49 = vpop.f32.mrf.mxu1  ;;  %v728_v59 = vadd.f32 %v4511_v35, %v614_v9 }
  0xce   : > { %v4504_v63 = vpop.f32.mrf.mxu3  ;;  %1918 = vmatpush.bf16.msrb.mxu3 %v3786_v42 }
  0xcf   : > { %v4502_v62 = vpop.f32.mrf.mxu2  ;;  %2040 = vmatpush.bf16.msrb.mxu0 %v3794_v31  ;;  %v3766_v31 = vld [vmem:[%s5135_s4] sm:$0xff] }
  0xd0   : > { %1686 = vmatpush.bf16.msra.mxu1 %v3766_v31 }
  0xd2   : > { %v4506_v28 = vpop.f32.mrf.mxu0  ;;  %1919 = vmatpush.bf16.msrb.mxu3 %v3785_v26  ;;  %v850_v26 = vadd.f32 %v4502_v62, %v728_v59  ;;  %v729_v59 = vadd.f32 %v4532_v50, %v615_v15 }
  0xd3   : > { %2041 = vmatpush.bf16.msrb.mxu0 %v3793_v44  ;;  %v1190_v9 = vpop.f32.mrf.mxu1 }
  0xd4   : > { %v972_v35 = vadd.f32 %v4504_v63, %v850_v26  ;;  %v616_v26 = vadd.f32 %v4466_v24, %v4483_v38 }
  0xd6   : > { %v4515_v54 = vpop.f32.mrf.mxu3  ;;  %1920 = vmatpush.bf16.msrb.mxu3 %v3784_v37  ;;  %v3790_v37 = vld [vmem:[%s5135_s4 + $0xc0] sm:$0xff]  ;;  %v730_v50 = vadd.f32 %v4552_v25, %v616_v26 }
  0xd7   : > { %v4513_v51 = vpop.f32.mrf.mxu2  ;;  %2042 = vmatpush.bf16.msrb.mxu0 %v3792_v36  ;;  %v3782_v36 = vld [vmem:[%s5135_s4 + $0x80] sm:$0xff] }
  0xd8   : > { %v851_v6 = vadd.f32 %v4513_v51, %v729_v59 }
  0xda   : > { %v4520_v55 = vpop.f32.mrf.mxu0  ;;  %1921 = vmatpush.bf16.msrb.mxu3 %v3783_v19  ;;  %v3805_v19 = vld [vmem:[%s5135_s4 + $0x138] sm:$0xff]  ;;  %v973_v27 = vadd.f32 %v4515_v54, %v851_v6  ;;  %v1716_v54 = vld [vmem:[#allocation2 + $0x1] sm:$0xff] }
  0xdb   : > { %2043 = vmatpush.bf16.msrb.mxu0 %v3791_v16  ;;  %v1086_v16 = vadd.f32 %v4497_v21, %v972_v35  ;;  %2151 = vmatpush.bf16.msrb.mxu1 %v3805_v19  ;;  %v1193_v5 = vpop.f32.mrf.mxu1  ;;  %v3804_v21 = vld [vmem:[%s5135_s4 + $0x130] sm:$0xff] }
  0xdc   : > { %v1087_v51 = vadd.f32 %v4506_v28, %v973_v27 }
  0xdd   : > { %v1208_v45 = vadd.f32 %v1188_v49, %v1086_v16  ;;  %v617_v49 = vadd.f32 %v4466_v24, %v4488_v43  ;;  %v3803_v43 = vld [vmem:[%s5135_s4 + $0x128] sm:$0xff] }
  0xde   : > { %v4530_v48 = vpop.f32.mrf.mxu3  ;;  %1922 = vmatpush.bf16.msrb.mxu3 %v3782_v36  ;;  %v1209_v59 = vadd.f32 %v1190_v9, %v1087_v51 }
  0xdf   : > { %v4528_v10 = vpop.f32.mrf.mxu2  ;;  %2044 = vmatpush.bf16.msrb.mxu0 %v3790_v37  ;;  %2152 = vmatpush.bf16.msrb.mxu1 %v3804_v21  ;;  %v731_v16 = vadd.f32 %v4589_v30, %v617_v49  ;;  %v3813_v30 = vld [vmem:[%s5135_s4 + $0x178] sm:$0xff]  ;;  %v4687_v21 = vld [vmem:[#allocation2] sm:$0xff] }
  0xe0   : > { %v852_v35 = vadd.f32 %v4528_v10, %v730_v50  ;;  %2273 = vmatpush.bf16.msra.mxu2 %v3813_v30 }
  0xe2   : > { %v4537_v23 = vpop.f32.mrf.mxu0  ;;  %v974_v25 = vadd.f32 %v4530_v48, %v852_v35 }
  0xe3   : > { %v1195_v48 = vpop.f32.mrf.mxu1  ;;  %2153 = vmatpush.bf16.msrb.mxu1 %v3803_v43 }
  0xe4   : > { %v1088_v28 = vadd.f32 %v4520_v55, %v974_v25  ;;  %v1603_v55 = vmul.f32 %v4687_v21, %v4077_v56 }
  0xe6   : > { %v4547_v4 = vpop.f32.mrf.mxu3  ;;  %v1210_v26 = vadd.f32 %v1193_v5, %v1088_v28  ;;  %v3810_v28 = vld [vmem:[%s5135_s4 + $0x160] sm:$0xff] }
  0xe7   : > { %v4545_v3 = vpop.f32.mrf.mxu2 }
  0xe8   : > { %v853_v10 = vadd.f32 %v4545_v3, %v731_v16  ;;  %v3812_v3 = vld [vmem:[%s5135_s4 + $0x170] sm:$0xff]  ;;  %v619_v16 = vadd.f32 %v4466_v24, %v4478_v33 }
  0xe9   : > { %2274 = vmatpush.bf16.msra.mxu2 %v3812_v3 }
  0xea   : > { %v4554_v2 = vpop.f32.mrf.mxu0 }
  0xee   : > { %v4570_v34 = vpop.f32.mrf.mxu3 }
  0xef   : > { %v4568_v46 = vpop.f32.mrf.mxu2 }
  0xf0   : > { %v854_v49 = vadd.f32 %v4568_v46, %v4470_v20 }
  0xf2   : > { %v4581_v39 = vpop.f32.mrf.mxu0  ;;  %v976_v46 = vadd.f32 %v4570_v34, %v854_v49 }
  0xf4   : > { %v1090_v3 = vadd.f32 %v4554_v2, %v976_v46  ;;  %v3821_v2 = vld [vmem:[%s5135_s4 + $0x1b8] sm:$0xff] }
  0xf5   : > { %2395 = vmatpush.bf16.msra.mxu3 %v3821_v2 }
  0xf6   : > { %v4596_v29 = vpop.f32.mrf.mxu3 }
  0xf7   : > { %v4594_v11 = vpop.f32.mrf.mxu2 }
  0xfa   : > { %v4607_v58 = vpop.f32.mrf.mxu0 }
  0xfe   : > { %v4619_v42 = vpop.f32.mrf.mxu3 }
  0xff   : > { %v4617_v40 = vpop.f32.mrf.mxu2 }
 0x102   : > { %v4632_v44 = vpop.f32.mrf.mxu0 }
 0x106   : > { %v4645_v31 = vpop.f32.mrf.mxu3 }
 0x107   : > { %v4643_v62 = vpop.f32.mrf.mxu2 }
 0x10a   : > { %v1546_v63 = vpop.f32.mrf.mxu0 }
 0x10e   : > { %v1424_v15 = vpop.f32.mrf.mxu3 }
 0x10f   : > { %v1310_v32 = vpop.f32.mrf.mxu2 }
 0x110   : > { %v1330_v47 = vadd.f32 %v1310_v32, %v1208_v45 }
 0x112   : > { %v1444_v36 = vadd.f32 %v1424_v15, %v1330_v47  ;;  %v1548_v37 = vpop.f32.mrf.mxu0  ;;  %v975_v15 = vadd.f32 %v4547_v4, %v853_v10  ;;  %v3802_v4 = vld [vmem:[%s5135_s4 + $0x120] sm:$0xff]  ;;  %v733_v10 = vadd.f32 %v4480_v18, %v619_v16 }
 0x113   : > { %2154 = vmatpush.bf16.msrb.mxu1 %v3802_v4 }
 0x114   : > { %v1566_v38 = vadd.f32 %v1546_v63, %v1444_v36 }
 0x116   : > { %v4671_v45 = vmax.f32 %v1566_v38, 0.0  ;;  %v1426_v19 = vpop.f32.mrf.mxu3 }
 0x117   : > { %v1312_v32 = vpop.f32.mrf.mxu2 }
 0x118   : > { %1582 = vst [vmem:[#allocation2 + $0x9] sm:$0xff] %v4671_v45  ;;  %v1331_v27 = vadd.f32 %v1312_v32, %v1209_v59  ;;  %v1724_v47 = vpack.c.bf16 %v4671_v45, %v1716_v54  ;;  %v1089_v54 = vadd.f32 %v4537_v23, %v975_v15 }
 0x11a   : > { %v1445_v9 = vadd.f32 %v1426_v19, %v1331_v27  ;;  %v1551_v6 = vpop.f32.mrf.mxu0  ;;  %1801 = vmatmul.bf16.vlgmr.msrb.gmra.mxu2 %v1724_v47  ;;  %v3811_v19 = vld [vmem:[%s5135_s4 + $0x168] sm:$0xff]  ;;  %v1198_v27 = vpop.f32.mrf.mxu1  ;;  %v1211_v43 = vadd.f32 %v1195_v48, %v1089_v54 }
 0x11b   : > { %2275 = vmatpush.bf16.msra.mxu2 %v3811_v19  ;;  %v1212_v54 = vadd.f32 %v1198_v27, %v1090_v3  ;;  %v3827_v3 = vld [vmem:[%s5135_s4 + $0x1e8] sm:$0xff] }
 0x11c   : > { %v1567_v63 = vadd.f32 %v1548_v37, %v1445_v9 }
 0x11e   : > { %v4685_v50 = vmax.f32 %v1567_v63, 0.0  ;;  %v1429_v35 = vpop.f32.mrf.mxu3 }
 0x11f   : > { %v1315_v51 = vpop.f32.mrf.mxu2  ;;  %v1596_v36 = vld [vmem:[#allocation2 + $0x8] sm:$0xff]  ;;  %2276 = vmatpush.bf16.msra.mxu2 %v3810_v28  ;;  %v3820_v28 = vld [vmem:[%s5135_s4 + $0x1b0] sm:$0xff] }
 0x120   : > { %1583 = vst [vmem:[#allocation2 + $0x11] sm:$0xff] %v4685_v50  ;;  %v1332_v37 = vadd.f32 %v1315_v51, %v1210_v26  ;;  %v1604_v5 = vmul.f32 %v4080_v57, %v1596_v36  ;;  %v2082_v38 = vpack.c.bf16 %v4685_v50, %v4671_v45  ;;  %v1830_v20 = vld [vmem:[#allocation2 + $0x2] sm:$0xff]  ;;  %v1960_v34 = vmul.f32 %v4077_v56, %v1596_v36 }
 0x121   : > { %v1838_v33 = vmul.f32 %v4250_v13, %v1830_v20  ;;  %v855_v51 = vadd.f32 %v4594_v11, %v733_v10  ;;  %v3829_v11 = vld [vmem:[%s5135_s4 + $0x1f8] sm:$0xff]  ;;  %v3828_v10 = vld [vmem:[%s5135_s4 + $0x1f0] sm:$0xff]  ;;  %2396 = vmatpush.bf16.msra.mxu3 %v3820_v28 }
 0x122   : > { %v1446_v59 = vadd.f32 %v1429_v35, %v1332_v37  ;;  %v1553_v25 = vpop.f32.mrf.mxu0  ;;  %v1611_v32 = vpack.c.bf16 %v1604_v5, %v1603_v55  ;;  %v3801_v55 = vld [vmem:[%s5135_s4 + $0x118] sm:$0xff]  ;;  %2509 = vmatpush.bf16.msra.mxu0 %v3829_v11 }
 0x123   : > { %2155 = vmatpush.bf16.msrb.mxu1 %v3801_v55  ;;  %v3809_v5 = vld [vmem:[%s5135_s4 + $0x158] sm:$0xff] }
 0x124   : > { %v1568_v47 = vadd.f32 %v1551_v6, %v1446_v59  ;;  %1687 = vmatmul.bf16.vlgmr.msra.gmra.mxu1 %v1611_v32  ;;  %2277 = vmatpush.bf16.msra.mxu2 %v3809_v5  ;;  %v977_v59 = vadd.f32 %v4596_v29, %v855_v51  ;;  %v1200_v32 = vpop.f32.mrf.mxu1 }
 0x126   : > { %v4710_v23 = vmax.f32 %v1568_v47, 0.0  ;;  %v1431_v30 = vpop.f32.mrf.mxu3  ;;  %2510 = vmatpush.bf16.msra.mxu0 %v3828_v10 }
 0x127   : > { %v1317_v9 = vpop.f32.mrf.mxu2  ;;  %v4716_v63 = vld [vmem:[#allocation2 + $0xa] sm:$0xff] }
 0x128   : > { %v4719_v6 = vld [vmem:[#allocation2 + $0x10] sm:$0xff]  ;;  %1584 = vst [vmem:[#allocation2 + $0x19] sm:$0xff] %v4710_v23  ;;  %v1333_v48 = vadd.f32 %v1317_v9, %v1211_v43  ;;  %v1839_v26 = vmul.f32 %v4253_v14, %v4716_v63  ;;  %v4729_v18 = vpack.c.bf16 %v4710_v23, %v4685_v50  ;;  %v856_v9 = vadd.f32 %v4617_v40, %v4486_v22  ;;  %v3799_v22 = vld [vmem:[%s5135_s4 + $0x108] sm:$0xff] }
 0x129   : > { %v1961_v15 = vmul.f32 %v4080_v57, %v4719_v6  ;;  %v1605_v27 = vmul.f32 %v4174_v60, %v4719_v6  ;;  %v3800_v43 = vld [vmem:[%s5135_s4 + $0x110] sm:$0xff] }
 0x12a   : > { %v1447_v35 = vadd.f32 %v1431_v30, %v1333_v48  ;;  %v1846_v36 = vpack.c.bf16 %v1839_v26, %v1838_v33  ;;  %1806 = vmatmul.bf16.gmra.mxu2 %v4729_v18  ;;  %v1556_v49 = vpop.f32.mrf.mxu0  ;;  %v1091_v33 = vadd.f32 %v4581_v39, %v977_v59  ;;  %2156 = vmatpush.bf16.msrb.mxu1 %v3800_v43  ;;  %v3807_v26 = vld [vmem:[%s5135_s4 + $0x148] sm:$0xff]  ;;  %v3826_v59 = vld [vmem:[%s5135_s4 + $0x1e0] sm:$0xff] }
 0x12b   : > { %v1968_v37 = vpack.c.bf16 %v1961_v15, %v1960_v34  ;;  %v621_v15 = vadd.f32 %v4466_v24, %v4493_v0  ;;  %v3819_v39 = vld [vmem:[%s5135_s4 + $0x1a8] sm:$0xff]  ;;  %v978_v51 = vadd.f32 %v4619_v42, %v856_v9  ;;  %2511 = vmatpush.bf16.msra.mxu0 %v3827_v3 }
 0x12c   : > { %v1569_v4 = vadd.f32 %v1553_v25, %v1447_v35  ;;  %1923 = vmatmul.bf16.vlgmr.msrb.gmra.mxu3 %v1846_v36  ;;  %v3808_v25 = vld [vmem:[%s5135_s4 + $0x150] sm:$0xff]  ;;  %v1213_v24 = vadd.f32 %v1200_v32, %v1091_v33  ;;  %v3818_v36 = vld [vmem:[%s5135_s4 + $0x1a0] sm:$0xff] }
 0x12d   : > { %2045 = vmatmul.bf16.vlgmr.msrb.gmra.mxu0 %v1968_v37  ;;  %2278 = vmatpush.bf16.msra.mxu2 %v3808_v25  ;;  %v3806_v37 = vld [vmem:[%s5135_s4 + $0x140] sm:$0xff]  ;;  %v735_v5 = vadd.f32 %v4495_v17, %v621_v15 }
 0x12e   : > { %v4747_v19 = vmax.f32 %v1569_v4, 0.0  ;;  %v1434_v47 = vpop.f32.mrf.mxu3  ;;  %2157 = vmatpush.bf16.msrb.mxu1 %v3799_v22  ;;  %2397 = vmatpush.bf16.msra.mxu3 %v3819_v39  ;;  %v3798_v33 = vld [vmem:[%s5135_s4 + $0x100] sm:$0xff]  ;;  %v3816_v22 = vld [vmem:[%s5135_s4 + $0x190] sm:$0xff] }
 0x12f   : > { %v1320_v16 = vpop.f32.mrf.mxu2  ;;  %v4752_v20 = vld [vmem:[#allocation2 + $0x18] sm:$0xff]  ;;  %2512 = vmatpush.bf16.msra.mxu0 %v3826_v59 }
 0x130   : > { %1585 = vst [vmem:[#allocation2 + $0x21] sm:$0xff] %v4747_v19  ;;  %v1334_v46 = vadd.f32 %v1320_v16, %v1212_v54  ;;  %v1606_v29 = vmul.f32 %v4177_v61, %v4752_v20  ;;  %v2083_v30 = vpack.c.bf16 %v4747_v19, %v4710_v23  ;;  %v4778_v55 = vld [vmem:[#allocation2 + $0x12] sm:$0xff]  ;;  %v1962_v54 = vmul.f32 %v4174_v60, %v4752_v20 }
 0x131   : > { %2279 = vmatpush.bf16.msra.mxu2 %v3807_v26  ;;  %v1840_v2 = vmul.f32 %v4328_v7, %v4778_v55 }
 0x132   : > { %v1448_v34 = vadd.f32 %v1434_v47, %v1334_v46  ;;  %v1612_v48 = vpack.c.bf16 %v1606_v29, %v1605_v27  ;;  %v1558_v35 = vpop.f32.mrf.mxu0  ;;  %v1092_v47 = vadd.f32 %v4607_v58, %v978_v51  ;;  %v1203_v46 = vpop.f32.mrf.mxu1  ;;  %v857_v27 = vadd.f32 %v4643_v62, %v735_v5  ;;  %2398 = vmatpush.bf16.msra.mxu3 %v3818_v36 }
 0x133   : > { %v4823_v29 = vmul.f32 %v4250_v13, %v4778_v55  ;;  %2158 = vmatpush.bf16.msrb.mxu1 %v3798_v33 }
 0x134   : > { %v1570_v40 = vadd.f32 %v1556_v49, %v1448_v34  ;;  %1692 = vmatmul.bf16.gmra.mxu1 %v1612_v48  ;;  %v3817_v34 = vld [vmem:[%s5135_s4 + $0x198] sm:$0xff]  ;;  %v1214_v26 = vadd.f32 %v1203_v46, %v1092_v47  ;;  %v979_v15 = vadd.f32 %v4645_v31, %v857_v27  ;;  %v3814_v27 = vld [vmem:[%s5135_s4 + $0x180] sm:$0xff] }
 0x135   : > { %2280 = vmatpush.bf16.msra.mxu2 %v3806_v37  ;;  %v3825_v48 = vld [vmem:[%s5135_s4 + $0x1d8] sm:$0xff] }
 0x136   : > { %v4790_v0 = vmax.f32 %v1570_v40, 0.0  ;;  %v1436_v49 = vpop.f32.mrf.mxu3  ;;  %2399 = vmatpush.bf16.msra.mxu3 %v3817_v34  ;;  %2513 = vmatpush.bf16.msra.mxu0 %v3825_v48  ;;  %v3822_v34 = vld [vmem:[%s5135_s4 + $0x1c0] sm:$0xff] }
 0x137   : > { %v1322_v4 = vpop.f32.mrf.mxu2  ;;  %v4799_v42 = vld [vmem:[#allocation2 + $0x1a] sm:$0xff] }
 0x138   : > { %v4803_v11 = vld [vmem:[#allocation2 + $0x20] sm:$0xff]  ;;  %1586 = vst [vmem:[#allocation2 + $0x29] sm:$0xff] %v4790_v0  ;;  %v1335_v17 = vadd.f32 %v1322_v4, %v1213_v24  ;;  %v1841_v32 = vmul.f32 %v4331_v8, %v4799_v42  ;;  %v4817_v16 = vpack.c.bf16 %v4790_v0, %v4747_v19  ;;  %v4827_v43 = vmul.f32 %v4253_v14, %v4799_v42  ;;  %v3824_v24 = vld [vmem:[%s5135_s4 + $0x1d0] sm:$0xff] }
 0x139   : > { %v1963_v25 = vmul.f32 %v4177_v61, %v4803_v11  ;;  %v1093_v4 = vadd.f32 %v4632_v44, %v979_v15  ;;  %v3823_v44 = vld [vmem:[%s5135_s4 + $0x1c8] sm:$0xff] }
 0x13a   : > { %v1449_v28 = vadd.f32 %v1436_v49, %v1335_v17  ;;  %v1847_v10 = vpack.c.bf16 %v1841_v32, %v1840_v2  ;;  %1811 = vmatmul.bf16.gmra.mxu2 %v4817_v16  ;;  %v2562_v58 = vpack.c.bf16 %v4827_v43, %v4823_v29  ;;  %v1561_v37 = vpop.f32.mrf.mxu0  ;;  %2400 = vmatpush.bf16.msra.mxu3 %v3816_v22  ;;  %v3837_v32 = vld [vmem:[%s5135_s4 + $0x238] sm:$0xff] }
 0x13b   : > { %v1969_v9 = vpack.c.bf16 %v1963_v25, %v1962_v54  ;;  %v1205_v54 = vpop.f32.mrf.mxu1  ;;  %2514 = vmatpush.bf16.msra.mxu0 %v3824_v24  ;;  %v3815_v25 = vld [vmem:[%s5135_s4 + $0x188] sm:$0xff]  ;;  %2631 = vmatpush.bf16.msra.mxu1 %v3837_v32 }
 0x13c   : > { %v1571_v62 = vadd.f32 %v1558_v35, %v1449_v28  ;;  %1928 = vmatmul.bf16.gmra.mxu3 %v1847_v10  ;;  %v1607_v35 = vmul.f32 %v4067_v52, %v4803_v11  ;;  %v1215_v47 = vadd.f32 %v1205_v54, %v1093_v4 }
 0x13d   : > { %2050 = vmatmul.bf16.gmra.mxu0 %v1969_v9 }
 0x13e   : > { %v4842_v40 = vmax.f32 %v1571_v62, 0.0  ;;  %v1439_v3 = vpop.f32.mrf.mxu3  ;;  %2401 = vmatpush.bf16.msra.mxu3 %v3815_v25  ;;  %v5166_v25 = vld [vmem:[#allocation10_spill] sm:$0xff] }
 0x13f   : > { %v1325_v39 = vpop.f32.mrf.mxu2  ;;  %v4847_v51 = vld [vmem:[#allocation2 + $0x28] sm:$0xff]  ;;  %2515 = vmatpush.bf16.msra.mxu0 %v3823_v44 }
 0x140   : > { %1587 = vst [vmem:[#allocation2 + $0x31] sm:$0xff] %v4842_v40  ;;  %v1336_v31 = vadd.f32 %v1325_v39, %v1214_v26  ;;  %v1608_v36 = vmul.f32 %v4070_v53, %v4847_v51  ;;  %v2084_v5 = vpack.c.bf16 %v4842_v40, %v4790_v0  ;;  %v4860_v59 = vld [vmem:[#allocation2 + $0x22] sm:$0xff]  ;;  %v1964_v33 = vmul.f32 %v4067_v52, %v4847_v51 }
 0x141   : > { %v1842_v9 = vmul.f32 %v4393_v1, %v4860_v59 }
 0x142   : > { %v1450_v49 = vadd.f32 %v1439_v3, %v1336_v31  ;;  %v1613_v2 = vpack.c.bf16 %v1608_v36, %v1607_v35  ;;  %v4898_v3 = vmul.f32 %v4328_v7, %v4860_v59  ;;  %2402 = vmatpush.bf16.msra.mxu3 %v3814_v27 }
 0x143   : > { %2516 = vmatpush.bf16.msra.mxu0 %v3822_v34  ;;  %v2196_v34 = vmul.f32 %v4250_v13, %v4716_v63 }
 0x144   : > { %v1572_v17 = vadd.f32 %v1561_v37, %v1450_v49  ;;  %1697 = vmatmul.bf16.gmra.mxu1 %v1613_v2  ;;  %v1563_v37 = vpop.f32.mrf.mxu0  ;;  %v3836_v2 = vld [vmem:[%s5135_s4 + $0x230] sm:$0xff] }
 0x145   : > { %2632 = vmatpush.bf16.msra.mxu1 %v3836_v2 }
 0x146   : > { %v4871_v46 = vmax.f32 %v1572_v17, 0.0  ;;  %v1441_v39 = vpop.f32.mrf.mxu3 }
 0x147   : > { %v1327_v28 = vpop.f32.mrf.mxu2  ;;  %v4876_v10 = vld [vmem:[#allocation2 + $0x2a] sm:$0xff] }
 0x148   : > { %v4880_v62 = vld [vmem:[#allocation2 + $0x30] sm:$0xff]  ;;  %1588 = vst [vmem:[#allocation2 + $0x39] sm:$0xff] %v4871_v46  ;;  %v1337_v48 = vadd.f32 %v1327_v28, %v1215_v47  ;;  %v1843_v26 = vmul.f32 %v4396_v12, %v4876_v10  ;;  %v4894_v22 = vpack.c.bf16 %v4871_v46, %v4842_v40  ;;  %v4902_v24 = vmul.f32 %v4331_v8, %v4876_v10  ;;  %v4997_v40 = vld [vmem:[%s5136_s5] ss:$0 sm:$0xff] }
 0x149   : > { %v1965_v15 = vmul.f32 %v4070_v53, %v4880_v62  ;;  %v1609_v32 = vmul.f32 %v4158_v41, %v4880_v62  ;;  %v2197_v28 = vmul.f32 %v4253_v14, %v4778_v55  ;;  %v2200_v50 = vmul.f32 %v4393_v1, %v4876_v10 }
 0x14a   : > { %v1451_v31 = vadd.f32 %v1441_v39, %v1337_v48  ;;  %v1848_v35 = vpack.c.bf16 %v1843_v26, %v1842_v9  ;;  %1816 = vmatmul.bf16.gmra.mxu2 %v4894_v22  ;;  %v2563_v4 = vpack.c.bf16 %v4902_v24, %v4898_v3  ;;  %v3835_v9 = vld [vmem:[%s5135_s4 + $0x228] sm:$0xff]  ;;  %v5167_v39 = vld [vmem:[#allocation12_spill] sm:$0xff]  ;;  %v2322_v19 = vmul.f32 %v4067_v52, %v4880_v62 }
 0x14b   : > { %v1970_v36 = vpack.c.bf16 %v1965_v15, %v1964_v33  ;;  %2633 = vmatpush.bf16.msra.mxu1 %v3835_v9  ;;  %v2204_v15 = vpack.c.bf16 %v2197_v28, %v2196_v34  ;;  %v2319_v28 = vmul.f32 %v4080_v57, %v4752_v20  ;;  %v2198_v9 = vmul.f32 %v4328_v7, %v4799_v42 }
 0x14c   : > { %v1573_v49 = vadd.f32 %v1563_v37, %v1451_v31  ;;  %1933 = vmatmul.bf16.gmra.mxu3 %v1848_v35  ;;  %v5168_v35 = vld [vmem:[#allocation13_spill] sm:$0xff]  ;;  %v2318_v34 = vmul.f32 %v4077_v56, %v4719_v6  ;;  %v2321_v7 = vmul.f32 %v4177_v61, %v4847_v51 }
 0x14d   : > { %2055 = vmatmul.bf16.gmra.mxu0 %v1970_v36  ;;  %v3831_v56 = vld [vmem:[%s5135_s4 + $0x208] sm:$0xff] }
 0x14e   : > { %v4910_v54 = vmax.f32 %v1573_v49, 0.0  ;;  %v2326_v45 = vpack.c.bf16 %v2319_v28, %v2318_v34 }
 0x14f   : > { %v1602_v17 = vld [vmem:[#allocation2 + $0x38] sm:$0xff] }
 0x150   : > { %1589 = vst [vmem:[#allocation2 + $0x41] sm:$0xff] %v4910_v54  ;;  %v1610_v44 = vmul.f32 %v5166_v25, %v1602_v17  ;;  %v2085_v47 = vpack.c.bf16 %v4910_v54, %v4871_v46  ;;  %v1836_v33 = vld [vmem:[#allocation2 + $0x32] sm:$0xff]  ;;  %v1966_v37 = vmul.f32 %v4158_v41, %v1602_v17 }
 0x151   : > { %v1844_v31 = vmul.f32 %v5167_v39, %v1836_v33  ;;  %v4930_v55 = vmul.f32 %v4393_v1, %v1836_v33  ;;  %v2201_v57 = vmul.f32 %v4396_v12, %v1836_v33  ;;  %v2323_v1 = vmul.f32 %v4070_v53, %v1602_v17 }
 0x152   : > { %v1614_v27 = vpack.c.bf16 %v1610_v44, %v1609_v32  ;;  %v3834_v32 = vld [vmem:[%s5135_s4 + $0x220] sm:$0xff]  ;;  %v2199_v44 = vmul.f32 %v4331_v8, %v4860_v59  ;;  %v3832_v8 = vld [vmem:[%s5135_s4 + $0x210] sm:$0xff]  ;;  %v2443_v53 = vpack.c.bf16 %v4687_v21, %v4910_v54 }
 0x153   : > { %2634 = vmatpush.bf16.msra.mxu1 %v3834_v32  ;;  %v2206_v6 = vpack.c.bf16 %v2201_v57, %v2200_v50 }
 0x154   : > { %1702 = vmatmul.bf16.gmra.mxu1 %v1614_v27  ;;  %v3833_v27 = vld [vmem:[%s5135_s4 + $0x218] sm:$0xff] }
 0x157   : > { %v1837_v48 = vld [vmem:[#allocation2 + $0x3a] sm:$0xff]  ;;  %2635 = vmatpush.bf16.msra.mxu1 %v3833_v27  ;;  %v4975_v23 = vld [vmem:[#allocation2 + $0x42] sm:$0xff] }
 0x158   : > { %v1959_v26 = vld [vmem:[#allocation2 + $0x40] sm:$0xff]  ;;  %v1845_v36 = vmul.f32 %v5168_v35, %v1837_v48  ;;  %v4933_v49 = vmul.f32 %v4396_v12, %v1837_v48  ;;  %v2202_v61 = vmul.f32 %v5167_v39, %v1837_v48  ;;  %v2317_v42 = vld [vmem:[#allocation2 + $0x48] sm:$0xff]  ;;  %v2560_v50 = vmul.f32 %v5167_v39, %v4975_v23 }
 0x159   : > { %v1967_v14 = vmul.f32 %v5166_v25, %v1959_v26  ;;  %v3830_v12 = vld [vmem:[%s5135_s4 + $0x200] sm:$0xff]  ;;  %v2324_v0 = vmul.f32 %v4158_v41, %v1959_v26 }
 0x15a   : > { %v1849_v2 = vpack.c.bf16 %v1845_v36, %v1844_v31  ;;  %2281 = vmatmul.bf16.vlgmr.msra.gmra.mxu2 %v2204_v15  ;;  %v2564_v63 = vpack.c.bf16 %v4933_v49, %v4930_v55  ;;  %v2205_v15 = vpack.c.bf16 %v2199_v44, %v2198_v9 }
 0x15b   : > { %v1971_v13 = vpack.c.bf16 %v1967_v14, %v1966_v37  ;;  %2636 = vmatpush.bf16.msra.mxu1 %v3832_v8 }
 0x15c   : > { %1938 = vmatmul.bf16.gmra.mxu3 %v1849_v2 }
 0x15d   : > { %2060 = vmatmul.bf16.gmra.mxu0 %v1971_v13 }
 0x15f   : > { %2637 = vmatpush.bf16.msra.mxu1 %v3831_v56  ;;  %v2553_v56 = vld [vmem:[#allocation2 + $0x4a] sm:$0xff] }
 0x163   : > { %2638 = vmatpush.bf16.msra.mxu1 %v3830_v12 }
 0x164   : > { %2159 = vmatmul.bf16.vlgmr.msrb.gmra.mxu1 %v2082_v38  ;;  %v2320_v38 = vmul.f32 %v4174_v60, %v4803_v11  ;;  %v2203_v60 = vmul.f32 %v5168_v35, %v4975_v23  ;;  %v2325_v11 = vmul.f32 %v5166_v25, %v2317_v42 }
 0x166   : > { %v2207_v20 = vpack.c.bf16 %v2203_v60, %v2202_v61 }
 0x16a   : > { %2286 = vmatmul.bf16.gmra.mxu2 %v2205_v15 }
 0x16c   : > { %2403 = vmatmul.bf16.vlgmr.msra.gmra.mxu3 %v2326_v45 }
 0x16d   : > { %2517 = vmatmul.bf16.vlgmr.msra.gmra.mxu0 %v4729_v18  ;;  %v2327_v18 = vpack.c.bf16 %v2321_v7, %v2320_v38  ;;  %v2561_v38 = vmul.f32 %v5168_v35, %v2553_v56  ;;  %v2686_v56 = vld [vmem:[%s5137_s6 + $0x20] sm:$0xff] }
 0x174   : > { %2164 = vmatmul.bf16.gmra.mxu1 %v2083_v30  ;;  %v2328_v30 = vpack.c.bf16 %v2323_v1, %v2322_v19 }
 0x17a   : > { %2291 = vmatmul.bf16.gmra.mxu2 %v2206_v6 }
 0x17c   : > { %2408 = vmatmul.bf16.gmra.mxu3 %v2327_v18 }
 0x17d   : > { %2522 = vmatmul.bf16.gmra.mxu0 %v4817_v16  ;;  %v2329_v16 = vpack.c.bf16 %v2325_v11, %v2324_v0 }
 0x184   : > { %2169 = vmatmul.bf16.gmra.mxu1 %v2084_v5 }
 0x18a   : > { %2296 = vmatmul.bf16.gmra.mxu2 %v2207_v20 }
 0x18c   : > { %2413 = vmatmul.bf16.gmra.mxu3 %v2328_v30 }
 0x18d   : > { %2527 = vmatmul.bf16.gmra.mxu0 %v4894_v22 }
 0x194   : > { %2174 = vmatmul.bf16.gmra.mxu1 %v2085_v47 }
 0x19c   : > { %2418 = vmatmul.bf16.gmra.mxu3 %v2329_v16 }
 0x19d   : > { %2532 = vmatmul.bf16.gmra.mxu0 %v2443_v53  ;;  %v1802_v52 = vpop.f32.mrf.mxu2 }
 0x1a1   : > { %v1688_v51 = vpop.f32.mrf.mxu1 }
 0x1a2   : > { %v1708_v5 = vadd.f32 %v4997_v40, %v1688_v51 }
 0x1a4   : > { %2639 = vmatmul.bf16.vlgmr.msra.gmra.mxu1 %v2562_v58  ;;  %v1822_v41 = vadd.f32 %v1802_v52, %v1708_v5 }
 0x1a5   : > { %v1804_v59 = vpop.f32.mrf.mxu2 }
 0x1a9   : > { %v1690_v46 = vpop.f32.mrf.mxu1 }
 0x1aa   : > { %v2046_v10 = vpop.f32.mrf.mxu0  ;;  %v1709_v21 = vadd.f32 %v4997_v40, %v1690_v46 }
 0x1ac   : > { %v1823_v62 = vadd.f32 %v1804_v59, %v1709_v21 }
 0x1ad   : > { %v1807_v22 = vpop.f32.mrf.mxu2 }
 0x1af   : > { %v1924_v54 = vpop.f32.mrf.mxu3 }
 0x1b0   : > { %v1944_v17 = vadd.f32 %v1924_v54, %v1822_v41 }
 0x1b1   : > { %v1693_v25 = vpop.f32.mrf.mxu1 }
 0x1b2   : > { %v2048_v47 = vpop.f32.mrf.mxu0  ;;  %v1710_v33 = vadd.f32 %v4997_v40, %v1693_v25  ;;  %v2066_v48 = vadd.f32 %v2046_v10, %v1944_v17  ;;  %v2697_v17 = vld [vmem:[%s5137_s6 + $0x78] sm:$0xff]  ;;  %v2696_v25 = vld [vmem:[%s5137_s6 + $0x70] sm:$0xff] }
 0x1b3   : > { %2698 = vmatpush.msrb.mxu2 %v2697_v17 }
 0x1b4   : > { %2644 = vmatmul.bf16.gmra.mxu1 %v2563_v4  ;;  %v1824_v29 = vadd.f32 %v1807_v22, %v1710_v33 }
 0x1b5   : > { %v1809_v58 = vpop.f32.mrf.mxu2  ;;  %2699 = vmatpush.msrb.mxu2 %v2696_v25 }
 0x1b7   : > { %v1926_v43 = vpop.f32.mrf.mxu3 }
 0x1b8   : > { %v1945_v26 = vadd.f32 %v1926_v43, %v1823_v62  ;;  %v2694_v43 = vld [vmem:[%s5137_s6 + $0x60] sm:$0xff] }
 0x1b9   : > { %v1695_v31 = vpop.f32.mrf.mxu1 }
 0x1ba   : > { %v1711_v36 = vadd.f32 %v4997_v40, %v1695_v31  ;;  %v2067_v37 = vadd.f32 %v2048_v47, %v1945_v26  ;;  %v2051_v14 = vpop.f32.mrf.mxu0 }
 0x1bc   : > { %v1825_v2 = vadd.f32 %v1809_v58, %v1711_v36  ;;  %v2693_v36 = vld [vmem:[%s5137_s6 + $0x58] sm:$0xff] }
 0x1bd   : > { %v1812_v27 = vpop.f32.mrf.mxu2 }
 0x1bf   : > { %v1929_v13 = vpop.f32.mrf.mxu3 }
 0x1c0   : > { %v1946_v32 = vadd.f32 %v1929_v13, %v1824_v29  ;;  %v2695_v29 = vld [vmem:[%s5137_s6 + $0x68] sm:$0xff] }
 0x1c1   : > { %v1698_v44 = vpop.f32.mrf.mxu1  ;;  %2700 = vmatpush.msrb.mxu2 %v2695_v29 }
 0x1c2   : > { %v1712_v28 = vadd.f32 %v4997_v40, %v1698_v44  ;;  %v2068_v9 = vadd.f32 %v2051_v14, %v1946_v32  ;;  %v2053_v24 = vpop.f32.mrf.mxu0  ;;  %v2691_v32 = vld [vmem:[%s5137_s6 + $0x48] sm:$0xff]  ;;  %v2690_v44 = vld [vmem:[%s5137_s6 + $0x40] sm:$0xff] }
 0x1c3   : > { %2701 = vmatpush.msrb.mxu2 %v2694_v43 }
 0x1c4   : > { %2649 = vmatmul.bf16.gmra.mxu1 %v2564_v63  ;;  %v1826_v3 = vadd.f32 %v1812_v27, %v1712_v28  ;;  %v2565_v63 = vpack.c.bf16 %v2561_v38, %v2560_v50 }
 0x1c5   : > { %v1814_v57 = vpop.f32.mrf.mxu2  ;;  %2702 = vmatpush.msrb.mxu2 %v2693_v36 }
 0x1c7   : > { %v1931_v4 = vpop.f32.mrf.mxu3 }
 0x1c8   : > { %v1947_v34 = vadd.f32 %v1931_v4, %v1825_v2  ;;  %v2688_v4 = vld [vmem:[%s5137_s6 + $0x30] sm:$0xff] }
 0x1c9   : > { %v1700_v15 = vpop.f32.mrf.mxu1 }
 0x1ca   : > { %v1713_v45 = vadd.f32 %v4997_v40, %v1700_v15  ;;  %v2069_v8 = vadd.f32 %v2053_v24, %v1947_v34  ;;  %v2056_v6 = vpop.f32.mrf.mxu0  ;;  %v2689_v24 = vld [vmem:[%s5137_s6 + $0x38] sm:$0xff] }
 0x1cc   : > { %v1827_v7 = vadd.f32 %v1814_v57, %v1713_v45  ;;  %v2687_v57 = vld [vmem:[%s5137_s6 + $0x28] sm:$0xff] }
 0x1cd   : > { %v1817_v11 = vpop.f32.mrf.mxu2 }
 0x1cf   : > { %v1934_v18 = vpop.f32.mrf.mxu3 }
 0x1d0   : > { %v1948_v55 = vadd.f32 %v1934_v18, %v1826_v3 }
 0x1d1   : > { %v5017_v49 = vpop.f32.mrf.mxu1 }
 0x1d2   : > { %v2070_v12 = vadd.f32 %v2056_v6, %v1948_v55  ;;  %v2058_v1 = vpop.f32.mrf.mxu0  ;;  %v1714_v6 = vadd.f32 %v4997_v40, %v5017_v49 }
 0x1d4   : > { %2654 = vmatmul.bf16.gmra.mxu1 %v2565_v63  ;;  %v1828_v55 = vadd.f32 %v1817_v11, %v1714_v6 }
 0x1d5   : > { %v1819_v5 = vpop.f32.mrf.mxu2 }
 0x1d7   : > { %v1936_v61 = vpop.f32.mrf.mxu3 }
 0x1d8   : > { %v1949_v60 = vadd.f32 %v1936_v61, %v1827_v7 }
 0x1d9   : > { %v5019_v19 = vpop.f32.mrf.mxu1 }
 0x1da   : > { %v2071_v20 = vadd.f32 %v2058_v1, %v1949_v60  ;;  %v5029_v51 = vpop.f32.mrf.mxu0  ;;  %v1715_v63 = vadd.f32 %v4997_v40, %v5019_v19 }
 0x1dd   : > { %v2282_v62 = vpop.f32.mrf.mxu2 }
 0x1df   : > { %v1939_v16 = vpop.f32.mrf.mxu3 }
 0x1e0   : > { %v1950_v61 = vadd.f32 %v1939_v16, %v1828_v55 }
 0x1e1   : > { %v2160_v30 = vpop.f32.mrf.mxu1 }
 0x1e2   : > { %v5021_v42 = vadd.f32 %v2160_v30, %v2066_v48  ;;  %v5035_v10 = vpop.f32.mrf.mxu0  ;;  %v2072_v16 = vadd.f32 %v5029_v51, %v1950_v61  ;;  %v2682_v51 = vld [vmem:[%s5137_s6] sm:$0xff] }
 0x1e4   : > { %v2302_v30 = vadd.f32 %v2282_v62, %v5021_v42  ;;  %v2684_v42 = vld [vmem:[%s5137_s6 + $0x10] sm:$0xff] }
 0x1e5   : > { %v2284_v48 = vpop.f32.mrf.mxu2 }
 0x1e7   : > { %v5031_v41 = vpop.f32.mrf.mxu3 }
 0x1e9   : > { %v2162_v39 = vpop.f32.mrf.mxu1 }
 0x1ea   : > { %v5023_v23 = vadd.f32 %v2162_v39, %v2067_v37  ;;  %v5045_v47 = vpop.f32.mrf.mxu0  ;;  %v2692_v37 = vld [vmem:[%s5137_s6 + $0x50] sm:$0xff]  ;;  %v2685_v39 = vld [vmem:[%s5137_s6 + $0x18] sm:$0xff] }
 0x1eb   : > { %2703 = vmatpush.msrb.mxu2 %v2692_v37 }
 0x1ec   : > { %v2303_v1 = vadd.f32 %v2284_v48, %v5023_v23 }
 0x1ed   : > { %v2287_v14 = vpop.f32.mrf.mxu2  ;;  %2704 = vmatpush.msrb.mxu2 %v2691_v32 }
 0x1ef   : > { %v2404_v54 = vpop.f32.mrf.mxu3  ;;  %2705 = vmatpush.msrb.mxu2 %v2690_v44 }
 0x1f0   : > { %v2424_v40 = vadd.f32 %v2404_v54, %v2302_v30 }
 0x1f1   : > { %v2165_v35 = vpop.f32.mrf.mxu1  ;;  %2706 = vmatpush.msrb.mxu2 %v2689_v24 }
 0x1f2   : > { %v5025_v0 = vadd.f32 %v2165_v35, %v2068_v9  ;;  %v2520_v31 = vpop.f32.mrf.mxu0  ;;  %v2538_v17 = vadd.f32 %v5045_v47, %v2424_v40 }
 0x1f3   : > { %2707 = vmatpush.msrb.mxu2 %v2688_v4 }
 0x1f4   : > { %v2304_v35 = vadd.f32 %v2287_v14, %v5025_v0 }
 0x1f5   : > { %v2289_v28 = vpop.f32.mrf.mxu2  ;;  %2708 = vmatpush.msrb.mxu2 %v2687_v57 }
 0x1f7   : > { %v2406_v58 = vpop.f32.mrf.mxu3  ;;  %2709 = vmatpush.msrb.mxu2 %v2686_v56 }
 0x1f8   : > { %v2425_v49 = vadd.f32 %v2406_v58, %v2303_v1 }
 0x1f9   : > { %v2167_v53 = vpop.f32.mrf.mxu1  ;;  %2710 = vmatpush.msrb.mxu2 %v2685_v39 }
 0x1fa   : > { %v5027_v52 = vadd.f32 %v2167_v53, %v2069_v8  ;;  %v2523_v27 = vpop.f32.mrf.mxu0 }
 0x1fb   : > { %2711 = vmatpush.msrb.mxu2 %v2684_v42 }
 0x1fc   : > { %v2305_v19 = vadd.f32 %v2289_v28, %v5027_v52  ;;  %v2539_v52 = vadd.f32 %v2520_v31, %v2425_v49 }
 0x1fd   : > { %v2292_v45 = vpop.f32.mrf.mxu2 }
 0x1ff   : > { %v2409_v2 = vpop.f32.mrf.mxu3 }
 0x201   : > { %v2170_v59 = vpop.f32.mrf.mxu1 }
 0x202   : > { %v5033_v46 = vadd.f32 %v2170_v59, %v2070_v12  ;;  %v2525_v34 = vpop.f32.mrf.mxu0 }
 0x204   : > { %v2306_v62 = vadd.f32 %v2292_v45, %v5033_v46 }
 0x205   : > { %v2294_v38 = vpop.f32.mrf.mxu2 }
 0x207   : > { %v2411_v9 = vpop.f32.mrf.mxu3 }
 0x208   : > { %v2427_v59 = vadd.f32 %v2411_v9, %v2305_v19 }
 0x209   : > { %v2172_v21 = vpop.f32.mrf.mxu1 }
 0x20a   : > { %v5037_v22 = vadd.f32 %v2172_v21, %v2071_v20  ;;  %v2528_v7 = vpop.f32.mrf.mxu0  ;;  %v1829_v20 = vadd.f32 %v1819_v5, %v1715_v63  ;;  %v2426_v5 = vadd.f32 %v2409_v2, %v2304_v35  ;;  %v2541_v46 = vadd.f32 %v2525_v34, %v2427_v59 }
 0x20c   : > { %v1951_v11 = vadd.f32 %v5031_v41, %v1829_v20  ;;  %v2683_v41 = vld [vmem:[%s5137_s6 + $0x8] sm:$0xff]  ;;  %v2307_v25 = vadd.f32 %v2294_v38, %v5037_v22  ;;  %v2540_v29 = vadd.f32 %v2523_v27, %v2426_v5 }
 0x20d   : > { %v2297_v53 = vpop.f32.mrf.mxu2  ;;  %2712 = vmatpush.msrb.mxu2 %v2683_v41 }
 0x20e   : > { %v2073_v54 = vadd.f32 %v5035_v10, %v1951_v11 }
 0x20f   : > { %v2414_v8 = vpop.f32.mrf.mxu3  ;;  %2713 = vmatpush.msrb.mxu2 %v2682_v51 }
 0x211   : > { %v5047_v33 = vpop.f32.mrf.mxu1 }
 0x212   : > { %v2530_v60 = vpop.f32.mrf.mxu0  ;;  %v2186_v0 = vadd.f32 %v5047_v33, %v2072_v16  ;;  %v2428_v33 = vadd.f32 %v2414_v8, %v2306_v62 }
 0x214   : > { %v2308_v43 = vadd.f32 %v2297_v53, %v2186_v0  ;;  %v2542_v22 = vadd.f32 %v2528_v7, %v2428_v33 }
 0x215   : > { %v2299_v2 = vpop.f32.mrf.mxu2 }
 0x217   : > { %v2416_v18 = vpop.f32.mrf.mxu3 }
 0x218   : > { %v2429_v31 = vadd.f32 %v2416_v18, %v2307_v25  ;;  %v5169_v25 = vld [vmem:[#allocation6_spill] sm:$0xff] }
 0x219   : > { %v5055_v26 = vpop.f32.mrf.mxu1 }
 0x21a   : > { %v2533_v58 = vpop.f32.mrf.mxu0  ;;  %v2187_v36 = vadd.f32 %v5055_v26, %v2073_v54  ;;  %v2543_v24 = vadd.f32 %v2530_v60, %v2429_v31 }
 0x21c   : > { %v2309_v9 = vadd.f32 %v2299_v2, %v2187_v36  ;;  %v5172_v36 = vld [vmem:[#allocation4_spill] sm:$0xff]  ;;  %v5173_v2 = vld [vmem:[#allocation5_spill] sm:$0xff] }
 0x21f   : > { %v2419_v23 = vpop.f32.mrf.mxu3 }
 0x220   : > { %v2430_v10 = vadd.f32 %v2419_v23, %v2308_v43 }
 0x221   : > { %v5063_v13 = vpop.f32.mrf.mxu1 }
 0x222   : > { %v2660_v37 = vadd.f32 %v5063_v13, %v2538_v17  ;;  %v2544_v8 = vadd.f32 %v2533_v58, %v2430_v10  ;;  %v2535_v13 = vpop.f32.mrf.mxu0  ;;  %v5171_v58 = vld [vmem:[#allocation3_spill] sm:$0xff] }
 0x227   : > { %v2421_v44 = vpop.f32.mrf.mxu3 }
 0x228   : > { %v2431_v4 = vadd.f32 %v2421_v44, %v2309_v9 }
 0x229   : > { %v2642_v3 = vpop.f32.mrf.mxu1 }
 0x22a   : > { %v5110_v48 = vadd.f32 %v2642_v3, %v2539_v52  ;;  %v2545_v56 = vadd.f32 %v2535_v13, %v2431_v4 }
 0x22c   : > { %v2668_v47 = vadd.f32 %v5110_v48, %v2660_v37 }
 0x231   : > { %v2645_v15 = vpop.f32.mrf.mxu1 }
 0x232   : > { %v2662_v14 = vadd.f32 %v2645_v15, %v2540_v29  ;;  %v5170_v29 = vld [vmem:[#allocation9_spill] sm:$0xff] }
 0x234   : > { %v2669_v27 = vadd.f32 %v2668_v47, %v2662_v14  ;;  %v5175_v47 = vld [vmem:[#allocation8_spill] sm:$0xff] }
 0x239   : > { %v2647_v50 = vpop.f32.mrf.mxu1 }
 0x23a   : > { %v2663_v32 = vadd.f32 %v2647_v50, %v2541_v46 }
 0x23c   : > { %v2670_v34 = vadd.f32 %v2669_v27, %v2663_v32 }
 0x241   : > { %v2650_v12 = vpop.f32.mrf.mxu1 }
 0x242   : > { %v2664_v3 = vadd.f32 %v2650_v12, %v2542_v22  ;;  %v5176_v22 = vld [vmem:[#allocation11_spill] sm:$0xff] }
 0x244   : > { %v2671_v26 = vadd.f32 %v2670_v34, %v2664_v3 }
 0x249   : > { %v2652_v21 = vpop.f32.mrf.mxu1 }
 0x24a   : > { %v2665_v45 = vadd.f32 %v2652_v21, %v2543_v24 }
 0x24c   : > { %v2672_v15 = vadd.f32 %v2671_v26, %v2665_v45 }
 0x251   : > { %v2655_v28 = vpop.f32.mrf.mxu1 }
 0x252   : > { %v2666_v57 = vadd.f32 %v2655_v28, %v2544_v8 }
 0x254   : > { %v2673_v6 = vadd.f32 %v2672_v15, %v2666_v57 }
 0x259   : > { %v2657_v38 = vpop.f32.mrf.mxu1 }
 0x25a   : > { %v2667_v18 = vadd.f32 %v2657_v38, %v2545_v56 }
 0x25c   : > { %v2674_v50 = vadd.f32 %v2673_v6, %v2667_v18 }
 0x25e   : > { %v2675_v7 = vrot.slane %v2674_v50, 4 }
 0x260   : > { %v2676_v55 = vadd.f32 %v2675_v7, %v2674_v50 }
 0x262   : > { %v2677_v63 = vrot.slane %v2676_v55, 2 }
 0x264   : > { %v2678_v61 = vadd.f32 %v2677_v63, %v2676_v55 }
 0x266   : > { %v2679_v1 = vrot.slane %v2678_v61, 1 }
 0x268   : > { %v2680_v12 = vadd.f32 %v2679_v1, %v2678_v61 }
 0x26a   : > { %v2681_v60 = vmul.f32 0.015625, %v2680_v12 }
 0x26c   : > { %2714 = vmatmul.f32.vlgmr.msrb.gmra.mxu2 %v2681_v60 }
 0x2ef   : > { %v2715_v20 = vpop.f32.mrf.mxu2 }
 0x2f0   : > { %v3688_v30 = vmul.f32 -1.442695, %v2715_v20 }
 0x2f2   : > { %3865 = vpow2.f32 %v3688_v30 }
 0x2f8   : > { %v3866_v39 = vpop.eup %3865 }
 0x2f9   : > { %v2721_v35 = vadd.f32 1.0, %v3866_v39 }
 0x2fb   : > { %3867 = vrcp.f32 %v2721_v35  ;;  %v2733_v40 = vand.u32 2147483648, %v2721_v35  ;;  %v2731_v16 = vand.u32 2147483647, %v2721_v35  ;;  %vm2727_vm1 = vweird.f32 %v2721_v35 }
 0x2fd   : > { %v2734_v42 = vor.u32 1.1754944e-38, %v2733_v40  ;;  %vm2732_vm3 = vcmp.eq.f32.partialorder %v2731_v16, 8.507059e+37 }
 0x301   : > { %v3868_v49 = vpop.eup %3867 }
 0x302   : > { %v2723_v53 = vmul.f32 %v3868_v49, %v2721_v35  ;;  %vm2728_vm0 = vweird.f32 %v3868_v49 }
 0x303   : > { %vm2729_vm2 = vmor %vm2727_vm1, %vm2728_vm0 }
 0x304   : > { %v2724_v11 = vsub.f32 1.0, %v2723_v53 }
 0x306   : > { %v2725_v19 = vmul.f32 %v3868_v49, %v2724_v11 }
 0x308   : > { %v2726_v23 = vadd.f32 %v3868_v49, %v2725_v19 }
 0x30a   : > { %v2730_v5 = vsel %vm2729_vm2, %v3868_v49, %v2726_v23 }
 0x30b   : > { %v2735_v59 = vsel %vm2732_vm3, %v2734_v42, %v2730_v5 }
 0x30c   : > { %v2737_v0 = vperm.slane %v2735_v59, 0 }
 0x30e   : > { %v2738_v21 = vmul.f32 %v2737_v0, %v2660_v37  ;;  %v2739_v41 = vmul.f32 %v2737_v0, %v5110_v48  ;;  %v2740_v62 = vmul.f32 %v2737_v0, %v2662_v14  ;;  %v2741_v52 = vmul.f32 %v2737_v0, %v2663_v32  ;;  %v5174_v14 = vld [vmem:[#allocation7_spill] sm:$0xff] }
 0x30f   : > { %v2742_v51 = vmul.f32 %v2737_v0, %v2664_v3  ;;  %v2743_v54 = vmul.f32 %v2737_v0, %v2665_v45  ;;  %v2744_v17 = vmul.f32 %v2737_v0, %v2666_v57  ;;  %v2745_v31 = vmul.f32 %v2737_v0, %v2667_v18 }
 0x310   : > { %v2746_v33 = vadd.f32 %v2738_v21, %v5169_v25  ;;  %v2747_v43 = vadd.f32 %v2739_v41, %v5170_v29  ;;  %v2748_v46 = vadd.f32 %v2740_v62, %v5171_v58  ;;  %v2749_v37 = vadd.f32 %v2741_v52, %v5172_v36 }
 0x311   : > { %v2750_v48 = vadd.f32 %v2742_v51, %v5173_v2  ;;  %v2751_v10 = vadd.f32 %v2743_v54, %v5174_v14  ;;  %v2752_v32 = vadd.f32 %v2744_v17, %v5175_v47  ;;  %v2753_v44 = vadd.f32 %v2745_v31, %v5176_v22 }
 0x312   : > { %2754 = vst [vmem:[%s298_s30] sm:$0xff] %v2746_v33 }
 0x313   : > { %2755 = vst [vmem:[%s298_s30 + $0x8] sm:$0xff] %v2747_v43 }
 0x314   : > { %2756 = vst [vmem:[%s298_s30 + $0x10] sm:$0xff] %v2748_v46 }
 0x315   : > { %2757 = vst [vmem:[%s298_s30 + $0x18] sm:$0xff] %v2749_v37 }
 0x316   : > { %2758 = vst [vmem:[%s298_s30 + $0x20] sm:$0xff] %v2750_v48 }
 0x317   : > { %2759 = vst [vmem:[%s298_s30 + $0x28] sm:$0xff] %v2751_v10 }
 0x318   : > { %2760 = vst [vmem:[%s298_s30 + $0x30] sm:$0xff] %v2752_v32 }
 0x319   : > { %2761 = vst [vmem:[%s298_s30 + $0x38] sm:$0xff] %v2753_v44 }
 0x31a PF: > { %s17_s24 = sadd.s32 1, %s3876_s24  }
 0x31b   : > { %p14_p4 = scmp.ge.s32.totalorder %s17_s24, 4  }
 0x31d   :  { %16 = sbr.rel (!%p14_p4) target bundleno = 1 (0x1), region = 97 }

</bundles_post_ra>
